<compile_context>
chip_gen: v7x
topology: tpu7x:2x2x1
jax: 0.10.0
libtpu: 0.0.40
codegen_flags: <defaults>
</compile_context>

<pallas_src>
import math

import jax
import jax.numpy as jnp
from jax.experimental import pallas as pl
from jax.experimental.pallas import tpu as pltpu

# ----------------------------------------------------------------------------
# Synthetic hyper-parameters (small shapes, consistent with the module's math).
# ----------------------------------------------------------------------------
XQUANTIZE = 16
YQUANTIZE = 16
DENSE_ENCODER_LAYER_DESCRIPTION = [
    'conv', 'dense', 'transition', 'dense', 'transition', 'linear', 'linear last'
]
DENSE_INIT_CONV_LAYER = (1, 4, 3, 1, 1)      # (in_ch, out_ch, kernel, stride, padding)
DENSE_DEPTHS = [2, 2]
DENSE_GROWTH_RATES = [4, 4]
DENSE_ENCODER_KERNEL_SIZE = [3, 3]
DENSE_ENCODER_STRIDES = [1, 1]
DENSE_ENCODER_PADDING = [1, 1]
DENSE_REDUCTION_RATES = [0.5, 0.5]
DENSE_ENCODER_MAX_POOL_SIZE = [2, 2]
ENCODER_FC_LAYERS = [32, 16]

# ---- static shape constants derived from the configuration ------------------
_H1 = XQUANTIZE                                          # 16 : conv0 / dense1 / trans1-conv
_H2 = _H1 // DENSE_ENCODER_MAX_POOL_SIZE[0]              # 8  : after first maxpool
_H3 = _H2 // DENSE_ENCODER_MAX_POOL_SIZE[1]              # 4  : after second maxpool
_C0 = DENSE_INIT_CONV_LAYER[1]                           # 4
_G0 = DENSE_GROWTH_RATES[0]                              # 4
_G1 = DENSE_GROWTH_RATES[1]                              # 4
_C1 = _C0 + DENSE_DEPTHS[0] * _G0                        # 12 : after dense block 1
_T1 = math.floor(_C1 * DENSE_REDUCTION_RATES[0])         # 6  : after transition 1
_C2 = _T1 + DENSE_DEPTHS[1] * _G1                        # 14 : after dense block 2
_T2 = math.floor(_C2 * DENSE_REDUCTION_RATES[1])         # 7  : after transition 2
_CMAX = max(_T1, _T2)                                    # 7
_FLAT = _H3 * _H3 * _T2                                  # 112 : FC1 fan-in


def compute_dim_sizes():
    """Mirror of DenseEncoderVAE.compute_dim_sizes."""
    x_dim, y_dim = XQUANTIZE, YQUANTIZE
    channels = DENSE_INIT_CONV_LAYER[1]
    dense_idx = trans_idx = 0
    for action in DENSE_ENCODER_LAYER_DESCRIPTION:
        if 'conv' in action:
            k, s, p = DENSE_INIT_CONV_LAYER[2], DENSE_INIT_CONV_LAYER[3], DENSE_INIT_CONV_LAYER[4]
            x_dim = int((x_dim - (k - s) + 2 * p) / s)
            y_dim = int((y_dim - (k - s) + 2 * p) / s)
        elif 'dense' in action:
            channels += DENSE_GROWTH_RATES[dense_idx] * DENSE_DEPTHS[dense_idx]
            dense_idx += 1
        elif 'transition' in action:
            channels = math.floor(channels * DENSE_REDUCTION_RATES[trans_idx])
            x_dim = int(x_dim / DENSE_ENCODER_MAX_POOL_SIZE[trans_idx])
            y_dim = int(y_dim / DENSE_ENCODER_MAX_POOL_SIZE[trans_idx])
            trans_idx += 1
    return x_dim, y_dim, channels


# ----------------------------------------------------------------------------
# Fused Pallas kernel: one batch element per grid step.
# ----------------------------------------------------------------------------
def _fused_encoder_kernel(
        # inputs
        x_ref,
        w0_ref, b0_ref,
        wd11_ref, bd11_ref, wd12_ref, bd12_ref,
        wt1_ref, bt1_ref,
        wd21_ref, bd21_ref, wd22_ref, bd22_ref,
        wt2_ref, bt2_ref,
        wf1_ref, bf1_ref, wf2_ref, bf2_ref,
        # output
        o_ref,
        # VMEM scratch
        xpad, buf1, buf2, tbuf, hbuf, flat):
    """Whole DenseEncoderVAE forward for one sample; activations stay in VMEM."""
    f32 = jnp.float32

    def conv3x3_relu(src, c_in, hw, w_ref, b_ref):
        # im2col: the 9 shifted windows concatenated on the channel (lane) axis,
        # then ONE MXU matmul with K = 9 * c_in (instead of 9 K<=14 matmuls).
        patches = [src[kh:kh + hw, kw:kw + hw, 0:c_in]
                   for kh in range(3) for kw in range(3)]
        pm = jnp.concatenate(patches, axis=-1).reshape(hw * hw, 9 * c_in)
        y = jnp.dot(pm, w_ref[...], preferred_element_type=f32) + b_ref[...]
        return jnp.maximum(y, 0.0)                       # (hw*hw, c_out)

    def maxpool2x2(hw, c):
        # 2x2 / stride-2 max pool of tbuf[0:hw, 0:hw, 0:c] with strided reads
        # (no 64-way unrolled per-pixel masked stores).
        half = hw // 2
        hm = jnp.maximum(tbuf[pl.ds(0, half, stride=2), 0:hw, 0:c],
                         tbuf[pl.ds(1, half, stride=2), 0:hw, 0:c])   # (half, hw, c)
        hbuf[0:half, 0:hw, 0:c] = hm
        return jnp.maximum(hbuf[0:half, pl.ds(0, half, stride=2), 0:c],
                           hbuf[0:half, pl.ds(1, half, stride=2), 0:c])  # (half, half, c)

    # Zero the padded buffers; the untouched 1-pixel borders are the convs'
    # zero padding (fused jnp.pad).  Interiors are fully overwritten below.
    xpad[...] = jnp.zeros_like(xpad)
    buf1[...] = jnp.zeros_like(buf1)
    buf2[...] = jnp.zeros_like(buf2)

    # ---- init ConvBlock: Cin -> 4 channels @ 16x16 ---------------------------
    xpad[1:1 + _H1, 1:1 + _H1, :] = x_ref[0]
    y = conv3x3_relu(xpad, DENSE_INIT_CONV_LAYER[0], _H1, w0_ref, b0_ref)
    buf1[1:1 + _H1, 1:1 + _H1, 0:_C0] = y.reshape(_H1, _H1, _C0)

    # ---- DenseBlock 1: concat fused as channel-slice writes into buf1 --------
    y = conv3x3_relu(buf1, _C0, _H1, wd11_ref, bd11_ref)
    buf1[1:1 + _H1, 1:1 + _H1, _C0:_C0 + _G0] = y.reshape(_H1, _H1, _G0)
    y = conv3x3_relu(buf1, _C0 + _G0, _H1, wd12_ref, bd12_ref)
    buf1[1:1 + _H1, 1:1 + _H1, _C0 + _G0:_C1] = y.reshape(_H1, _H1, _G0)

    # ---- DenseTransitionBlock 1: conv 12->6, ReLU, maxpool -> 8x8x6 ----------
    y = conv3x3_relu(buf1, _C1, _H1, wt1_ref, bt1_ref)
    tbuf[0:_H1, 0:_H1, 0:_T1] = y.reshape(_H1, _H1, _T1)
    buf2[1:1 + _H2, 1:1 + _H2, 0:_T1] = maxpool2x2(_H1, _T1)

    # ---- DenseBlock 2 ---------------------------------------------------------
    y = conv3x3_relu(buf2, _T1, _H2, wd21_ref, bd21_ref)
    buf2[1:1 + _H2, 1:1 + _H2, _T1:_T1 + _G1] = y.reshape(_H2, _H2, _G1)
    y = conv3x3_relu(buf2, _T1 + _G1, _H2, wd22_ref, bd22_ref)
    buf2[1:1 + _H2, 1:1 + _H2, _T1 + _G1:_C2] = y.reshape(_H2, _H2, _G1)

    # ---- DenseTransitionBlock 2: conv 14->7, ReLU, maxpool -> 4x4x7 ----------
    y = conv3x3_relu(buf2, _C2, _H2, wt2_ref, bt2_ref)
    tbuf[0:_H2, 0:_H2, 0:_T2] = y.reshape(_H2, _H2, _T2)
    pooled = maxpool2x2(_H2, _T2)                        # (_H3, _H3, _T2)

    # ---- flatten into one lane-dense (1, 112) row in (h, w, c) order.
    #      PyTorch's NCHW .view ordering is baked into wf1's row permutation.
    for h in range(_H3):
        for w in range(_H3):
            c0 = (h * _H3 + w) * _T2
            flat[0:1, c0:c0 + _T2] = pooled[h:h + 1, w:w + 1, :].reshape(1, _T2)

    # ---- fused FC chain: 112 -> 32 (ReLU) -> 16 -------------------------------
    y1 = jnp.dot(flat[...], wf1_ref[...], preferred_element_type=f32) + bf1_ref[...]
    y1 = jnp.maximum(y1, 0.0)
    y2 = jnp.dot(y1, wf2_ref[...], preferred_element_type=f32) + bf2_ref[...]
    o_ref[...] = y2.reshape(o_ref.shape).astype(o_ref.dtype)


# ----------------------------------------------------------------------------
# Parameter construction (mirrors DenseEncoderVAE.__init__; PyTorch-style init).
# Conv weights are stored directly in im2col layout (9*Cin, Cout); the first FC
# weight carries the NCHW-flatten row permutation.
# ----------------------------------------------------------------------------
def _conv_init(key, cin, cout, k=3):
    kw_, kb_ = jax.random.split(key)
    bound = 1.0 / math.sqrt(cin * k * k)
    w = jax.random.uniform(kw_, (k, k, cin, cout), jnp.float32, -bound, bound)
    b = jax.random.uniform(kb_, (cout,), jnp.float32, -bound, bound)
    return w.reshape(k * k * cin, cout), b.reshape(1, cout)


def _fc_init(key, din, dout):
    kw_, kb_ = jax.random.split(key)
    bound = 1.0 / math.sqrt(din)
    w = jax.random.uniform(kw_, (din, dout), jnp.float32, -bound, bound)
    b = jax.random.uniform(kb_, (dout,), jnp.float32, -bound, bound)
    return w, b.reshape(1, dout)


def build_params(key):
    x_dim, y_dim, out_ch = compute_dim_sizes()
    assert (x_dim, y_dim, out_ch) == (_H3, _H3, _T2)
    assert x_dim * y_dim * out_ch == _FLAT

    keys = iter(jax.random.split(key, 16))
    conv_shapes = [
        (DENSE_INIT_CONV_LAYER[0], _C0),        # init conv
        (_C0, _G0), (_C0 + _G0, _G0),           # dense block 1 (depth 2)
        (_C1, _T1),                             # transition 1
        (_T1, _G1), (_T1 + _G1, _G1),           # dense block 2 (depth 2)
        (_C2, _T2),                             # transition 2
    ]
    params = []
    for cin, cout in conv_shapes:
        params.extend(_conv_init(next(keys), cin, cout))

    # FC1: generate in PyTorch (c, h, w)-flatten row order, then permute rows to
    # the kernel's (h, w, c) order so no runtime transpose/reshape is needed.
    w1, b1 = _fc_init(next(keys), _FLAT, ENCODER_FC_LAYERS[0])
    w1 = (w1.reshape(_T2, _H3, _H3, ENCODER_FC_LAYERS[0])
            .transpose(1, 2, 0, 3)
            .reshape(_FLAT, ENCODER_FC_LAYERS[0]))
    params.extend([w1, b1])

    w2, b2 = _fc_init(next(keys), ENCODER_FC_LAYERS[0], ENCODER_FC_LAYERS[1])
    params.extend([w2, b2])
    return tuple(params)


# ----------------------------------------------------------------------------
# Public forward (mirrors DenseEncoderVAE.forward): ONE pallas_call.
# ----------------------------------------------------------------------------
def dense_encoder_vae_forward(params, x_nchw):
    n = x_nchw.shape[0]
    # NCHW -> NHWC (Cin = 1 here, so this is a free reshape in XLA).
    x_nhwc = jnp.transpose(x_nchw.astype(jnp.float32), (0, 2, 3, 1))

    def _full(shape):
        zeros = (0,) * len(shape)
        return pl.BlockSpec(shape, lambda i, _z=zeros: _z)

    in_specs = [pl.BlockSpec((1, XQUANTIZE, YQUANTIZE, DENSE_INIT_CONV_LAYER[0]),
                             lambda i: (i, 0, 0, 0))]
    in_specs += [_full(p.shape) for p in params]

    out = pl.pallas_call(
        _fused_encoder_kernel,
        out_shape=jax.ShapeDtypeStruct((n, 1, ENCODER_FC_LAYERS[-1]), jnp.float32),
        grid_spec=pltpu.PrefetchScalarGridSpec(
            num_scalar_prefetch=0,
            grid=(n,),
            in_specs=in_specs,
            out_specs=pl.BlockSpec((1, 1, ENCODER_FC_LAYERS[-1]),
                                   lambda i: (i, 0, 0)),
            scratch_shapes=[
                pltpu.VMEM((_H1 + 2, _H1 + 2, DENSE_INIT_CONV_LAYER[0]), jnp.float32),  # xpad
                pltpu.VMEM((_H1 + 2, _H1 + 2, _C1), jnp.float32),                       # buf1
                pltpu.VMEM((_H2 + 2, _H2 + 2, _C2), jnp.float32),                       # buf2
                pltpu.VMEM((_H1, _H1, _CMAX), jnp.float32),                             # tbuf
                pltpu.VMEM((_H1 // 2, _H1, _CMAX), jnp.float32),                        # hbuf
                pltpu.VMEM((1, _FLAT), jnp.float32),                                    # flat
            ]),
        compiler_params=pltpu.CompilerParams(
            dimension_semantics=("parallel",)),          # v7x: batch across both TCs
    )(x_nhwc, *params)
    return out.reshape(n, ENCODER_FC_LAYERS[-1])


# ----------------------------------------------------------------------------
# Pure-JAX reference (same parameters / layout) used for a correctness check.
# ----------------------------------------------------------------------------
def _reference_forward(params, x_nchw):
    (w0, b0, wd11, bd11, wd12, bd12, wt1, bt1,
     wd21, bd21, wd22, bd22, wt2, bt2, wf1, bf1, wf2, bf2) = params
    hp = jax.lax.Precision.HIGHEST

    def conv(x, w, b):
        _, hh, ww, _ = x.shape
        xp = jnp.pad(x, ((0, 0), (1, 1), (1, 1), (0, 0)))
        pm = jnp.concatenate(
            [xp[:, kh:kh + hh, kw:kw + ww, :] for kh in range(3) for kw in range(3)],
            axis=-1)
        y = jnp.einsum('nhwk,ko->nhwo', pm, w, precision=hp) + b
        return jnp.maximum(y, 0.0)

    def pool(x):
        nb, hh, ww, c = x.shape
        return x.reshape(nb, hh // 2, 2, ww // 2, 2, c).max(axis=(2, 4))

    x = jnp.transpose(x_nchw.astype(jnp.float32), (0, 2, 3, 1))
    x = conv(x, w0, b0)
    for (w, b) in ((wd11, bd11), (wd12, bd12)):
        x = jnp.concatenate([x, conv(x, w, b)], axis=-1)
    x = pool(conv(x, wt1, bt1))
    for (w, b) in ((wd21, bd21), (wd22, bd22)):
        x = jnp.concatenate([x, conv(x, w, b)], axis=-1)
    x = pool(conv(x, wt2, bt2))
    x = x.reshape(x.shape[0], -1)          # (h, w, c) order; matches permuted wf1
    x = jnp.maximum(jnp.dot(x, wf1, precision=hp) + bf1, 0.0)
    return jnp.dot(x, wf2, precision=hp) + bf2


if __name__ == "__main__":
    key = jax.random.PRNGKey(0)
    pkey, xkey = jax.random.split(key)
    params = build_params(pkey)
    x = jax.random.normal(
        xkey, (2, DENSE_INIT_CONV_LAYER[0], XQUANTIZE, YQUANTIZE), jnp.float32)

    fwd = jax.jit(dense_encoder_vae_forward)
    out = jax.block_until_ready(fwd(params, x))

    assert out.shape == (2, ENCODER_FC_LAYERS[-1]), out.shape
    assert bool(jnp.all(jnp.isfinite(out)))

    ref = _reference_forward(params, x)
    max_err = float(jnp.max(jnp.abs(out - ref)))
    assert bool(jnp.allclose(out, ref, rtol=2e-3, atol=2e-3)), max_err

    print("KERNEL_OK")
</pallas_src>

<mosaic_0001>
module attributes {stable_mosaic.version = 11 : i64} {
  func.func @_fused_encoder_kernel(%arg0: i32, %arg1: memref<1x16x16x1xf32, #tpu.memory_space<vmem>>, %arg2: memref<9x4xf32, #tpu.memory_space<vmem>>, %arg3: memref<1x4xf32, #tpu.memory_space<vmem>>, %arg4: memref<36x4xf32, #tpu.memory_space<vmem>>, %arg5: memref<1x4xf32, #tpu.memory_space<vmem>>, %arg6: memref<72x4xf32, #tpu.memory_space<vmem>>, %arg7: memref<1x4xf32, #tpu.memory_space<vmem>>, %arg8: memref<108x6xf32, #tpu.memory_space<vmem>>, %arg9: memref<1x6xf32, #tpu.memory_space<vmem>>, %arg10: memref<54x4xf32, #tpu.memory_space<vmem>>, %arg11: memref<1x4xf32, #tpu.memory_space<vmem>>, %arg12: memref<90x4xf32, #tpu.memory_space<vmem>>, %arg13: memref<1x4xf32, #tpu.memory_space<vmem>>, %arg14: memref<126x7xf32, #tpu.memory_space<vmem>>, %arg15: memref<1x7xf32, #tpu.memory_space<vmem>>, %arg16: memref<112x32xf32, #tpu.memory_space<vmem>>, %arg17: memref<1x32xf32, #tpu.memory_space<vmem>>, %arg18: memref<32x16xf32, #tpu.memory_space<vmem>>, %arg19: memref<1x16xf32, #tpu.memory_space<vmem>>, %arg20: memref<1x1x16xf32, #tpu.memory_space<vmem>>, %arg21: memref<18x18x1xf32, #tpu.memory_space<vmem>>, %arg22: memref<18x18x12xf32, #tpu.memory_space<vmem>>, %arg23: memref<10x10x14xf32, #tpu.memory_space<vmem>>, %arg24: memref<16x16x7xf32, #tpu.memory_space<vmem>>, %arg25: memref<8x16x7xf32, #tpu.memory_space<vmem>>, %arg26: memref<1x112xf32, #tpu.memory_space<vmem>>) attributes {dimension_semantics = [#tpu.dimension_semantics<parallel>], iteration_bounds = array<i64: 2>, scalar_prefetch = 0 : i64, scratch_operands = 6 : i64, tpu.core_type = #tpu.core_type<tc>, window_params = [{transform_indices = @transform_0, window_bounds = array<i64: 1, 16, 16, 1>}, {pipeline_mode = #tpu.pipeline_mode<synchronous>, transform_indices = @transform_1, window_bounds = array<i64: 9, 4>}, {pipeline_mode = #tpu.pipeline_mode<synchronous>, transform_indices = @transform_2, window_bounds = array<i64: 1, 4>}, {pipeline_mode = #tpu.pipeline_mode<synchronous>, transform_indices = @transform_3, window_bounds = array<i64: 36, 4>}, {pipeline_mode = #tpu.pipeline_mode<synchronous>, transform_indices = @transform_4, window_bounds = array<i64: 1, 4>}, {pipeline_mode = #tpu.pipeline_mode<synchronous>, transform_indices = @transform_5, window_bounds = array<i64: 72, 4>}, {pipeline_mode = #tpu.pipeline_mode<synchronous>, transform_indices = @transform_6, window_bounds = array<i64: 1, 4>}, {pipeline_mode = #tpu.pipeline_mode<synchronous>, transform_indices = @transform_7, window_bounds = array<i64: 108, 6>}, {pipeline_mode = #tpu.pipeline_mode<synchronous>, transform_indices = @transform_8, window_bounds = array<i64: 1, 6>}, {pipeline_mode = #tpu.pipeline_mode<synchronous>, transform_indices = @transform_9, window_bounds = array<i64: 54, 4>}, {pipeline_mode = #tpu.pipeline_mode<synchronous>, transform_indices = @transform_10, window_bounds = array<i64: 1, 4>}, {pipeline_mode = #tpu.pipeline_mode<synchronous>, transform_indices = @transform_11, window_bounds = array<i64: 90, 4>}, {pipeline_mode = #tpu.pipeline_mode<synchronous>, transform_indices = @transform_12, window_bounds = array<i64: 1, 4>}, {pipeline_mode = #tpu.pipeline_mode<synchronous>, transform_indices = @transform_13, window_bounds = array<i64: 126, 7>}, {pipeline_mode = #tpu.pipeline_mode<synchronous>, transform_indices = @transform_14, window_bounds = array<i64: 1, 7>}, {pipeline_mode = #tpu.pipeline_mode<synchronous>, transform_indices = @transform_15, window_bounds = array<i64: 112, 32>}, {pipeline_mode = #tpu.pipeline_mode<synchronous>, transform_indices = @transform_16, window_bounds = array<i64: 1, 32>}, {pipeline_mode = #tpu.pipeline_mode<synchronous>, transform_indices = @transform_17, window_bounds = array<i64: 32, 16>}, {pipeline_mode = #tpu.pipeline_mode<synchronous>, transform_indices = @transform_18, window_bounds = array<i64: 1, 16>}, {transform_indices = @transform_19, window_bounds = array<i64: 1, 1, 16>}]} {
    %cst = arith.constant 0.000000e+00 : f32
    %0 = vector.broadcast %cst : f32 to vector<18x18x1xf32>
    %c0 = arith.constant 0 : index
    %c0_0 = arith.constant 0 : index
    %c0_1 = arith.constant 0 : index
    %1 = vector.load %arg21[%c0, %c0_0, %c0_1] : memref<18x18x1xf32, #tpu.memory_space<vmem>>, vector<18x18x1xf32>
    tpu.vector_store %arg21[%c0, %c0_0, %c0_1], %0 {strides = array<i32>} : memref<18x18x1xf32, #tpu.memory_space<vmem>>, vector<18x18x1xf32>,
    %cst_2 = arith.constant 0.000000e+00 : f32
    %2 = vector.broadcast %cst_2 : f32 to vector<18x18x12xf32>
    %c0_3 = arith.constant 0 : index
    %c0_4 = arith.constant 0 : index
    %c0_5 = arith.constant 0 : index
    %3 = vector.load %arg22[%c0_3, %c0_4, %c0_5] : memref<18x18x12xf32, #tpu.memory_space<vmem>>, vector<18x18x12xf32>
    tpu.vector_store %arg22[%c0_3, %c0_4, %c0_5], %2 {strides = array<i32>} : memref<18x18x12xf32, #tpu.memory_space<vmem>>, vector<18x18x12xf32>,
    %cst_6 = arith.constant 0.000000e+00 : f32
    %4 = vector.broadcast %cst_6 : f32 to vector<10x10x14xf32>
    %c0_7 = arith.constant 0 : index
    %c0_8 = arith.constant 0 : index
    %c0_9 = arith.constant 0 : index
    %5 = vector.load %arg23[%c0_7, %c0_8, %c0_9] : memref<10x10x14xf32, #tpu.memory_space<vmem>>, vector<10x10x14xf32>
    tpu.vector_store %arg23[%c0_7, %c0_8, %c0_9], %4 {strides = array<i32>} : memref<10x10x14xf32, #tpu.memory_space<vmem>>, vector<10x10x14xf32>,
    %c0_10 = arith.constant 0 : index
    %c0_11 = arith.constant 0 : index
    %c0_12 = arith.constant 0 : index
    %c0_13 = arith.constant 0 : index
    %6 = vector.load %arg1[%c0_10, %c0_11, %c0_12, %c0_13] : memref<1x16x16x1xf32, #tpu.memory_space<vmem>>, vector<1x16x16x1xf32>
    %7 = vector.shape_cast %6 : vector<1x16x16x1xf32> to vector<16x16x1xf32>
    %c1 = arith.constant 1 : index
    %c1_14 = arith.constant 1 : index
    %c0_15 = arith.constant 0 : index
    %8 = vector.load %arg21[%c1, %c1_14, %c0_15] : memref<18x18x1xf32, #tpu.memory_space<vmem>>, vector<16x16x1xf32>
    tpu.vector_store %arg21[%c1, %c1_14, %c0_15], %7 {strides = array<i32>} : memref<18x18x1xf32, #tpu.memory_space<vmem>>, vector<16x16x1xf32>,
    %c0_16 = arith.constant 0 : index
    %c0_17 = arith.constant 0 : index
    %c0_18 = arith.constant 0 : index
    %9 = vector.load %arg21[%c0_16, %c0_17, %c0_18] : memref<18x18x1xf32, #tpu.memory_space<vmem>>, vector<16x16x1xf32>
    %c0_19 = arith.constant 0 : index
    %c1_20 = arith.constant 1 : index
    %c0_21 = arith.constant 0 : index
    %10 = vector.load %arg21[%c0_19, %c1_20, %c0_21] : memref<18x18x1xf32, #tpu.memory_space<vmem>>, vector<16x16x1xf32>
    %c0_22 = arith.constant 0 : index
    %c2 = arith.constant 2 : index
    %c0_23 = arith.constant 0 : index
    %11 = vector.load %arg21[%c0_22, %c2, %c0_23] : memref<18x18x1xf32, #tpu.memory_space<vmem>>, vector<16x16x1xf32>
    %c1_24 = arith.constant 1 : index
    %c0_25 = arith.constant 0 : index
    %c0_26 = arith.constant 0 : index
    %12 = vector.load %arg21[%c1_24, %c0_25, %c0_26] : memref<18x18x1xf32, #tpu.memory_space<vmem>>, vector<16x16x1xf32>
    %c1_27 = arith.constant 1 : index
    %c1_28 = arith.constant 1 : index
    %c0_29 = arith.constant 0 : index
    %13 = vector.load %arg21[%c1_27, %c1_28, %c0_29] : memref<18x18x1xf32, #tpu.memory_space<vmem>>, vector<16x16x1xf32>
    %c1_30 = arith.constant 1 : index
    %c2_31 = arith.constant 2 : index
    %c0_32 = arith.constant 0 : index
    %14 = vector.load %arg21[%c1_30, %c2_31, %c0_32] : memref<18x18x1xf32, #tpu.memory_space<vmem>>, vector<16x16x1xf32>
    %c2_33 = arith.constant 2 : index
    %c0_34 = arith.constant 0 : index
    %c0_35 = arith.constant 0 : index
    %15 = vector.load %arg21[%c2_33, %c0_34, %c0_35] : memref<18x18x1xf32, #tpu.memory_space<vmem>>, vector<16x16x1xf32>
    %c2_36 = arith.constant 2 : index
    %c1_37 = arith.constant 1 : index
    %c0_38 = arith.constant 0 : index
    %16 = vector.load %arg21[%c2_36, %c1_37, %c0_38] : memref<18x18x1xf32, #tpu.memory_space<vmem>>, vector<16x16x1xf32>
    %c2_39 = arith.constant 2 : index
    %c2_40 = arith.constant 2 : index
    %c0_41 = arith.constant 0 : index
    %17 = vector.load %arg21[%c2_39, %c2_40, %c0_41] : memref<18x18x1xf32, #tpu.memory_space<vmem>>, vector<16x16x1xf32>
    %18 = tpu.concatenate %9, %10, %11, %12, %13, %14, %15, %16, %17 in 2 : vector<16x16x1xf32>, vector<16x16x1xf32>, vector<16x16x1xf32>, vector<16x16x1xf32>, vector<16x16x1xf32>, vector<16x16x1xf32>, vector<16x16x1xf32>, vector<16x16x1xf32>, vector<16x16x1xf32> -> vector<16x16x9xf32>
    %19 = vector.shape_cast %18 : vector<16x16x9xf32> to vector<256x9xf32>
    %c0_42 = arith.constant 0 : index
    %c0_43 = arith.constant 0 : index
    %20 = vector.load %arg2[%c0_42, %c0_43] : memref<9x4xf32, #tpu.memory_space<vmem>>, vector<9x4xf32>
    %cst_44 = arith.constant dense<0.000000e+00> : vector<256x4xf32>
    %21 = tpu.matmul %19, %20, %cst_44 {dimension_numbers = #tpu.dot_dimension_numbers<[1], [0], [0], [1], [0, 0, 1, 1], [], []>} : vector<256x9xf32>, vector<9x4xf32>, vector<256x4xf32> -> vector<256x4xf32>
    %c0_45 = arith.constant 0 : index
    %c0_46 = arith.constant 0 : index
    %22 = vector.load %arg3[%c0_45, %c0_46] : memref<1x4xf32, #tpu.memory_space<vmem>>, vector<1x4xf32>
    %23 = vector.broadcast %22 : vector<1x4xf32> to vector<256x4xf32>
    %24 = arith.addf %21, %23 : vector<256x4xf32>
    %cst_47 = arith.constant 0.000000e+00 : f32
    %25 = vector.broadcast %cst_47 : f32 to vector<256x4xf32>
    %26 = arith.maximumf %24, %25 : vector<256x4xf32>
    %27 = vector.shape_cast %26 : vector<256x4xf32> to vector<16x16x4xf32>
    %c1_48 = arith.constant 1 : index
    %c1_49 = arith.constant 1 : index
    %c0_50 = arith.constant 0 : index
    %28 = vector.load %arg22[%c1_48, %c1_49, %c0_50] : memref<18x18x12xf32, #tpu.memory_space<vmem>>, vector<16x16x4xf32>
    tpu.vector_store %arg22[%c1_48, %c1_49, %c0_50], %27 {strides = array<i32>} : memref<18x18x12xf32, #tpu.memory_space<vmem>>, vector<16x16x4xf32>,
    %c0_51 = arith.constant 0 : index
    %c0_52 = arith.constant 0 : index
    %c0_53 = arith.constant 0 : index
    %29 = vector.load %arg22[%c0_51, %c0_52, %c0_53] : memref<18x18x12xf32, #tpu.memory_space<vmem>>, vector<16x16x4xf32>
    %c0_54 = arith.constant 0 : index
    %c1_55 = arith.constant 1 : index
    %c0_56 = arith.constant 0 : index
    %30 = vector.load %arg22[%c0_54, %c1_55, %c0_56] : memref<18x18x12xf32, #tpu.memory_space<vmem>>, vector<16x16x4xf32>
    %c0_57 = arith.constant 0 : index
    %c2_58 = arith.constant 2 : index
    %c0_59 = arith.constant 0 : index
    %31 = vector.load %arg22[%c0_57, %c2_58, %c0_59] : memref<18x18x12xf32, #tpu.memory_space<vmem>>, vector<16x16x4xf32>
    %c1_60 = arith.constant 1 : index
    %c0_61 = arith.constant 0 : index
    %c0_62 = arith.constant 0 : index
    %32 = vector.load %arg22[%c1_60, %c0_61, %c0_62] : memref<18x18x12xf32, #tpu.memory_space<vmem>>, vector<16x16x4xf32>
    %c1_63 = arith.constant 1 : index
    %c1_64 = arith.constant 1 : index
    %c0_65 = arith.constant 0 : index
    %33 = vector.load %arg22[%c1_63, %c1_64, %c0_65] : memref<18x18x12xf32, #tpu.memory_space<vmem>>, vector<16x16x4xf32>
    %c1_66 = arith.constant 1 : index
    %c2_67 = arith.constant 2 : index
    %c0_68 = arith.constant 0 : index
    %34 = vector.load %arg22[%c1_66, %c2_67, %c0_68] : memref<18x18x12xf32, #tpu.memory_space<vmem>>, vector<16x16x4xf32>
    %c2_69 = arith.constant 2 : index
    %c0_70 = arith.constant 0 : index
    %c0_71 = arith.constant 0 : index
    %35 = vector.load %arg22[%c2_69, %c0_70, %c0_71] : memref<18x18x12xf32, #tpu.memory_space<vmem>>, vector<16x16x4xf32>
    %c2_72 = arith.constant 2 : index
    %c1_73 = arith.constant 1 : index
    %c0_74 = arith.constant 0 : index
    %36 = vector.load %arg22[%c2_72, %c1_73, %c0_74] : memref<18x18x12xf32, #tpu.memory_space<vmem>>, vector<16x16x4xf32>
    %c2_75 = arith.constant 2 : index
    %c2_76 = arith.constant 2 : index
    %c0_77 = arith.constant 0 : index
    %37 = vector.load %arg22[%c2_75, %c2_76, %c0_77] : memref<18x18x12xf32, #tpu.memory_space<vmem>>, vector<16x16x4xf32>
    %38 = tpu.concatenate %29, %30, %31, %32, %33, %34, %35, %36, %37 in 2 : vector<16x16x4xf32>, vector<16x16x4xf32>, vector<16x16x4xf32>, vector<16x16x4xf32>, vector<16x16x4xf32>, vector<16x16x4xf32>, vector<16x16x4xf32>, vector<16x16x4xf32>, vector<16x16x4xf32> -> vector<16x16x36xf32>
    %39 = vector.shape_cast %38 : vector<16x16x36xf32> to vector<256x36xf32>
    %c0_78 = arith.constant 0 : index
    %c0_79 = arith.constant 0 : index
    %40 = vector.load %arg4[%c0_78, %c0_79] : memref<36x4xf32, #tpu.memory_space<vmem>>, vector<36x4xf32>
    %cst_80 = arith.constant dense<0.000000e+00> : vector<256x4xf32>
    %41 = tpu.matmul %39, %40, %cst_80 {dimension_numbers = #tpu.dot_dimension_numbers<[1], [0], [0], [1], [0, 0, 1, 1], [], []>} : vector<256x36xf32>, vector<36x4xf32>, vector<256x4xf32> -> vector<256x4xf32>
    %c0_81 = arith.constant 0 : index
    %c0_82 = arith.constant 0 : index
    %42 = vector.load %arg5[%c0_81, %c0_82] : memref<1x4xf32, #tpu.memory_space<vmem>>, vector<1x4xf32>
    %43 = vector.broadcast %42 : vector<1x4xf32> to vector<256x4xf32>
    %44 = arith.addf %41, %43 : vector<256x4xf32>
    %cst_83 = arith.constant 0.000000e+00 : f32
    %45 = vector.broadcast %cst_83 : f32 to vector<256x4xf32>
    %46 = arith.maximumf %44, %45 : vector<256x4xf32>
    %47 = vector.shape_cast %46 : vector<256x4xf32> to vector<16x16x4xf32>
    %c1_84 = arith.constant 1 : index
    %c1_85 = arith.constant 1 : index
    %c4 = arith.constant 4 : index
    %48 = vector.load %arg22[%c1_84, %c1_85, %c4] : memref<18x18x12xf32, #tpu.memory_space<vmem>>, vector<16x16x4xf32>
    tpu.vector_store %arg22[%c1_84, %c1_85, %c4], %47 {strides = array<i32>} : memref<18x18x12xf32, #tpu.memory_space<vmem>>, vector<16x16x4xf32>,
    %c0_86 = arith.constant 0 : index
    %c0_87 = arith.constant 0 : index
    %c0_88 = arith.constant 0 : index
    %49 = vector.load %arg22[%c0_86, %c0_87, %c0_88] : memref<18x18x12xf32, #tpu.memory_space<vmem>>, vector<16x16x8xf32>
    %c0_89 = arith.constant 0 : index
    %c1_90 = arith.constant 1 : index
    %c0_91 = arith.constant 0 : index
    %50 = vector.load %arg22[%c0_89, %c1_90, %c0_91] : memref<18x18x12xf32, #tpu.memory_space<vmem>>, vector<16x16x8xf32>
    %c0_92 = arith.constant 0 : index
    %c2_93 = arith.constant 2 : index
    %c0_94 = arith.constant 0 : index
    %51 = vector.load %arg22[%c0_92, %c2_93, %c0_94] : memref<18x18x12xf32, #tpu.memory_space<vmem>>, vector<16x16x8xf32>
    %c1_95 = arith.constant 1 : index
    %c0_96 = arith.constant 0 : index
    %c0_97 = arith.constant 0 : index
    %52 = vector.load %arg22[%c1_95, %c0_96, %c0_97] : memref<18x18x12xf32, #tpu.memory_space<vmem>>, vector<16x16x8xf32>
    %c1_98 = arith.constant 1 : index
    %c1_99 = arith.constant 1 : index
    %c0_100 = arith.constant 0 : index
    %53 = vector.load %arg22[%c1_98, %c1_99, %c0_100] : memref<18x18x12xf32, #tpu.memory_space<vmem>>, vector<16x16x8xf32>
    %c1_101 = arith.constant 1 : index
    %c2_102 = arith.constant 2 : index
    %c0_103 = arith.constant 0 : index
    %54 = vector.load %arg22[%c1_101, %c2_102, %c0_103] : memref<18x18x12xf32, #tpu.memory_space<vmem>>, vector<16x16x8xf32>
    %c2_104 = arith.constant 2 : index
    %c0_105 = arith.constant 0 : index
    %c0_106 = arith.constant 0 : index
    %55 = vector.load %arg22[%c2_104, %c0_105, %c0_106] : memref<18x18x12xf32, #tpu.memory_space<vmem>>, vector<16x16x8xf32>
    %c2_107 = arith.constant 2 : index
    %c1_108 = arith.constant 1 : index
    %c0_109 = arith.constant 0 : index
    %56 = vector.load %arg22[%c2_107, %c1_108, %c0_109] : memref<18x18x12xf32, #tpu.memory_space<vmem>>, vector<16x16x8xf32>
    %c2_110 = arith.constant 2 : index
    %c2_111 = arith.constant 2 : index
    %c0_112 = arith.constant 0 : index
    %57 = vector.load %arg22[%c2_110, %c2_111, %c0_112] : memref<18x18x12xf32, #tpu.memory_space<vmem>>, vector<16x16x8xf32>
    %58 = tpu.concatenate %49, %50, %51, %52, %53, %54, %55, %56, %57 in 2 : vector<16x16x8xf32>, vector<16x16x8xf32>, vector<16x16x8xf32>, vector<16x16x8xf32>, vector<16x16x8xf32>, vector<16x16x8xf32>, vector<16x16x8xf32>, vector<16x16x8xf32>, vector<16x16x8xf32> -> vector<16x16x72xf32>
    %59 = vector.shape_cast %58 : vector<16x16x72xf32> to vector<256x72xf32>
    %c0_113 = arith.constant 0 : index
    %c0_114 = arith.constant 0 : index
    %60 = vector.load %arg6[%c0_113, %c0_114] : memref<72x4xf32, #tpu.memory_space<vmem>>, vector<72x4xf32>
    %cst_115 = arith.constant dense<0.000000e+00> : vector<256x4xf32>
    %61 = tpu.matmul %59, %60, %cst_115 {dimension_numbers = #tpu.dot_dimension_numbers<[1], [0], [0], [1], [0, 0, 1, 1], [], []>} : vector<256x72xf32>, vector<72x4xf32>, vector<256x4xf32> -> vector<256x4xf32>
    %c0_116 = arith.constant 0 : index
    %c0_117 = arith.constant 0 : index
    %62 = vector.load %arg7[%c0_116, %c0_117] : memref<1x4xf32, #tpu.memory_space<vmem>>, vector<1x4xf32>
    %63 = vector.broadcast %62 : vector<1x4xf32> to vector<256x4xf32>
    %64 = arith.addf %61, %63 : vector<256x4xf32>
    %cst_118 = arith.constant 0.000000e+00 : f32
    %65 = vector.broadcast %cst_118 : f32 to vector<256x4xf32>
    %66 = arith.maximumf %64, %65 : vector<256x4xf32>
    %67 = vector.shape_cast %66 : vector<256x4xf32> to vector<16x16x4xf32>
    %c1_119 = arith.constant 1 : index
    %c1_120 = arith.constant 1 : index
    %c8 = arith.constant 8 : index
    %68 = vector.load %arg22[%c1_119, %c1_120, %c8] : memref<18x18x12xf32, #tpu.memory_space<vmem>>, vector<16x16x4xf32>
    tpu.vector_store %arg22[%c1_119, %c1_120, %c8], %67 {strides = array<i32>} : memref<18x18x12xf32, #tpu.memory_space<vmem>>, vector<16x16x4xf32>,
    %c0_121 = arith.constant 0 : index
    %c0_122 = arith.constant 0 : index
    %c0_123 = arith.constant 0 : index
    %69 = vector.load %arg22[%c0_121, %c0_122, %c0_123] : memref<18x18x12xf32, #tpu.memory_space<vmem>>, vector<16x16x12xf32>
    %c0_124 = arith.constant 0 : index
    %c1_125 = arith.constant 1 : index
    %c0_126 = arith.constant 0 : index
    %70 = vector.load %arg22[%c0_124, %c1_125, %c0_126] : memref<18x18x12xf32, #tpu.memory_space<vmem>>, vector<16x16x12xf32>
    %c0_127 = arith.constant 0 : index
    %c2_128 = arith.constant 2 : index
    %c0_129 = arith.constant 0 : index
    %71 = vector.load %arg22[%c0_127, %c2_128, %c0_129] : memref<18x18x12xf32, #tpu.memory_space<vmem>>, vector<16x16x12xf32>
    %c1_130 = arith.constant 1 : index
    %c0_131 = arith.constant 0 : index
    %c0_132 = arith.constant 0 : index
    %72 = vector.load %arg22[%c1_130, %c0_131, %c0_132] : memref<18x18x12xf32, #tpu.memory_space<vmem>>, vector<16x16x12xf32>
    %c1_133 = arith.constant 1 : index
    %c1_134 = arith.constant 1 : index
    %c0_135 = arith.constant 0 : index
    %73 = vector.load %arg22[%c1_133, %c1_134, %c0_135] : memref<18x18x12xf32, #tpu.memory_space<vmem>>, vector<16x16x12xf32>
    %c1_136 = arith.constant 1 : index
    %c2_137 = arith.constant 2 : index
    %c0_138 = arith.constant 0 : index
    %74 = vector.load %arg22[%c1_136, %c2_137, %c0_138] : memref<18x18x12xf32, #tpu.memory_space<vmem>>, vector<16x16x12xf32>
    %c2_139 = arith.constant 2 : index
    %c0_140 = arith.constant 0 : index
    %c0_141 = arith.constant 0 : index
    %75 = vector.load %arg22[%c2_139, %c0_140, %c0_141] : memref<18x18x12xf32, #tpu.memory_space<vmem>>, vector<16x16x12xf32>
    %c2_142 = arith.constant 2 : index
    %c1_143 = arith.constant 1 : index
    %c0_144 = arith.constant 0 : index
    %76 = vector.load %arg22[%c2_142, %c1_143, %c0_144] : memref<18x18x12xf32, #tpu.memory_space<vmem>>, vector<16x16x12xf32>
    %c2_145 = arith.constant 2 : index
    %c2_146 = arith.constant 2 : index
    %c0_147 = arith.constant 0 : index
    %77 = vector.load %arg22[%c2_145, %c2_146, %c0_147] : memref<18x18x12xf32, #tpu.memory_space<vmem>>, vector<16x16x12xf32>
    %78 = tpu.concatenate %69, %70, %71, %72, %73, %74, %75, %76, %77 in 2 : vector<16x16x12xf32>, vector<16x16x12xf32>, vector<16x16x12xf32>, vector<16x16x12xf32>, vector<16x16x12xf32>, vector<16x16x12xf32>, vector<16x16x12xf32>, vector<16x16x12xf32>, vector<16x16x12xf32> -> vector<16x16x108xf32>
    %79 = vector.shape_cast %78 : vector<16x16x108xf32> to vector<256x108xf32>
    %c0_148 = arith.constant 0 : index
    %c0_149 = arith.constant 0 : index
    %80 = vector.load %arg8[%c0_148, %c0_149] : memref<108x6xf32, #tpu.memory_space<vmem>>, vector<108x6xf32>
    %cst_150 = arith.constant dense<0.000000e+00> : vector<256x6xf32>
    %81 = tpu.matmul %79, %80, %cst_150 {dimension_numbers = #tpu.dot_dimension_numbers<[1], [0], [0], [1], [0, 0, 1, 1], [], []>} : vector<256x108xf32>, vector<108x6xf32>, vector<256x6xf32> -> vector<256x6xf32>
    %c0_151 = arith.constant 0 : index
    %c0_152 = arith.constant 0 : index
    %82 = vector.load %arg9[%c0_151, %c0_152] : memref<1x6xf32, #tpu.memory_space<vmem>>, vector<1x6xf32>
    %83 = vector.broadcast %82 : vector<1x6xf32> to vector<256x6xf32>
    %84 = arith.addf %81, %83 : vector<256x6xf32>
    %cst_153 = arith.constant 0.000000e+00 : f32
    %85 = vector.broadcast %cst_153 : f32 to vector<256x6xf32>
    %86 = arith.maximumf %84, %85 : vector<256x6xf32>
    %87 = vector.shape_cast %86 : vector<256x6xf32> to vector<16x16x6xf32>
    %c0_154 = arith.constant 0 : index
    %c0_155 = arith.constant 0 : index
    %c0_156 = arith.constant 0 : index
    %88 = vector.load %arg24[%c0_154, %c0_155, %c0_156] : memref<16x16x7xf32, #tpu.memory_space<vmem>>, vector<16x16x6xf32>
    tpu.vector_store %arg24[%c0_154, %c0_155, %c0_156], %87 {strides = array<i32>} : memref<16x16x7xf32, #tpu.memory_space<vmem>>, vector<16x16x6xf32>,
    %c0_157 = arith.constant 0 : index
    %c0_158 = arith.constant 0 : index
    %c0_159 = arith.constant 0 : index
    %89 = tpu.strided_load %arg24[%c0_157, %c0_158, %c0_159] {strides = array<i32: 2, 1, 1>} : memref<16x16x7xf32, #tpu.memory_space<vmem>>, vector<8x16x6xf32>
    %c1_160 = arith.constant 1 : index
    %c0_161 = arith.constant 0 : index
    %c0_162 = arith.constant 0 : index
    %90 = tpu.strided_load %arg24[%c1_160, %c0_161, %c0_162] {strides = array<i32: 2, 1, 1>} : memref<16x16x7xf32, #tpu.memory_space<vmem>>, vector<8x16x6xf32>
    %91 = arith.maximumf %89, %90 : vector<8x16x6xf32>
    %c0_163 = arith.constant 0 : index
    %c0_164 = arith.constant 0 : index
    %c0_165 = arith.constant 0 : index
    %92 = vector.load %arg25[%c0_163, %c0_164, %c0_165] : memref<8x16x7xf32, #tpu.memory_space<vmem>>, vector<8x16x6xf32>
    tpu.vector_store %arg25[%c0_163, %c0_164, %c0_165], %91 {strides = array<i32>} : memref<8x16x7xf32, #tpu.memory_space<vmem>>, vector<8x16x6xf32>,
    %c0_166 = arith.constant 0 : index
    %c0_167 = arith.constant 0 : index
    %c0_168 = arith.constant 0 : index
    %93 = tpu.strided_load %arg25[%c0_166, %c0_167, %c0_168] {strides = array<i32: 1, 2, 1>} : memref<8x16x7xf32, #tpu.memory_space<vmem>>, vector<8x8x6xf32>
    %c0_169 = arith.constant 0 : index
    %c1_170 = arith.constant 1 : index
    %c0_171 = arith.constant 0 : index
    %94 = tpu.strided_load %arg25[%c0_169, %c1_170, %c0_171] {strides = array<i32: 1, 2, 1>} : memref<8x16x7xf32, #tpu.memory_space<vmem>>, vector<8x8x6xf32>
    %95 = arith.maximumf %93, %94 : vector<8x8x6xf32>
    %c1_172 = arith.constant 1 : index
    %c1_173 = arith.constant 1 : index
    %c0_174 = arith.constant 0 : index
    %96 = vector.load %arg23[%c1_172, %c1_173, %c0_174] : memref<10x10x14xf32, #tpu.memory_space<vmem>>, vector<8x8x6xf32>
    tpu.vector_store %arg23[%c1_172, %c1_173, %c0_174], %95 {strides = array<i32>} : memref<10x10x14xf32, #tpu.memory_space<vmem>>, vector<8x8x6xf32>,
    %c0_175 = arith.constant 0 : index
    %c0_176 = arith.constant 0 : index
    %c0_177 = arith.constant 0 : index
    %97 = vector.load %arg23[%c0_175, %c0_176, %c0_177] : memref<10x10x14xf32, #tpu.memory_space<vmem>>, vector<8x8x6xf32>
    %c0_178 = arith.constant 0 : index
    %c1_179 = arith.constant 1 : index
    %c0_180 = arith.constant 0 : index
    %98 = vector.load %arg23[%c0_178, %c1_179, %c0_180] : memref<10x10x14xf32, #tpu.memory_space<vmem>>, vector<8x8x6xf32>
    %c0_181 = arith.constant 0 : index
    %c2_182 = arith.constant 2 : index
    %c0_183 = arith.constant 0 : index
    %99 = vector.load %arg23[%c0_181, %c2_182, %c0_183] : memref<10x10x14xf32, #tpu.memory_space<vmem>>, vector<8x8x6xf32>
    %c1_184 = arith.constant 1 : index
    %c0_185 = arith.constant 0 : index
    %c0_186 = arith.constant 0 : index
    %100 = vector.load %arg23[%c1_184, %c0_185, %c0_186] : memref<10x10x14xf32, #tpu.memory_space<vmem>>, vector<8x8x6xf32>
    %c1_187 = arith.constant 1 : index
    %c1_188 = arith.constant 1 : index
    %c0_189 = arith.constant 0 : index
    %101 = vector.load %arg23[%c1_187, %c1_188, %c0_189] : memref<10x10x14xf32, #tpu.memory_space<vmem>>, vector<8x8x6xf32>
    %c1_190 = arith.constant 1 : index
    %c2_191 = arith.constant 2 : index
    %c0_192 = arith.constant 0 : index
    %102 = vector.load %arg23[%c1_190, %c2_191, %c0_192] : memref<10x10x14xf32, #tpu.memory_space<vmem>>, vector<8x8x6xf32>
    %c2_193 = arith.constant 2 : index
    %c0_194 = arith.constant 0 : index
    %c0_195 = arith.constant 0 : index
    %103 = vector.load %arg23[%c2_193, %c0_194, %c0_195] : memref<10x10x14xf32, #tpu.memory_space<vmem>>, vector<8x8x6xf32>
    %c2_196 = arith.constant 2 : index
    %c1_197 = arith.constant 1 : index
    %c0_198 = arith.constant 0 : index
    %104 = vector.load %arg23[%c2_196, %c1_197, %c0_198] : memref<10x10x14xf32, #tpu.memory_space<vmem>>, vector<8x8x6xf32>
    %c2_199 = arith.constant 2 : index
    %c2_200 = arith.constant 2 : index
    %c0_201 = arith.constant 0 : index
    %105 = vector.load %arg23[%c2_199, %c2_200, %c0_201] : memref<10x10x14xf32, #tpu.memory_space<vmem>>, vector<8x8x6xf32>
    %106 = tpu.concatenate %97, %98, %99, %100, %101, %102, %103, %104, %105 in 2 : vector<8x8x6xf32>, vector<8x8x6xf32>, vector<8x8x6xf32>, vector<8x8x6xf32>, vector<8x8x6xf32>, vector<8x8x6xf32>, vector<8x8x6xf32>, vector<8x8x6xf32>, vector<8x8x6xf32> -> vector<8x8x54xf32>
    %107 = vector.shape_cast %106 : vector<8x8x54xf32> to vector<64x54xf32>
    %c0_202 = arith.constant 0 : index
    %c0_203 = arith.constant 0 : index
    %108 = vector.load %arg10[%c0_202, %c0_203] : memref<54x4xf32, #tpu.memory_space<vmem>>, vector<54x4xf32>
    %cst_204 = arith.constant dense<0.000000e+00> : vector<64x4xf32>
    %109 = tpu.matmul %107, %108, %cst_204 {dimension_numbers = #tpu.dot_dimension_numbers<[1], [0], [0], [1], [0, 0, 1, 1], [], []>} : vector<64x54xf32>, vector<54x4xf32>, vector<64x4xf32> -> vector<64x4xf32>
    %c0_205 = arith.constant 0 : index
    %c0_206 = arith.constant 0 : index
    %110 = vector.load %arg11[%c0_205, %c0_206] : memref<1x4xf32, #tpu.memory_space<vmem>>, vector<1x4xf32>
    %111 = vector.broadcast %110 : vector<1x4xf32> to vector<64x4xf32>
    %112 = arith.addf %109, %111 : vector<64x4xf32>
    %cst_207 = arith.constant 0.000000e+00 : f32
    %113 = vector.broadcast %cst_207 : f32 to vector<64x4xf32>
    %114 = arith.maximumf %112, %113 : vector<64x4xf32>
    %115 = vector.shape_cast %114 : vector<64x4xf32> to vector<8x8x4xf32>
    %c1_208 = arith.constant 1 : index
    %c1_209 = arith.constant 1 : index
    %c6 = arith.constant 6 : index
    %116 = vector.load %arg23[%c1_208, %c1_209, %c6] : memref<10x10x14xf32, #tpu.memory_space<vmem>>, vector<8x8x4xf32>
    tpu.vector_store %arg23[%c1_208, %c1_209, %c6], %115 {strides = array<i32>} : memref<10x10x14xf32, #tpu.memory_space<vmem>>, vector<8x8x4xf32>,
    %c0_210 = arith.constant 0 : index
    %c0_211 = arith.constant 0 : index
    %c0_212 = arith.constant 0 : index
    %117 = vector.load %arg23[%c0_210, %c0_211, %c0_212] : memref<10x10x14xf32, #tpu.memory_space<vmem>>, vector<8x8x10xf32>
    %c0_213 = arith.constant 0 : index
    %c1_214 = arith.constant 1 : index
    %c0_215 = arith.constant 0 : index
    %118 = vector.load %arg23[%c0_213, %c1_214, %c0_215] : memref<10x10x14xf32, #tpu.memory_space<vmem>>, vector<8x8x10xf32>
    %c0_216 = arith.constant 0 : index
    %c2_217 = arith.constant 2 : index
    %c0_218 = arith.constant 0 : index
    %119 = vector.load %arg23[%c0_216, %c2_217, %c0_218] : memref<10x10x14xf32, #tpu.memory_space<vmem>>, vector<8x8x10xf32>
    %c1_219 = arith.constant 1 : index
    %c0_220 = arith.constant 0 : index
    %c0_221 = arith.constant 0 : index
    %120 = vector.load %arg23[%c1_219, %c0_220, %c0_221] : memref<10x10x14xf32, #tpu.memory_space<vmem>>, vector<8x8x10xf32>
    %c1_222 = arith.constant 1 : index
    %c1_223 = arith.constant 1 : index
    %c0_224 = arith.constant 0 : index
    %121 = vector.load %arg23[%c1_222, %c1_223, %c0_224] : memref<10x10x14xf32, #tpu.memory_space<vmem>>, vector<8x8x10xf32>
    %c1_225 = arith.constant 1 : index
    %c2_226 = arith.constant 2 : index
    %c0_227 = arith.constant 0 : index
    %122 = vector.load %arg23[%c1_225, %c2_226, %c0_227] : memref<10x10x14xf32, #tpu.memory_space<vmem>>, vector<8x8x10xf32>
    %c2_228 = arith.constant 2 : index
    %c0_229 = arith.constant 0 : index
    %c0_230 = arith.constant 0 : index
    %123 = vector.load %arg23[%c2_228, %c0_229, %c0_230] : memref<10x10x14xf32, #tpu.memory_space<vmem>>, vector<8x8x10xf32>
    %c2_231 = arith.constant 2 : index
    %c1_232 = arith.constant 1 : index
    %c0_233 = arith.constant 0 : index
    %124 = vector.load %arg23[%c2_231, %c1_232, %c0_233] : memref<10x10x14xf32, #tpu.memory_space<vmem>>, vector<8x8x10xf32>
    %c2_234 = arith.constant 2 : index
    %c2_235 = arith.constant 2 : index
    %c0_236 = arith.constant 0 : index
    %125 = vector.load %arg23[%c2_234, %c2_235, %c0_236] : memref<10x10x14xf32, #tpu.memory_space<vmem>>, vector<8x8x10xf32>
    %126 = tpu.concatenate %117, %118, %119, %120, %121, %122, %123, %124, %125 in 2 : vector<8x8x10xf32>, vector<8x8x10xf32>, vector<8x8x10xf32>, vector<8x8x10xf32>, vector<8x8x10xf32>, vector<8x8x10xf32>, vector<8x8x10xf32>, vector<8x8x10xf32>, vector<8x8x10xf32> -> vector<8x8x90xf32>
    %127 = vector.shape_cast %126 : vector<8x8x90xf32> to vector<64x90xf32>
    %c0_237 = arith.constant 0 : index
    %c0_238 = arith.constant 0 : index
    %128 = vector.load %arg12[%c0_237, %c0_238] : memref<90x4xf32, #tpu.memory_space<vmem>>, vector<90x4xf32>
    %cst_239 = arith.constant dense<0.000000e+00> : vector<64x4xf32>
    %129 = tpu.matmul %127, %128, %cst_239 {dimension_numbers = #tpu.dot_dimension_numbers<[1], [0], [0], [1], [0, 0, 1, 1], [], []>} : vector<64x90xf32>, vector<90x4xf32>, vector<64x4xf32> -> vector<64x4xf32>
    %c0_240 = arith.constant 0 : index
    %c0_241 = arith.constant 0 : index
    %130 = vector.load %arg13[%c0_240, %c0_241] : memref<1x4xf32, #tpu.memory_space<vmem>>, vector<1x4xf32>
    %131 = vector.broadcast %130 : vector<1x4xf32> to vector<64x4xf32>
    %132 = arith.addf %129, %131 : vector<64x4xf32>
    %cst_242 = arith.constant 0.000000e+00 : f32
    %133 = vector.broadcast %cst_242 : f32 to vector<64x4xf32>
    %134 = arith.maximumf %132, %133 : vector<64x4xf32>
    %135 = vector.shape_cast %134 : vector<64x4xf32> to vector<8x8x4xf32>
    %c1_243 = arith.constant 1 : index
    %c1_244 = arith.constant 1 : index
    %c10 = arith.constant 10 : index
    %136 = vector.load %arg23[%c1_243, %c1_244, %c10] : memref<10x10x14xf32, #tpu.memory_space<vmem>>, vector<8x8x4xf32>
    tpu.vector_store %arg23[%c1_243, %c1_244, %c10], %135 {strides = array<i32>} : memref<10x10x14xf32, #tpu.memory_space<vmem>>, vector<8x8x4xf32>,
    %c0_245 = arith.constant 0 : index
    %c0_246 = arith.constant 0 : index
    %c0_247 = arith.constant 0 : index
    %137 = vector.load %arg23[%c0_245, %c0_246, %c0_247] : memref<10x10x14xf32, #tpu.memory_space<vmem>>, vector<8x8x14xf32>
    %c0_248 = arith.constant 0 : index
    %c1_249 = arith.constant 1 : index
    %c0_250 = arith.constant 0 : index
    %138 = vector.load %arg23[%c0_248, %c1_249, %c0_250] : memref<10x10x14xf32, #tpu.memory_space<vmem>>, vector<8x8x14xf32>
    %c0_251 = arith.constant 0 : index
    %c2_252 = arith.constant 2 : index
    %c0_253 = arith.constant 0 : index
    %139 = vector.load %arg23[%c0_251, %c2_252, %c0_253] : memref<10x10x14xf32, #tpu.memory_space<vmem>>, vector<8x8x14xf32>
    %c1_254 = arith.constant 1 : index
    %c0_255 = arith.constant 0 : index
    %c0_256 = arith.constant 0 : index
    %140 = vector.load %arg23[%c1_254, %c0_255, %c0_256] : memref<10x10x14xf32, #tpu.memory_space<vmem>>, vector<8x8x14xf32>
    %c1_257 = arith.constant 1 : index
    %c1_258 = arith.constant 1 : index
    %c0_259 = arith.constant 0 : index
    %141 = vector.load %arg23[%c1_257, %c1_258, %c0_259] : memref<10x10x14xf32, #tpu.memory_space<vmem>>, vector<8x8x14xf32>
    %c1_260 = arith.constant 1 : index
    %c2_261 = arith.constant 2 : index
    %c0_262 = arith.constant 0 : index
    %142 = vector.load %arg23[%c1_260, %c2_261, %c0_262] : memref<10x10x14xf32, #tpu.memory_space<vmem>>, vector<8x8x14xf32>
    %c2_263 = arith.constant 2 : index
    %c0_264 = arith.constant 0 : index
    %c0_265 = arith.constant 0 : index
    %143 = vector.load %arg23[%c2_263, %c0_264, %c0_265] : memref<10x10x14xf32, #tpu.memory_space<vmem>>, vector<8x8x14xf32>
    %c2_266 = arith.constant 2 : index
    %c1_267 = arith.constant 1 : index
    %c0_268 = arith.constant 0 : index
    %144 = vector.load %arg23[%c2_266, %c1_267, %c0_268] : memref<10x10x14xf32, #tpu.memory_space<vmem>>, vector<8x8x14xf32>
    %c2_269 = arith.constant 2 : index
    %c2_270 = arith.constant 2 : index
    %c0_271 = arith.constant 0 : index
    %145 = vector.load %arg23[%c2_269, %c2_270, %c0_271] : memref<10x10x14xf32, #tpu.memory_space<vmem>>, vector<8x8x14xf32>
    %146 = tpu.concatenate %137, %138, %139, %140, %141, %142, %143, %144, %145 in 2 : vector<8x8x14xf32>, vector<8x8x14xf32>, vector<8x8x14xf32>, vector<8x8x14xf32>, vector<8x8x14xf32>, vector<8x8x14xf32>, vector<8x8x14xf32>, vector<8x8x14xf32>, vector<8x8x14xf32> -> vector<8x8x126xf32>
    %147 = vector.shape_cast %146 : vector<8x8x126xf32> to vector<64x126xf32>
    %c0_272 = arith.constant 0 : index
    %c0_273 = arith.constant 0 : index
    %148 = vector.load %arg14[%c0_272, %c0_273] : memref<126x7xf32, #tpu.memory_space<vmem>>, vector<126x7xf32>
    %cst_274 = arith.constant dense<0.000000e+00> : vector<64x7xf32>
    %149 = tpu.matmul %147, %148, %cst_274 {dimension_numbers = #tpu.dot_dimension_numbers<[1], [0], [0], [1], [0, 0, 1, 1], [], []>} : vector<64x126xf32>, vector<126x7xf32>, vector<64x7xf32> -> vector<64x7xf32>
    %c0_275 = arith.constant 0 : index
    %c0_276 = arith.constant 0 : index
    %150 = vector.load %arg15[%c0_275, %c0_276] : memref<1x7xf32, #tpu.memory_space<vmem>>, vector<1x7xf32>
    %151 = vector.broadcast %150 : vector<1x7xf32> to vector<64x7xf32>
    %152 = arith.addf %149, %151 : vector<64x7xf32>
    %cst_277 = arith.constant 0.000000e+00 : f32
    %153 = vector.broadcast %cst_277 : f32 to vector<64x7xf32>
    %154 = arith.maximumf %152, %153 : vector<64x7xf32>
    %155 = vector.shape_cast %154 : vector<64x7xf32> to vector<8x8x7xf32>
    %c0_278 = arith.constant 0 : index
    %c0_279 = arith.constant 0 : index
    %c0_280 = arith.constant 0 : index
    %156 = vector.load %arg24[%c0_278, %c0_279, %c0_280] : memref<16x16x7xf32, #tpu.memory_space<vmem>>, vector<8x8x7xf32>
    tpu.vector_store %arg24[%c0_278, %c0_279, %c0_280], %155 {strides = array<i32>} : memref<16x16x7xf32, #tpu.memory_space<vmem>>, vector<8x8x7xf32>,
    %c0_281 = arith.constant 0 : index
    %c0_282 = arith.constant 0 : index
    %c0_283 = arith.constant 0 : index
    %157 = tpu.strided_load %arg24[%c0_281, %c0_282, %c0_283] {strides = array<i32: 2, 1, 1>} : memref<16x16x7xf32, #tpu.memory_space<vmem>>, vector<4x8x7xf32>
    %c1_284 = arith.constant 1 : index
    %c0_285 = arith.constant 0 : index
    %c0_286 = arith.constant 0 : index
    %158 = tpu.strided_load %arg24[%c1_284, %c0_285, %c0_286] {strides = array<i32: 2, 1, 1>} : memref<16x16x7xf32, #tpu.memory_space<vmem>>, vector<4x8x7xf32>
    %159 = arith.maximumf %157, %158 : vector<4x8x7xf32>
    %c0_287 = arith.constant 0 : index
    %c0_288 = arith.constant 0 : index
    %c0_289 = arith.constant 0 : index
    %160 = vector.load %arg25[%c0_287, %c0_288, %c0_289] : memref<8x16x7xf32, #tpu.memory_space<vmem>>, vector<4x8x7xf32>
    tpu.vector_store %arg25[%c0_287, %c0_288, %c0_289], %159 {strides = array<i32>} : memref<8x16x7xf32, #tpu.memory_space<vmem>>, vector<4x8x7xf32>,
    %c0_290 = arith.constant 0 : index
    %c0_291 = arith.constant 0 : index
    %c0_292 = arith.constant 0 : index
    %161 = tpu.strided_load %arg25[%c0_290, %c0_291, %c0_292] {strides = array<i32: 1, 2, 1>} : memref<8x16x7xf32, #tpu.memory_space<vmem>>, vector<4x4x7xf32>
    %c0_293 = arith.constant 0 : index
    %c1_294 = arith.constant 1 : index
    %c0_295 = arith.constant 0 : index
    %162 = tpu.strided_load %arg25[%c0_293, %c1_294, %c0_295] {strides = array<i32: 1, 2, 1>} : memref<8x16x7xf32, #tpu.memory_space<vmem>>, vector<4x4x7xf32>
    %163 = arith.maximumf %161, %162 : vector<4x4x7xf32>
    %164 = vector.extract_strided_slice %163 {offsets = [0, 0, 0], sizes = [1, 1, 7], strides = [1, 1, 1]} : vector<4x4x7xf32> to vector<1x1x7xf32>
    %165 = vector.shape_cast %164 : vector<1x1x7xf32> to vector<1x7xf32>
    %c0_296 = arith.constant 0 : index
    %c0_297 = arith.constant 0 : index
    %166 = vector.load %arg26[%c0_296, %c0_297] : memref<1x112xf32, #tpu.memory_space<vmem>>, vector<1x7xf32>
    tpu.vector_store %arg26[%c0_296, %c0_297], %165 {strides = array<i32>} : memref<1x112xf32, #tpu.memory_space<vmem>>, vector<1x7xf32>,
    %167 = vector.extract_strided_slice %163 {offsets = [0, 1, 0], sizes = [1, 1, 7], strides = [1, 1, 1]} : vector<4x4x7xf32> to vector<1x1x7xf32>
    %168 = vector.shape_cast %167 : vector<1x1x7xf32> to vector<1x7xf32>
    %c0_298 = arith.constant 0 : index
    %c7 = arith.constant 7 : index
    %169 = vector.load %arg26[%c0_298, %c7] : memref<1x112xf32, #tpu.memory_space<vmem>>, vector<1x7xf32>
    tpu.vector_store %arg26[%c0_298, %c7], %168 {strides = array<i32>} : memref<1x112xf32, #tpu.memory_space<vmem>>, vector<1x7xf32>,
    %170 = vector.extract_strided_slice %163 {offsets = [0, 2, 0], sizes = [1, 1, 7], strides = [1, 1, 1]} : vector<4x4x7xf32> to vector<1x1x7xf32>
    %171 = vector.shape_cast %170 : vector<1x1x7xf32> to vector<1x7xf32>
    %c0_299 = arith.constant 0 : index
    %c14 = arith.constant 14 : index
    %172 = vector.load %arg26[%c0_299, %c14] : memref<1x112xf32, #tpu.memory_space<vmem>>, vector<1x7xf32>
    tpu.vector_store %arg26[%c0_299, %c14], %171 {strides = array<i32>} : memref<1x112xf32, #tpu.memory_space<vmem>>, vector<1x7xf32>,
    %173 = vector.extract_strided_slice %163 {offsets = [0, 3, 0], sizes = [1, 1, 7], strides = [1, 1, 1]} : vector<4x4x7xf32> to vector<1x1x7xf32>
    %174 = vector.shape_cast %173 : vector<1x1x7xf32> to vector<1x7xf32>
    %c0_300 = arith.constant 0 : index
    %c21 = arith.constant 21 : index
    %175 = vector.load %arg26[%c0_300, %c21] : memref<1x112xf32, #tpu.memory_space<vmem>>, vector<1x7xf32>
    tpu.vector_store %arg26[%c0_300, %c21], %174 {strides = array<i32>} : memref<1x112xf32, #tpu.memory_space<vmem>>, vector<1x7xf32>,
    %176 = vector.extract_strided_slice %163 {offsets = [1, 0, 0], sizes = [1, 1, 7], strides = [1, 1, 1]} : vector<4x4x7xf32> to vector<1x1x7xf32>
    %177 = vector.shape_cast %176 : vector<1x1x7xf32> to vector<1x7xf32>
    %c0_301 = arith.constant 0 : index
    %c28 = arith.constant 28 : index
    %178 = vector.load %arg26[%c0_301, %c28] : memref<1x112xf32, #tpu.memory_space<vmem>>, vector<1x7xf32>
    tpu.vector_store %arg26[%c0_301, %c28], %177 {strides = array<i32>} : memref<1x112xf32, #tpu.memory_space<vmem>>, vector<1x7xf32>,
    %179 = vector.extract_strided_slice %163 {offsets = [1, 1, 0], sizes = [1, 1, 7], strides = [1, 1, 1]} : vector<4x4x7xf32> to vector<1x1x7xf32>
    %180 = vector.shape_cast %179 : vector<1x1x7xf32> to vector<1x7xf32>
    %c0_302 = arith.constant 0 : index
    %c35 = arith.constant 35 : index
    %181 = vector.load %arg26[%c0_302, %c35] : memref<1x112xf32, #tpu.memory_space<vmem>>, vector<1x7xf32>
    tpu.vector_store %arg26[%c0_302, %c35], %180 {strides = array<i32>} : memref<1x112xf32, #tpu.memory_space<vmem>>, vector<1x7xf32>,
    %182 = vector.extract_strided_slice %163 {offsets = [1, 2, 0], sizes = [1, 1, 7], strides = [1, 1, 1]} : vector<4x4x7xf32> to vector<1x1x7xf32>
    %183 = vector.shape_cast %182 : vector<1x1x7xf32> to vector<1x7xf32>
    %c0_303 = arith.constant 0 : index
    %c42 = arith.constant 42 : index
    %184 = vector.load %arg26[%c0_303, %c42] : memref<1x112xf32, #tpu.memory_space<vmem>>, vector<1x7xf32>
    tpu.vector_store %arg26[%c0_303, %c42], %183 {strides = array<i32>} : memref<1x112xf32, #tpu.memory_space<vmem>>, vector<1x7xf32>,
    %185 = vector.extract_strided_slice %163 {offsets = [1, 3, 0], sizes = [1, 1, 7], strides = [1, 1, 1]} : vector<4x4x7xf32> to vector<1x1x7xf32>
    %186 = vector.shape_cast %185 : vector<1x1x7xf32> to vector<1x7xf32>
    %c0_304 = arith.constant 0 : index
    %c49 = arith.constant 49 : index
    %187 = vector.load %arg26[%c0_304, %c49] : memref<1x112xf32, #tpu.memory_space<vmem>>, vector<1x7xf32>
    tpu.vector_store %arg26[%c0_304, %c49], %186 {strides = array<i32>} : memref<1x112xf32, #tpu.memory_space<vmem>>, vector<1x7xf32>,
    %188 = vector.extract_strided_slice %163 {offsets = [2, 0, 0], sizes = [1, 1, 7], strides = [1, 1, 1]} : vector<4x4x7xf32> to vector<1x1x7xf32>
    %189 = vector.shape_cast %188 : vector<1x1x7xf32> to vector<1x7xf32>
    %c0_305 = arith.constant 0 : index
    %c56 = arith.constant 56 : index
    %190 = vector.load %arg26[%c0_305, %c56] : memref<1x112xf32, #tpu.memory_space<vmem>>, vector<1x7xf32>
    tpu.vector_store %arg26[%c0_305, %c56], %189 {strides = array<i32>} : memref<1x112xf32, #tpu.memory_space<vmem>>, vector<1x7xf32>,
    %191 = vector.extract_strided_slice %163 {offsets = [2, 1, 0], sizes = [1, 1, 7], strides = [1, 1, 1]} : vector<4x4x7xf32> to vector<1x1x7xf32>
    %192 = vector.shape_cast %191 : vector<1x1x7xf32> to vector<1x7xf32>
    %c0_306 = arith.constant 0 : index
    %c63 = arith.constant 63 : index
    %193 = vector.load %arg26[%c0_306, %c63] : memref<1x112xf32, #tpu.memory_space<vmem>>, vector<1x7xf32>
    tpu.vector_store %arg26[%c0_306, %c63], %192 {strides = array<i32>} : memref<1x112xf32, #tpu.memory_space<vmem>>, vector<1x7xf32>,
    %194 = vector.extract_strided_slice %163 {offsets = [2, 2, 0], sizes = [1, 1, 7], strides = [1, 1, 1]} : vector<4x4x7xf32> to vector<1x1x7xf32>
    %195 = vector.shape_cast %194 : vector<1x1x7xf32> to vector<1x7xf32>
    %c0_307 = arith.constant 0 : index
    %c70 = arith.constant 70 : index
    %196 = vector.load %arg26[%c0_307, %c70] : memref<1x112xf32, #tpu.memory_space<vmem>>, vector<1x7xf32>
    tpu.vector_store %arg26[%c0_307, %c70], %195 {strides = array<i32>} : memref<1x112xf32, #tpu.memory_space<vmem>>, vector<1x7xf32>,
    %197 = vector.extract_strided_slice %163 {offsets = [2, 3, 0], sizes = [1, 1, 7], strides = [1, 1, 1]} : vector<4x4x7xf32> to vector<1x1x7xf32>
    %198 = vector.shape_cast %197 : vector<1x1x7xf32> to vector<1x7xf32>
    %c0_308 = arith.constant 0 : index
    %c77 = arith.constant 77 : index
    %199 = vector.load %arg26[%c0_308, %c77] : memref<1x112xf32, #tpu.memory_space<vmem>>, vector<1x7xf32>
    tpu.vector_store %arg26[%c0_308, %c77], %198 {strides = array<i32>} : memref<1x112xf32, #tpu.memory_space<vmem>>, vector<1x7xf32>,
    %200 = vector.extract_strided_slice %163 {offsets = [3, 0, 0], sizes = [1, 1, 7], strides = [1, 1, 1]} : vector<4x4x7xf32> to vector<1x1x7xf32>
    %201 = vector.shape_cast %200 : vector<1x1x7xf32> to vector<1x7xf32>
    %c0_309 = arith.constant 0 : index
    %c84 = arith.constant 84 : index
    %202 = vector.load %arg26[%c0_309, %c84] : memref<1x112xf32, #tpu.memory_space<vmem>>, vector<1x7xf32>
    tpu.vector_store %arg26[%c0_309, %c84], %201 {strides = array<i32>} : memref<1x112xf32, #tpu.memory_space<vmem>>, vector<1x7xf32>,
    %203 = vector.extract_strided_slice %163 {offsets = [3, 1, 0], sizes = [1, 1, 7], strides = [1, 1, 1]} : vector<4x4x7xf32> to vector<1x1x7xf32>
    %204 = vector.shape_cast %203 : vector<1x1x7xf32> to vector<1x7xf32>
    %c0_310 = arith.constant 0 : index
    %c91 = arith.constant 91 : index
    %205 = vector.load %arg26[%c0_310, %c91] : memref<1x112xf32, #tpu.memory_space<vmem>>, vector<1x7xf32>
    tpu.vector_store %arg26[%c0_310, %c91], %204 {strides = array<i32>} : memref<1x112xf32, #tpu.memory_space<vmem>>, vector<1x7xf32>,
    %206 = vector.extract_strided_slice %163 {offsets = [3, 2, 0], sizes = [1, 1, 7], strides = [1, 1, 1]} : vector<4x4x7xf32> to vector<1x1x7xf32>
    %207 = vector.shape_cast %206 : vector<1x1x7xf32> to vector<1x7xf32>
    %c0_311 = arith.constant 0 : index
    %c98 = arith.constant 98 : index
    %208 = vector.load %arg26[%c0_311, %c98] : memref<1x112xf32, #tpu.memory_space<vmem>>, vector<1x7xf32>
    tpu.vector_store %arg26[%c0_311, %c98], %207 {strides = array<i32>} : memref<1x112xf32, #tpu.memory_space<vmem>>, vector<1x7xf32>,
    %209 = vector.extract_strided_slice %163 {offsets = [3, 3, 0], sizes = [1, 1, 7], strides = [1, 1, 1]} : vector<4x4x7xf32> to vector<1x1x7xf32>
    %210 = vector.shape_cast %209 : vector<1x1x7xf32> to vector<1x7xf32>
    %c0_312 = arith.constant 0 : index
    %c105 = arith.constant 105 : index
    %211 = vector.load %arg26[%c0_312, %c105] : memref<1x112xf32, #tpu.memory_space<vmem>>, vector<1x7xf32>
    tpu.vector_store %arg26[%c0_312, %c105], %210 {strides = array<i32>} : memref<1x112xf32, #tpu.memory_space<vmem>>, vector<1x7xf32>,
    %c0_313 = arith.constant 0 : index
    %c0_314 = arith.constant 0 : index
    %212 = vector.load %arg26[%c0_313, %c0_314] : memref<1x112xf32, #tpu.memory_space<vmem>>, vector<1x112xf32>
    %c0_315 = arith.constant 0 : index
    %c0_316 = arith.constant 0 : index
    %213 = vector.load %arg16[%c0_315, %c0_316] : memref<112x32xf32, #tpu.memory_space<vmem>>, vector<112x32xf32>
    %cst_317 = arith.constant dense<0.000000e+00> : vector<1x32xf32>
    %214 = tpu.matmul %212, %213, %cst_317 {dimension_numbers = #tpu.dot_dimension_numbers<[1], [0], [0], [1], [0, 0, 1, 1], [], []>} : vector<1x112xf32>, vector<112x32xf32>, vector<1x32xf32> -> vector<1x32xf32>
    %c0_318 = arith.constant 0 : index
    %c0_319 = arith.constant 0 : index
    %215 = vector.load %arg17[%c0_318, %c0_319] : memref<1x32xf32, #tpu.memory_space<vmem>>, vector<1x32xf32>
    %216 = arith.addf %214, %215 : vector<1x32xf32>
    %cst_320 = arith.constant 0.000000e+00 : f32
    %217 = vector.broadcast %cst_320 : f32 to vector<1x32xf32>
    %218 = arith.maximumf %216, %217 : vector<1x32xf32>
    %c0_321 = arith.constant 0 : index
    %c0_322 = arith.constant 0 : index
    %219 = vector.load %arg18[%c0_321, %c0_322] : memref<32x16xf32, #tpu.memory_space<vmem>>, vector<32x16xf32>
    %cst_323 = arith.constant dense<0.000000e+00> : vector<1x16xf32>
    %220 = tpu.matmul %218, %219, %cst_323 {dimension_numbers = #tpu.dot_dimension_numbers<[1], [0], [0], [1], [0, 0, 1, 1], [], []>} : vector<1x32xf32>, vector<32x16xf32>, vector<1x16xf32> -> vector<1x16xf32>
    %c0_324 = arith.constant 0 : index
    %c0_325 = arith.constant 0 : index
    %221 = vector.load %arg19[%c0_324, %c0_325] : memref<1x16xf32, #tpu.memory_space<vmem>>, vector<1x16xf32>
    %222 = arith.addf %220, %221 : vector<1x16xf32>
    %223 = vector.shape_cast %222 : vector<1x16xf32> to vector<1x1x16xf32>
    %c0_326 = arith.constant 0 : index
    %c0_327 = arith.constant 0 : index
    %c0_328 = arith.constant 0 : index
    %224 = vector.load %arg20[%c0_326, %c0_327, %c0_328] : memref<1x1x16xf32, #tpu.memory_space<vmem>>, vector<1x1x16xf32>
    tpu.vector_store %arg20[%c0_326, %c0_327, %c0_328], %223 {strides = array<i32>} : memref<1x1x16xf32, #tpu.memory_space<vmem>>, vector<1x1x16xf32>,
    return
  }
  func.func @transform_0(%arg0: i32) -> (i32, i32, i32, i32) {
    %c0_i32 = arith.constant 0 : i32
    %c0_i32_0 = arith.constant 0 : i32
    %c0_i32_1 = arith.constant 0 : i32
    %c0_i32_2 = arith.constant 0 : i32
    return %arg0, %c0_i32, %c0_i32_0, %c0_i32_1 : i32, i32, i32, i32
  }
  func.func @transform_1(%arg0: i32) -> (i32, i32) {
    %c0_i32 = arith.constant 0 : i32
    %c0_i32_0 = arith.constant 0 : i32
    %c0_i32_1 = arith.constant 0 : i32
    return %c0_i32, %c0_i32_0 : i32, i32
  }
  func.func @transform_2(%arg0: i32) -> (i32, i32) {
    %c0_i32 = arith.constant 0 : i32
    %c0_i32_0 = arith.constant 0 : i32
    %c0_i32_1 = arith.constant 0 : i32
    return %c0_i32, %c0_i32_0 : i32, i32
  }
  func.func @transform_3(%arg0: i32) -> (i32, i32) {
    %c0_i32 = arith.constant 0 : i32
    %c0_i32_0 = arith.constant 0 : i32
    %c0_i32_1 = arith.constant 0 : i32
    return %c0_i32, %c0_i32_0 : i32, i32
  }
  func.func @transform_4(%arg0: i32) -> (i32, i32) {
    %c0_i32 = arith.constant 0 : i32
    %c0_i32_0 = arith.constant 0 : i32
    %c0_i32_1 = arith.constant 0 : i32
    return %c0_i32, %c0_i32_0 : i32, i32
  }
  func.func @transform_5(%arg0: i32) -> (i32, i32) {
    %c0_i32 = arith.constant 0 : i32
    %c0_i32_0 = arith.constant 0 : i32
    %c0_i32_1 = arith.constant 0 : i32
    return %c0_i32, %c0_i32_0 : i32, i32
  }
  func.func @transform_6(%arg0: i32) -> (i32, i32) {
    %c0_i32 = arith.constant 0 : i32
    %c0_i32_0 = arith.constant 0 : i32
    %c0_i32_1 = arith.constant 0 : i32
    return %c0_i32, %c0_i32_0 : i32, i32
  }
  func.func @transform_7(%arg0: i32) -> (i32, i32) {
    %c0_i32 = arith.constant 0 : i32
    %c0_i32_0 = arith.constant 0 : i32
    %c0_i32_1 = arith.constant 0 : i32
    return %c0_i32, %c0_i32_0 : i32, i32
  }
  func.func @transform_8(%arg0: i32) -> (i32, i32) {
    %c0_i32 = arith.constant 0 : i32
    %c0_i32_0 = arith.constant 0 : i32
    %c0_i32_1 = arith.constant 0 : i32
    return %c0_i32, %c0_i32_0 : i32, i32
  }
  func.func @transform_9(%arg0: i32) -> (i32, i32) {
    %c0_i32 = arith.constant 0 : i32
    %c0_i32_0 = arith.constant 0 : i32
    %c0_i32_1 = arith.constant 0 : i32
    return %c0_i32, %c0_i32_0 : i32, i32
  }
  func.func @transform_10(%arg0: i32) -> (i32, i32) {
    %c0_i32 = arith.constant 0 : i32
    %c0_i32_0 = arith.constant 0 : i32
    %c0_i32_1 = arith.constant 0 : i32
    return %c0_i32, %c0_i32_0 : i32, i32
  }
  func.func @transform_11(%arg0: i32) -> (i32, i32) {
    %c0_i32 = arith.constant 0 : i32
    %c0_i32_0 = arith.constant 0 : i32
    %c0_i32_1 = arith.constant 0 : i32
    return %c0_i32, %c0_i32_0 : i32, i32
  }
  func.func @transform_12(%arg0: i32) -> (i32, i32) {
    %c0_i32 = arith.constant 0 : i32
    %c0_i32_0 = arith.constant 0 : i32
    %c0_i32_1 = arith.constant 0 : i32
    return %c0_i32, %c0_i32_0 : i32, i32
  }
  func.func @transform_13(%arg0: i32) -> (i32, i32) {
    %c0_i32 = arith.constant 0 : i32
    %c0_i32_0 = arith.constant 0 : i32
    %c0_i32_1 = arith.constant 0 : i32
    return %c0_i32, %c0_i32_0 : i32, i32
  }
  func.func @transform_14(%arg0: i32) -> (i32, i32) {
    %c0_i32 = arith.constant 0 : i32
    %c0_i32_0 = arith.constant 0 : i32
    %c0_i32_1 = arith.constant 0 : i32
    return %c0_i32, %c0_i32_0 : i32, i32
  }
  func.func @transform_15(%arg0: i32) -> (i32, i32) {
    %c0_i32 = arith.constant 0 : i32
    %c0_i32_0 = arith.constant 0 : i32
    %c0_i32_1 = arith.constant 0 : i32
    return %c0_i32, %c0_i32_0 : i32, i32
  }
  func.func @transform_16(%arg0: i32) -> (i32, i32) {
    %c0_i32 = arith.constant 0 : i32
    %c0_i32_0 = arith.constant 0 : i32
    %c0_i32_1 = arith.constant 0 : i32
    return %c0_i32, %c0_i32_0 : i32, i32
  }
  func.func @transform_17(%arg0: i32) -> (i32, i32) {
    %c0_i32 = arith.constant 0 : i32
    %c0_i32_0 = arith.constant 0 : i32
    %c0_i32_1 = arith.constant 0 : i32
    return %c0_i32, %c0_i32_0 : i32, i32
  }
  func.func @transform_18(%arg0: i32) -> (i32, i32) {
    %c0_i32 = arith.constant 0 : i32
    %c0_i32_0 = arith.constant 0 : i32
    %c0_i32_1 = arith.constant 0 : i32
    return %c0_i32, %c0_i32_0 : i32, i32
  }
  func.func @transform_19(%arg0: i32) -> (i32, i32, i32) {
    %c0_i32 = arith.constant 0 : i32
    %c0_i32_0 = arith.constant 0 : i32
    %c0_i32_1 = arith.constant 0 : i32
    return %arg0, %c0_i32, %c0_i32_0 : i32, i32, i32
  }
}

</mosaic_0001>

<bundles_post_ra>
// kernel: dense_encoder_vae_forward.1
= control target key start
LH: loop header
LB: loop body
LE: loop exit
PB: predicated region body
PF: predicated region fallthrough
CT: control target
= control target key end

     0   :  { %s18283_s0 = inlined_call_operand.vmem [shape: f32[2,16,16,1], index: 0, kind: input, shape index: {}]   ;;  %s18284_s1 = inlined_call_operand.vmem [shape: f32[9,4], index: 1, kind: input, shape index: {}]   ;;  %s18285_s2 = inlined_call_operand.vmem [shape: f32[1,4], index: 2, kind: input, shape index: {}]   ;;  %s18286_s3 = inlined_call_operand.vmem [shape: f32[36,4], index: 3, kind: input, shape index: {}]   ;;  %s18287_s4 = inlined_call_operand.vmem [shape: f32[1,4], index: 4, kind: input, shape index: {}]   ;;  %s18288_s5 = inlined_call_operand.vmem [shape: f32[72,4], index: 5, kind: input, shape index: {}]   ;;  %s18289_s6 = inlined_call_operand.vmem [shape: f32[1,4], index: 6, kind: input, shape index: {}]   ;;  %s18290_s7 = inlined_call_operand.vmem [shape: f32[108,6], index: 7, kind: input, shape index: {}]   ;;  %s18291_s8 = inlined_call_operand.vmem [shape: f32[1,6], index: 8, kind: input, shape index: {}]   ;;  %s18292_s9 = inlined_call_operand.vmem [shape: f32[54,4], index: 9, kind: input, shape index: {}]   ;;  %s18293_s10 = inlined_call_operand.vmem [shape: f32[1,4], index: 10, kind: input, shape index: {}]   ;;  %s18294_s11 = inlined_call_operand.vmem [shape: f32[90,4], index: 11, kind: input, shape index: {}]   ;;  %s18295_s12 = inlined_call_operand.vmem [shape: f32[1,4], index: 12, kind: input, shape index: {}]   ;;  %s18296_s13 = inlined_call_operand.vmem [shape: f32[126,7], index: 13, kind: input, shape index: {}]   ;;  %s18297_s14 = inlined_call_operand.vmem [shape: f32[1,7], index: 14, kind: input, shape index: {}]   ;;  %s18298_s15 = inlined_call_operand.vmem [shape: f32[112,32], index: 15, kind: input, shape index: {}]   ;;  %s18299_s16 = inlined_call_operand.vmem [shape: f32[1,32], index: 16, kind: input, shape index: {}]   ;;  %s18300_s17 = inlined_call_operand.vmem [shape: f32[32,16], index: 17, kind: input, shape index: {}]   ;;  %s18301_s18 = inlined_call_operand.vmem [shape: f32[1,16], index: 18, kind: input, shape index: {}]   ;;  %s18302_s19 = inlined_call_operand.hbm [shape: f32[2,1,16], index: 19, kind: output, shape index: {}]  }
   0x1   :  { %18358 = sst [smem:[#allocation18_spill]] %s18283_s0 }
   0x2   :  { %18359 = sst [smem:[#allocation19_spill]] %s18284_s1 }
   0x3   :  { %18360 = sst [smem:[#allocation20_spill]] %s18285_s2 }
   0x4   :  { %18361 = sst [smem:[#allocation21_spill]] %s18286_s3 }
   0x5   :  { %18362 = sst [smem:[#allocation22_spill]] %s18287_s4 }
   0x6   :  { %18363 = sst [smem:[#allocation23_spill]] %s18299_s16 }
   0x7   :  { %18364 = sst [smem:[#allocation24_spill]] %s18301_s18 }
   0x8   :  { %18365 = sst [smem:[#allocation25_spill]] %s18302_s19 }
   0x9   :  { %24 = vsyncpa [#allocation9], 0 }
   0xa   :  { %26 = vsyncpa [#allocation9 + $0x1], 0  ;;  %s12448_s0 = smov 0   ;;  %s12450_s30 = smov 0  }
   0xb   :  { %s12452_s20 = smov 0   ;;  %s12454_s21 = smov 0  }
   0xc LB: > { %18366 = sst [smem:[#allocation11_spill]] %s12289_s0  ;;  %s12469_s1 = sadd.s32 4294967295, %s12301_s21   ;;  %s12301_s21 = sphi %s12454_s21, %s18435_s21   ;;  %s12297_s20 = sphi %s12452_s20, %s18437_s20   ;;  %s12293_s30 = sphi %s12450_s30, %s18439_s30   ;;  %s12289_s0 = sphi %s12448_s0, %s18438_s0  }
   0xd   : > { %18367 = sst [smem:[#allocation12_spill]] %s12297_s20  ;;  %s11181_s22 = sadd.s32 4294967294, %s12301_s21  }
   0xe   : > { %18368 = sst [smem:[#allocation13_spill]] %s12301_s21  ;;  %s12473_s2 = sadd.s32 1, %s12301_s21  }
   0xf   : > { %18369 = sst [smem:[#allocation14_spill]] %s12473_s2  ;;  %s443_s23 = sadd.s32 1, %s12297_s20 }
  0x10   : > { %s440_s24 = ssub.s32 %s12301_s21, %s12473_s2  ;;  %p453_p0 = scmp.ne.s32.totalorder %s12297_s20, %s12293_s30 }
  0x11   : > { %p441_p1 = scmp.eq.s32.totalorder %s440_s24, 0  ;;  %p454_p2 = scmp.eq.s32.totalorder %s12469_s1, 1 }
  0x12   : > { %p459_p3 = scmp.ne.s32.totalorder %s12293_s30, %s12289_s0  ;;  %p460_p4 = scmp.eq.s32.totalorder %s11181_s22, 1 }
  0x13   : > { %s12484_s25 = scalar_select %p441_p1, %s12297_s20, %s443_s23  }
  0x14   : > { %p12486_p5 = por %p454_p2, %p453_p0  ;;  %p12490_p6 = por %p460_p4, %p459_p3 }
  0x15   : > { %18370 = sst [smem:[#allocation15_spill]] %s12484_s25  ;;  %p11184_p7 = scmp.ge.s32.totalorder %s12301_s21, 1 }
  0x16   : > { %s18371_s3 = scalar_select %p12486_p5, 1, 0 }
  0x17   : > { %s18373_s26 = scalar_select %p12490_p6, 1, 0 }
  0x18   : > { %18372 = sst [smem:[#allocation16_spill]] %s18371_s3  ;;  %p540_p8 = scmp.lt.s32.totalorder %s12301_s21, 3 }
  0x19   : > { %18374 = sst [smem:[#allocation17_spill]] %s18373_s26 }
  0x1a   : > { %p541_p9 = pnand %p11184_p7, %p540_p8 }
  0x1b   : > { %vm600_vm0 = vcmask (!%p541_p9), 7168   ;;  %vm603_vm1 = vcmask (!%p541_p9), 1024   ;;  %v12303_v0 = vmov (!%p541_p9), 0.0   ;;  %p595_p10 = scmp.lt.s32.totalorder (!%p541_p9), %s12469_s1, 1  ;;  %s18375_s23 = sld [smem:[#allocation18_spill]] (!%p541_p9)  ;;  %vm2481_vm2 = vcmask (!%p541_p9), 1040384  }
  0x1c   : > { %544 = sbr.rel (%p541_p9) target bundleno = 5112 (0x13f8), region = 96  ;;  %601 = vst.msk [vmem:[#allocation2] sm:$0xff] (!%p541_p9), %vm600_vm0, %v12303_v0  ;;  %602 = vst.msk [vmem:[#allocation2 + $0x8] sm:$0xff] (!%p541_p9), %vm600_vm0, %v12303_v0  ;;  %s18306_s29 = smov (!%p541_p9), 3   ;;  %vm12311_vm3 = vmmov (!%p541_p9), 1   ;;  %vm2144_vm5 = vcmask (!%p541_p9), 15360  }
  0x1d   : > { %605 = vst.msk [vmem:[#allocation2 + $0x18] sm:$0xff] (!%p541_p9), %vm600_vm0, %v12303_v0  ;;  %606 = vst.msk [vmem:[#allocation2 + $0x20] sm:$0xff] (!%p541_p9), %vm600_vm0, %v12303_v0  ;;  %s18308_s22 = smov (!%p541_p9), 4   ;;  %s18377_s20 = sld [smem:[#allocation19_spill]] (!%p541_p9)  ;;  %vm2177_vm6 = vcmask (!%p541_p9), 23552   ;;  %vm2210_vm7 = vcmask (!%p541_p9), 31744  }
  0x1e   : > { %608 = vst.msk [vmem:[#allocation2 + $0x30] sm:$0xff] (!%p541_p9), %vm600_vm0, %v12303_v0  ;;  %609 = vst.msk [vmem:[#allocation2 + $0x38] sm:$0xff] (!%p541_p9), %vm600_vm0, %v12303_v0  ;;  %s18320_s25 = smov (!%p541_p9), 8   ;;  %s18380_s26 = smov (!%p541_p9), 1   ;;  %vm2243_vm8 = vcmask (!%p541_p9), 39936   ;;  %vm2276_vm9 = vcmask (!%p541_p9), 48128  }
  0x1f   : > { %611 = vst.msk [vmem:[#allocation2 + $0x48] sm:$0xff] (!%p541_p9), %vm600_vm0, %v12303_v0  ;;  %612 = vst.msk [vmem:[#allocation2 + $0x50] sm:$0xff] (!%p541_p9), %vm600_vm0, %v12303_v0  ;;  %vm18350_vm10 = vcmask (!%p541_p9), 56320   ;;  %vm2342_vm11 = vcmask (!%p541_p9), 64512   ;;  %vm2384_vm12 = vcmask (!%p541_p9), 72704   ;;  %vm656_vm13 = vcmask (!%p541_p9), 97280  }
  0x20   : > { %614 = vst.msk [vmem:[#allocation2 + $0x60] sm:$0xff] (!%p541_p9), %vm600_vm0, %v12303_v0  ;;  %615 = vst.msk [vmem:[#allocation2 + $0x68] sm:$0xff] (!%p541_p9), %vm600_vm0, %v12303_v0  ;;  %vm659_vm14 = vcmask (!%p541_p9), 91136   ;;  %s18387_s0 = smov (!%p541_p9), 12   ;;  %vm4458_vm15 = vcmask (!%p541_p9), 1043456   ;;  %s18393_s4 = sld [smem:[#allocation22_spill]] (!%p541_p9) }
  0x21   : > { %617 = vst.msk [vmem:[#allocation2 + $0x78] sm:$0xff] (!%p541_p9), %vm600_vm0, %v12303_v0  ;;  %618 = vst.msk [vmem:[#allocation2 + $0x80] sm:$0xff] (!%p541_p9), %vm600_vm0, %v12303_v0  ;;  %s18394_s21 = smov (!%p541_p9), 40   ;;  %s12322_s16 = smov (!%p541_p9), 64  }
  0x22   : > { %620 = vst.msk [vmem:[#allocation2 + $0x90] sm:$0xff] (!%p541_p9), %vm600_vm0, %v12303_v0  ;;  %621 = vst.msk [vmem:[#allocation2 + $0x98] sm:$0xff] (!%p541_p9), %vm600_vm0, %v12303_v0  ;;  %s12323_s19 = smov (!%p541_p9), 36   ;;  %s12328_s3 = smov (!%p541_p9), 18  }
  0x23   : > { %623 = vst.msk [vmem:[#allocation2 + $0xa8] sm:$0xff] %vm600_vm0, %v12303_v0  ;;  %624 = vst.msk [vmem:[#allocation2 + $0xb0] sm:$0xff] %vm600_vm0, %v12303_v0  ;;  %s596_s27 = scalar_select %p595_p10, %s12469_s1, 1  ;;  %v863_v4 = vld [vmem:[#allocation2 + $0x2] sm:$0xff] }
  0x24   : > { %626 = vst.msk [vmem:[#allocation2 + $0xc0] sm:$0xff] %vm600_vm0, %v12303_v0  ;;  %627 = vst.msk [vmem:[#allocation2 + $0xc8] sm:$0xff] %vm600_vm0, %v12303_v0  ;;  %v831_v5 = vld [vmem:[#allocation2 + $0x1] sm:$0xff]  ;;  %s18378_s2 = smov %s18377_s20  ;;  %s593_s18 = sand.u32 1, %s12293_s30  }
  0x25   : > { %629 = vst.msk [vmem:[#allocation2 + $0xd8] sm:$0xff] %vm600_vm0, %v12303_v0  ;;  %630 = vst.msk [vmem:[#allocation2 + $0xe0] sm:$0xff] %vm600_vm0, %v12303_v0  ;;  %s11357_s28 = sshll.u32 %s596_s27, 8  ;;  %s18318_s27 = smov 2   ;;  %v2375_v26 = vld [vmem:[%s18377_s20] sm:$0xff] }
  0x26   : > { %632 = vst.msk [vmem:[#allocation2 + $0xf0] sm:$0xff] %vm600_vm0, %v12303_v0  ;;  %633 = vst.msk [vmem:[#allocation2 + $0xf8] sm:$0xff] %vm600_vm0, %v12303_v0  ;;  %s12609_s24 = scalar_lea.vmem %s18375_s23, %s11357_s28  ;;  %1248 = vrot.lane.b32.xlu1 %v863_v4, %s18318_s27  ;;  %s18310_s28 = smov 1   ;;  %v2376_v27 = vld [vmem:[%s18378_s2 + $0x8] sm:$0x1] }
  0x27   : > { %635 = vst.msk [vmem:[#allocation2 + $0x108] sm:$0xff] %vm600_vm0, %v12303_v0  ;;  %636 = vst.msk [vmem:[#allocation2 + $0x110] sm:$0xff] %vm600_vm0, %v12303_v0  ;;  %v734_v1 = vld [vmem:[%s12609_s24] sm:$0xff]  ;;  %v735_v2 = vld [vmem:[%s12609_s24 + $0x8] sm:$0xff]  ;;  %1120 = vrot.lane.b32.xlu0 %v831_v5, %s18310_s28  ;;  %s18315_s23 = smov 5   ;;  %v11995_v28 = vpack.c.bf16 %v2376_v27, %v2375_v26  ;;  %s18379_s20 = smov 4  }
  0x28   : > { %638 = vst.msk [vmem:[#allocation2 + $0x120] sm:$0xff] %vm600_vm0, %v12303_v0  ;;  %639 = vst.msk [vmem:[#allocation2 + $0x128] sm:$0xff] %vm600_vm0, %v12303_v0  ;;  %v736_v3 = vld [vmem:[%s12609_s24 + $0x10] sm:$0xff]  ;;  %v737_v8 = vld [vmem:[%s12609_s24 + $0x18] sm:$0xff]  ;;  %s18338_s2 = smov 32  }
  0x29   : > { %641 = vst.msk [vmem:[#allocation2 + $0x138] sm:$0xff] %vm600_vm0, %v12303_v0  ;;  %642 = vst.msk [vmem:[#allocation2 + $0x140] sm:$0xff] %vm600_vm0, %v12303_v0  ;;  %v738_v9 = vld [vmem:[%s12609_s24 + $0x20] sm:$0xff]  ;;  %v739_v10 = vld [vmem:[%s12609_s24 + $0x28] sm:$0xff] }
  0x2a   : > { %644 = vst.msk [vmem:[#allocation2 + $0x150] sm:$0xff] %vm600_vm0, %v12303_v0  ;;  %645 = vst.msk [vmem:[#allocation2 + $0x158] sm:$0xff] %vm600_vm0, %v12303_v0  ;;  %v740_v11 = vld [vmem:[%s12609_s24 + $0x30] sm:$0xff]  ;;  %v741_v12 = vld [vmem:[%s12609_s24 + $0x38] sm:$0xff] }
  0x2b   : > { %647 = vst.msk [vmem:[#allocation2 + $0x168] sm:$0xff] %vm600_vm0, %v12303_v0  ;;  %648 = vst.msk [vmem:[#allocation2 + $0x170] sm:$0xff] %vm600_vm0, %v12303_v0  ;;  %v742_v13 = vld [vmem:[%s12609_s24 + $0x40] sm:$0xff]  ;;  %v743_v14 = vld [vmem:[%s12609_s24 + $0x48] sm:$0xff] }
  0x2c   : > { %650 = vst.msk [vmem:[#allocation2 + $0x180] sm:$0xff] %vm600_vm0, %v12303_v0  ;;  %651 = vst.msk [vmem:[#allocation2 + $0x188] sm:$0xff] %vm600_vm0, %v12303_v0  ;;  %v744_v20 = vld [vmem:[%s12609_s24 + $0x50] sm:$0xff]  ;;  %v745_v23 = vld [vmem:[%s12609_s24 + $0x58] sm:$0xff] }
  0x2d   : > { %653 = vst.msk [vmem:[#allocation2 + $0x198] sm:$0xff] %vm600_vm0, %v12303_v0  ;;  %654 = vst.msk [vmem:[#allocation2 + $0x1a0] sm:$0xff] %vm600_vm0, %v12303_v0  ;;  %v746_v32 = vld [vmem:[%s12609_s24 + $0x60] sm:$0xff]  ;;  %v747_v34 = vld [vmem:[%s12609_s24 + $0x68] sm:$0xff] }
  0x2e   : > { %604 = vst.msk [vmem:[#allocation2 + $0x10] sm:$0x3] %vm603_vm1, %v12303_v0  ;;  %607 = vst.msk [vmem:[#allocation2 + $0x28] sm:$0x3] %vm603_vm1, %v12303_v0  ;;  %v748_v40 = vld [vmem:[%s12609_s24 + $0x70] sm:$0xff]  ;;  %v749_v42 = vld [vmem:[%s12609_s24 + $0x78] sm:$0xff] }
  0x2f   : > { %610 = vst.msk [vmem:[#allocation2 + $0x40] sm:$0x3] %vm603_vm1, %v12303_v0  ;;  %613 = vst.msk [vmem:[#allocation2 + $0x58] sm:$0x3] %vm603_vm1, %v12303_v0  ;;  %v750_v48 = vld [vmem:[%s12609_s24 + $0x80] sm:$0xff]  ;;  %v751_v54 = vld [vmem:[%s12609_s24 + $0x88] sm:$0xff] }
  0x30   : > { %616 = vst.msk [vmem:[#allocation2 + $0x70] sm:$0x3] %vm603_vm1, %v12303_v0  ;;  %619 = vst.msk [vmem:[#allocation2 + $0x88] sm:$0x3] %vm603_vm1, %v12303_v0  ;;  %v753_v26 = vld [vmem:[%s12609_s24 + $0x98] sm:$0xff] }
  0x31   : > { %622 = vst.msk [vmem:[#allocation2 + $0xa0] sm:$0x3] %vm603_vm1, %v12303_v0  ;;  %625 = vst.msk [vmem:[#allocation2 + $0xb8] sm:$0x3] %vm603_vm1, %v12303_v0 }
  0x32   : > { %628 = vst.msk [vmem:[#allocation2 + $0xd0] sm:$0x3] %vm603_vm1, %v12303_v0  ;;  %631 = vst.msk [vmem:[#allocation2 + $0xe8] sm:$0x3] %vm603_vm1, %v12303_v0 }
  0x33   : > { %634 = vst.msk [vmem:[#allocation2 + $0x100] sm:$0x3] %vm603_vm1, %v12303_v0  ;;  %637 = vst.msk [vmem:[#allocation2 + $0x118] sm:$0x3] %vm603_vm1, %v12303_v0 }
  0x34   : > { %640 = vst.msk [vmem:[#allocation2 + $0x130] sm:$0x3] %vm603_vm1, %v12303_v0  ;;  %643 = vst.msk [vmem:[#allocation2 + $0x148] sm:$0x3] %vm603_vm1, %v12303_v0 }
  0x35   : > { %646 = vst.msk [vmem:[#allocation2 + $0x160] sm:$0x3] %vm603_vm1, %v12303_v0  ;;  %649 = vst.msk [vmem:[#allocation2 + $0x178] sm:$0x3] %vm603_vm1, %v12303_v0  ;;  %v864_v6 = vld [vmem:[#allocation2 + $0xa] sm:$0xff] }
  0x36   : > { %652 = vst.msk [vmem:[#allocation2 + $0x190] sm:$0x3] %vm603_vm1, %v12303_v0  ;;  %655 = vst.msk [vmem:[#allocation2 + $0x1a8] sm:$0x3] %vm603_vm1, %v12303_v0  ;;  %v832_v7 = vld [vmem:[#allocation2 + $0x9] sm:$0xff]  ;;  %1250 = vrot.lane.b32.xlu1 %v864_v6, %s18318_s27  ;;  %vm4217_vm1 = vcmask 162816  }
  0x37   : > { %767 = vst.msk [vmem:[#allocation2 + $0x19] sm:$0xff] %vm600_vm0, %v734_v1  ;;  %768 = vst.msk [vmem:[#allocation2 + $0x21] sm:$0xff] %vm600_vm0, %v735_v2  ;;  %1122 = vrot.lane.b32.xlu0 %v832_v7, %s18310_s28 }
  0x38   : > { %769 = vst.msk [vmem:[#allocation2 + $0x31] sm:$0xff] %vm600_vm0, %v736_v3  ;;  %770 = vst.msk [vmem:[#allocation2 + $0x39] sm:$0xff] %vm600_vm0, %v737_v8 }
  0x39   : > { %771 = vst.msk [vmem:[#allocation2 + $0x49] sm:$0xff] %vm600_vm0, %v738_v9  ;;  %772 = vst.msk [vmem:[#allocation2 + $0x51] sm:$0xff] %vm600_vm0, %v739_v10  ;;  %v799_v9 = vld [vmem:[#allocation2] sm:$0xff]  ;;  %v752_v10 = vld [vmem:[%s12609_s24 + $0x90] sm:$0xff] }
  0x3a   : > { %773 = vst.msk [vmem:[#allocation2 + $0x61] sm:$0xff] %vm600_vm0, %v740_v11  ;;  %774 = vst.msk [vmem:[#allocation2 + $0x69] sm:$0xff] %vm600_vm0, %v741_v12 }
  0x3b   : > { %775 = vst.msk [vmem:[#allocation2 + $0x79] sm:$0xff] %vm600_vm0, %v742_v13  ;;  %776 = vst.msk [vmem:[#allocation2 + $0x81] sm:$0xff] %vm600_vm0, %v743_v14 }
  0x3c   : > { %777 = vst.msk [vmem:[#allocation2 + $0x91] sm:$0xff] %vm600_vm0, %v744_v20  ;;  %778 = vst.msk [vmem:[#allocation2 + $0x99] sm:$0xff] %vm600_vm0, %v745_v23 }
  0x3d   : > { %vm11996_vm4 = vmpackc.low %vm2481_vm2, %vm12311_vm3  ;;  %779 = vst.msk [vmem:[#allocation2 + $0xa9] sm:$0xff] %vm600_vm0, %v746_v32  ;;  %vm4250_vm2 = vcmask 195584  }
  0x3e   : > { %v12635_v15 = vld [vmem:[#allocation2 + $0x20] sm:$0xff]  ;;  %v12637_v16 = vld [vmem:[#allocation2 + $0x18] sm:$0xff]  ;;  %11997 = vmatprep.subr.msk.bf16.mxu0 %vm11996_vm4, %v11995_v28  ;;  %780 = vst.msk [vmem:[#allocation2 + $0xb1] sm:$0xff] %vm600_vm0, %v747_v34  ;;  %781 = vst.msk [vmem:[#allocation2 + $0xc1] sm:$0xff] %vm600_vm0, %v748_v40 }
  0x3f   : > { %1378 = vrot.lane.b32.xlu1 %v12635_v15, %s18306_s29  ;;  %1376 = vrot.lane.b32.xlu0 %v12637_v16, %s18306_s29  ;;  %v927_v17 = vld [vmem:[#allocation2 + $0x19] sm:$0xff]  ;;  %v928_v18 = vld [vmem:[#allocation2 + $0x21] sm:$0xff]  ;;  %v12651_v22 = vld [vmem:[#allocation2 + $0x30] sm:$0xff]  ;;  %s18324_s29 = smov 6   ;;  %782 = vst.msk [vmem:[#allocation2 + $0xc9] sm:$0xff] %vm600_vm0, %v749_v42 }
  0x40   : > { %v959_v19 = vld [vmem:[#allocation2 + $0x1a] sm:$0xff]  ;;  %v960_v21 = vld [vmem:[#allocation2 + $0x22] sm:$0xff]  ;;  %v1024_v25 = vld [vmem:[#allocation2 + $0x31] sm:$0xff]  ;;  %12000 = vmatpush3.bf16.msk.msra.mxu0 %vm11996_vm4, %v11995_v28  ;;  %783 = vst.msk [vmem:[#allocation2 + $0xd9] sm:$0xff] %vm600_vm0, %v750_v48  ;;  %vm4283_vm4 = vcmask 228352  }
  0x41   : > { %v12661_v24 = vld [vmem:[#allocation2 + $0x38] sm:$0xff]  ;;  %v12686_v33 = vld [vmem:[#allocation2 + $0x48] sm:$0xff]  ;;  %v12696_v35 = vld [vmem:[#allocation2 + $0x50] sm:$0xff]  ;;  %784 = vst.msk [vmem:[#allocation2 + $0xe1] sm:$0xff] %vm600_vm0, %v751_v54 }
  0x42   : > { %v1025_v29 = vld [vmem:[#allocation2 + $0x39] sm:$0xff]  ;;  %v1026_v36 = vld [vmem:[#allocation2 + $0x49] sm:$0xff]  ;;  %v1027_v37 = vld [vmem:[#allocation2 + $0x51] sm:$0xff]  ;;  %785 = vst.msk [vmem:[#allocation2 + $0xf1] sm:$0xff] %vm600_vm0, %v752_v10 }
  0x43   : > { %1504 = vrot.lane.b32.xlu0 %v927_v17, %s18308_s22  ;;  %1124 = vrot.lane.b32.xlu1 %v927_v17, %s18310_s28  ;;  %v1056_v30 = vld [vmem:[#allocation2 + $0x32] sm:$0xff]  ;;  %v1057_v31 = vld [vmem:[#allocation2 + $0x3a] sm:$0xff]  ;;  %v1058_v38 = vld [vmem:[#allocation2 + $0x4a] sm:$0xff]  ;;  %786 = vst.msk [vmem:[#allocation2 + $0xf9] sm:$0xff] %vm600_vm0, %v753_v26 }
  0x44   : > { %v1059_v39 = vld [vmem:[#allocation2 + $0x52] sm:$0xff]  ;;  %v12714_v41 = vld [vmem:[#allocation2 + $0x60] sm:$0xff]  ;;  %v12724_v43 = vld [vmem:[#allocation2 + $0x68] sm:$0xff]  ;;  %662 = vst.msk [vmem:[#allocation3 + $0x20] sm:$0xff] %vm656_vm13, %v12303_v0 }
  0x45   : > { %v1028_v44 = vld [vmem:[#allocation2 + $0x61] sm:$0xff]  ;;  %v1029_v45 = vld [vmem:[#allocation2 + $0x69] sm:$0xff]  ;;  %v12742_v51 = vld [vmem:[#allocation2 + $0x78] sm:$0xff]  ;;  %663 = vst.msk [vmem:[#allocation3 + $0x28] sm:$0x3] %vm659_vm14, %v12303_v0 }
  0x46   : > { %v1060_v46 = vld [vmem:[#allocation2 + $0x62] sm:$0xff]  ;;  %v1061_v47 = vld [vmem:[#allocation2 + $0x6a] sm:$0xff]  ;;  %v1030_v58 = vld [vmem:[#allocation2 + $0x79] sm:$0xff]  ;;  %657 = vst.msk [vmem:[#allocation3] sm:$0xff] %vm656_vm13, %v12303_v0 }
  0x47   : > { %1506 = vrot.lane.b32.xlu0 %v928_v18, %s18308_s22  ;;  %1632 = vrot.lane.b32.xlu1 %v959_v19, %s18315_s23  ;;  %s18376_s22 = smov 3   ;;  %v12758_v57 = vld [vmem:[#allocation2 + $0x80] sm:$0xff]  ;;  %v12790_v17 = vld [vmem:[#allocation2 + $0x90] sm:$0xff]  ;;  %658 = vst.msk [vmem:[#allocation3 + $0x8] sm:$0xff] %vm656_vm13, %v12303_v0  ;;  %661 = vst.msk [vmem:[#allocation3 + $0x18] sm:$0xff] %vm656_vm13, %v12303_v0 }
  0x48   : > { %v1031_v63 = vld [vmem:[#allocation2 + $0x81] sm:$0xff]  ;;  %660 = vst.msk [vmem:[#allocation3 + $0x10] sm:$0x3] %vm659_vm14, %v12303_v0  ;;  %666 = vst.msk [vmem:[#allocation3 + $0x40] sm:$0x3] %vm659_vm14, %v12303_v0 }
  0x49   : > { %v1062_v1 = vld [vmem:[#allocation2 + $0x7a] sm:$0xff]  ;;  %v1063_v6 = vld [vmem:[#allocation2 + $0x82] sm:$0xff]  ;;  %664 = vst.msk [vmem:[#allocation3 + $0x30] sm:$0xff] %vm656_vm13, %v12303_v0  ;;  %665 = vst.msk [vmem:[#allocation3 + $0x38] sm:$0xff] %vm656_vm13, %v12303_v0 }
  0x4a   : > { %667 = vst.msk [vmem:[#allocation3 + $0x48] sm:$0xff] %vm656_vm13, %v12303_v0  ;;  %668 = vst.msk [vmem:[#allocation3 + $0x50] sm:$0xff] %vm656_vm13, %v12303_v0 }
  0x4b   : > { %1126 = vrot.lane.b32.xlu0 %v928_v18, %s18310_s28  ;;  %1252 = vrot.lane.b32.xlu1 %v959_v19, %s18318_s27  ;;  %s18381_s28 = smov 5   ;;  %669 = vst.msk [vmem:[#allocation3 + $0x58] sm:$0x3] %vm659_vm14, %v12303_v0  ;;  %672 = vst.msk [vmem:[#allocation3 + $0x70] sm:$0x3] %vm659_vm14, %v12303_v0 }
  0x4c   : > { %670 = vst.msk [vmem:[#allocation3 + $0x60] sm:$0xff] %vm656_vm13, %v12303_v0  ;;  %671 = vst.msk [vmem:[#allocation3 + $0x68] sm:$0xff] %vm656_vm13, %v12303_v0 }
  0x4d   : > { %673 = vst.msk [vmem:[#allocation3 + $0x78] sm:$0xff] %vm656_vm13, %v12303_v0  ;;  %674 = vst.msk [vmem:[#allocation3 + $0x80] sm:$0xff] %vm656_vm13, %v12303_v0 }
  0x4e   : > { %675 = vst.msk [vmem:[#allocation3 + $0x88] sm:$0x3] %vm659_vm14, %v12303_v0  ;;  %678 = vst.msk [vmem:[#allocation3 + $0xa0] sm:$0x3] %vm659_vm14, %v12303_v0 }
  0x4f   : > { %1634 = vrot.lane.b32.xlu0 %v960_v21, %s18315_s23  ;;  %1760 = vrot.lane.b32.xlu1 %v12651_v22, %s18324_s29  ;;  %s18382_s23 = smov 2   ;;  %676 = vst.msk [vmem:[#allocation3 + $0x90] sm:$0xff] %vm656_vm13, %v12303_v0  ;;  %677 = vst.msk [vmem:[#allocation3 + $0x98] sm:$0xff] %vm656_vm13, %v12303_v0 }
  0x50   : > { %679 = vst.msk [vmem:[#allocation3 + $0xa8] sm:$0xff] %vm656_vm13, %v12303_v0  ;;  %680 = vst.msk [vmem:[#allocation3 + $0xb0] sm:$0xff] %vm656_vm13, %v12303_v0 }
  0x51   : > { %681 = vst.msk [vmem:[#allocation3 + $0xb8] sm:$0x3] %vm659_vm14, %v12303_v0  ;;  %684 = vst.msk [vmem:[#allocation3 + $0xd0] sm:$0x3] %vm659_vm14, %v12303_v0 }
  0x52   : > { %682 = vst.msk [vmem:[#allocation3 + $0xc0] sm:$0xff] %vm656_vm13, %v12303_v0  ;;  %683 = vst.msk [vmem:[#allocation3 + $0xc8] sm:$0xff] %vm656_vm13, %v12303_v0 }
  0x53   : > { %1254 = vrot.lane.b32.xlu0 %v960_v21, %s18318_s27  ;;  %1380 = vrot.lane.b32.xlu1 %v12651_v22, %s18376_s22  ;;  %s18322_s27 = smov 7   ;;  %v800_v21 = vld [vmem:[#allocation2 + $0x8] sm:$0xff]  ;;  %685 = vst.msk [vmem:[#allocation3 + $0xd8] sm:$0xff] %vm656_vm13, %v12303_v0  ;;  %686 = vst.msk [vmem:[#allocation3 + $0xe0] sm:$0xff] %vm656_vm13, %v12303_v0 }
  0x54   : > { %687 = vst.msk [vmem:[#allocation3 + $0xe8] sm:$0x3] %vm659_vm14, %v12303_v0  ;;  %690 = vst.msk [vmem:[#allocation3 + $0x100] sm:$0x3] %vm659_vm14, %v12303_v0 }
  0x55   : > { %688 = vst.msk [vmem:[#allocation3 + $0xf0] sm:$0xff] %vm656_vm13, %v12303_v0  ;;  %689 = vst.msk [vmem:[#allocation3 + $0xf8] sm:$0xff] %vm656_vm13, %v12303_v0 }
  0x56   : > { %691 = vst.msk [vmem:[#allocation3 + $0x108] sm:$0xff] %vm656_vm13, %v12303_v0  ;;  %692 = vst.msk [vmem:[#allocation3 + $0x110] sm:$0xff] %vm656_vm13, %v12303_v0 }
  0x57   : > { %1762 = vrot.lane.b32.xlu0 %v12661_v24, %s18324_s29  ;;  %1888 = vrot.lane.b32.xlu1 %v1024_v25, %s18322_s27  ;;  %693 = vst.msk [vmem:[#allocation3 + $0x118] sm:$0x3] %vm659_vm14, %v12303_v0  ;;  %696 = vst.msk [vmem:[#allocation3 + $0x130] sm:$0x3] %vm659_vm14, %v12303_v0 }
  0x58   : > { %694 = vst.msk [vmem:[#allocation3 + $0x120] sm:$0xff] %vm656_vm13, %v12303_v0  ;;  %695 = vst.msk [vmem:[#allocation3 + $0x128] sm:$0xff] %vm656_vm13, %v12303_v0 }
  0x59   : > { %697 = vst.msk [vmem:[#allocation3 + $0x138] sm:$0xff] %vm656_vm13, %v12303_v0  ;;  %698 = vst.msk [vmem:[#allocation3 + $0x140] sm:$0xff] %vm656_vm13, %v12303_v0 }
  0x5a   : > { %699 = vst.msk [vmem:[#allocation3 + $0x148] sm:$0x3] %vm659_vm14, %v12303_v0  ;;  %702 = vst.msk [vmem:[#allocation3 + $0x160] sm:$0x3] %vm659_vm14, %v12303_v0 }
  0x5b   : > { %1382 = vrot.lane.b32.xlu0 %v12661_v24, %s18376_s22  ;;  %1508 = vrot.lane.b32.xlu1 %v1024_v25, %s18379_s20  ;;  %700 = vst.msk [vmem:[#allocation3 + $0x150] sm:$0xff] %vm656_vm13, %v12303_v0  ;;  %701 = vst.msk [vmem:[#allocation3 + $0x158] sm:$0xff] %vm656_vm13, %v12303_v0 }
  0x5c   : > { %703 = vst.msk [vmem:[#allocation3 + $0x168] sm:$0xff] %vm656_vm13, %v12303_v0  ;;  %704 = vst.msk [vmem:[#allocation3 + $0x170] sm:$0xff] %vm656_vm13, %v12303_v0 }
  0x5d   : > { %705 = vst.msk [vmem:[#allocation3 + $0x178] sm:$0x3] %vm659_vm14, %v12303_v0  ;;  %708 = vst.msk [vmem:[#allocation3 + $0x190] sm:$0x3] %vm659_vm14, %v12303_v0 }
  0x5e   : > { %706 = vst.msk [vmem:[#allocation3 + $0x180] sm:$0xff] %vm656_vm13, %v12303_v0  ;;  %707 = vst.msk [vmem:[#allocation3 + $0x188] sm:$0xff] %vm656_vm13, %v12303_v0 }
  0x5f   : > { %1890 = vrot.lane.b32.xlu0 %v1025_v29, %s18322_s27  ;;  %2016 = vrot.lane.b32.xlu1 %v1056_v30, %s18320_s25  ;;  %709 = vst.msk [vmem:[#allocation3 + $0x198] sm:$0xff] %vm656_vm13, %v12303_v0  ;;  %710 = vst.msk [vmem:[#allocation3 + $0x1a0] sm:$0xff] %vm656_vm13, %v12303_v0 }
  0x60   : > { %711 = vst.msk [vmem:[#allocation3 + $0x1a8] sm:$0x3] %vm659_vm14, %v12303_v0  ;;  %vm18354_vm14 = vcmask 457728  }
  0x63   : > { %1128 = vrot.lane.b32.xlu0 %v1024_v25, %s18380_s26  ;;  %1510 = vrot.lane.b32.xlu1 %v1025_v29, %s18379_s20 }
  0x67   : > { %1636 = vrot.lane.b32.xlu0 %v1056_v30, %s18381_s28  ;;  %2018 = vrot.lane.b32.xlu1 %v1057_v31, %s18320_s25 }
  0x6b   : > { %1130 = vrot.lane.b32.xlu0 %v1025_v29, %s18380_s26  ;;  %1256 = vrot.lane.b32.xlu1 %v1056_v30, %s18382_s23 }
  0x6f   : > { %1638 = vrot.lane.b32.xlu0 %v1057_v31, %s18381_s28  ;;  %1764 = vrot.lane.b32.xlu1 %v12686_v33, %s18324_s29 }
  0x73   : > { %1258 = vrot.lane.b32.xlu0 %v1057_v31, %s18382_s23  ;;  %1384 = vrot.lane.b32.xlu1 %v12686_v33, %s18376_s22 }
  0x77   : > { %1766 = vrot.lane.b32.xlu0 %v12696_v35, %s18324_s29  ;;  %1892 = vrot.lane.b32.xlu1 %v1026_v36, %s18322_s27 }
  0x7b   : > { %1386 = vrot.lane.b32.xlu0 %v12696_v35, %s18376_s22  ;;  %1512 = vrot.lane.b32.xlu1 %v1026_v36, %s18379_s20 }
  0x7f   : > { %1894 = vrot.lane.b32.xlu0 %v1027_v37, %s18322_s27  ;;  %2020 = vrot.lane.b32.xlu1 %v1058_v38, %s18320_s25 }
  0x83   : > { %1132 = vrot.lane.b32.xlu0 %v1026_v36, %s18380_s26  ;;  %1514 = vrot.lane.b32.xlu1 %v1027_v37, %s18379_s20  ;;  %v12815_v36 = vld [vmem:[#allocation2 + $0x98] sm:$0xff] }
  0x87   : > { %1640 = vrot.lane.b32.xlu0 %v1058_v38, %s18381_s28  ;;  %2022 = vrot.lane.b32.xlu1 %v1059_v39, %s18320_s25 }
  0x8b   : > { %1134 = vrot.lane.b32.xlu0 %v1027_v37, %s18380_s26  ;;  %1260 = vrot.lane.b32.xlu1 %v1058_v38, %s18382_s23  ;;  %v1032_v37 = vld [vmem:[#allocation2 + $0x91] sm:$0xff] }
  0x8f   : > { %1642 = vrot.lane.b32.xlu0 %v1059_v39, %s18381_s28  ;;  %1768 = vrot.lane.b32.xlu1 %v12714_v41, %s18324_s29 }
  0x93   : > { %1262 = vrot.lane.b32.xlu0 %v1059_v39, %s18382_s23  ;;  %1388 = vrot.lane.b32.xlu1 %v12714_v41, %s18376_s22 }
  0x97   : > { %1770 = vrot.lane.b32.xlu0 %v12724_v43, %s18324_s29  ;;  %1896 = vrot.lane.b32.xlu1 %v1028_v44, %s18322_s27 }
  0x98   : > { %v1249_v49 = vpop.permute.xlu1 %1248 }
  0x99   : > { %v1121_v50 = vpop.permute.xlu0 %1120 }
  0x9a   : > { %v2112_v11 = vsel %vm600_vm0, %v799_v9, %v1121_v50  ;;  %v1033_v50 = vld [vmem:[#allocation2 + $0x99] sm:$0xff] }
  0x9b   : > { %1390 = vrot.lane.b32.xlu0 %v12724_v43, %s18376_s22  ;;  %1516 = vrot.lane.b32.xlu1 %v1028_v44, %s18379_s20  ;;  %v2145_v14 = vsel %vm2144_vm5, %v2112_v11, %v1249_v49 }
  0x9f   : > { %1898 = vrot.lane.b32.xlu0 %v1029_v45, %s18322_s27  ;;  %2024 = vrot.lane.b32.xlu1 %v1060_v46, %s18320_s25 }
  0xa3   : > { %1136 = vrot.lane.b32.xlu0 %v1028_v44, %s18380_s26  ;;  %1518 = vrot.lane.b32.xlu1 %v1029_v45, %s18379_s20 }
  0xa7   : > { %1644 = vrot.lane.b32.xlu0 %v1060_v46, %s18381_s28  ;;  %2026 = vrot.lane.b32.xlu1 %v1061_v47, %s18320_s25 }
  0xa8   : > { %v12744_v52 = vpop.permute.xlu1 %1250 }
  0xa9   : > { %v12746_v53 = vpop.permute.xlu0 %1122 }
  0xaa   : > { %v2113_v28 = vsel %vm600_vm0, %v800_v21, %v12746_v53 }
  0xab   : > { %1138 = vrot.lane.b32.xlu0 %v1029_v45, %s18380_s26  ;;  %1264 = vrot.lane.b32.xlu1 %v1060_v46, %s18382_s23  ;;  %v2146_v34 = vsel %vm2144_vm5, %v2113_v28, %v12744_v52  ;;  %v1064_v52 = vld [vmem:[#allocation2 + $0x92] sm:$0xff] }
  0xaf   : > { %1646 = vrot.lane.b32.xlu0 %v1061_v47, %s18381_s28  ;;  %1772 = vrot.lane.b32.xlu1 %v12742_v51, %s18324_s29 }
  0xb1   : > { %v12753_v55 = vpop.permute.xlu1 %1378  ;;  %v1377_v56 = vpop.permute.xlu0 %1376 }
  0xb2   : > { %v2178_v18 = vsel %vm2177_vm6, %v2145_v14, %v1377_v56  ;;  %v2179_v38 = vsel %vm2177_vm6, %v2146_v34, %v12753_v55  ;;  %v1066_v34 = vld [vmem:[#allocation2 + $0xaa] sm:$0xff] }
  0xb3   : > { %1266 = vrot.lane.b32.xlu0 %v1061_v47, %s18382_s23  ;;  %1392 = vrot.lane.b32.xlu1 %v12742_v51, %s18376_s22 }
  0xb5   : > { %v1505_v59 = vpop.permute.xlu0 %1504  ;;  %v12760_v60 = vpop.permute.xlu1 %1124 }
  0xb6   : > { %v2211_v23 = vsel %vm2210_vm7, %v2178_v18, %v1505_v59 }
  0xb7   : > { %1774 = vrot.lane.b32.xlu0 %v12758_v57, %s18324_s29  ;;  %1900 = vrot.lane.b32.xlu1 %v1030_v58, %s18322_s27 }
  0xb9   : > { %v12765_v61 = vpop.permute.xlu0 %1506  ;;  %v1633_v62 = vpop.permute.xlu1 %1632 }
  0xba   : > { %v2244_v25 = vsel %vm2243_vm8, %v2211_v23, %v1633_v62  ;;  %v2212_v42 = vsel %vm2210_vm7, %v2179_v38, %v12765_v61  ;;  %v754_v62 = vld [vmem:[%s12609_s24 + $0xa0] sm:$0xff]  ;;  %v12883_v23 = vld [vmem:[#allocation2 + $0xb0] sm:$0xff] }
  0xbb   : > { %1394 = vrot.lane.b32.xlu0 %v12758_v57, %s18376_s22  ;;  %1520 = vrot.lane.b32.xlu1 %v1030_v58, %s18379_s20  ;;  %787 = vst.msk [vmem:[#allocation2 + $0x109] sm:$0xff] %vm600_vm0, %v754_v62 }
  0xbd   : > { %v12770_v2 = vpop.permute.xlu0 %1126  ;;  %v12772_v3 = vpop.permute.xlu1 %1252 }
  0xbf   : > { %1902 = vrot.lane.b32.xlu0 %v1031_v63, %s18322_s27  ;;  %2028 = vrot.lane.b32.xlu1 %v1062_v1, %s18320_s25 }
  0xc1   : > { %v1635_v4 = vpop.permute.xlu0 %1634  ;;  %v1761_v5 = vpop.permute.xlu1 %1760 }
  0xc2   : > { %v2277_v27 = vsel %vm2276_vm9, %v2244_v25, %v1761_v5  ;;  %v2245_v44 = vsel %vm2243_vm8, %v2212_v42, %v1635_v4  ;;  %v2114_v4 = vsel %vm600_vm0, %v12637_v16, %v12760_v60  ;;  %v755_v60 = vld [vmem:[%s12609_s24 + $0xa8] sm:$0xff] }
  0xc3   : > { %1140 = vrot.lane.b32.xlu0 %v1030_v58, %s18380_s26  ;;  %1522 = vrot.lane.b32.xlu1 %v1031_v63, %s18379_s20  ;;  %v1065_v58 = vld [vmem:[#allocation2 + $0x9a] sm:$0xff]  ;;  %v2147_v5 = vsel %vm2144_vm5, %v2114_v4, %v12772_v3  ;;  %788 = vst.msk [vmem:[#allocation2 + $0x111] sm:$0xff] %vm600_vm0, %v755_v60  ;;  %v1034_v25 = vld [vmem:[#allocation2 + $0xa9] sm:$0xff] }
  0xc5   : > { %v12778_v7 = vpop.permute.xlu0 %1254  ;;  %v12780_v8 = vpop.permute.xlu1 %1380 }
  0xc6   : > { %v2180_v9 = vsel %vm2177_vm6, %v2147_v5, %v12780_v8 }
  0xc7   : > { %1648 = vrot.lane.b32.xlu0 %v1062_v1, %s18381_s28  ;;  %2030 = vrot.lane.b32.xlu1 %v1063_v6, %s18320_s25 }
  0xc9   : > { %v1763_v12 = vpop.permute.xlu0 %1762  ;;  %v1889_v13 = vpop.permute.xlu1 %1888 }
  0xca   : > { %v2310_v29 = vsel %vm18350_vm10, %v2277_v27, %v1889_v13  ;;  %v2278_v45 = vsel %vm2276_vm9, %v2245_v44, %v1763_v12  ;;  %v1067_v44 = vld [vmem:[#allocation2 + $0xb2] sm:$0xff] }
  0xcb   : > { %1142 = vrot.lane.b32.xlu0 %v1031_v63, %s18380_s26  ;;  %1268 = vrot.lane.b32.xlu1 %v1062_v1, %s18382_s23 }
  0xcd   : > { %v12793_v19 = vpop.permute.xlu0 %1382  ;;  %v12795_v20 = vpop.permute.xlu1 %1508 }
  0xce   : > { %v2213_v12 = vsel %vm2210_vm7, %v2180_v9, %v12795_v20  ;;  %v2115_v20 = vsel %vm600_vm0, %v12635_v15, %v12770_v2 }
  0xcf   : > { %1650 = vrot.lane.b32.xlu0 %v1063_v6, %s18381_s28  ;;  %1776 = vrot.lane.b32.xlu1 %v12790_v17, %s18324_s29  ;;  %v2148_v21 = vsel %vm2144_vm5, %v2115_v20, %v12778_v7  ;;  %v1037_v20 = vld [vmem:[#allocation2 + $0xc9] sm:$0xff] }
  0xd0   : > { %v2181_v26 = vsel %vm2177_vm6, %v2148_v21, %v12793_v19  ;;  %v1068_v21 = vld [vmem:[#allocation2 + $0xc2] sm:$0xff] }
  0xd1   : > { %v1891_v30 = vpop.permute.xlu0 %1890  ;;  %v2017_v31 = vpop.permute.xlu1 %2016 }
  0xd2   : > { %v2343_v32 = vsel %vm2342_vm11, %v2310_v29, %v2017_v31  ;;  %v2311_v46 = vsel %vm18350_vm10, %v2278_v45, %v1891_v30 }
  0xd3   : > { %1270 = vrot.lane.b32.xlu0 %v1063_v6, %s18382_s23  ;;  %1396 = vrot.lane.b32.xlu1 %v12790_v17, %s18376_s22  ;;  %v12857_v6 = vld [vmem:[#allocation2 + $0xa8] sm:$0xff] }
  0xd4   : > { %11599 = vmatprep.mubr.msk.f32.mxu0 %vm2384_vm12, %v2343_v32  ;;  %v1035_v32 = vld [vmem:[#allocation2 + $0xb1] sm:$0xff] }
  0xd5   : > { %v12819_v39 = vpop.permute.xlu0 %1128  ;;  %v1511_v40 = vpop.permute.xlu1 %1510 }
  0xd6   : > { %v2214_v15 = vsel %vm2210_vm7, %v2181_v26, %v1511_v40 }
  0xd7   : > { %1778 = vrot.lane.b32.xlu0 %v12815_v36, %s18324_s29  ;;  %1904 = vrot.lane.b32.xlu1 %v1032_v37, %s18322_s27 }
  0xd9   : > { %v1637_v47 = vpop.permute.xlu0 %1636  ;;  %v2019_v48 = vpop.permute.xlu1 %2018 }
  0xda   : > { %v2344_v49 = vsel %vm2342_vm11, %v2311_v46, %v2019_v48  ;;  %v2246_v16 = vsel %vm2243_vm8, %v2213_v12, %v1637_v47  ;;  %v756_v47 = vld [vmem:[%s12609_s24 + $0xb0] sm:$0xff]  ;;  %v12949_v12 = vld [vmem:[#allocation2 + $0xc8] sm:$0xff] }
  0xdb   : > { %1398 = vrot.lane.b32.xlu0 %v12815_v36, %s18376_s22  ;;  %1524 = vrot.lane.b32.xlu1 %v1032_v37, %s18379_s20  ;;  %789 = vst.msk [vmem:[#allocation2 + $0x121] sm:$0xff] %vm600_vm0, %v756_v47 }
  0xdc   : > { %11600 = vmatmul.mubr.msk.f32.vlgmr.msra.gmra.mrb[0].mxu0 %vm2384_vm12, %v2344_v49 }
  0xdd   : > { %v12834_v53 = vpop.permute.xlu0 %1130  ;;  %v12836_v54 = vpop.permute.xlu1 %1256 }
  0xde   : > { %v2117_v9 = vsel %vm600_vm0, %v12661_v24, %v12834_v53 }
  0xdf   : > { %1906 = vrot.lane.b32.xlu0 %v1033_v50, %s18322_s27  ;;  %2032 = vrot.lane.b32.xlu1 %v1064_v52, %s18320_s25 }
  0xe1   : > { %v1639_v55 = vpop.permute.xlu0 %1638  ;;  %v1765_v56 = vpop.permute.xlu1 %1764 }
  0xe2   : > { %v2279_v3 = vsel %vm2276_vm9, %v2246_v16, %v1765_v56  ;;  %v2247_v2 = vsel %vm2243_vm8, %v2214_v15, %v1639_v55  ;;  %v12924_v55 = vld [vmem:[#allocation2 + $0xc0] sm:$0xff] }
  0xe3   : > { %1144 = vrot.lane.b32.xlu0 %v1032_v37, %s18380_s26  ;;  %1526 = vrot.lane.b32.xlu1 %v1033_v50, %s18379_s20  ;;  %v1036_v16 = vld [vmem:[#allocation2 + $0xc1] sm:$0xff] }
  0xe5   : > { %v12842_v59 = vpop.permute.xlu0 %1258  ;;  %v12844_v61 = vpop.permute.xlu1 %1384 }
  0xe7   : > { %1652 = vrot.lane.b32.xlu0 %v1064_v52, %s18381_s28  ;;  %2034 = vrot.lane.b32.xlu1 %v1065_v58, %s18320_s25 }
  0xe9   : > { %v1767_v63 = vpop.permute.xlu0 %1766  ;;  %v1893_v1 = vpop.permute.xlu1 %1892 }
  0xea   : > { %v2312_v8 = vsel %vm18350_vm10, %v2279_v3, %v1893_v1  ;;  %v2280_v7 = vsel %vm2276_vm9, %v2247_v2, %v1767_v63  ;;  %v12981_v2 = vld [vmem:[#allocation2 + $0xca] sm:$0xff] }
  0xeb   : > { %1146 = vrot.lane.b32.xlu0 %v1033_v50, %s18380_s26  ;;  %1272 = vrot.lane.b32.xlu1 %v1064_v52, %s18382_s23  ;;  %v2116_v50 = vsel %vm600_vm0, %v12651_v22, %v12819_v39  ;;  %v757_v22 = vld [vmem:[%s12609_s24 + $0xb8] sm:$0xff] }
  0xec   : > { %v2149_v52 = vsel %vm2144_vm5, %v2116_v50, %v12836_v54  ;;  %790 = vst.msk [vmem:[#allocation2 + $0x129] sm:$0xff] %vm600_vm0, %v757_v22 }
  0xed   : > { %v12861_v10 = vpop.permute.xlu0 %1386  ;;  %v1513_v11 = vpop.permute.xlu1 %1512  ;;  %v2182_v56 = vsel %vm2177_vm6, %v2149_v52, %v12844_v61 }
  0xee   : > { %v2215_v63 = vsel %vm2210_vm7, %v2182_v56, %v1513_v11  ;;  %v2150_v11 = vsel %vm2144_vm5, %v2117_v9, %v12842_v59  ;;  %v1039_v9 = vld [vmem:[#allocation2 + $0xe1] sm:$0xff] }
  0xef   : > { %1654 = vrot.lane.b32.xlu0 %v1065_v58, %s18381_s28  ;;  %1780 = vrot.lane.b32.xlu1 %v12857_v6, %s18324_s29  ;;  %v2183_v60 = vsel %vm2177_vm6, %v2150_v11, %v12861_v10  ;;  %v1070_v11 = vld [vmem:[#allocation2 + $0xda] sm:$0xff] }
  0xf1   : > { %v1895_v13 = vpop.permute.xlu0 %1894  ;;  %v2021_v14 = vpop.permute.xlu1 %2020 }
  0xf2   : > { %v2345_v18 = vsel %vm2342_vm11, %v2312_v8, %v2021_v14  ;;  %v2313_v29 = vsel %vm18350_vm10, %v2280_v7, %v1895_v13 }
  0xf3   : > { %1274 = vrot.lane.b32.xlu0 %v1065_v58, %s18382_s23  ;;  %1400 = vrot.lane.b32.xlu1 %v12857_v6, %s18376_s22 }
  0xf4   : > { %11602 = vmatprep.mubr.msk.f32.mxu0 %vm2384_vm12, %v2345_v18 }
  0xf5   : > { %v12887_v27 = vpop.permute.xlu0 %1132  ;;  %v1515_v28 = vpop.permute.xlu1 %1514 }
  0xf6   : > { %v2216_v24 = vsel %vm2210_vm7, %v2183_v60, %v1515_v28 }
  0xf7   : > { %1782 = vrot.lane.b32.xlu0 %v12883_v23, %s18324_s29  ;;  %1908 = vrot.lane.b32.xlu1 %v1034_v25, %s18322_s27 }
  0xf9   : > { %v1641_v30 = vpop.permute.xlu0 %1640  ;;  %v2023_v31 = vpop.permute.xlu1 %2022 }
  0xfa   : > { %v2346_v19 = vsel %vm2342_vm11, %v2313_v29, %v2023_v31  ;;  %v2248_v1 = vsel %vm2243_vm8, %v2215_v63, %v1641_v30  ;;  %v758_v30 = vld [vmem:[%s12609_s24 + $0xc0] sm:$0xff] }
  0xfb   : > { %1402 = vrot.lane.b32.xlu0 %v12883_v23, %s18376_s22  ;;  %1528 = vrot.lane.b32.xlu1 %v1034_v25, %s18379_s20  ;;  %791 = vst.msk [vmem:[#allocation2 + $0x139] sm:$0xff] %vm600_vm0, %v758_v30  ;;  %v13142_v63 = vld [vmem:[#allocation2 + $0xe0] sm:$0xff] }
  0xfc   : > { %11603 = vmatmul.mubr.msk.f32.gmra.mrb[2].mxu0 %vm2384_vm12, %v2346_v19 }
  0xfd   : > { %v12901_v37 = vpop.permute.xlu0 %1134  ;;  %v12903_v38 = vpop.permute.xlu1 %1260 }
  0xfe   : > { %v2119_v56 = vsel %vm600_vm0, %v12696_v35, %v12901_v37 }
  0xff   : > { %1910 = vrot.lane.b32.xlu0 %v1035_v32, %s18322_s27  ;;  %2036 = vrot.lane.b32.xlu1 %v1066_v34, %s18320_s25 }
 0x101   : > { %v1643_v40 = vpop.permute.xlu0 %1642  ;;  %v1769_v42 = vpop.permute.xlu1 %1768 }
 0x102   : > { %v2281_v39 = vsel %vm2276_vm9, %v2248_v1, %v1769_v42  ;;  %v2249_v53 = vsel %vm2243_vm8, %v2216_v24, %v1643_v40  ;;  %v13003_v40 = vld [vmem:[#allocation2 + $0xd8] sm:$0xff] }
 0x103   : > { %1148 = vrot.lane.b32.xlu0 %v1034_v25, %s18380_s26  ;;  %1530 = vrot.lane.b32.xlu1 %v1035_v32, %s18379_s20  ;;  %v1038_v1 = vld [vmem:[#allocation2 + $0xd9] sm:$0xff] }
 0x105   : > { %v12909_v45 = vpop.permute.xlu0 %1262  ;;  %v12911_v46 = vpop.permute.xlu1 %1388 }
 0x107   : > { %1656 = vrot.lane.b32.xlu0 %v1066_v34, %s18381_s28  ;;  %2038 = vrot.lane.b32.xlu1 %v1067_v44, %s18320_s25 }
 0x109   : > { %v1771_v48 = vpop.permute.xlu0 %1770  ;;  %v1897_v49 = vpop.permute.xlu1 %1896 }
 0x10a   : > { %v2314_v54 = vsel %vm18350_vm10, %v2281_v39, %v1897_v49  ;;  %v2282_v59 = vsel %vm2276_vm9, %v2249_v53, %v1771_v48  ;;  %v1071_v53 = vld [vmem:[#allocation2 + $0xe2] sm:$0xff] }
 0x10b   : > { %1150 = vrot.lane.b32.xlu0 %v1035_v32, %s18380_s26  ;;  %1276 = vrot.lane.b32.xlu1 %v1066_v34, %s18382_s23  ;;  %v2118_v32 = vsel %vm600_vm0, %v12686_v33, %v12887_v27  ;;  %v759_v27 = vld [vmem:[%s12609_s24 + $0xc8] sm:$0xff] }
 0x10c   : > { %v2151_v34 = vsel %vm2144_vm5, %v2118_v32, %v12903_v38  ;;  %792 = vst.msk [vmem:[#allocation2 + $0x141] sm:$0xff] %vm600_vm0, %v759_v27 }
 0x10d   : > { %v12928_v58 = vpop.permute.xlu0 %1390  ;;  %v1517_v62 = vpop.permute.xlu1 %1516  ;;  %v2184_v42 = vsel %vm2177_vm6, %v2151_v34, %v12911_v46 }
 0x10e   : > { %v2217_v48 = vsel %vm2210_vm7, %v2184_v42, %v1517_v62  ;;  %v2152_v62 = vsel %vm2144_vm5, %v2119_v56, %v12909_v45  ;;  %v1041_v56 = vld [vmem:[#allocation2 + $0xf9] sm:$0xff] }
 0x10f   : > { %1658 = vrot.lane.b32.xlu0 %v1067_v44, %s18381_s28  ;;  %1784 = vrot.lane.b32.xlu1 %v12924_v55, %s18324_s29  ;;  %v2185_v22 = vsel %vm2177_vm6, %v2152_v62, %v12928_v58  ;;  %v1072_v62 = vld [vmem:[#allocation2 + $0xf2] sm:$0xff] }
 0x111   : > { %v1899_v61 = vpop.permute.xlu0 %1898  ;;  %v2025_v4 = vpop.permute.xlu1 %2024 }
 0x112   : > { %v2347_v5 = vsel %vm2342_vm11, %v2314_v54, %v2025_v4  ;;  %v2315_v13 = vsel %vm18350_vm10, %v2282_v59, %v1899_v61 }
 0x113   : > { %1278 = vrot.lane.b32.xlu0 %v1067_v44, %s18382_s23  ;;  %1404 = vrot.lane.b32.xlu1 %v12924_v55, %s18376_s22 }
 0x114   : > { %11605 = vmatprep.mubr.msk.f32.mxu0 %vm2384_vm12, %v2347_v5 }
 0x115   : > { %v12953_v3 = vpop.permute.xlu0 %1136  ;;  %v12955_v8 = vpop.permute.xlu1 %1518 }
 0x116   : > { %v2218_v37 = vsel %vm2210_vm7, %v2185_v22, %v12955_v8 }
 0x117   : > { %1786 = vrot.lane.b32.xlu0 %v12949_v12, %s18324_s29  ;;  %1912 = vrot.lane.b32.xlu1 %v1036_v16, %s18322_s27 }
 0x119   : > { %v1645_v14 = vpop.permute.xlu0 %1644  ;;  %v2027_v18 = vpop.permute.xlu1 %2026 }
 0x11a   : > { %v2348_v10 = vsel %vm2342_vm11, %v2315_v13, %v2027_v18  ;;  %v2250_v33 = vsel %vm2243_vm8, %v2217_v48, %v1645_v14  ;;  %v760_v14 = vld [vmem:[%s12609_s24 + $0xd0] sm:$0xff]  ;;  %v13212_v48 = vld [vmem:[#allocation2 + $0xf8] sm:$0xff] }
 0x11b   : > { %1406 = vrot.lane.b32.xlu0 %v12949_v12, %s18376_s22  ;;  %1532 = vrot.lane.b32.xlu1 %v1036_v16, %s18379_s20  ;;  %793 = vst.msk [vmem:[#allocation2 + $0x151] sm:$0xff] %vm600_vm0, %v760_v14 }
 0x11c   : > { %11606 = vmatmul.mubr.msk.f32.gmra.mrb[4].mxu0 %vm2384_vm12, %v2348_v10 }
 0x11d   : > { %v12969_v25 = vpop.permute.xlu0 %1138  ;;  %v12971_v26 = vpop.permute.xlu1 %1264 }
 0x11e   : > { %v2121_v42 = vsel %vm600_vm0, %v12724_v43, %v12969_v25 }
 0x11f   : > { %1914 = vrot.lane.b32.xlu0 %v1037_v20, %s18322_s27  ;;  %2040 = vrot.lane.b32.xlu1 %v1068_v21, %s18320_s25 }
 0x121   : > { %v12975_v28 = vpop.permute.xlu0 %1646  ;;  %v12977_v15 = vpop.permute.xlu1 %1772 }
 0x122   : > { %v2283_v38 = vsel %vm2276_vm9, %v2250_v33, %v12977_v15  ;;  %v2251_v54 = vsel %vm2243_vm8, %v2218_v37, %v12975_v28  ;;  %v13186_v28 = vld [vmem:[#allocation2 + $0xf0] sm:$0xff] }
 0x123   : > { %1152 = vrot.lane.b32.xlu0 %v1036_v16, %s18380_s26  ;;  %1534 = vrot.lane.b32.xlu1 %v1037_v20, %s18379_s20  ;;  %v1040_v33 = vld [vmem:[#allocation2 + $0xf1] sm:$0xff] }
 0x125   : > { %v12983_v7 = vpop.permute.xlu0 %1266  ;;  %v12985_v29 = vpop.permute.xlu1 %1392 }
 0x127   : > { %1660 = vrot.lane.b32.xlu0 %v1068_v21, %s18381_s28  ;;  %2042 = vrot.lane.b32.xlu1 %v12981_v2, %s18320_s25 }
 0x129   : > { %v12992_v31 = vpop.permute.xlu0 %1774  ;;  %v12994_v19 = vpop.permute.xlu1 %1900 }
 0x12a   : > { %v2316_v46 = vsel %vm18350_vm10, %v2283_v38, %v12994_v19  ;;  %v2284_v45 = vsel %vm2276_vm9, %v2251_v54, %v12992_v31  ;;  %v1073_v54 = vld [vmem:[#allocation2 + $0xfa] sm:$0xff] }
 0x12b   : > { %1154 = vrot.lane.b32.xlu0 %v1037_v20, %s18380_s26  ;;  %1280 = vrot.lane.b32.xlu1 %v1068_v21, %s18382_s23  ;;  %v2120_v20 = vsel %vm600_vm0, %v12714_v41, %v12953_v3  ;;  %v761_v3 = vld [vmem:[%s12609_s24 + $0xd8] sm:$0xff] }
 0x12c   : > { %v2153_v21 = vsel %vm2144_vm5, %v2120_v20, %v12971_v26  ;;  %794 = vst.msk [vmem:[#allocation2 + $0x159] sm:$0xff] %vm600_vm0, %v761_v3 }
 0x12d   : > { %v13007_v44 = vpop.permute.xlu0 %1394  ;;  %v13009_v47 = vpop.permute.xlu1 %1520  ;;  %v2186_v15 = vsel %vm2177_vm6, %v2153_v21, %v12985_v29 }
 0x12e   : > { %v2219_v31 = vsel %vm2210_vm7, %v2186_v15, %v13009_v47  ;;  %v2154_v47 = vsel %vm2144_vm5, %v2121_v42, %v12983_v7  ;;  %v1043_v42 = vld [vmem:[#allocation2 + $0x111] sm:$0xff] }
 0x12f   : > { %1662 = vrot.lane.b32.xlu0 %v12981_v2, %s18381_s28  ;;  %1788 = vrot.lane.b32.xlu1 %v13003_v40, %s18324_s29  ;;  %v2187_v27 = vsel %vm2177_vm6, %v2154_v47, %v13007_v44  ;;  %v1074_v47 = vld [vmem:[#allocation2 + $0x10a] sm:$0xff] }
 0x131   : > { %v1903_v49 = vpop.permute.xlu0 %1902  ;;  %v2029_v50 = vpop.permute.xlu1 %2028 }
 0x132   : > { %v2349_v52 = vsel %vm2342_vm11, %v2316_v46, %v2029_v50  ;;  %v2317_v61 = vsel %vm18350_vm10, %v2284_v45, %v1903_v49 }
 0x133   : > { %1282 = vrot.lane.b32.xlu0 %v12981_v2, %s18382_s23  ;;  %1408 = vrot.lane.b32.xlu1 %v13003_v40, %s18376_s22 }
 0x134   : > { %11608 = vmatprep.mubr.msk.f32.mxu0 %vm2384_vm12, %v2349_v52 }
 0x135   : > { %v13146_v39 = vpop.permute.xlu0 %1140  ;;  %v1523_v35 = vpop.permute.xlu1 %1522 }
 0x136   : > { %v2220_v43 = vsel %vm2210_vm7, %v2187_v27, %v1523_v35 }
 0x137   : > { %1790 = vrot.lane.b32.xlu0 %v13142_v63, %s18324_s29  ;;  %1916 = vrot.lane.b32.xlu1 %v1038_v1, %s18322_s27 }
 0x139   : > { %v1649_v58 = vpop.permute.xlu0 %1648  ;;  %v2031_v4 = vpop.permute.xlu1 %2030 }
 0x13a   : > { %v2350_v5 = vsel %vm2342_vm11, %v2317_v61, %v2031_v4  ;;  %v2252_v41 = vsel %vm2243_vm8, %v2219_v31, %v1649_v58  ;;  %v762_v58 = vld [vmem:[%s12609_s24 + $0xe0] sm:$0xff]  ;;  %v13278_v31 = vld [vmem:[#allocation2 + $0x110] sm:$0xff] }
 0x13b   : > { %1410 = vrot.lane.b32.xlu0 %v13142_v63, %s18376_s22  ;;  %1536 = vrot.lane.b32.xlu1 %v1038_v1, %s18379_s20  ;;  %795 = vst.msk [vmem:[#allocation2 + $0x169] sm:$0xff] %vm600_vm0, %v762_v58 }
 0x13c   : > { %11609 = vmatmul.mubr.msk.f32.gmra.mrb[6].mxu0 %vm2384_vm12, %v2350_v5 }
 0x13d   : > { %v13163_v16 = vpop.permute.xlu0 %1142  ;;  %v13165_v60 = vpop.permute.xlu1 %1268 }
 0x13e   : > { %v2123_v15 = vsel %vm600_vm0, %v12758_v57, %v13163_v16 }
 0x13f   : > { %1918 = vrot.lane.b32.xlu0 %v1039_v9, %s18322_s27  ;;  %2044 = vrot.lane.b32.xlu1 %v1070_v11, %s18320_s25 }
 0x141   : > { %v1651_v8 = vpop.permute.xlu0 %1650  ;;  %v1777_v24 = vpop.permute.xlu1 %1776 }
 0x142   : > { %v2285_v26 = vsel %vm2276_vm9, %v2252_v41, %v1777_v24  ;;  %v2253_v25 = vsel %vm2243_vm8, %v2220_v43, %v1651_v8  ;;  %v13253_v8 = vld [vmem:[#allocation2 + $0x108] sm:$0xff] }
 0x143   : > { %1156 = vrot.lane.b32.xlu0 %v1038_v1, %s18380_s26  ;;  %1538 = vrot.lane.b32.xlu1 %v1039_v9, %s18379_s20  ;;  %v1042_v41 = vld [vmem:[#allocation2 + $0x109] sm:$0xff] }
 0x145   : > { %v13171_v59 = vpop.permute.xlu0 %1270  ;;  %v13173_v13 = vpop.permute.xlu1 %1396 }
 0x147   : > { %1664 = vrot.lane.b32.xlu0 %v1070_v11, %s18381_s28  ;;  %2046 = vrot.lane.b32.xlu1 %v1071_v53, %s18320_s25 }
 0x149   : > { %v1779_v18 = vpop.permute.xlu0 %1778  ;;  %v1905_v10 = vpop.permute.xlu1 %1904 }
 0x14a   : > { %v2318_v29 = vsel %vm18350_vm10, %v2285_v26, %v1905_v10  ;;  %v2286_v7 = vsel %vm2276_vm9, %v2253_v25, %v1779_v18  ;;  %v1075_v25 = vld [vmem:[#allocation2 + $0x112] sm:$0xff] }
 0x14b   : > { %1158 = vrot.lane.b32.xlu0 %v1039_v9, %s18380_s26  ;;  %1284 = vrot.lane.b32.xlu1 %v1070_v11, %s18382_s23  ;;  %v2122_v9 = vsel %vm600_vm0, %v12742_v51, %v13146_v39  ;;  %v763_v51 = vld [vmem:[%s12609_s24 + $0xe8] sm:$0xff] }
 0x14c   : > { %v2155_v11 = vsel %vm2144_vm5, %v2122_v9, %v13165_v60  ;;  %796 = vst.msk [vmem:[#allocation2 + $0x171] sm:$0xff] %vm600_vm0, %v763_v51 }
 0x14d   : > { %v13190_v2 = vpop.permute.xlu0 %1398  ;;  %v1525_v30 = vpop.permute.xlu1 %1524  ;;  %v2188_v24 = vsel %vm2177_vm6, %v2155_v11, %v13173_v13 }
 0x14e   : > { %v2221_v18 = vsel %vm2210_vm7, %v2188_v24, %v1525_v30  ;;  %v2156_v30 = vsel %vm2144_vm5, %v2123_v15, %v13171_v59  ;;  %v1045_v15 = vld [vmem:[#allocation2 + $0x129] sm:$0xff] }
 0x14f   : > { %1666 = vrot.lane.b32.xlu0 %v1071_v53, %s18381_s28  ;;  %1792 = vrot.lane.b32.xlu1 %v13186_v28, %s18324_s29  ;;  %v2189_v3 = vsel %vm2177_vm6, %v2156_v30, %v13190_v2  ;;  %v1076_v30 = vld [vmem:[#allocation2 + $0x122] sm:$0xff] }
 0x151   : > { %v1907_v19 = vpop.permute.xlu0 %1906  ;;  %v2033_v32 = vpop.permute.xlu1 %2032 }
 0x152   : > { %v2351_v34 = vsel %vm2342_vm11, %v2318_v29, %v2033_v32  ;;  %v2319_v49 = vsel %vm18350_vm10, %v2286_v7, %v1907_v19 }
 0x153   : > { %1286 = vrot.lane.b32.xlu0 %v1071_v53, %s18382_s23  ;;  %1412 = vrot.lane.b32.xlu1 %v13186_v28, %s18376_s22 }
 0x154   : > { %11611 = vmatprep.mubr.msk.f32.mxu0 %vm2384_vm12, %v2351_v34 }
 0x155   : > { %v13216_v38 = vpop.permute.xlu0 %1144  ;;  %v1527_v46 = vpop.permute.xlu1 %1526 }
 0x156   : > { %v2222_v57 = vsel %vm2210_vm7, %v2189_v3, %v1527_v46 }
 0x157   : > { %1794 = vrot.lane.b32.xlu0 %v13212_v48, %s18324_s29  ;;  %1920 = vrot.lane.b32.xlu1 %v1040_v33, %s18322_s27 }
 0x159   : > { %v1653_v50 = vpop.permute.xlu0 %1652  ;;  %v2035_v52 = vpop.permute.xlu1 %2034 }
 0x15a   : > { %v2352_v44 = vsel %vm2342_vm11, %v2319_v49, %v2035_v52  ;;  %v2254_v10 = vsel %vm2243_vm8, %v2221_v18, %v1653_v50  ;;  %v764_v50 = vld [vmem:[%s12609_s24 + $0xf0] sm:$0xff]  ;;  %v13344_v18 = vld [vmem:[#allocation2 + $0x128] sm:$0xff] }
 0x15b   : > { %1414 = vrot.lane.b32.xlu0 %v13212_v48, %s18376_s22  ;;  %1540 = vrot.lane.b32.xlu1 %v1040_v33, %s18379_s20  ;;  %797 = vst.msk [vmem:[#allocation2 + $0x181] sm:$0xff] %vm600_vm0, %v764_v50 }
 0x15c   : > { %11612 = vmatmul.mubr.msk.f32.gmra.mrb[8].mxu0 %vm2384_vm12, %v2352_v44 }
 0x15d   : > { %v13230_v1 = vpop.permute.xlu0 %1146  ;;  %v13232_v22 = vpop.permute.xlu1 %1272 }
 0x15e   : > { %v2125_v24 = vsel %vm600_vm0, %v12815_v36, %v13230_v1 }
 0x15f   : > { %1922 = vrot.lane.b32.xlu0 %v1041_v56, %s18322_s27  ;;  %2048 = vrot.lane.b32.xlu1 %v1072_v62, %s18320_s25 }
 0x161   : > { %v1655_v35 = vpop.permute.xlu0 %1654  ;;  %v1781_v37 = vpop.permute.xlu1 %1780 }
 0x162   : > { %v2287_v39 = vsel %vm2276_vm9, %v2254_v10, %v1781_v37  ;;  %v2255_v16 = vsel %vm2243_vm8, %v2222_v57, %v1655_v35  ;;  %v13319_v35 = vld [vmem:[#allocation2 + $0x120] sm:$0xff] }
 0x163   : > { %1160 = vrot.lane.b32.xlu0 %v1040_v33, %s18380_s26  ;;  %1542 = vrot.lane.b32.xlu1 %v1041_v56, %s18379_s20  ;;  %v1044_v10 = vld [vmem:[#allocation2 + $0x121] sm:$0xff] }
 0x165   : > { %v13238_v45 = vpop.permute.xlu0 %1274  ;;  %v13240_v61 = vpop.permute.xlu1 %1400 }
 0x167   : > { %1668 = vrot.lane.b32.xlu0 %v1072_v62, %s18381_s28  ;;  %2050 = vrot.lane.b32.xlu1 %v1073_v54, %s18320_s25 }
 0x169   : > { %v1783_v4 = vpop.permute.xlu0 %1782  ;;  %v1909_v5 = vpop.permute.xlu1 %1908 }
 0x16a   : > { %v2320_v60 = vsel %vm18350_vm10, %v2287_v39, %v1909_v5  ;;  %v2288_v59 = vsel %vm2276_vm9, %v2255_v16, %v1783_v4  ;;  %v1077_v16 = vld [vmem:[#allocation2 + $0x12a] sm:$0xff] }
 0x16b   : > { %1162 = vrot.lane.b32.xlu0 %v1041_v56, %s18380_s26  ;;  %1288 = vrot.lane.b32.xlu1 %v1072_v62, %s18382_s23  ;;  %v2124_v56 = vsel %vm600_vm0, %v12790_v17, %v13216_v38  ;;  %v765_v17 = vld [vmem:[%s12609_s24 + $0xf8] sm:$0xff]  ;;  %s18385_s24 = smov 8  }
 0x16c   : > { %v2157_v62 = vsel %vm2144_vm5, %v2124_v56, %v13232_v22  ;;  %798 = vst.msk [vmem:[#allocation2 + $0x189] sm:$0xff] %vm600_vm0, %v765_v17 }
 0x16d   : > { %v13257_v53 = vpop.permute.xlu0 %1402  ;;  %v1529_v14 = vpop.permute.xlu1 %1528  ;;  %v2190_v37 = vsel %vm2177_vm6, %v2157_v62, %v13240_v61 }
 0x16e   : > { %v2223_v4 = vsel %vm2210_vm7, %v2190_v37, %v1529_v14  ;;  %v2158_v14 = vsel %vm2144_vm5, %v2125_v24, %v13238_v45 }
 0x16f   : > { %1670 = vrot.lane.b32.xlu0 %v1073_v54, %s18381_s28  ;;  %1796 = vrot.lane.b32.xlu1 %v13253_v8, %s18324_s29  ;;  %v2191_v51 = vsel %vm2177_vm6, %v2158_v14, %v13257_v53 }
 0x171   : > { %v1911_v13 = vpop.permute.xlu0 %1910  ;;  %v2037_v20 = vpop.permute.xlu1 %2036 }
 0x172   : > { %v2353_v21 = vsel %vm2342_vm11, %v2320_v60, %v2037_v20  ;;  %v2321_v19 = vsel %vm18350_vm10, %v2288_v59, %v1911_v13 }
 0x173   : > { %1290 = vrot.lane.b32.xlu0 %v1073_v54, %s18382_s23  ;;  %1416 = vrot.lane.b32.xlu1 %v13253_v8, %s18376_s22 }
 0x174   : > { %11614 = vmatprep.mubr.msk.f32.mxu0 %vm2384_vm12, %v2353_v21 }
 0x175   : > { %v13282_v26 = vpop.permute.xlu0 %1148  ;;  %v1531_v29 = vpop.permute.xlu1 %1530 }
 0x176   : > { %v2224_v36 = vsel %vm2210_vm7, %v2191_v51, %v1531_v29 }
 0x177   : > { %1798 = vrot.lane.b32.xlu0 %v13278_v31, %s18324_s29  ;;  %1924 = vrot.lane.b32.xlu1 %v1042_v41, %s18322_s27 }
 0x179   : > { %v1657_v32 = vpop.permute.xlu0 %1656  ;;  %v2039_v34 = vpop.permute.xlu1 %2038 }
 0x17a   : > { %v2354_v2 = vsel %vm2342_vm11, %v2321_v19, %v2039_v34  ;;  %v2256_v5 = vsel %vm2243_vm8, %v2223_v4, %v1657_v32 }
 0x17b   : > { %1418 = vrot.lane.b32.xlu0 %v13278_v31, %s18376_s22  ;;  %1544 = vrot.lane.b32.xlu1 %v1042_v41, %s18379_s20 }
 0x17c   : > { %11615 = vmatmul.mubr.msk.f32.gmra.mrb[10].mxu0 %vm2384_vm12, %v2354_v2  ;;  %v2126_v2 = vsel %vm600_vm0, %v12857_v6, %v13282_v26 }
 0x17d   : > { %v13296_v33 = vpop.permute.xlu0 %1150  ;;  %v13298_v27 = vpop.permute.xlu1 %1276 }
 0x17e   : > { %v2127_v17 = vsel %vm600_vm0, %v12883_v23, %v13296_v33 }
 0x17f   : > { %1926 = vrot.lane.b32.xlu0 %v1043_v42, %s18322_s27  ;;  %2052 = vrot.lane.b32.xlu1 %v1074_v47, %s18320_s25 }
 0x181   : > { %v1659_v46 = vpop.permute.xlu0 %1658  ;;  %v1785_v43 = vpop.permute.xlu1 %1784 }
 0x182   : > { %v2289_v38 = vsel %vm2276_vm9, %v2256_v5, %v1785_v43  ;;  %v2257_v1 = vsel %vm2243_vm8, %v2224_v36, %v1659_v46 }
 0x183   : > { %1164 = vrot.lane.b32.xlu0 %v1042_v41, %s18380_s26  ;;  %1546 = vrot.lane.b32.xlu1 %v1043_v42, %s18379_s20 }
 0x185   : > { %v13304_v7 = vpop.permute.xlu0 %1278  ;;  %v13306_v49 = vpop.permute.xlu1 %1404 }
 0x187   : > { %1672 = vrot.lane.b32.xlu0 %v1074_v47, %s18381_s28  ;;  %2054 = vrot.lane.b32.xlu1 %v1075_v25, %s18320_s25 }
 0x189   : > { %v1787_v52 = vpop.permute.xlu0 %1786  ;;  %v1913_v44 = vpop.permute.xlu1 %1912 }
 0x18a   : > { %v2322_v22 = vsel %vm18350_vm10, %v2289_v38, %v1913_v44  ;;  %v2290_v45 = vsel %vm2276_vm9, %v2257_v1, %v1787_v52  ;;  %v1078_v1 = vld [vmem:[#allocation2 + $0x13a] sm:$0xff] }
 0x18b   : > { %1166 = vrot.lane.b32.xlu0 %v1043_v42, %s18380_s26  ;;  %1292 = vrot.lane.b32.xlu1 %v1074_v47, %s18382_s23  ;;  %v2159_v42 = vsel %vm2144_vm5, %v2126_v2, %v13298_v27  ;;  %v13385_v47 = vld [vmem:[#allocation2 + $0x138] sm:$0xff] }
 0x18c   : > { %v2192_v46 = vsel %vm2177_vm6, %v2159_v42, %v13306_v49 }
 0x18d   : > { %v13323_v54 = vpop.permute.xlu0 %1406  ;;  %v1533_v58 = vpop.permute.xlu1 %1532 }
 0x18e   : > { %v2225_v26 = vsel %vm2210_vm7, %v2192_v46, %v1533_v58 }
 0x18f   : > { %1674 = vrot.lane.b32.xlu0 %v1075_v25, %s18381_s28  ;;  %1800 = vrot.lane.b32.xlu1 %v13319_v35, %s18324_s29 }
 0x191   : > { %v1915_v61 = vpop.permute.xlu0 %1914  ;;  %v2041_v9 = vpop.permute.xlu1 %2040 }
 0x192   : > { %v2355_v11 = vsel %vm2342_vm11, %v2322_v22, %v2041_v9  ;;  %v2323_v13 = vsel %vm18350_vm10, %v2290_v45, %v1915_v61  ;;  %v2160_v22 = vsel %vm2144_vm5, %v2127_v17, %v13304_v7  ;;  %v13418_v61 = vld [vmem:[#allocation2 + $0x140] sm:$0xff] }
 0x193   : > { %1294 = vrot.lane.b32.xlu0 %v1075_v25, %s18382_s23  ;;  %1420 = vrot.lane.b32.xlu1 %v13319_v35, %s18376_s22  ;;  %v1046_v9 = vld [vmem:[#allocation2 + $0x139] sm:$0xff] }
 0x194   : > { %11617 = vmatprep.mubr.msk.f32.mxu0 %vm2384_vm12, %v2355_v11  ;;  %v2193_v11 = vsel %vm2177_vm6, %v2160_v22, %v13323_v54 }
 0x195   : > { %v13348_v39 = vpop.permute.xlu0 %1152  ;;  %v13350_v60 = vpop.permute.xlu1 %1534 }
 0x196   : > { %v2226_v24 = vsel %vm2210_vm7, %v2193_v11, %v13350_v60  ;;  %v1047_v60 = vld [vmem:[#allocation2 + $0x141] sm:$0xff] }
 0x197   : > { %1802 = vrot.lane.b32.xlu0 %v13344_v18, %s18324_s29  ;;  %1928 = vrot.lane.b32.xlu1 %v1044_v10, %s18322_s27 }
 0x199   : > { %v1661_v20 = vpop.permute.xlu0 %1660  ;;  %v2043_v21 = vpop.permute.xlu1 %2042 }
 0x19a   : > { %v2356_v53 = vsel %vm2342_vm11, %v2323_v13, %v2043_v21  ;;  %v2258_v50 = vsel %vm2243_vm8, %v2225_v26, %v1661_v20 }
 0x19b   : > { %1422 = vrot.lane.b32.xlu0 %v13344_v18, %s18376_s22  ;;  %1548 = vrot.lane.b32.xlu1 %v1044_v10, %s18379_s20 }
 0x19c   : > { %11618 = vmatmul.mubr.msk.f32.gmra.mrb[12].mxu0 %vm2384_vm12, %v2356_v53  ;;  %v1079_v53 = vld [vmem:[#allocation2 + $0x142] sm:$0xff] }
 0x19d   : > { %v13364_v41 = vpop.permute.xlu0 %1154  ;;  %v13366_v3 = vpop.permute.xlu1 %1280 }
 0x19f   : > { %1930 = vrot.lane.b32.xlu0 %v1045_v15, %s18322_s27  ;;  %2056 = vrot.lane.b32.xlu1 %v1076_v30, %s18320_s25  ;;  %s18383_s27 = sld [smem:[#allocation20_spill]] }
 0x1a1   : > { %v1663_v29 = vpop.permute.xlu0 %1662  ;;  %v1789_v57 = vpop.permute.xlu1 %1788 }
 0x1a2   : > { %v2291_v27 = vsel %vm2276_vm9, %v2258_v50, %v1789_v57  ;;  %v2259_v7 = vsel %vm2243_vm8, %v2226_v24, %v1663_v29 }
 0x1a3   : > { %1168 = vrot.lane.b32.xlu0 %v1044_v10, %s18380_s26  ;;  %1550 = vrot.lane.b32.xlu1 %v1045_v15, %s18379_s20 }
 0x1a5   : > { %v13372_v59 = vpop.permute.xlu0 %1282  ;;  %v13374_v19 = vpop.permute.xlu1 %1408  ;;  %v13396_v6 = vld [vmem:[%s18383_s27] ss:$0 sm:$0xff] }
 0x1a7   : > { %1676 = vrot.lane.b32.xlu0 %v1076_v30, %s18381_s28  ;;  %2058 = vrot.lane.b32.xlu1 %v1077_v16, %s18320_s25  ;;  %s18384_s25 = smov 7  }
 0x1a9   : > { %v1791_v32 = vpop.permute.xlu0 %1790  ;;  %v1917_v34 = vpop.permute.xlu1 %1916 }
 0x1aa   : > { %v2324_v56 = vsel %vm18350_vm10, %v2291_v27, %v1917_v34  ;;  %v2292_v14 = vsel %vm2276_vm9, %v2259_v7, %v1791_v32  ;;  %v13461_v34 = vld [vmem:[#allocation2 + $0x150] sm:$0xff] }
 0x1ab   : > { %1170 = vrot.lane.b32.xlu0 %v1045_v15, %s18380_s26  ;;  %1296 = vrot.lane.b32.xlu1 %v1076_v30, %s18382_s23  ;;  %v1080_v7 = vld [vmem:[#allocation2 + $0x152] sm:$0xff] }
 0x1ad   : > { %v13389_v43 = vpop.permute.xlu0 %1410  ;;  %v13391_v25 = vpop.permute.xlu1 %1536 }
 0x1af   : > { %v11601_v52 = vpop.f32.mrb[0].mxu0  ;;  %1678 = vrot.lane.b32.xlu0 %v1077_v16, %s18381_s28  ;;  %1804 = vrot.lane.b32.xlu1 %v13385_v47, %s18324_s29 }
 0x1b0   : > { %v2557_v49 = vadd.f32 %v11601_v52, %v13396_v6  ;;  %v2551_v44 = vpop.f32.mrb[1].mxu0 }
 0x1b1   : > { %v2552_v62 = vadd.f32 %v13396_v6, %v2551_v44  ;;  %v1919_v37 = vpop.permute.xlu0 %1918  ;;  %v2045_v4 = vpop.permute.xlu1 %2044 }
 0x1b2   : > { %v2711_v58 = vmax.f32 %v2557_v49, 0.0  ;;  %v2357_v5 = vsel %vm2342_vm11, %v2324_v56, %v2045_v4  ;;  %v2325_v54 = vsel %vm18350_vm10, %v2292_v14, %v1919_v37 }
 0x1b3   : > { %v2710_v38 = vmax.f32 %v2552_v62, 0.0  ;;  %1298 = vrot.lane.b32.xlu0 %v1077_v16, %s18382_s23  ;;  %1424 = vrot.lane.b32.xlu1 %v13385_v47, %s18376_s22  ;;  %v2128_v16 = vsel %vm600_vm0, %v12924_v55, %v13348_v39  ;;  %v2129_v62 = vsel %vm600_vm0, %v12949_v12, %v13364_v41 }
 0x1b4   : > { %2744 = vst.msk [vmem:[#allocation3 + $0x21] sm:$0xff] %vm2210_vm7, %v2711_v58  ;;  %11620 = vmatprep.mubr.msk.f32.mxu0 %vm2384_vm12, %v2357_v5  ;;  %v2161_v32 = vsel %vm2144_vm5, %v2128_v16, %v13366_v3  ;;  %v2162_v4 = vsel %vm2144_vm5, %v2129_v62, %v13372_v59  ;;  %v13490_v58 = vld [vmem:[#allocation2 + $0x158] sm:$0xff] }
 0x1b5   : > { %2743 = vst.msk [vmem:[#allocation3 + $0x19] sm:$0xff] %vm2210_vm7, %v2710_v38  ;;  %v13423_v23 = vpop.permute.xlu0 %1156  ;;  %v13425_v33 = vpop.permute.xlu1 %1538  ;;  %v2194_v2 = vsel %vm2177_vm6, %v2161_v32, %v13374_v19  ;;  %v1048_v5 = vld [vmem:[#allocation2 + $0x151] sm:$0xff]  ;;  %v2195_v17 = vsel %vm2177_vm6, %v2162_v4, %v13389_v43 }
 0x1b6   : > { %v2227_v26 = vsel %vm2210_vm7, %v2194_v2, %v13391_v25  ;;  %v2228_v38 = vsel %vm2210_vm7, %v2195_v17, %v13425_v33  ;;  %v1049_v33 = vld [vmem:[#allocation2 + $0x159] sm:$0xff] }
 0x1b7   : > { %1806 = vrot.lane.b32.xlu0 %v13418_v61, %s18324_s29  ;;  %1932 = vrot.lane.b32.xlu1 %v1046_v9, %s18384_s25 }
 0x1b9   : > { %v1665_v10 = vpop.permute.xlu0 %1664  ;;  %v2047_v51 = vpop.permute.xlu1 %2046 }
 0x1ba   : > { %v2358_v36 = vsel %vm2342_vm11, %v2325_v54, %v2047_v51  ;;  %v2260_v55 = vsel %vm2243_vm8, %v2227_v26, %v1665_v10 }
 0x1bb   : > { %1426 = vrot.lane.b32.xlu0 %v13418_v61, %s18376_s22  ;;  %1552 = vrot.lane.b32.xlu1 %v1046_v9, %s18379_s20 }
 0x1bc   : > { %11621 = vmatmul.mubr.msk.f32.gmra.mrb[14].mxu0 %vm2384_vm12, %v2358_v36  ;;  %v1081_v36 = vld [vmem:[#allocation2 + $0x15a] sm:$0xff] }
 0x1bd   : > { %v13440_v45 = vpop.permute.xlu0 %1158  ;;  %v13442_v13 = vpop.permute.xlu1 %1284 }
 0x1bf   : > { %1934 = vrot.lane.b32.xlu0 %v1047_v60, %s18384_s25  ;;  %2060 = vrot.lane.b32.xlu1 %v1078_v1, %s18385_s24 }
 0x1c1   : > { %v1667_v20 = vpop.permute.xlu0 %1666  ;;  %v1793_v21 = vpop.permute.xlu1 %1792 }
 0x1c2   : > { %v2293_v3 = vsel %vm2276_vm9, %v2260_v55, %v1793_v21  ;;  %v2261_v59 = vsel %vm2243_vm8, %v2228_v38, %v1667_v20 }
 0x1c3   : > { %1172 = vrot.lane.b32.xlu0 %v1046_v9, %s18380_s26  ;;  %1554 = vrot.lane.b32.xlu1 %v1047_v60, %s18379_s20 }
 0x1c5   : > { %v13448_v15 = vpop.permute.xlu0 %1286  ;;  %v13450_v30 = vpop.permute.xlu1 %1412 }
 0x1c7   : > { %1680 = vrot.lane.b32.xlu0 %v1078_v1, %s18381_s28  ;;  %2062 = vrot.lane.b32.xlu1 %v1079_v53, %s18385_s24 }
 0x1c9   : > { %v1795_v29 = vpop.permute.xlu0 %1794  ;;  %v1921_v57 = vpop.permute.xlu1 %1920 }
 0x1ca   : > { %v2326_v52 = vsel %vm18350_vm10, %v2293_v3, %v1921_v57  ;;  %v2294_v22 = vsel %vm2276_vm9, %v2261_v59, %v1795_v29  ;;  %v13533_v57 = vld [vmem:[#allocation2 + $0x168] sm:$0xff] }
 0x1cb   : > { %1174 = vrot.lane.b32.xlu0 %v1047_v60, %s18380_s26  ;;  %1300 = vrot.lane.b32.xlu1 %v1078_v1, %s18382_s23  ;;  %v1082_v59 = vld [vmem:[#allocation2 + $0x16a] sm:$0xff] }
 0x1cd   : > { %v13465_v42 = vpop.permute.xlu0 %1414  ;;  %v13467_v46 = vpop.permute.xlu1 %1540 }
 0x1cf   : > { %v11604_v39 = vpop.f32.mrb[2].mxu0  ;;  %1682 = vrot.lane.b32.xlu0 %v1079_v53, %s18381_s28  ;;  %1808 = vrot.lane.b32.xlu1 %v13461_v34, %s18324_s29 }
 0x1d0   : > { %v2567_v50 = vadd.f32 %v11604_v39, %v13396_v6  ;;  %v2561_v19 = vpop.f32.mrb[3].mxu0 }
 0x1d1   : > { %v2562_v27 = vadd.f32 %v13396_v6, %v2561_v19  ;;  %v1923_v49 = vpop.permute.xlu0 %1922  ;;  %v2049_v44 = vpop.permute.xlu1 %2048 }
 0x1d2   : > { %v2713_v25 = vmax.f32 %v2567_v50, 0.0  ;;  %v2359_v56 = vsel %vm2342_vm11, %v2326_v52, %v2049_v44  ;;  %v2327_v43 = vsel %vm18350_vm10, %v2294_v22, %v1923_v49 }
 0x1d3   : > { %v2712_v37 = vmax.f32 %v2562_v27, 0.0  ;;  %1302 = vrot.lane.b32.xlu0 %v1079_v53, %s18382_s23  ;;  %1428 = vrot.lane.b32.xlu1 %v13461_v34, %s18376_s22  ;;  %v2130_v53 = vsel %vm600_vm0, %v13003_v40, %v13423_v23  ;;  %v2131_v27 = vsel %vm600_vm0, %v13142_v63, %v13440_v45 }
 0x1d4   : > { %2746 = vst.msk [vmem:[#allocation3 + $0x39] sm:$0xff] %vm2210_vm7, %v2713_v25  ;;  %11623 = vmatprep.mubr.msk.f32.mxu0 %vm2384_vm12, %v2359_v56  ;;  %v2163_v29 = vsel %vm2144_vm5, %v2130_v53, %v13442_v13  ;;  %v2164_v44 = vsel %vm2144_vm5, %v2131_v27, %v13448_v15  ;;  %v13562_v25 = vld [vmem:[#allocation2 + $0x170] sm:$0xff] }
 0x1d5   : > { %2745 = vst.msk [vmem:[#allocation3 + $0x31] sm:$0xff] %vm2210_vm7, %v2712_v37  ;;  %v13495_v12 = vpop.permute.xlu0 %1160  ;;  %v13497_v41 = vpop.permute.xlu1 %1542  ;;  %v2196_v16 = vsel %vm2177_vm6, %v2163_v29, %v13450_v30  ;;  %v1050_v56 = vld [vmem:[#allocation2 + $0x169] sm:$0xff]  ;;  %v2197_v62 = vsel %vm2177_vm6, %v2164_v44, %v13465_v42 }
 0x1d6   : > { %v2229_v26 = vsel %vm2210_vm7, %v2196_v16, %v13467_v46  ;;  %v2230_v37 = vsel %vm2210_vm7, %v2197_v62, %v13497_v41  ;;  %v1051_v41 = vld [vmem:[#allocation2 + $0x171] sm:$0xff] }
 0x1d7   : > { %1810 = vrot.lane.b32.xlu0 %v13490_v58, %s18324_s29  ;;  %1936 = vrot.lane.b32.xlu1 %v1048_v5, %s18384_s25 }
 0x1d9   : > { %v1669_v9 = vpop.permute.xlu0 %1668  ;;  %v2051_v11 = vpop.permute.xlu1 %2050 }
 0x1da   : > { %v2360_v24 = vsel %vm2342_vm11, %v2327_v43, %v2051_v11  ;;  %v2262_v40 = vsel %vm2243_vm8, %v2229_v26, %v1669_v9 }
 0x1db   : > { %1430 = vrot.lane.b32.xlu0 %v13490_v58, %s18376_s22  ;;  %1556 = vrot.lane.b32.xlu1 %v1048_v5, %s18379_s20 }
 0x1dc   : > { %11624 = vmatmul.mubr.msk.f32.gmra.mrb[16].mxu0 %vm2384_vm12, %v2360_v24  ;;  %v1083_v24 = vld [vmem:[#allocation2 + $0x172] sm:$0xff] }
 0x1dd   : > { %v13512_v14 = vpop.permute.xlu0 %1162  ;;  %v13514_v54 = vpop.permute.xlu1 %1288 }
 0x1df   : > { %1938 = vrot.lane.b32.xlu0 %v1049_v33, %s18384_s25  ;;  %2064 = vrot.lane.b32.xlu1 %v1080_v7, %s18385_s24 }
 0x1e1   : > { %v1671_v10 = vpop.permute.xlu0 %1670  ;;  %v1797_v51 = vpop.permute.xlu1 %1796 }
 0x1e2   : > { %v2295_v13 = vsel %vm2276_vm9, %v2262_v40, %v1797_v51  ;;  %v2263_v15 = vsel %vm2243_vm8, %v2230_v37, %v1671_v10 }
 0x1e3   : > { %1176 = vrot.lane.b32.xlu0 %v1048_v5, %s18380_s26  ;;  %1558 = vrot.lane.b32.xlu1 %v1049_v33, %s18379_s20 }
 0x1e5   : > { %v13520_v60 = vpop.permute.xlu0 %1290  ;;  %v13522_v1 = vpop.permute.xlu1 %1416 }
 0x1e7   : > { %1684 = vrot.lane.b32.xlu0 %v1080_v7, %s18381_s28  ;;  %2066 = vrot.lane.b32.xlu1 %v1081_v36, %s18385_s24 }
 0x1e9   : > { %v1799_v20 = vpop.permute.xlu0 %1798  ;;  %v1925_v21 = vpop.permute.xlu1 %1924 }
 0x1ea   : > { %v2328_v39 = vsel %vm18350_vm10, %v2295_v13, %v1925_v21  ;;  %v2296_v4 = vsel %vm2276_vm9, %v2263_v15, %v1799_v20  ;;  %v1020_v21 = vld [vmem:[#allocation2 + $0x180] sm:$0xff] }
 0x1eb   : > { %1178 = vrot.lane.b32.xlu0 %v1049_v33, %s18380_s26  ;;  %1304 = vrot.lane.b32.xlu1 %v1080_v7, %s18382_s23  ;;  %v1084_v15 = vld [vmem:[#allocation2 + $0x182] sm:$0xff] }
 0x1ed   : > { %v13537_v32 = vpop.permute.xlu0 %1418  ;;  %v13539_v2 = vpop.permute.xlu1 %1544 }
 0x1ef   : > { %v11607_v23 = vpop.f32.mrb[4].mxu0  ;;  %1686 = vrot.lane.b32.xlu0 %v1081_v36, %s18381_s28  ;;  %1812 = vrot.lane.b32.xlu1 %v13533_v57, %s18324_s29 }
 0x1f0   : > { %v2577_v55 = vadd.f32 %v11607_v23, %v13396_v6  ;;  %v2571_v30 = vpop.f32.mrb[5].mxu0 }
 0x1f1   : > { %v2572_v3 = vadd.f32 %v13396_v6, %v2571_v30  ;;  %v1927_v50 = vpop.permute.xlu0 %1926  ;;  %v2053_v19 = vpop.permute.xlu1 %2052 }
 0x1f2   : > { %v2715_v46 = vmax.f32 %v2577_v55, 0.0  ;;  %v2361_v52 = vsel %vm2342_vm11, %v2328_v39, %v2053_v19  ;;  %v2329_v42 = vsel %vm18350_vm10, %v2296_v4, %v1927_v50 }
 0x1f3   : > { %v2714_v49 = vmax.f32 %v2572_v3, 0.0  ;;  %1306 = vrot.lane.b32.xlu0 %v1081_v36, %s18382_s23  ;;  %1432 = vrot.lane.b32.xlu1 %v13533_v57, %s18376_s22  ;;  %v2132_v36 = vsel %vm600_vm0, %v13186_v28, %v13495_v12  ;;  %v2133_v3 = vsel %vm600_vm0, %v13212_v48, %v13512_v14 }
 0x1f4   : > { %2748 = vst.msk [vmem:[#allocation3 + $0x51] sm:$0xff] %vm2210_vm7, %v2715_v46  ;;  %11626 = vmatprep.mubr.msk.f32.mxu0 %vm2384_vm12, %v2361_v52  ;;  %v2165_v20 = vsel %vm2144_vm5, %v2132_v36, %v13514_v54  ;;  %v2166_v19 = vsel %vm2144_vm5, %v2133_v3, %v13520_v60  ;;  %v1021_v46 = vld [vmem:[#allocation2 + $0x188] sm:$0xff] }
 0x1f5   : > { %2747 = vst.msk [vmem:[#allocation3 + $0x49] sm:$0xff] %vm2210_vm7, %v2714_v49  ;;  %v13567_v63 = vpop.permute.xlu0 %1164  ;;  %v13569_v45 = vpop.permute.xlu1 %1546  ;;  %v2198_v53 = vsel %vm2177_vm6, %v2165_v20, %v13522_v1  ;;  %v1052_v52 = vld [vmem:[#allocation2 + $0x181] sm:$0xff]  ;;  %v2199_v27 = vsel %vm2177_vm6, %v2166_v19, %v13537_v32  ;;  %v1054_v20 = vld [vmem:[#allocation2 + $0x199] sm:$0xff]  ;;  %v2807_v19 = vld [vmem:[#allocation3 + $0x1] sm:$0xff] }
 0x1f6   : > { %v2231_v26 = vsel %vm2210_vm7, %v2198_v53, %v13539_v2  ;;  %v2232_v49 = vsel %vm2210_vm7, %v2199_v27, %v13569_v45  ;;  %v1053_v45 = vld [vmem:[#allocation2 + $0x189] sm:$0xff] }
 0x1f7   : > { %1814 = vrot.lane.b32.xlu0 %v13562_v25, %s18324_s29  ;;  %1940 = vrot.lane.b32.xlu1 %v1050_v56, %s18384_s25 }
 0x1f9   : > { %v1673_v5 = vpop.permute.xlu0 %1672  ;;  %v2055_v17 = vpop.permute.xlu1 %2054 }
 0x1fa   : > { %v2362_v38 = vsel %vm2342_vm11, %v2329_v42, %v2055_v17  ;;  %v2264_v28 = vsel %vm2243_vm8, %v2231_v26, %v1673_v5 }
 0x1fb   : > { %1434 = vrot.lane.b32.xlu0 %v13562_v25, %s18376_s22  ;;  %1560 = vrot.lane.b32.xlu1 %v1050_v56, %s18379_s20 }
 0x1fc   : > { %11627 = vmatmul.mubr.msk.f32.gmra.mrb[18].mxu0 %vm2384_vm12, %v2362_v38  ;;  %v1085_v38 = vld [vmem:[#allocation2 + $0x18a] sm:$0xff] }
 0x1fd   : > { %v13584_v22 = vpop.permute.xlu0 %1166  ;;  %v13586_v43 = vpop.permute.xlu1 %1292 }
 0x1ff   : > { %1942 = vrot.lane.b32.xlu0 %v1051_v41, %s18384_s25  ;;  %2068 = vrot.lane.b32.xlu1 %v1082_v59, %s18385_s24 }
 0x201   : > { %v1675_v9 = vpop.permute.xlu0 %1674  ;;  %v1801_v11 = vpop.permute.xlu1 %1800 }
 0x202   : > { %v2297_v54 = vsel %vm2276_vm9, %v2264_v28, %v1801_v11  ;;  %v2265_v60 = vsel %vm2243_vm8, %v2232_v49, %v1675_v9  ;;  %v1022_v9 = vld [vmem:[#allocation2 + $0x198] sm:$0xff]  ;;  %v1023_v11 = vld [vmem:[#allocation2 + $0x1a0] sm:$0xff] }
 0x203   : > { %1180 = vrot.lane.b32.xlu0 %v1050_v56, %s18380_s26  ;;  %1562 = vrot.lane.b32.xlu1 %v1051_v41, %s18379_s20 }
 0x205   : > { %v13592_v33 = vpop.permute.xlu0 %1294  ;;  %v13594_v7 = vpop.permute.xlu1 %1420 }
 0x207   : > { %1688 = vrot.lane.b32.xlu0 %v1082_v59, %s18381_s28  ;;  %2070 = vrot.lane.b32.xlu1 %v1083_v24, %s18385_s24 }
 0x209   : > { %v1803_v10 = vpop.permute.xlu0 %1802  ;;  %v1929_v51 = vpop.permute.xlu1 %1928 }
 0x20a   : > { %v2330_v1 = vsel %vm18350_vm10, %v2297_v54, %v1929_v51  ;;  %v2298_v44 = vsel %vm2276_vm9, %v2265_v60, %v1803_v10  ;;  %v2134_v51 = vsel %vm600_vm0, %v13253_v8, %v13567_v63  ;;  %v2839_v60 = vld [vmem:[#allocation3 + $0x2] sm:$0xff] }
 0x20b   : > { %1182 = vrot.lane.b32.xlu0 %v1051_v41, %s18380_s26  ;;  %1308 = vrot.lane.b32.xlu1 %v1082_v59, %s18382_s23  ;;  %v2167_v36 = vsel %vm2144_vm5, %v2134_v51, %v13586_v43  ;;  %s18326_s26 = smov 16  }
 0x20c   : > { %v2200_v53 = vsel %vm2177_vm6, %v2167_v36, %v13594_v7  ;;  %v1086_v7 = vld [vmem:[#allocation2 + $0x19a] sm:$0xff] }
 0x20d   : > { %v13607_v29 = vpop.permute.xlu0 %1422  ;;  %v13609_v16 = vpop.permute.xlu1 %1548 }
 0x20f   : > { %v11610_v12 = vpop.f32.mrb[6].mxu0  ;;  %1690 = vrot.lane.b32.xlu0 %v1083_v24, %s18381_s28  ;;  %1816 = vrot.lane.b32.xlu1 %v1020_v21, %s18324_s29 }
 0x210   : > { %v2587_v40 = vadd.f32 %v11610_v12, %v13396_v6  ;;  %v2581_v23 = vpop.f32.mrb[7].mxu0  ;;  %v2233_v12 = vsel %vm2210_vm7, %v2200_v53, %v13609_v16 }
 0x211   : > { %v2582_v13 = vadd.f32 %v13396_v6, %v2581_v23  ;;  %v1931_v55 = vpop.permute.xlu0 %1930  ;;  %v2057_v30 = vpop.permute.xlu1 %2056  ;;  %v1087_v23 = vld [vmem:[#allocation2 + $0x1a2] sm:$0xff] }
 0x212   : > { %v2717_v39 = vmax.f32 %v2587_v40, 0.0  ;;  %v2363_v2 = vsel %vm2342_vm11, %v2330_v1, %v2057_v30  ;;  %v2331_v56 = vsel %vm18350_vm10, %v2298_v44, %v1931_v55  ;;  %v2840_v44 = vld [vmem:[#allocation3 + $0xa] sm:$0xff] }
 0x213   : > { %v2716_v50 = vmax.f32 %v2582_v13, 0.0  ;;  %1310 = vrot.lane.b32.xlu0 %v1083_v24, %s18382_s23  ;;  %1436 = vrot.lane.b32.xlu1 %v1020_v21, %s18376_s22  ;;  %v1055_v21 = vld [vmem:[#allocation2 + $0x1a1] sm:$0xff]  ;;  %s18336_s23 = smov 24  }
 0x214   : > { %2750 = vst.msk [vmem:[#allocation3 + $0x69] sm:$0xff] %vm2210_vm7, %v2717_v39  ;;  %11629 = vmatprep.mubr.msk.f32.mxu0 %vm2384_vm12, %v2363_v2  ;;  %v2135_v2 = vsel %vm600_vm0, %v13278_v31, %v13584_v22 }
 0x215   : > { %2749 = vst.msk [vmem:[#allocation3 + $0x61] sm:$0xff] %vm2210_vm7, %v2716_v50  ;;  %v13633_v48 = vpop.permute.xlu0 %1168  ;;  %v13635_v14 = vpop.permute.xlu1 %1550  ;;  %v2168_v50 = vsel %vm2144_vm5, %v2135_v2, %v13592_v33 }
 0x217   : > { %1818 = vrot.lane.b32.xlu0 %v1021_v46, %s18324_s29  ;;  %1944 = vrot.lane.b32.xlu1 %v1052_v52, %s18384_s25 }
 0x219   : > { %v1677_v32 = vpop.permute.xlu0 %1676  ;;  %v2059_v62 = vpop.permute.xlu1 %2058 }
 0x21a   : > { %v2364_v37 = vsel %vm2342_vm11, %v2331_v56, %v2059_v62  ;;  %v2266_v8 = vsel %vm2243_vm8, %v2233_v12, %v1677_v32 }
 0x21b   : > { %1438 = vrot.lane.b32.xlu0 %v1021_v46, %s18376_s22  ;;  %1564 = vrot.lane.b32.xlu1 %v1052_v52, %s18379_s20  ;;  %v2808_v46 = vld [vmem:[#allocation3 + $0x9] sm:$0xff]  ;;  %v2201_v52 = vsel %vm2177_vm6, %v2168_v50, %v13607_v29  ;;  %s18328_s22 = smov 12  }
 0x21c   : > { %11630 = vmatmul.mubr.msk.f32.gmra.mrb[20].mxu0 %vm2384_vm12, %v2364_v37  ;;  %v2234_v27 = vsel %vm2210_vm7, %v2201_v52, %v13635_v14 }
 0x21d   : > { %v13648_v4 = vpop.permute.xlu0 %1170  ;;  %v13650_v42 = vpop.permute.xlu1 %1296 }
 0x21e   : > { %v2137_v2 = vsel %vm600_vm0, %v13344_v18, %v13648_v4 }
 0x21f   : > { %1946 = vrot.lane.b32.xlu0 %v1053_v45, %s18384_s25  ;;  %2072 = vrot.lane.b32.xlu1 %v1084_v15, %s18385_s24 }
 0x221   : > { %v1679_v5 = vpop.permute.xlu0 %1678  ;;  %v1805_v17 = vpop.permute.xlu1 %1804 }
 0x222   : > { %v2299_v43 = vsel %vm2276_vm9, %v2266_v8, %v1805_v17  ;;  %v2267_v33 = vsel %vm2243_vm8, %v2234_v27, %v1679_v5 }
 0x223   : > { %1566 = vrot.lane.b32.xlu0 %v1053_v45, %s18379_s20  ;;  %1692 = vrot.lane.b32.xlu1 %v1084_v15, %s18381_s28  ;;  %v13716_v45 = vld [vmem:[#allocation3 + $0x18] sm:$0xff]  ;;  %v13718_v15 = vld [vmem:[#allocation3 + $0x20] sm:$0xff] }
 0x225   : > { %v13656_v41 = vpop.permute.xlu0 %1298  ;;  %v13658_v59 = vpop.permute.xlu1 %1424 }
 0x226   : > { %v2170_v50 = vsel %vm2144_vm5, %v2137_v2, %v13656_v41 }
 0x227   : > { %2074 = vrot.lane.b32.xlu0 %v1085_v38, %s18385_s24  ;;  %1694 = vrot.lane.b32.xlu1 %v1085_v38, %s18381_s28  ;;  %v2903_v38 = vld [vmem:[#allocation3 + $0x19] sm:$0xff]  ;;  %s18332_s28 = smov 20  }
 0x229   : > { %v1807_v24 = vpop.permute.xlu0 %1806  ;;  %v1933_v10 = vpop.permute.xlu1 %1932 }
 0x22a   : > { %v2332_v1 = vsel %vm18350_vm10, %v2299_v43, %v1933_v10  ;;  %v2300_v49 = vsel %vm2276_vm9, %v2267_v33, %v1807_v24  ;;  %v2904_v24 = vld [vmem:[#allocation3 + $0x21] sm:$0xff]  ;;  %v13789_v33 = vld [vmem:[#allocation3 + $0x38] sm:$0xff] }
 0x22b   : > { %1820 = vrot.lane.b32.xlu0 %v1022_v9, %s18324_s29  ;;  %1822 = vrot.lane.b32.xlu1 %v1023_v11, %s18324_s29  ;;  %v2935_v10 = vld [vmem:[#allocation3 + $0x1a] sm:$0xff]  ;;  %v2936_v43 = vld [vmem:[#allocation3 + $0x22] sm:$0xff]  ;;  %s18389_s29 = smov 20  }
 0x22d   : > { %v13671_v26 = vpop.permute.xlu0 %1426  ;;  %v13673_v28 = vpop.permute.xlu1 %1552 }
 0x22e   : > { %v2203_v4 = vsel %vm2177_vm6, %v2170_v50, %v13671_v26  ;;  %v13866_v50 = vld [vmem:[#allocation3 + $0x50] sm:$0xff] }
 0x22f   : > { %v11613_v63 = vpop.f32.mrb[8].mxu0  ;;  %1948 = vrot.lane.b32.xlu0 %v1054_v20, %s18384_s25  ;;  %1950 = vrot.lane.b32.xlu1 %v1055_v21, %s18384_s25  ;;  %v2136_v20 = vsel %vm600_vm0, %v13319_v35, %v13633_v48 }
 0x230   : > { %v2597_v54 = vadd.f32 %v11613_v63, %v13396_v6  ;;  %v2591_v40 = vpop.f32.mrb[9].mxu0  ;;  %v2169_v21 = vsel %vm2144_vm5, %v2136_v20, %v13650_v42  ;;  %v3033_v20 = vld [vmem:[#allocation3 + $0x3a] sm:$0xff] }
 0x231   : > { %v2592_v13 = vadd.f32 %v13396_v6, %v2591_v40  ;;  %v1935_v55 = vpop.permute.xlu0 %1934  ;;  %v2061_v16 = vpop.permute.xlu1 %2060  ;;  %v2202_v53 = vsel %vm2177_vm6, %v2169_v21, %v13658_v59 }
 0x232   : > { %v2719_v30 = vmax.f32 %v2597_v54, 0.0  ;;  %v2365_v39 = vsel %vm2342_vm11, %v2332_v1, %v2061_v16  ;;  %v2333_v29 = vsel %vm18350_vm10, %v2300_v49, %v1935_v55  ;;  %v2235_v63 = vsel %vm2210_vm7, %v2202_v53, %v13673_v28  ;;  %v13747_v54 = vld [vmem:[#allocation3 + $0x30] sm:$0xff] }
 0x233   : > { %v2718_v3 = vmax.f32 %v2592_v13, 0.0  ;;  %2076 = vrot.lane.b32.xlu0 %v1086_v7, %s18385_s24  ;;  %2078 = vrot.lane.b32.xlu1 %v1087_v23, %s18385_s24 }
 0x234   : > { %2752 = vst.msk [vmem:[#allocation3 + $0x81] sm:$0xff] %vm2210_vm7, %v2719_v30  ;;  %11632 = vmatprep.mubr.msk.f32.mxu0 %vm2384_vm12, %v2365_v39 }
 0x235   : > { %2751 = vst.msk [vmem:[#allocation3 + $0x79] sm:$0xff] %vm2210_vm7, %v2718_v3  ;;  %v13697_v31 = vpop.permute.xlu0 %1172  ;;  %v13699_v22 = vpop.permute.xlu1 %1554 }
 0x236   : > { %v2236_v27 = vsel %vm2210_vm7, %v2203_v4, %v13699_v22 }
 0x237   : > { %3096 = vrot.lane.b32.xlu0 %v2807_v19, %s18379_s20  ;;  %3098 = vrot.lane.b32.xlu1 %v2808_v46, %s18379_s20 }
 0x239   : > { %v1681_v56 = vpop.permute.xlu0 %1680  ;;  %v2063_v32 = vpop.permute.xlu1 %2062 }
 0x23a   : > { %v2366_v62 = vsel %vm2342_vm11, %v2333_v29, %v2063_v32  ;;  %v2268_v35 = vsel %vm2243_vm8, %v2235_v63, %v1681_v56  ;;  %v2138_v63 = vsel %vm600_vm0, %v13385_v47, %v13697_v31  ;;  %v13837_v31 = vld [vmem:[#allocation3 + $0x48] sm:$0xff] }
 0x23b   : > { %3224 = vrot.lane.b32.xlu0 %v2839_v60, %s18385_s24  ;;  %3226 = vrot.lane.b32.xlu1 %v2840_v44, %s18385_s24  ;;  %v3000_v60 = vld [vmem:[#allocation3 + $0x31] sm:$0xff] }
 0x23c   : > { %11633 = vmatmul.mubr.msk.f32.gmra.mrb[22].mxu0 %vm2384_vm12, %v2366_v62 }
 0x23d   : > { %v13712_v14 = vpop.permute.xlu0 %1174  ;;  %v13714_v37 = vpop.permute.xlu1 %1300 }
 0x23f   : > { %3352 = vrot.lane.b32.xlu0 %v13716_v45, %s18328_s22  ;;  %3354 = vrot.lane.b32.xlu1 %v13718_v15, %s18328_s22  ;;  %s18386_s22 = sld [smem:[#allocation21_spill]] }
 0x241   : > { %v1683_v5 = vpop.permute.xlu0 %1682  ;;  %v1809_v17 = vpop.permute.xlu1 %1808 }
 0x242   : > { %v2301_v42 = vsel %vm2276_vm9, %v2268_v35, %v1809_v17  ;;  %v2269_v49 = vsel %vm2243_vm8, %v2236_v27, %v1683_v5  ;;  %v3001_v17 = vld [vmem:[#allocation3 + $0x39] sm:$0xff] }
 0x243   : > { %3480 = vrot.lane.b32.xlu0 %v2903_v38, %s18326_s26  ;;  %3100 = vrot.lane.b32.xlu1 %v2903_v38, %s18379_s20  ;;  %v3032_v38 = vld [vmem:[#allocation3 + $0x32] sm:$0xff] }
 0x245   : > { %v13726_v9 = vpop.permute.xlu0 %1302  ;;  %v13728_v11 = vpop.permute.xlu1 %1428  ;;  %v4349_v28 = vld [vmem:[%s18386_s22] sm:$0xff]  ;;  %v4350_v7 = vld [vmem:[%s18386_s22 + $0x8] sm:$0xff]  ;;  %v4351_v19 = vld [vmem:[%s18386_s22 + $0x10] sm:$0xff] }
 0x246   : > { %v12001_v16 = vpack.c.bf16 %v4350_v7, %v4349_v28  ;;  %v4352_v18 = vld [vmem:[%s18386_s22 + $0x18] sm:$0xff]  ;;  %v4353_v44 = vld [vmem:[%s18386_s22 + $0x20] sm:$0xf]  ;;  %s18395_s22 = smov 48  }
 0x247   : > { %3482 = vrot.lane.b32.xlu0 %v2904_v24, %s18326_s26  ;;  %3608 = vrot.lane.b32.xlu1 %v2935_v10, %s18332_s28  ;;  %v12005_v52 = vpack.c.bf16 %v4352_v18, %v4351_v19  ;;  %s18388_s26 = smov 16   ;;  %v3002_v19 = vld [vmem:[#allocation3 + $0x49] sm:$0xff] }
 0x248   : > { %12002 = vmatprep.subr.bf16.mxu1 %v12001_v16 }
 0x249   : > { %v1811_v51 = vpop.permute.xlu0 %1810  ;;  %v1937_v36 = vpop.permute.xlu1 %1936  ;;  %12004 = vmatpush3.bf16.msra.mxu1 %v12001_v16  ;;  %v2139_v16 = vsel %vm600_vm0, %v13418_v61, %v13712_v14 }
 0x24a   : > { %v2334_v23 = vsel %vm18350_vm10, %v2301_v42, %v1937_v36  ;;  %12006 = vmatprep.subr.bf16.mxu1 %v12005_v52  ;;  %v2302_v26 = vsel %vm2276_vm9, %v2269_v49, %v1811_v51 }
 0x24b   : > { %3102 = vrot.lane.b32.xlu0 %v2904_v24, %s18379_s20  ;;  %3228 = vrot.lane.b32.xlu1 %v2935_v10, %s18385_s24 }
 0x24d   : > { %v13741_v12 = vpop.permute.xlu0 %1430  ;;  %v13743_v8 = vpop.permute.xlu1 %1556  ;;  %12008 = vmatpush3.bf16.msra.mxu1 %v12005_v52 }
 0x24e   : > { %11655 = vmatprep.subr.msk.mxu1 %vm4458_vm15, %v4353_v44 }
 0x24f   : > { %v11616_v48 = vpop.f32.mrb[10].mxu0  ;;  %3610 = vrot.lane.b32.xlu0 %v2936_v43, %s18332_s28  ;;  %3736 = vrot.lane.b32.xlu1 %v13747_v54, %s18336_s23  ;;  %s18334_s28 = smov 28  }
 0x250   : > { %v2607_v59 = vadd.f32 %v11616_v48, %v13396_v6  ;;  %v2601_v40 = vpop.f32.mrb[11].mxu0 }
 0x251   : > { %v2602_v1 = vadd.f32 %v13396_v6, %v2601_v40  ;;  %v1939_v13 = vpop.permute.xlu0 %1938  ;;  %v2065_v55 = vpop.permute.xlu1 %2064  ;;  %11656 = vmatpush3.msk.msra.mxu1 %vm4458_vm15, %v4353_v44 }
 0x252   : > { %v2721_v30 = vmax.f32 %v2607_v59, 0.0  ;;  %v2367_v39 = vsel %vm2342_vm11, %v2334_v23, %v2065_v55  ;;  %v2335_v22 = vsel %vm18350_vm10, %v2302_v26, %v1939_v13  ;;  %v3034_v26 = vld [vmem:[#allocation3 + $0x4a] sm:$0xff] }
 0x253   : > { %v2720_v3 = vmax.f32 %v2602_v1, 0.0  ;;  %3230 = vrot.lane.b32.xlu0 %v2936_v43, %s18385_s24  ;;  %11635 = vmatprep.mubr.msk.f32.mxu0 %vm2384_vm12, %v2367_v39  ;;  %v2171_v43 = vsel %vm2144_vm5, %v2138_v63, %v13714_v37  ;;  %v2172_v39 = vsel %vm2144_vm5, %v2139_v16, %v13726_v9 }
 0x254   : > { %2754 = vst.msk [vmem:[#allocation3 + $0x99] sm:$0xff] %vm2210_vm7, %v2721_v30  ;;  %3356 = vrot.lane.b32.xlu1 %v13747_v54, %s18387_s0  ;;  %v2204_v35 = vsel %vm2177_vm6, %v2171_v43, %v13728_v11  ;;  %v2205_v2 = vsel %vm2177_vm6, %v2172_v39, %v13741_v12 }
 0x255   : > { %2753 = vst.msk [vmem:[#allocation3 + $0x91] sm:$0xff] %vm2210_vm7, %v2720_v3  ;;  %v13783_v41 = vpop.permute.xlu0 %1176  ;;  %v13785_v46 = vpop.permute.xlu1 %1558  ;;  %v2237_v59 = vsel %vm2210_vm7, %v2204_v35, %v13743_v8 }
 0x256   : > { %v2238_v14 = vsel %vm2210_vm7, %v2205_v2, %v13785_v46 }
 0x257   : > { %3738 = vrot.lane.b32.xlu0 %v13789_v33, %s18336_s23 }
 0x258   : > { %3864 = vrot.lane.b32.xlu1 %v3000_v60, %s18334_s28 }
 0x259   : > { %v1685_v29 = vpop.permute.xlu0 %1684  ;;  %v2067_v56 = vpop.permute.xlu1 %2066 }
 0x25a   : > { %v2368_v32 = vsel %vm2342_vm11, %v2335_v22, %v2067_v56  ;;  %v2270_v40 = vsel %vm2243_vm8, %v2237_v59, %v1685_v29  ;;  %v13905_v59 = vld [vmem:[#allocation3 + $0x60] sm:$0xff] }
 0x25b   : > { %11636 = vmatmul.mubr.msk.f32.gmra.mrb[24].mxu0 %vm2384_vm12, %v2368_v32  ;;  %3358 = vrot.lane.b32.xlu0 %v13789_v33, %s18387_s0  ;;  %v3035_v32 = vld [vmem:[#allocation3 + $0x52] sm:$0xff] }
 0x25c   : > { %3484 = vrot.lane.b32.xlu1 %v3000_v60, %s18388_s26 }
 0x25d   : > { %v13806_v62 = vpop.permute.xlu0 %1178  ;;  %v13808_v5 = vpop.permute.xlu1 %1304 }
 0x25f   : > { %3866 = vrot.lane.b32.xlu0 %v3001_v17, %s18334_s28 }
 0x260   : > { %3992 = vrot.lane.b32.xlu1 %v3032_v38, %s18338_s2 }
 0x261   : > { %v1687_v24 = vpop.permute.xlu0 %1686  ;;  %v1813_v10 = vpop.permute.xlu1 %1812 }
 0x262   : > { %v2303_v37 = vsel %vm2276_vm9, %v2270_v40, %v1813_v10  ;;  %v2271_v9 = vsel %vm2243_vm8, %v2238_v14, %v1687_v24  ;;  %v2140_v24 = vsel %vm600_vm0, %v13461_v34, %v13783_v41  ;;  %v3005_v14 = vld [vmem:[#allocation3 + $0x69] sm:$0xff] }
 0x263   : > { %3104 = vrot.lane.b32.xlu0 %v3000_v60, %s18379_s20  ;;  %v3003_v60 = vld [vmem:[#allocation3 + $0x51] sm:$0xff]  ;;  %v2173_v10 = vsel %vm2144_vm5, %v2140_v24, %v13808_v5 }
 0x264   : > { %3486 = vrot.lane.b32.xlu1 %v3001_v17, %s18388_s26  ;;  %v3037_v24 = vld [vmem:[#allocation3 + $0x6a] sm:$0xff] }
 0x265   : > { %v13815_v51 = vpop.permute.xlu0 %1306  ;;  %v13817_v36 = vpop.permute.xlu1 %1432 }
 0x267   : > { %3612 = vrot.lane.b32.xlu0 %v3032_v38, %s18389_s29 }
 0x268   : > { %3994 = vrot.lane.b32.xlu1 %v3033_v20, %s18338_s2 }
 0x269   : > { %v1815_v21 = vpop.permute.xlu0 %1814  ;;  %v1941_v53 = vpop.permute.xlu1 %1940 }
 0x26a   : > { %v2336_v11 = vsel %vm18350_vm10, %v2303_v37, %v1941_v53  ;;  %v2304_v18 = vsel %vm2276_vm9, %v2271_v9, %v1815_v21 }
 0x26b   : > { %3106 = vrot.lane.b32.xlu0 %v3001_v17, %s18379_s20 }
 0x26c   : > { %3232 = vrot.lane.b32.xlu1 %v3032_v38, %s18385_s24 }
 0x26d   : > { %v13830_v48 = vpop.permute.xlu0 %1434  ;;  %v13832_v42 = vpop.permute.xlu1 %1560 }
 0x26f   : > { %v11619_v47 = vpop.f32.mrb[12].mxu0  ;;  %3614 = vrot.lane.b32.xlu0 %v3033_v20, %s18389_s29 }
 0x270   : > { %v2617_v28 = vadd.f32 %v11619_v47, %v13396_v6  ;;  %v2611_v7 = vpop.f32.mrb[13].mxu0  ;;  %3740 = vrot.lane.b32.xlu1 %v13837_v31, %s18336_s23 }
 0x271   : > { %v2612_v23 = vadd.f32 %v13396_v6, %v2611_v7  ;;  %v1943_v8 = vpop.permute.xlu0 %1942  ;;  %v2069_v1 = vpop.permute.xlu1 %2068  ;;  %v2141_v7 = vsel %vm600_vm0, %v13490_v58, %v13806_v62 }
 0x272   : > { %v2723_v13 = vmax.f32 %v2617_v28, 0.0  ;;  %v2369_v55 = vsel %vm2342_vm11, %v2336_v11, %v2069_v1  ;;  %v2337_v12 = vsel %vm18350_vm10, %v2304_v18, %v1943_v8  ;;  %v13930_v1 = vld [vmem:[#allocation3 + $0x68] sm:$0xff] }
 0x273   : > { %v2722_v30 = vmax.f32 %v2612_v23, 0.0  ;;  %11638 = vmatprep.mubr.msk.f32.mxu0 %vm2384_vm12, %v2369_v55  ;;  %3234 = vrot.lane.b32.xlu0 %v3033_v20, %s18385_s24  ;;  %v2206_v20 = vsel %vm2177_vm6, %v2173_v10, %v13817_v36  ;;  %v2174_v23 = vsel %vm2144_vm5, %v2141_v7, %v13815_v51  ;;  %v3004_v51 = vld [vmem:[#allocation3 + $0x61] sm:$0xff] }
 0x274   : > { %2756 = vst.msk [vmem:[#allocation3 + $0xb1] sm:$0xff] %vm2210_vm7, %v2723_v13  ;;  %3360 = vrot.lane.b32.xlu1 %v13837_v31, %s18387_s0  ;;  %v2239_v63 = vsel %vm2210_vm7, %v2206_v20, %v13832_v42  ;;  %v3036_v18 = vld [vmem:[#allocation3 + $0x62] sm:$0xff] }
 0x275   : > { %2755 = vst.msk [vmem:[#allocation3 + $0xa9] sm:$0xff] %vm2210_vm7, %v2722_v30  ;;  %v13860_v3 = vpop.permute.xlu0 %1180  ;;  %v13862_v61 = vpop.permute.xlu1 %1562  ;;  %v14001_v7 = vld [vmem:[#allocation3 + $0x80] sm:$0xff] }
 0x276   : > { %v2142_v9 = vsel %vm600_vm0, %v13533_v57, %v13860_v3 }
 0x277   : > { %3742 = vrot.lane.b32.xlu0 %v13866_v50, %s18336_s23 }
 0x278   : > { %3868 = vrot.lane.b32.xlu1 %v3002_v19, %s18334_s28 }
 0x279   : > { %v1689_v4 = vpop.permute.xlu0 %1688  ;;  %v2071_v52 = vpop.permute.xlu1 %2070 }
 0x27a   : > { %v2370_v27 = vsel %vm2342_vm11, %v2337_v12, %v2071_v52  ;;  %v2272_v43 = vsel %vm2243_vm8, %v2239_v63, %v1689_v4 }
 0x27b   : > { %11639 = vmatmul.mubr.msk.f32.gmra.mrb[26].mxu0 %vm2384_vm12, %v2370_v27  ;;  %3362 = vrot.lane.b32.xlu0 %v13866_v50, %s18387_s0 }
 0x27c   : > { %3488 = vrot.lane.b32.xlu1 %v3002_v19, %s18388_s26 }
 0x27d   : > { %v13879_v46 = vpop.permute.xlu0 %1182  ;;  %v13881_v49 = vpop.permute.xlu1 %1308 }
 0x27e   : > { %v2175_v12 = vsel %vm2144_vm5, %v2142_v9, %v13881_v49 }
 0x27f   : > { %3870 = vrot.lane.b32.xlu0 %v3003_v60, %s18334_s28 }
 0x280   : > { %3996 = vrot.lane.b32.xlu1 %v3034_v26, %s18338_s2 }
 0x281   : > { %v1691_v44 = vpop.permute.xlu0 %1690  ;;  %v1817_v22 = vpop.permute.xlu1 %1816 }
 0x282   : > { %v2305_v34 = vsel %vm2276_vm9, %v2272_v43, %v1817_v22  ;;  %v13980_v43 = vld [vmem:[#allocation3 + $0x78] sm:$0xff] }
 0x283   : > { %3108 = vrot.lane.b32.xlu0 %v3002_v19, %s18379_s20  ;;  %v2143_v19 = vsel %vm600_vm0, %v13562_v25, %v13879_v46  ;;  %vm4184_vm0 = vcmask 130048  }
 0x284   : > { %3490 = vrot.lane.b32.xlu1 %v3003_v60, %s18388_s26 }
 0x285   : > { %v13887_v29 = vpop.permute.xlu0 %1310  ;;  %v13889_v56 = vpop.permute.xlu1 %1436 }
 0x286   : > { %v2176_v4 = vsel %vm2144_vm5, %v2143_v19, %v13887_v29  ;;  %v2208_v52 = vsel %vm2177_vm6, %v2175_v12, %v13889_v56  ;;  %vm18353_vm5 = vcmask 261120  }
 0x287   : > { %3616 = vrot.lane.b32.xlu0 %v3034_v26, %s18389_s29 }
 0x288   : > { %3998 = vrot.lane.b32.xlu1 %v3035_v32, %s18338_s2 }
 0x289   : > { %v1819_v17 = vpop.permute.xlu0 %1818  ;;  %v1945_v38 = vpop.permute.xlu1 %1944 }
 0x28a   : > { %v2338_v36 = vsel %vm18350_vm10, %v2305_v34, %v1945_v38 }
 0x28b   : > { %3110 = vrot.lane.b32.xlu0 %v3003_v60, %s18379_s20 }
 0x28c   : > { %3236 = vrot.lane.b32.xlu1 %v3034_v26, %s18385_s24 }
 0x28d   : > { %v1439_v21 = vpop.permute.xlu0 %1438  ;;  %v1565_v53 = vpop.permute.xlu1 %1564 }
 0x28e   : > { %v2209_v57 = vsel %vm2177_vm6, %v2176_v4, %v1439_v21  ;;  %v2241_v25 = vsel %vm2210_vm7, %v2208_v52, %v1565_v53 }
 0x28f   : > { %v11622_v35 = vpop.f32.mrb[14].mxu0  ;;  %3618 = vrot.lane.b32.xlu0 %v3035_v32, %s18389_s29 }
 0x290   : > { %v2627_v41 = vadd.f32 %v11622_v35, %v13396_v6  ;;  %v2621_v5 = vpop.f32.mrb[15].mxu0  ;;  %3744 = vrot.lane.b32.xlu1 %v13905_v59, %s18336_s23  ;;  %v13986_v35 = vld [vmem:[%s18383_s27] ss:$0 sm:$0xff]  ;;  %s18344_s27 = smov 40  }
 0x291   : > { %v2622_v40 = vadd.f32 %v13396_v6, %v2621_v5  ;;  %v1947_v42 = vpop.permute.xlu0 %1946  ;;  %v2073_v47 = vpop.permute.xlu1 %2072  ;;  %v2207_v6 = vsel %vm2177_vm6, %v2174_v23, %v13830_v48  ;;  %vm4361_vm6 = vcmask 293888  }
 0x292   : > { %v2725_v37 = vmax.f32 %v2627_v41, 0.0  ;;  %v2371_v28 = vsel %vm2342_vm11, %v2338_v36, %v2073_v47  ;;  %v2240_v62 = vsel %vm2210_vm7, %v2207_v6, %v13862_v61 }
 0x293   : > { %v2724_v11 = vmax.f32 %v2622_v40, 0.0  ;;  %11641 = vmatprep.mubr.msk.f32.mxu0 %vm2384_vm12, %v2371_v28  ;;  %3238 = vrot.lane.b32.xlu0 %v3035_v32, %s18385_s24  ;;  %v2273_v13 = vsel %vm2243_vm8, %v2240_v62, %v1691_v44  ;;  %v3007_v62 = vld [vmem:[#allocation3 + $0x81] sm:$0xff] }
 0x294   : > { %2758 = vst.msk [vmem:[#allocation3 + $0xc9] sm:$0xff] %vm2210_vm7, %v2725_v37  ;;  %3364 = vrot.lane.b32.xlu1 %v13905_v59, %s18387_s0  ;;  %v2306_v55 = vsel %vm2276_vm9, %v2273_v13, %v1819_v17  ;;  %v3038_v13 = vld [vmem:[#allocation3 + $0x7a] sm:$0xff] }
 0x295   : > { %2757 = vst.msk [vmem:[#allocation3 + $0xc1] sm:$0xff] %vm2210_vm7, %v2724_v11  ;;  %v1567_v8 = vpop.permute.xlu0 %1566  ;;  %v1693_v58 = vpop.permute.xlu1 %1692  ;;  %v2339_v48 = vsel %vm18350_vm10, %v2306_v55, %v1947_v42  ;;  %v3006_v11 = vld [vmem:[#allocation3 + $0x79] sm:$0xff] }
 0x296   : > { %v2242_v46 = vsel %vm2210_vm7, %v2209_v57, %v1567_v8  ;;  %v2274_v60 = vsel %vm2243_vm8, %v2241_v25, %v1693_v58  ;;  %v14035_v57 = vld [vmem:[#allocation3 + $0x90] sm:$0xff] }
 0x297   : > { %3746 = vrot.lane.b32.xlu0 %v13930_v1, %s18336_s23  ;;  %s18391_s23 = smov 28  }
 0x298   : > { %3872 = vrot.lane.b32.xlu1 %v3004_v51, %s18334_s28 }
 0x299   : > { %v2075_v16 = vpop.permute.xlu0 %2074  ;;  %v1695_v30 = vpop.permute.xlu1 %1694 }
 0x29a   : > { %v2372_v39 = vsel %vm2342_vm11, %v2339_v48, %v2075_v16  ;;  %v2275_v49 = vsel %vm2243_vm8, %v2242_v46, %v1695_v30  ;;  %v3039_v30 = vld [vmem:[#allocation3 + $0x82] sm:$0xff]  ;;  %vm6320_vm8 = vcmask 326656  }
 0x29b   : > { %11642 = vmatmul.mubr.msk.f32.gmra.mrb[28].mxu0 %vm2384_vm12, %v2372_v39  ;;  %3366 = vrot.lane.b32.xlu0 %v13930_v1, %s18387_s0  ;;  %v2775_v39 = vld [vmem:[#allocation3] sm:$0xff]  ;;  %v2776_v46 = vld [vmem:[#allocation3 + $0x8] sm:$0xff] }
 0x29c   : > { %3492 = vrot.lane.b32.xlu1 %v3004_v51, %s18388_s26 }
 0x29d   : > { %v1821_v2 = vpop.permute.xlu0 %1820  ;;  %v1823_v61 = vpop.permute.xlu1 %1822 }
 0x29e   : > { %v2307_v26 = vsel %vm2276_vm9, %v2274_v60, %v1821_v2  ;;  %v2308_v44 = vsel %vm2276_vm9, %v2275_v49, %v1823_v61 }
 0x29f   : > { %3874 = vrot.lane.b32.xlu0 %v3005_v14, %s18334_s28  ;;  %s18392_s28 = smov 32  }
 0x2a0   : > { %4000 = vrot.lane.b32.xlu1 %v3036_v18, %s18338_s2 }
 0x2a1   : > { %v1949_v3 = vpop.permute.xlu0 %1948  ;;  %v1951_v27 = vpop.permute.xlu1 %1950 }
 0x2a2   : > { %v2340_v22 = vsel %vm18350_vm10, %v2307_v26, %v1949_v3  ;;  %v2341_v29 = vsel %vm18350_vm10, %v2308_v44, %v1951_v27  ;;  %vm6468_vm10 = vcmask 588800  }
 0x2a3   : > { %3112 = vrot.lane.b32.xlu0 %v3004_v51, %s18379_s20 }
 0x2a4   : > { %3494 = vrot.lane.b32.xlu1 %v3005_v14, %s18388_s26 }
 0x2a5   : > { %v2077_v56 = vpop.permute.xlu0 %2076  ;;  %v2079_v32 = vpop.permute.xlu1 %2078 }
 0x2a6   : > { %v2373_v17 = vsel %vm2342_vm11, %v2340_v22, %v2077_v56  ;;  %v2374_v38 = vsel %vm2342_vm11, %v2341_v29, %v2079_v32 }
 0x2a7   : > { %11644 = vmatprep.mubr.msk.f32.mxu0 %vm2384_vm12, %v2373_v17  ;;  %3620 = vrot.lane.b32.xlu0 %v3036_v18, %s18389_s29 }
 0x2a8   : > { %4002 = vrot.lane.b32.xlu1 %v3037_v24, %s18338_s2  ;;  %11645 = vmatmul.mubr.msk.f32.gmra.mrb[30].mxu0 %vm2384_vm12, %v2374_v38  ;;  %s18390_s2 = smov 24   ;;  %vm6353_vm12 = vcmask 392192  }
 0x2a9   : > { %v3097_v10 = vpop.permute.xlu0 %3096  ;;  %v13974_v20 = vpop.permute.xlu1 %3098 }
 0x2aa   : > { %v4089_v17 = vsel %vm2210_vm7, %v2776_v46, %v13974_v20  ;;  %v14062_v20 = vld [vmem:[#allocation3 + $0x98] sm:$0xff] }
 0x2ab   : > { %3114 = vrot.lane.b32.xlu0 %v3005_v14, %s18379_s20  ;;  %v4088_v14 = vsel %vm2210_vm7, %v2775_v39, %v3097_v10 }
 0x2ac   : > { %3240 = vrot.lane.b32.xlu1 %v3036_v18, %s18385_s24 }
 0x2ad   : > { %v3225_v21 = vpop.permute.xlu0 %3224  ;;  %v13978_v53 = vpop.permute.xlu1 %3226 }
 0x2ae   : > { %v4120_v9 = vsel %vm2342_vm11, %v4088_v14, %v3225_v21  ;;  %v4121_v38 = vsel %vm2342_vm11, %v4089_v17, %v13978_v53  ;;  %v3010_v17 = vld [vmem:[#allocation3 + $0xa9] sm:$0xff] }
 0x2af   : > { %v11625_v63 = vpop.f32.mrb[16].mxu0  ;;  %3622 = vrot.lane.b32.xlu0 %v3037_v24, %s18389_s29 }
 0x2b0   : > { %v2637_v34 = vadd.f32 %v13986_v35, %v11625_v63  ;;  %v2631_v41 = vpop.f32.mrb[17].mxu0  ;;  %3748 = vrot.lane.b32.xlu1 %v13980_v43, %s18390_s2 }
 0x2b1   : > { %v2632_v5 = vadd.f32 %v13986_v35, %v2631_v41  ;;  %v3353_v36 = vpop.permute.xlu0 %3352  ;;  %v13992_v40 = vpop.permute.xlu1 %3354 }
 0x2b2   : > { %v2727_v42 = vmax.f32 %v2637_v34, 0.0  ;;  %v4152_v18 = vsel %vm656_vm13, %v4120_v9, %v3353_v36  ;;  %v4153_v10 = vsel %vm656_vm13, %v4121_v38, %v13992_v40  ;;  %v3008_v34 = vld [vmem:[#allocation3 + $0x91] sm:$0xff] }
 0x2b3   : > { %v2726_v47 = vmax.f32 %v2632_v5, 0.0  ;;  %3242 = vrot.lane.b32.xlu0 %v3037_v24, %s18385_s24 }
 0x2b4   : > { %2760 = vst.msk [vmem:[#allocation3 + $0xe1] sm:$0xff] %vm2210_vm7, %v2727_v42  ;;  %3368 = vrot.lane.b32.xlu1 %v13980_v43, %s18387_s0 }
 0x2b5   : > { %2759 = vst.msk [vmem:[#allocation3 + $0xd9] sm:$0xff] %vm2210_vm7, %v2726_v47  ;;  %v3481_v37 = vpop.permute.xlu0 %3480  ;;  %v13999_v28 = vpop.permute.xlu1 %3100 }
 0x2b6   : > { %v4185_v4 = vsel %vm4184_vm0, %v4152_v18, %v3481_v37 }
 0x2b7   : > { %3750 = vrot.lane.b32.xlu0 %v14001_v7, %s18390_s2 }
 0x2b8   : > { %3876 = vrot.lane.b32.xlu1 %v3006_v11, %s18391_s23 }
 0x2b9   : > { %v14006_v23 = vpop.permute.xlu0 %3482  ;;  %v3609_v6 = vpop.permute.xlu1 %3608 }
 0x2ba   : > { %v4218_v3 = vsel %vm4217_vm1, %v4185_v4, %v3609_v6  ;;  %v4186_v63 = vsel %vm4184_vm0, %v4153_v10, %v14006_v23  ;;  %v3040_v23 = vld [vmem:[#allocation3 + $0x92] sm:$0xff] }
 0x2bb   : > { %3370 = vrot.lane.b32.xlu0 %v14001_v7, %s18387_s0 }
 0x2bc   : > { %3496 = vrot.lane.b32.xlu1 %v3006_v11, %s18388_s26 }
 0x2bd   : > { %v14011_v8 = vpop.permute.xlu0 %3102  ;;  %v14013_v58 = vpop.permute.xlu1 %3228 }
 0x2bf   : > { %3878 = vrot.lane.b32.xlu0 %v3007_v62, %s18391_s23 }
 0x2c0   : > { %4004 = vrot.lane.b32.xlu1 %v3038_v13, %s18392_s28 }
 0x2c1   : > { %v3611_v51 = vpop.permute.xlu0 %3610  ;;  %v3737_v55 = vpop.permute.xlu1 %3736 }
 0x2c2   : > { %v4251_v60 = vsel %vm4250_vm2, %v4218_v3, %v3737_v55  ;;  %v4219_v53 = vsel %vm4217_vm1, %v4186_v63, %v3611_v51  ;;  %v3041_v55 = vld [vmem:[#allocation3 + $0x9a] sm:$0xff]  ;;  %v14106_v3 = vld [vmem:[#allocation3 + $0xa8] sm:$0xff] }
 0x2c3   : > { %3116 = vrot.lane.b32.xlu0 %v3006_v11, %s18379_s20  ;;  %v3009_v11 = vld [vmem:[#allocation3 + $0x99] sm:$0xff] }
 0x2c4   : > { %3498 = vrot.lane.b32.xlu1 %v3007_v62, %s18388_s26 }
 0x2c5   : > { %v14019_v48 = vpop.permute.xlu0 %3230 }
 0x2c6   : > { %v14021_v16 = vpop.permute.xlu1 %3356 }
 0x2c7   : > { %3624 = vrot.lane.b32.xlu0 %v3038_v13, %s18389_s29 }
 0x2c8   : > { %4006 = vrot.lane.b32.xlu1 %v3039_v30, %s18392_s28 }
 0x2c9   : > { %v3739_v2 = vpop.permute.xlu0 %3738 }
 0x2ca   : > { %v3865_v61 = vpop.permute.xlu1 %3864  ;;  %v4252_v41 = vsel %vm4250_vm2, %v4219_v53, %v3739_v2  ;;  %v4090_v2 = vsel %vm2210_vm7, %v13716_v45, %v13999_v28 }
 0x2cb   : > { %3118 = vrot.lane.b32.xlu0 %v3007_v62, %s18379_s20  ;;  %v4284_v44 = vsel %vm4283_vm4, %v4251_v60, %v3865_v61  ;;  %v4122_v61 = vsel %vm2342_vm11, %v4090_v2, %v14013_v58 }
 0x2cc   : > { %3244 = vrot.lane.b32.xlu1 %v3038_v13, %s18385_s24  ;;  %v4154_v9 = vsel %vm656_vm13, %v4122_v61, %v14021_v16 }
 0x2cd   : > { %v14029_v19 = vpop.permute.xlu0 %3358 }
 0x2ce   : > { %v14032_v12 = vpop.permute.xlu1 %3484 }
 0x2cf   : > { %v11628_v52 = vpop.f32.mrb[18].mxu0  ;;  %3626 = vrot.lane.b32.xlu0 %v3039_v30, %s18389_s29  ;;  %v4187_v4 = vsel %vm4184_vm0, %v4154_v9, %v14032_v12 }
 0x2d0   : > { %v2647_v27 = vadd.f32 %v13986_v35, %v11628_v52  ;;  %v2641_v25 = vpop.f32.mrb[19].mxu0  ;;  %3752 = vrot.lane.b32.xlu1 %v14035_v57, %s18390_s2 }
 0x2d1   : > { %v2642_v49 = vadd.f32 %v13986_v35, %v2641_v25  ;;  %v3867_v26 = vpop.permute.xlu0 %3866 }
 0x2d2   : > { %v2729_v22 = vmax.f32 %v2647_v27, 0.0  ;;  %v3993_v29 = vpop.permute.xlu1 %3992  ;;  %v4285_v36 = vsel %vm4283_vm4, %v4252_v41, %v3867_v26  ;;  %v3011_v41 = vld [vmem:[#allocation3 + $0xb1] sm:$0xff] }
 0x2d3   : > { %v2728_v56 = vmax.f32 %v2642_v49, 0.0  ;;  %v4317_v32 = vsel %vm18353_vm5, %v4284_v44, %v3993_v29  ;;  %3246 = vrot.lane.b32.xlu0 %v3039_v30, %s18385_s24  ;;  %v4091_v44 = vsel %vm2210_vm7, %v13718_v15, %v14011_v8  ;;  %v14134_v15 = vld [vmem:[#allocation3 + $0xb0] sm:$0xff] }
 0x2d4   : > { %2762 = vst.msk [vmem:[#allocation3 + $0xf9] sm:$0xff] %vm2210_vm7, %v2729_v22  ;;  %11657 = vmatprep.mubr.msk.f32.mxu1 %vm4361_vm6, %v4317_v32  ;;  %3372 = vrot.lane.b32.xlu1 %v14035_v57, %s18387_s0  ;;  %v4123_v22 = vsel %vm2342_vm11, %v4091_v44, %v14019_v48  ;;  %v3012_v44 = vld [vmem:[#allocation3 + $0xc1] sm:$0xff] }
 0x2d5   : > { %2761 = vst.msk [vmem:[#allocation3 + $0xf1] sm:$0xff] %vm2210_vm7, %v2728_v56  ;;  %v14056_v24 = vpop.permute.xlu0 %3104  ;;  %v4155_v56 = vsel %vm656_vm13, %v4123_v22, %v14029_v19 }
 0x2d6   : > { %v14060_v21 = vpop.permute.xlu1 %3486 }
 0x2d7   : > { %3754 = vrot.lane.b32.xlu0 %v14062_v20, %s18390_s2  ;;  %v4188_v8 = vsel %vm4184_vm0, %v4155_v56, %v14060_v21 }
 0x2d8   : > { %3880 = vrot.lane.b32.xlu1 %v3008_v34, %s18391_s23 }
 0x2d9   : > { %v3613_v5 = vpop.permute.xlu0 %3612 }
 0x2da   : > { %v3995_v40 = vpop.permute.xlu1 %3994  ;;  %v4220_v45 = vsel %vm4217_vm1, %v4187_v4, %v3613_v5  ;;  %v3042_v5 = vld [vmem:[#allocation3 + $0xaa] sm:$0xff] }
 0x2db   : > { %v4318_v42 = vsel %vm18353_vm5, %v4285_v36, %v3995_v40  ;;  %3374 = vrot.lane.b32.xlu0 %v14062_v20, %s18387_s0 }
 0x2dc   : > { %11658 = vmatmul.mubr.msk.f32.vlgmr.msra.gmra.mrb[0].mxu1 %vm4361_vm6, %v4318_v42  ;;  %3500 = vrot.lane.b32.xlu1 %v3008_v34, %s18388_s26 }
 0x2dd   : > { %v14077_v47 = vpop.permute.xlu0 %3106 }
 0x2de   : > { %v14079_v37 = vpop.permute.xlu1 %3232 }
 0x2df   : > { %3882 = vrot.lane.b32.xlu0 %v3009_v11, %s18391_s23 }
 0x2e0   : > { %4008 = vrot.lane.b32.xlu1 %v3040_v23, %s18392_s28 }
 0x2e1   : > { %v3615_v6 = vpop.permute.xlu0 %3614 }
 0x2e2   : > { %v3741_v62 = vpop.permute.xlu1 %3740  ;;  %v4221_v48 = vsel %vm4217_vm1, %v4188_v8, %v3615_v6 }
 0x2e3   : > { %3120 = vrot.lane.b32.xlu0 %v3008_v34, %s18379_s20  ;;  %v4253_v16 = vsel %vm4250_vm2, %v4220_v45, %v3741_v62 }
 0x2e4   : > { %3502 = vrot.lane.b32.xlu1 %v3009_v11, %s18388_s26 }
 0x2e5   : > { %v14085_v13 = vpop.permute.xlu0 %3234 }
 0x2e6   : > { %v14087_v51 = vpop.permute.xlu1 %3360 }
 0x2e7   : > { %3628 = vrot.lane.b32.xlu0 %v3040_v23, %s18389_s29 }
 0x2e8   : > { %4010 = vrot.lane.b32.xlu1 %v3041_v55, %s18392_s28 }
 0x2e9   : > { %v3743_v30 = vpop.permute.xlu0 %3742 }
 0x2ea   : > { %v3869_v39 = vpop.permute.xlu1 %3868  ;;  %v4254_v38 = vsel %vm4250_vm2, %v4221_v48, %v3743_v30 }
 0x2eb   : > { %3122 = vrot.lane.b32.xlu0 %v3009_v11, %s18379_s20  ;;  %v4286_v12 = vsel %vm4283_vm4, %v4253_v16, %v3869_v39 }
 0x2ec   : > { %3248 = vrot.lane.b32.xlu1 %v3040_v23, %s18385_s24  ;;  %v3043_v23 = vld [vmem:[#allocation3 + $0xb2] sm:$0xff] }
 0x2ed   : > { %v14098_v14 = vpop.permute.xlu0 %3362 }
 0x2ee   : > { %v14102_v18 = vpop.permute.xlu1 %3488 }
 0x2ef   : > { %v11631_v52 = vpop.f32.mrb[20].mxu0  ;;  %3630 = vrot.lane.b32.xlu0 %v3041_v55, %s18389_s29 }
 0x2f0   : > { %v2657_v28 = vadd.f32 %v13986_v35, %v11631_v52  ;;  %v2651_v58 = vpop.f32.mrb[21].mxu0  ;;  %3756 = vrot.lane.b32.xlu1 %v14106_v3, %s18390_s2  ;;  %v14178_v52 = vld [vmem:[#allocation3 + $0xc0] sm:$0xff] }
 0x2f1   : > { %v2652_v27 = vadd.f32 %v13986_v35, %v2651_v58  ;;  %v3871_v25 = vpop.permute.xlu0 %3870 }
 0x2f2   : > { %v2731_v46 = vmax.f32 %v2657_v28, 0.0  ;;  %v3997_v60 = vpop.permute.xlu1 %3996  ;;  %v4287_v19 = vsel %vm4283_vm4, %v4254_v38, %v3871_v25  ;;  %v3013_v38 = vld [vmem:[#allocation3 + $0xc9] sm:$0xff] }
 0x2f3   : > { %v2730_v49 = vmax.f32 %v2652_v27, 0.0  ;;  %v4319_v26 = vsel %vm18353_vm5, %v4286_v12, %v3997_v60  ;;  %3250 = vrot.lane.b32.xlu0 %v3041_v55, %s18385_s24  ;;  %v4092_v55 = vsel %vm2210_vm7, %v13747_v54, %v14056_v24  ;;  %v4093_v12 = vsel %vm2210_vm7, %v13789_v33, %v14077_v47  ;;  %v14206_v33 = vld [vmem:[#allocation3 + $0xc8] sm:$0xff] }
 0x2f4   : > { %2764 = vst.msk [vmem:[#allocation3 + $0x111] sm:$0xff] %vm2210_vm7, %v2731_v46  ;;  %3376 = vrot.lane.b32.xlu1 %v14106_v3, %s18387_s0  ;;  %11660 = vmatprep.mubr.msk.f32.mxu1 %vm4361_vm6, %v4319_v26  ;;  %v4124_v30 = vsel %vm2342_vm11, %v4092_v55, %v14079_v37  ;;  %v4125_v46 = vsel %vm2342_vm11, %v4093_v12, %v14085_v13  ;;  %v14278_v12 = vld [vmem:[#allocation3 + $0xe0] sm:$0xff] }
 0x2f5   : > { %2763 = vst.msk [vmem:[#allocation3 + $0x109] sm:$0xff] %vm2210_vm7, %v2730_v49  ;;  %v14128_v29 = vpop.permute.xlu0 %3108  ;;  %v4156_v2 = vsel %vm656_vm13, %v4124_v30, %v14087_v51  ;;  %v4157_v49 = vsel %vm656_vm13, %v4125_v46, %v14098_v14 }
 0x2f6   : > { %v14132_v32 = vpop.permute.xlu1 %3490  ;;  %v4189_v9 = vsel %vm4184_vm0, %v4156_v2, %v14102_v18 }
 0x2f7   : > { %3758 = vrot.lane.b32.xlu0 %v14134_v15, %s18390_s2  ;;  %v4190_v47 = vsel %vm4184_vm0, %v4157_v49, %v14132_v32 }
 0x2f8   : > { %3884 = vrot.lane.b32.xlu1 %v3010_v17, %s18391_s23 }
 0x2f9   : > { %v3617_v10 = vpop.permute.xlu0 %3616 }
 0x2fa   : > { %v3999_v63 = vpop.permute.xlu1 %3998  ;;  %v4222_v54 = vsel %vm4217_vm1, %v4189_v9, %v3617_v10  ;;  %v3044_v10 = vld [vmem:[#allocation3 + $0xc2] sm:$0xff] }
 0x2fb   : > { %v4320_v34 = vsel %vm18353_vm5, %v4287_v19, %v3999_v63  ;;  %3378 = vrot.lane.b32.xlu0 %v14134_v15, %s18387_s0 }
 0x2fc   : > { %3504 = vrot.lane.b32.xlu1 %v3010_v17, %s18388_s26  ;;  %11661 = vmatmul.mubr.msk.f32.gmra.mrb[2].mxu1 %vm4361_vm6, %v4320_v34 }
 0x2fd   : > { %v14149_v21 = vpop.permute.xlu0 %3110 }
 0x2fe   : > { %v14151_v53 = vpop.permute.xlu1 %3236 }
 0x2ff   : > { %3886 = vrot.lane.b32.xlu0 %v3011_v41, %s18391_s23 }
 0x300   : > { %4012 = vrot.lane.b32.xlu1 %v3042_v5, %s18392_s28 }
 0x301   : > { %v3619_v36 = vpop.permute.xlu0 %3618 }
 0x302   : > { %v3745_v40 = vpop.permute.xlu1 %3744  ;;  %v4223_v13 = vsel %vm4217_vm1, %v4190_v47, %v3619_v36 }
 0x303   : > { %3124 = vrot.lane.b32.xlu0 %v3010_v17, %s18379_s20  ;;  %v4255_v51 = vsel %vm4250_vm2, %v4222_v54, %v3745_v40 }
 0x304   : > { %3506 = vrot.lane.b32.xlu1 %v3011_v41, %s18388_s26 }
 0x305   : > { %v14157_v42 = vpop.permute.xlu0 %3238 }
 0x306   : > { %v14159_v11 = vpop.permute.xlu1 %3364 }
 0x307   : > { %3632 = vrot.lane.b32.xlu0 %v3042_v5, %s18389_s29 }
 0x308   : > { %4014 = vrot.lane.b32.xlu1 %v3043_v23, %s18392_s28 }
 0x309   : > { %v3747_v6 = vpop.permute.xlu0 %3746 }
 0x30a   : > { %v3873_v62 = vpop.permute.xlu1 %3872  ;;  %v4256_v22 = vsel %vm4250_vm2, %v4223_v13, %v3747_v6 }
 0x30b   : > { %3126 = vrot.lane.b32.xlu0 %v3011_v41, %s18379_s20  ;;  %v4288_v18 = vsel %vm4283_vm4, %v4255_v51, %v3873_v62 }
 0x30c   : > { %3252 = vrot.lane.b32.xlu1 %v3042_v5, %s18385_s24  ;;  %v3045_v5 = vld [vmem:[#allocation3 + $0xca] sm:$0xff] }
 0x30d   : > { %v14170_v39 = vpop.permute.xlu0 %3366 }
 0x30e   : > { %v14174_v61 = vpop.permute.xlu1 %3492 }
 0x30f   : > { %v11634_v4 = vpop.f32.mrb[22].mxu0  ;;  %3634 = vrot.lane.b32.xlu0 %v3043_v23, %s18389_s29 }
 0x310   : > { %v2667_v24 = vadd.f32 %v13986_v35, %v11634_v4  ;;  %v2661_v37 = vpop.f32.mrb[23].mxu0  ;;  %3760 = vrot.lane.b32.xlu1 %v14178_v52, %s18390_s2 }
 0x311   : > { %v2662_v45 = vadd.f32 %v13986_v35, %v2661_v37  ;;  %v3875_v28 = vpop.permute.xlu0 %3874 }
 0x312   : > { %v2733_v58 = vmax.f32 %v2667_v24, 0.0  ;;  %v4001_v16 = vpop.permute.xlu1 %4000  ;;  %v4289_v14 = vsel %vm4283_vm4, %v4256_v22, %v3875_v28  ;;  %v3015_v22 = vld [vmem:[#allocation3 + $0xe1] sm:$0xff] }
 0x313   : > { %v2732_v27 = vmax.f32 %v2662_v45, 0.0  ;;  %v4321_v25 = vsel %vm18353_vm5, %v4288_v18, %v4001_v16  ;;  %3254 = vrot.lane.b32.xlu0 %v3043_v23, %s18385_s24  ;;  %v4094_v23 = vsel %vm2210_vm7, %v13837_v31, %v14128_v29  ;;  %v14251_v31 = vld [vmem:[#allocation3 + $0xd8] sm:$0xff]  ;;  %v4095_v18 = vsel %vm2210_vm7, %v13866_v50, %v14149_v21 }
 0x314   : > { %2766 = vst.msk [vmem:[#allocation3 + $0x129] sm:$0xff] %vm2210_vm7, %v2733_v58  ;;  %3380 = vrot.lane.b32.xlu1 %v14178_v52, %s18387_s0  ;;  %11663 = vmatprep.mubr.msk.f32.mxu1 %vm4361_vm6, %v4321_v25  ;;  %v4126_v6 = vsel %vm2342_vm11, %v4094_v23, %v14151_v53  ;;  %v4127_v58 = vsel %vm2342_vm11, %v4095_v18, %v14157_v42  ;;  %v3014_v21 = vld [vmem:[#allocation3 + $0xd9] sm:$0xff] }
 0x315   : > { %2765 = vst.msk [vmem:[#allocation3 + $0x121] sm:$0xff] %vm2210_vm7, %v2732_v27  ;;  %v14200_v60 = vpop.permute.xlu0 %3112  ;;  %v4158_v55 = vsel %vm656_vm13, %v4126_v6, %v14159_v11  ;;  %v4159_v27 = vsel %vm656_vm13, %v4127_v58, %v14170_v39  ;;  %v14350_v18 = vld [vmem:[#allocation3 + $0xf8] sm:$0xff] }
 0x316   : > { %v14204_v26 = vpop.permute.xlu1 %3494  ;;  %v4191_v9 = vsel %vm4184_vm0, %v4158_v55, %v14174_v61 }
 0x317   : > { %3762 = vrot.lane.b32.xlu0 %v14206_v33, %s18390_s2  ;;  %v4192_v50 = vsel %vm4184_vm0, %v4159_v27, %v14204_v26 }
 0x318   : > { %3888 = vrot.lane.b32.xlu1 %v3012_v44, %s18391_s23 }
 0x319   : > { %v3621_v56 = vpop.permute.xlu0 %3620 }
 0x31a   : > { %v4003_v8 = vpop.permute.xlu1 %4002  ;;  %v4224_v29 = vsel %vm4217_vm1, %v4191_v9, %v3621_v56  ;;  %v3046_v56 = vld [vmem:[#allocation3 + $0xda] sm:$0xff] }
 0x31b   : > { %v4322_v17 = vsel %vm18353_vm5, %v4289_v14, %v4003_v8  ;;  %3382 = vrot.lane.b32.xlu0 %v14206_v33, %s18387_s0 }
 0x31c   : > { %3508 = vrot.lane.b32.xlu1 %v3012_v44, %s18388_s26  ;;  %11664 = vmatmul.mubr.msk.f32.gmra.mrb[4].mxu1 %vm4361_vm6, %v4322_v17 }
 0x31d   : > { %v14221_v32 = vpop.permute.xlu0 %3114 }
 0x31e   : > { %v14223_v48 = vpop.permute.xlu1 %3240 }
 0x31f   : > { %3890 = vrot.lane.b32.xlu0 %v3013_v38, %s18391_s23 }
 0x320   : > { %4016 = vrot.lane.b32.xlu1 %v3044_v10, %s18392_s28 }
 0x321   : > { %v3623_v19 = vpop.permute.xlu0 %3622 }
 0x322   : > { %v3749_v63 = vpop.permute.xlu1 %3748  ;;  %v4225_v46 = vsel %vm4217_vm1, %v4192_v50, %v3623_v19 }
 0x323   : > { %3128 = vrot.lane.b32.xlu0 %v3012_v44, %s18379_s20  ;;  %v4257_v11 = vsel %vm4250_vm2, %v4224_v29, %v3749_v63 }
 0x324   : > { %3510 = vrot.lane.b32.xlu1 %v3013_v38, %s18388_s26 }
 0x325   : > { %v14229_v34 = vpop.permute.xlu0 %3242 }
 0x326   : > { %v14231_v41 = vpop.permute.xlu1 %3368 }
 0x327   : > { %3636 = vrot.lane.b32.xlu0 %v3044_v10, %s18389_s29 }
 0x328   : > { %4018 = vrot.lane.b32.xlu1 %v3045_v5, %s18392_s28 }
 0x329   : > { %v3751_v36 = vpop.permute.xlu0 %3750 }
 0x32a   : > { %v3877_v40 = vpop.permute.xlu1 %3876  ;;  %v4258_v42 = vsel %vm4250_vm2, %v4225_v46, %v3751_v36 }
 0x32b   : > { %3130 = vrot.lane.b32.xlu0 %v3013_v38, %s18379_s20  ;;  %v4290_v61 = vsel %vm4283_vm4, %v4257_v11, %v3877_v40 }
 0x32c   : > { %3256 = vrot.lane.b32.xlu1 %v3044_v10, %s18385_s24  ;;  %v3047_v10 = vld [vmem:[#allocation3 + $0xe2] sm:$0xff] }
 0x32d   : > { %v14242_v62 = vpop.permute.xlu0 %3370 }
 0x32e   : > { %v14246_v30 = vpop.permute.xlu1 %3496  ;;  %v11637_v2 = vpop.f32.mrb[24].mxu0 }
 0x32f   : > { %v2677_v4 = vadd.f32 %v13986_v35, %v11637_v2  ;;  %v2671_v54 = vpop.f32.mrb[25].mxu0  ;;  %3638 = vrot.lane.b32.xlu0 %v3045_v5, %s18389_s29 }
 0x330   : > { %v2672_v53 = vadd.f32 %v13986_v35, %v2671_v54  ;;  %3764 = vrot.lane.b32.xlu1 %v14251_v31, %s18390_s2 }
 0x331   : > { %v2735_v24 = vmax.f32 %v2677_v4, 0.0  ;;  %v3879_v37 = vpop.permute.xlu0 %3878 }
 0x332   : > { %v2734_v51 = vmax.f32 %v2672_v53, 0.0  ;;  %v4005_v45 = vpop.permute.xlu1 %4004  ;;  %v4291_v39 = vsel %vm4283_vm4, %v4258_v42, %v3879_v37  ;;  %v4097_v37 = vsel %vm2210_vm7, %v13930_v1, %v14221_v32  ;;  %v3016_v32 = vld [vmem:[#allocation3 + $0xf1] sm:$0xff]  ;;  %v3017_v42 = vld [vmem:[#allocation3 + $0xf9] sm:$0xff] }
 0x333   : > { %2768 = vst.msk [vmem:[#allocation3 + $0x141] sm:$0xff] %vm2210_vm7, %v2735_v24  ;;  %v4323_v28 = vsel %vm18353_vm5, %v4290_v61, %v4005_v45  ;;  %3258 = vrot.lane.b32.xlu0 %v3045_v5, %s18385_s24  ;;  %v4096_v5 = vsel %vm2210_vm7, %v13905_v59, %v14200_v60  ;;  %v14323_v59 = vld [vmem:[#allocation3 + $0xf0] sm:$0xff]  ;;  %v4129_v61 = vsel %vm2342_vm11, %v4097_v37, %v14229_v34 }
 0x334   : > { %2767 = vst.msk [vmem:[#allocation3 + $0x139] sm:$0xff] %vm2210_vm7, %v2734_v51  ;;  %3384 = vrot.lane.b32.xlu1 %v14251_v31, %s18387_s0  ;;  %11666 = vmatprep.mubr.msk.f32.mxu1 %vm4361_vm6, %v4323_v28  ;;  %v4128_v36 = vsel %vm2342_vm11, %v4096_v5, %v14223_v48  ;;  %v4161_v45 = vsel %vm656_vm13, %v4129_v61, %v14242_v62  ;;  %v14422_v37 = vld [vmem:[#allocation3 + $0x110] sm:$0xff] }
 0x335   : > { %v14272_v16 = vpop.permute.xlu0 %3116  ;;  %v4160_v23 = vsel %vm656_vm13, %v4128_v36, %v14231_v41 }
 0x336   : > { %v14276_v25 = vpop.permute.xlu1 %3498  ;;  %v4193_v2 = vsel %vm4184_vm0, %v4160_v23, %v14246_v30 }
 0x337   : > { %3766 = vrot.lane.b32.xlu0 %v14278_v12, %s18390_s2  ;;  %v4194_v1 = vsel %vm4184_vm0, %v4161_v45, %v14276_v25 }
 0x338   : > { %3892 = vrot.lane.b32.xlu1 %v3014_v21, %s18391_s23 }
 0x339   : > { %v3625_v49 = vpop.permute.xlu0 %3624 }
 0x33a   : > { %v4007_v47 = vpop.permute.xlu1 %4006  ;;  %v4226_v60 = vsel %vm4217_vm1, %v4193_v2, %v3625_v49  ;;  %v3048_v49 = vld [vmem:[#allocation3 + $0xf2] sm:$0xff] }
 0x33b   : > { %v4324_v44 = vsel %vm18353_vm5, %v4291_v39, %v4007_v47  ;;  %3386 = vrot.lane.b32.xlu0 %v14278_v12, %s18387_s0 }
 0x33c   : > { %3512 = vrot.lane.b32.xlu1 %v3014_v21, %s18388_s26  ;;  %11667 = vmatmul.mubr.msk.f32.gmra.mrb[6].mxu1 %vm4361_vm6, %v4324_v44 }
 0x33d   : > { %v14293_v26 = vpop.permute.xlu0 %3118 }
 0x33e   : > { %v14295_v13 = vpop.permute.xlu1 %3244 }
 0x33f   : > { %3894 = vrot.lane.b32.xlu0 %v3015_v22, %s18391_s23 }
 0x340   : > { %4020 = vrot.lane.b32.xlu1 %v3046_v56, %s18392_s28 }
 0x341   : > { %v3627_v14 = vpop.permute.xlu0 %3626 }
 0x342   : > { %v3753_v8 = vpop.permute.xlu1 %3752  ;;  %v4227_v58 = vsel %vm4217_vm1, %v4194_v1, %v3627_v14 }
 0x343   : > { %3132 = vrot.lane.b32.xlu0 %v3014_v21, %s18379_s20  ;;  %v4259_v41 = vsel %vm4250_vm2, %v4226_v60, %v3753_v8 }
 0x344   : > { %3514 = vrot.lane.b32.xlu1 %v3015_v22, %s18388_s26 }
 0x345   : > { %v14301_v17 = vpop.permute.xlu0 %3246 }
 0x346   : > { %v14303_v38 = vpop.permute.xlu1 %3372 }
 0x347   : > { %3640 = vrot.lane.b32.xlu0 %v3046_v56, %s18389_s29 }
 0x348   : > { %4022 = vrot.lane.b32.xlu1 %v3047_v10, %s18392_s28 }
 0x349   : > { %v3755_v19 = vpop.permute.xlu0 %3754 }
 0x34a   : > { %v3881_v63 = vpop.permute.xlu1 %3880  ;;  %v4260_v34 = vsel %vm4250_vm2, %v4227_v58, %v3755_v19 }
 0x34b   : > { %3134 = vrot.lane.b32.xlu0 %v3015_v22, %s18379_s20  ;;  %v4292_v30 = vsel %vm4283_vm4, %v4259_v41, %v3881_v63 }
 0x34c   : > { %3260 = vrot.lane.b32.xlu1 %v3046_v56, %s18385_s24  ;;  %v3049_v56 = vld [vmem:[#allocation3 + $0xfa] sm:$0xff] }
 0x34d   : > { %v14314_v40 = vpop.permute.xlu0 %3374 }
 0x34e   : > { %v14318_v6 = vpop.permute.xlu1 %3500  ;;  %v11640_v55 = vpop.f32.mrb[26].mxu0 }
 0x34f   : > { %v2687_v9 = vadd.f32 %v13986_v35, %v11640_v55  ;;  %v2681_v4 = vpop.f32.mrb[27].mxu0  ;;  %3642 = vrot.lane.b32.xlu0 %v3047_v10, %s18389_s29 }
 0x350   : > { %v2682_v48 = vadd.f32 %v13986_v35, %v2681_v4  ;;  %3768 = vrot.lane.b32.xlu1 %v14323_v59, %s18390_s2 }
 0x351   : > { %v2737_v54 = vmax.f32 %v2687_v9, 0.0  ;;  %v3883_v29 = vpop.permute.xlu0 %3882 }
 0x352   : > { %v2736_v53 = vmax.f32 %v2682_v48, 0.0  ;;  %v4009_v11 = vpop.permute.xlu1 %4008  ;;  %v4293_v62 = vsel %vm4283_vm4, %v4260_v34, %v3883_v29  ;;  %v4099_v29 = vsel %vm2210_vm7, %v14001_v7, %v14293_v26  ;;  %v3018_v26 = vld [vmem:[#allocation3 + $0x109] sm:$0xff] }
 0x353   : > { %2770 = vst.msk [vmem:[#allocation3 + $0x159] sm:$0xff] %vm2210_vm7, %v2737_v54  ;;  %v4325_v24 = vsel %vm18353_vm5, %v4292_v30, %v4009_v11  ;;  %3262 = vrot.lane.b32.xlu0 %v3047_v10, %s18385_s24  ;;  %v4098_v10 = vsel %vm2210_vm7, %v13980_v43, %v14272_v16  ;;  %v14395_v43 = vld [vmem:[#allocation3 + $0x108] sm:$0xff]  ;;  %v4131_v30 = vsel %vm2342_vm11, %v4099_v29, %v14301_v17 }
 0x354   : > { %2769 = vst.msk [vmem:[#allocation3 + $0x151] sm:$0xff] %vm2210_vm7, %v2736_v53  ;;  %3388 = vrot.lane.b32.xlu1 %v14323_v59, %s18387_s0  ;;  %11669 = vmatprep.mubr.msk.f32.mxu1 %vm4361_vm6, %v4325_v24  ;;  %v4130_v19 = vsel %vm2342_vm11, %v4098_v10, %v14295_v13  ;;  %v4163_v11 = vsel %vm656_vm13, %v4131_v30, %v14314_v40 }
 0x355   : > { %v14344_v51 = vpop.permute.xlu0 %3120  ;;  %v4162_v5 = vsel %vm656_vm13, %v4130_v19, %v14303_v38 }
 0x356   : > { %v14348_v28 = vpop.permute.xlu1 %3502  ;;  %v4195_v55 = vsel %vm4184_vm0, %v4162_v5, %v14318_v6  ;;  %v4100_v5 = vsel %vm2210_vm7, %v14035_v57, %v14344_v51 }
 0x357   : > { %3770 = vrot.lane.b32.xlu0 %v14350_v18, %s18390_s2  ;;  %v4196_v7 = vsel %vm4184_vm0, %v4163_v11, %v14348_v28 }
 0x358   : > { %3896 = vrot.lane.b32.xlu1 %v3016_v32, %s18391_s23 }
 0x359   : > { %v3629_v27 = vpop.permute.xlu0 %3628 }
 0x35a   : > { %v4011_v50 = vpop.permute.xlu1 %4010  ;;  %v4228_v16 = vsel %vm4217_vm1, %v4195_v55, %v3629_v27 }
 0x35b   : > { %v4326_v21 = vsel %vm18353_vm5, %v4293_v62, %v4011_v50  ;;  %3390 = vrot.lane.b32.xlu0 %v14350_v18, %s18387_s0 }
 0x35c   : > { %3516 = vrot.lane.b32.xlu1 %v3016_v32, %s18388_s26  ;;  %11670 = vmatmul.mubr.msk.f32.gmra.mrb[8].mxu1 %vm4361_vm6, %v4326_v21 }
 0x35d   : > { %v14365_v25 = vpop.permute.xlu0 %3122 }
 0x35e   : > { %v14367_v46 = vpop.permute.xlu1 %3248 }
 0x35f   : > { %3898 = vrot.lane.b32.xlu0 %v3017_v42, %s18391_s23 }
 0x360   : > { %4024 = vrot.lane.b32.xlu1 %v3048_v49, %s18392_s28 }
 0x361   : > { %v3631_v39 = vpop.permute.xlu0 %3630 }
 0x362   : > { %v3757_v47 = vpop.permute.xlu1 %3756  ;;  %v4229_v61 = vsel %vm4217_vm1, %v4196_v7, %v3631_v39  ;;  %v3050_v39 = vld [vmem:[#allocation3 + $0x10a] sm:$0xff] }
 0x363   : > { %3136 = vrot.lane.b32.xlu0 %v3016_v32, %s18379_s20  ;;  %v4261_v38 = vsel %vm4250_vm2, %v4228_v16, %v3757_v47 }
 0x364   : > { %3518 = vrot.lane.b32.xlu1 %v3017_v42, %s18388_s26 }
 0x365   : > { %v14373_v44 = vpop.permute.xlu0 %3250 }
 0x366   : > { %v14375_v22 = vpop.permute.xlu1 %3376 }
 0x367   : > { %3644 = vrot.lane.b32.xlu0 %v3048_v49, %s18389_s29 }
 0x368   : > { %4026 = vrot.lane.b32.xlu1 %v3049_v56, %s18392_s28 }
 0x369   : > { %v3759_v14 = vpop.permute.xlu0 %3758 }
 0x36a   : > { %v3885_v8 = vpop.permute.xlu1 %3884  ;;  %v4262_v17 = vsel %vm4250_vm2, %v4229_v61, %v3759_v14  ;;  %v3021_v61 = vld [vmem:[#allocation3 + $0x129] sm:$0xff] }
 0x36b   : > { %3138 = vrot.lane.b32.xlu0 %v3017_v42, %s18379_s20  ;;  %v4294_v6 = vsel %vm4283_vm4, %v4261_v38, %v3885_v8  ;;  %v3019_v42 = vld [vmem:[#allocation3 + $0x111] sm:$0xff] }
 0x36c   : > { %3264 = vrot.lane.b32.xlu1 %v3048_v49, %s18385_s24  ;;  %v3051_v8 = vld [vmem:[#allocation3 + $0x112] sm:$0xff] }
 0x36d   : > { %v14386_v63 = vpop.permute.xlu0 %3378 }
 0x36e   : > { %v14390_v36 = vpop.permute.xlu1 %3504  ;;  %v11643_v23 = vpop.f32.mrb[28].mxu0 }
 0x36f   : > { %v2697_v2 = vadd.f32 %v13986_v35, %v11643_v23  ;;  %v2691_v9 = vpop.f32.mrb[29].mxu0  ;;  %3646 = vrot.lane.b32.xlu0 %v3049_v56, %s18389_s29  ;;  %v4132_v23 = vsel %vm2342_vm11, %v4100_v5, %v14367_v46 }
 0x370   : > { %v2692_v13 = vadd.f32 %v13986_v35, %v2691_v9  ;;  %3772 = vrot.lane.b32.xlu1 %v14395_v43, %s18390_s2 }
 0x371   : > { %v2739_v4 = vmax.f32 %v2697_v2, 0.0  ;;  %v3887_v60 = vpop.permute.xlu0 %3886  ;;  %v4164_v2 = vsel %vm656_vm13, %v4132_v23, %v14375_v22 }
 0x372   : > { %v2738_v48 = vmax.f32 %v2692_v13, 0.0  ;;  %v4013_v41 = vpop.permute.xlu1 %4012  ;;  %v4295_v40 = vsel %vm4283_vm4, %v4262_v17, %v3887_v60  ;;  %v4197_v16 = vsel %vm4184_vm0, %v4164_v2, %v14390_v36  ;;  %v14468_v13 = vld [vmem:[#allocation3 + $0x120] sm:$0xff]  ;;  %v4101_v36 = vsel %vm2210_vm7, %v14062_v20, %v14365_v25 }
 0x373   : > { %2772 = vst.msk [vmem:[#allocation3 + $0x171] sm:$0xff] %vm2210_vm7, %v2739_v4  ;;  %v4327_v54 = vsel %vm18353_vm5, %v4294_v6, %v4013_v41  ;;  %3266 = vrot.lane.b32.xlu0 %v3049_v56, %s18385_s24  ;;  %v4133_v60 = vsel %vm2342_vm11, %v4101_v36, %v14373_v44  ;;  %v3020_v20 = vld [vmem:[#allocation3 + $0x121] sm:$0xff] }
 0x374   : > { %2771 = vst.msk [vmem:[#allocation3 + $0x169] sm:$0xff] %vm2210_vm7, %v2738_v48  ;;  %3392 = vrot.lane.b32.xlu1 %v14395_v43, %s18387_s0  ;;  %11672 = vmatprep.mubr.msk.f32.mxu1 %vm4361_vm6, %v4327_v54  ;;  %v4165_v48 = vsel %vm656_vm13, %v4133_v60, %v14386_v63  ;;  %v14490_v54 = vld [vmem:[#allocation3 + $0x128] sm:$0xff] }
 0x375   : > { %v14416_v53 = vpop.permute.xlu0 %3124  ;;  %v3052_v17 = vld [vmem:[#allocation3 + $0x122] sm:$0xff] }
 0x376   : > { %v14420_v24 = vpop.permute.xlu1 %3506 }
 0x377   : > { %3774 = vrot.lane.b32.xlu0 %v14422_v37, %s18390_s2  ;;  %v4198_v29 = vsel %vm4184_vm0, %v4165_v48, %v14420_v24  ;;  %v3023_v48 = vld [vmem:[#allocation3 + $0x141] sm:$0xff] }
 0x378   : > { %3900 = vrot.lane.b32.xlu1 %v3018_v26, %s18391_s23 }
 0x379   : > { %v3633_v45 = vpop.permute.xlu0 %3632 }
 0x37a   : > { %v4015_v1 = vpop.permute.xlu1 %4014  ;;  %v4230_v57 = vsel %vm4217_vm1, %v4197_v16, %v3633_v45 }
 0x37b   : > { %v4328_v32 = vsel %vm18353_vm5, %v4295_v40, %v4015_v1  ;;  %v11646_v58 = vpop.f32.mrb[30].mxu0  ;;  %3394 = vrot.lane.b32.xlu0 %v14422_v37, %s18387_s0 }
 0x37c   : > { %v2707_v28 = vadd.f32 %v13986_v35, %v11646_v58  ;;  %3520 = vrot.lane.b32.xlu1 %v3018_v26, %s18388_s26  ;;  %11673 = vmatmul.mubr.msk.f32.gmra.mrb[10].mxu1 %vm4361_vm6, %v4328_v32  ;;  %v2701_v34 = vpop.f32.mrb[31].mxu0  ;;  %v3053_v58 = vld [vmem:[#allocation3 + $0x12a] sm:$0xff] }
 0x37d   : > { %v2702_v27 = vadd.f32 %v13986_v35, %v2701_v34  ;;  %v14439_v62 = vpop.permute.xlu0 %3126 }
 0x37e   : > { %v2741_v50 = vmax.f32 %v2707_v28, 0.0  ;;  %v14441_v21 = vpop.permute.xlu1 %3252  ;;  %v4103_v23 = vsel %vm2210_vm7, %v14134_v15, %v14439_v62 }
 0x37f   : > { %v2740_v49 = vmax.f32 %v2702_v27, 0.0  ;;  %3902 = vrot.lane.b32.xlu0 %v3019_v42, %s18391_s23  ;;  %v4102_v27 = vsel %vm2210_vm7, %v14106_v3, %v14416_v53 }
 0x380   : > { %2774 = vst.msk [vmem:[#allocation3 + $0x189] sm:$0xff] %vm2210_vm7, %v2741_v50  ;;  %4028 = vrot.lane.b32.xlu1 %v3050_v39, %s18392_s28  ;;  %v4134_v50 = vsel %vm2342_vm11, %v4102_v27, %v14441_v21 }
 0x381   : > { %2773 = vst.msk [vmem:[#allocation3 + $0x181] sm:$0xff] %vm2210_vm7, %v2740_v49  ;;  %v3635_v47 = vpop.permute.xlu0 %3634 }
 0x382   : > { %v3761_v56 = vpop.permute.xlu1 %3760  ;;  %v4231_v25 = vsel %vm4217_vm1, %v4198_v29, %v3635_v47 }
 0x383   : > { %3140 = vrot.lane.b32.xlu0 %v3018_v26, %s18379_s20  ;;  %v4263_v51 = vsel %vm4250_vm2, %v4230_v57, %v3761_v56 }
 0x384   : > { %3522 = vrot.lane.b32.xlu1 %v3019_v42, %s18388_s26 }
 0x385   : > { %v14449_v35 = vpop.permute.xlu0 %3254 }
 0x386   : > { %v14451_v14 = vpop.permute.xlu1 %3380  ;;  %v4135_v2 = vsel %vm2342_vm11, %v4103_v23, %v14449_v35 }
 0x387   : > { %3648 = vrot.lane.b32.xlu0 %v3050_v39, %s18389_s29  ;;  %v4166_v49 = vsel %vm656_vm13, %v4134_v50, %v14451_v14 }
 0x388   : > { %4030 = vrot.lane.b32.xlu1 %v3051_v8, %s18392_s28 }
 0x389   : > { %v3763_v10 = vpop.permute.xlu0 %3762 }
 0x38a   : > { %v3889_v19 = vpop.permute.xlu1 %3888  ;;  %v4264_v44 = vsel %vm4250_vm2, %v4231_v25, %v3763_v10 }
 0x38b   : > { %3142 = vrot.lane.b32.xlu0 %v3019_v42, %s18379_s20  ;;  %v4296_v38 = vsel %vm4283_vm4, %v4263_v51, %v3889_v19  ;;  %v14557_v51 = vld [vmem:[#allocation3 + $0x140] sm:$0xff] }
 0x38c   : > { %3268 = vrot.lane.b32.xlu1 %v3050_v39, %s18385_s24 }
 0x38d   : > { %v14462_v55 = vpop.permute.xlu0 %3382 }
 0x38e   : > { %v3509_v9 = vpop.permute.xlu1 %3508  ;;  %v4167_v16 = vsel %vm656_vm13, %v4135_v2, %v14462_v55 }
 0x38f   : > { %3650 = vrot.lane.b32.xlu0 %v3051_v8, %s18389_s29  ;;  %v4199_v47 = vsel %vm4184_vm0, %v4166_v49, %v3509_v9 }
 0x390   : > { %3776 = vrot.lane.b32.xlu1 %v14468_v13, %s18390_s2 }
 0x391   : > { %v3891_v46 = vpop.permute.xlu0 %3890 }
 0x392   : > { %v4017_v4 = vpop.permute.xlu1 %4016  ;;  %v4297_v11 = vsel %vm4283_vm4, %v4264_v44, %v3891_v46 }
 0x393   : > { %v4329_v22 = vsel %vm18353_vm5, %v4296_v38, %v4017_v4  ;;  %3270 = vrot.lane.b32.xlu0 %v3051_v8, %s18385_s24  ;;  %v14533_v8 = vld [vmem:[#allocation3 + $0x138] sm:$0xff] }
 0x394   : > { %3396 = vrot.lane.b32.xlu1 %v14468_v13, %s18387_s0  ;;  %11675 = vmatprep.mubr.msk.f32.mxu1 %vm4361_vm6, %v4329_v22  ;;  %v3022_v38 = vld [vmem:[#allocation3 + $0x139] sm:$0xff] }
 0x395   : > { %v14486_v6 = vpop.permute.xlu0 %3128 }
 0x396   : > { %v3511_v41 = vpop.permute.xlu1 %3510 }
 0x397   : > { %3778 = vrot.lane.b32.xlu0 %v14490_v54, %s18390_s2  ;;  %v4200_v46 = vsel %vm4184_vm0, %v4167_v16, %v3511_v41  ;;  %v3054_v41 = vld [vmem:[#allocation3 + $0x13a] sm:$0xff] }
 0x398   : > { %3904 = vrot.lane.b32.xlu1 %v3020_v20, %s18391_s23 }
 0x399   : > { %v3637_v30 = vpop.permute.xlu0 %3636 }
 0x39a   : > { %v4019_v63 = vpop.permute.xlu1 %4018  ;;  %v4232_v3 = vsel %vm4217_vm1, %v4199_v47, %v3637_v30  ;;  %v3055_v30 = vld [vmem:[#allocation3 + $0x142] sm:$0xff] }
 0x39b   : > { %v4330_v7 = vsel %vm18353_vm5, %v4297_v11, %v4019_v63  ;;  %3398 = vrot.lane.b32.xlu0 %v14490_v54, %s18387_s0 }
 0x39c   : > { %3524 = vrot.lane.b32.xlu1 %v3020_v20, %s18388_s26  ;;  %11676 = vmatmul.mubr.msk.f32.gmra.mrb[12].mxu1 %vm4361_vm6, %v4330_v7  ;;  %v4104_v7 = vsel %vm2210_vm7, %v14178_v52, %v14486_v6 }
 0x39d   : > { %v14505_v24 = vpop.permute.xlu0 %3130 }
 0x39e   : > { %v14507_v26 = vpop.permute.xlu1 %3256 }
 0x39f   : > { %3906 = vrot.lane.b32.xlu0 %v3021_v61, %s18391_s23 }
 0x3a0   : > { %4032 = vrot.lane.b32.xlu1 %v3052_v17, %s18392_s28 }
 0x3a1   : > { %v3639_v45 = vpop.permute.xlu0 %3638 }
 0x3a2   : > { %v3765_v40 = vpop.permute.xlu1 %3764  ;;  %v4233_v15 = vsel %vm4217_vm1, %v4200_v46, %v3639_v45  ;;  %v3025_v46 = vld [vmem:[#allocation3 + $0x159] sm:$0xff] }
 0x3a3   : > { %3144 = vrot.lane.b32.xlu0 %v3020_v20, %s18379_s20  ;;  %v4265_v21 = vsel %vm4250_vm2, %v4232_v3, %v3765_v40 }
 0x3a4   : > { %3526 = vrot.lane.b32.xlu1 %v3021_v61, %s18388_s26 }
 0x3a5   : > { %v14513_v1 = vpop.permute.xlu0 %3258 }
 0x3a6   : > { %v14515_v32 = vpop.permute.xlu1 %3384 }
 0x3a7   : > { %3652 = vrot.lane.b32.xlu0 %v3052_v17, %s18389_s29 }
 0x3a8   : > { %4034 = vrot.lane.b32.xlu1 %v3053_v58, %s18392_s28 }
 0x3a9   : > { %v3767_v28 = vpop.permute.xlu0 %3766 }
 0x3aa   : > { %v3893_v34 = vpop.permute.xlu1 %3892  ;;  %v4266_v62 = vsel %vm4250_vm2, %v4233_v15, %v3767_v28 }
 0x3ab   : > { %3146 = vrot.lane.b32.xlu0 %v3021_v61, %s18379_s20  ;;  %v4298_v14 = vsel %vm4283_vm4, %v4265_v21, %v3893_v34  ;;  %v4136_v61 = vsel %vm2342_vm11, %v4104_v7, %v14507_v26  ;;  %v14599_v34 = vld [vmem:[#allocation3 + $0x150] sm:$0xff] }
 0x3ac   : > { %3272 = vrot.lane.b32.xlu1 %v3052_v17, %s18385_s24  ;;  %v4168_v45 = vsel %vm656_vm13, %v4136_v61, %v14515_v32  ;;  %v14665_v61 = vld [vmem:[#allocation3 + $0x168] sm:$0xff] }
 0x3ad   : > { %v14526_v42 = vpop.permute.xlu0 %3386 }
 0x3ae   : > { %v3513_v39 = vpop.permute.xlu1 %3512 }
 0x3af   : > { %v14531_v56 = vpop.f32.mrb[0].mxu1  ;;  %3654 = vrot.lane.b32.xlu0 %v3053_v58, %s18389_s29 }
 0x3b0   : > { %v14537_v53 = vpop.f32.mrb[1].mxu1  ;;  %3780 = vrot.lane.b32.xlu1 %v14533_v8, %s18390_s2 }
 0x3b1   : > { %v3895_v10 = vpop.permute.xlu0 %3894 }
 0x3b2   : > { %v4021_v19 = vpop.permute.xlu1 %4020  ;;  %v4299_v4 = vsel %vm4283_vm4, %v4266_v62, %v3895_v10 }
 0x3b3   : > { %v4331_v5 = vsel %vm18353_vm5, %v4298_v14, %v4021_v19  ;;  %3274 = vrot.lane.b32.xlu0 %v3053_v58, %s18385_s24  ;;  %v4201_v58 = vsel %vm4184_vm0, %v4168_v45, %v3513_v39  ;;  %v4105_v39 = vsel %vm2210_vm7, %v14206_v33, %v14505_v24  ;;  %v14623_v14 = vld [vmem:[#allocation3 + $0x158] sm:$0xff] }
 0x3b4   : > { %3400 = vrot.lane.b32.xlu1 %v14533_v8, %s18387_s0  ;;  %11678 = vmatprep.mubr.msk.f32.mxu1 %vm4361_vm6, %v4331_v5  ;;  %v4137_v47 = vsel %vm2342_vm11, %v4105_v39, %v14513_v1  ;;  %v3024_v5 = vld [vmem:[#allocation3 + $0x151] sm:$0xff] }
 0x3b5   : > { %v14553_v9 = vpop.permute.xlu0 %3132  ;;  %v4169_v21 = vsel %vm656_vm13, %v4137_v47, %v14526_v42  ;;  %v3026_v47 = vld [vmem:[#allocation3 + $0x169] sm:$0xff] }
 0x3b6   : > { %v3515_v57 = vpop.permute.xlu1 %3514 }
 0x3b7   : > { %3782 = vrot.lane.b32.xlu0 %v14557_v51, %s18390_s2  ;;  %v4202_v19 = vsel %vm4184_vm0, %v4169_v21, %v3515_v57 }
 0x3b8   : > { %3908 = vrot.lane.b32.xlu1 %v3022_v38, %s18391_s23 }
 0x3b9   : > { %v3641_v35 = vpop.permute.xlu0 %3640 }
 0x3ba   : > { %v4023_v22 = vpop.permute.xlu1 %4022  ;;  %v4234_v52 = vsel %vm4217_vm1, %v4201_v58, %v3641_v35 }
 0x3bb   : > { %v4332_v55 = vsel %vm18353_vm5, %v4299_v4, %v4023_v22  ;;  %3402 = vrot.lane.b32.xlu0 %v14557_v51, %s18387_s0  ;;  %v3057_v22 = vld [vmem:[#allocation3 + $0x15a] sm:$0xff] }
 0x3bc   : > { %3528 = vrot.lane.b32.xlu1 %v3022_v38, %s18388_s26  ;;  %11679 = vmatmul.mubr.msk.f32.gmra.mrb[14].mxu1 %vm4361_vm6, %v4332_v55 }
 0x3bd   : > { %v14571_v36 = vpop.permute.xlu0 %3134 }
 0x3be   : > { %v14573_v60 = vpop.permute.xlu1 %3260 }
 0x3bf   : > { %3910 = vrot.lane.b32.xlu0 %v3023_v48, %s18391_s23 }
 0x3c0   : > { %4036 = vrot.lane.b32.xlu1 %v3054_v41, %s18392_s28 }
 0x3c1   : > { %v3643_v29 = vpop.permute.xlu0 %3642 }
 0x3c2   : > { %v3769_v20 = vpop.permute.xlu1 %3768  ;;  %v4235_v33 = vsel %vm4217_vm1, %v4202_v19, %v3643_v29 }
 0x3c3   : > { %3148 = vrot.lane.b32.xlu0 %v3022_v38, %s18379_s20  ;;  %v4267_v26 = vsel %vm4250_vm2, %v4234_v52, %v3769_v20  ;;  %v3056_v38 = vld [vmem:[#allocation3 + $0x152] sm:$0xff]  ;;  %v4107_v52 = vsel %vm2210_vm7, %v14278_v12, %v14571_v36 }
 0x3c4   : > { %3530 = vrot.lane.b32.xlu1 %v3023_v48, %s18388_s26 }
 0x3c5   : > { %v14579_v25 = vpop.permute.xlu0 %3262 }
 0x3c6   : > { %v14581_v44 = vpop.permute.xlu1 %3388 }
 0x3c7   : > { %3656 = vrot.lane.b32.xlu0 %v3054_v41, %s18389_s29 }
 0x3c8   : > { %4038 = vrot.lane.b32.xlu1 %v3055_v30, %s18392_s28 }
 0x3c9   : > { %v3771_v11 = vpop.permute.xlu0 %3770 }
 0x3ca   : > { %v3897_v63 = vpop.permute.xlu1 %3896  ;;  %v4268_v24 = vsel %vm4250_vm2, %v4235_v33, %v3771_v11  ;;  %v3027_v33 = vld [vmem:[#allocation3 + $0x171] sm:$0xff] }
 0x3cb   : > { %3150 = vrot.lane.b32.xlu0 %v3023_v48, %s18379_s20  ;;  %v4300_v32 = vsel %vm4283_vm4, %v4267_v26, %v3897_v63  ;;  %v4139_v26 = vsel %vm2342_vm11, %v4107_v52, %v14579_v25 }
 0x3cc   : > { %3276 = vrot.lane.b32.xlu1 %v3054_v41, %s18385_s24  ;;  %v4106_v41 = vsel %vm2210_vm7, %v14251_v31, %v14553_v9 }
 0x3cd   : > { %v14592_v17 = vpop.permute.xlu0 %3390  ;;  %v4138_v29 = vsel %vm2342_vm11, %v4106_v41, %v14573_v60 }
 0x3ce   : > { %v3517_v40 = vpop.permute.xlu1 %3516 }
 0x3cf   : > { %v14597_v28 = vpop.f32.mrb[2].mxu1  ;;  %3658 = vrot.lane.b32.xlu0 %v3055_v30, %s18389_s29 }
 0x3d0   : > { %3784 = vrot.lane.b32.xlu1 %v14599_v34, %s18390_s2  ;;  %v14605_v6 = vpop.f32.mrb[3].mxu1 }
 0x3d1   : > { %v3899_v27 = vpop.permute.xlu0 %3898 }
 0x3d2   : > { %v4025_v50 = vpop.permute.xlu1 %4024  ;;  %v4301_v23 = vsel %vm4283_vm4, %v4268_v24, %v3899_v27  ;;  %v3058_v24 = vld [vmem:[#allocation3 + $0x16a] sm:$0xff] }
 0x3d3   : > { %v4333_v49 = vsel %vm18353_vm5, %v4300_v32, %v4025_v50  ;;  %3278 = vrot.lane.b32.xlu0 %v3055_v30, %s18385_s24  ;;  %v4170_v30 = vsel %vm656_vm13, %v4138_v29, %v14581_v44  ;;  %v4171_v32 = vsel %vm656_vm13, %v4139_v26, %v14592_v17  ;;  %v2997_v26 = vld [vmem:[#allocation3 + $0x188] sm:$0xff] }
 0x3d4   : > { %3404 = vrot.lane.b32.xlu1 %v14599_v34, %s18387_s0  ;;  %11681 = vmatprep.mubr.msk.f32.mxu1 %vm4361_vm6, %v4333_v49  ;;  %v4203_v63 = vsel %vm4184_vm0, %v4170_v30, %v3517_v40  ;;  %v14689_v49 = vld [vmem:[#allocation3 + $0x170] sm:$0xff] }
 0x3d5   : > { %v14619_v3 = vpop.permute.xlu0 %3136 }
 0x3d6   : > { %v3519_v10 = vpop.permute.xlu1 %3518 }
 0x3d7   : > { %3786 = vrot.lane.b32.xlu0 %v14623_v14, %s18390_s2  ;;  %v4204_v39 = vsel %vm4184_vm0, %v4171_v32, %v3519_v10 }
 0x3d8   : > { %3912 = vrot.lane.b32.xlu1 %v3024_v5, %s18391_s23 }
 0x3d9   : > { %v3645_v1 = vpop.permute.xlu0 %3644 }
 0x3da   : > { %v4027_v2 = vpop.permute.xlu1 %4026  ;;  %v4236_v31 = vsel %vm4217_vm1, %v4203_v63, %v3645_v1  ;;  %v2996_v63 = vld [vmem:[#allocation3 + $0x180] sm:$0xff] }
 0x3db   : > { %v4334_v42 = vsel %vm18353_vm5, %v4301_v23, %v4027_v2  ;;  %3406 = vrot.lane.b32.xlu0 %v14623_v14, %s18387_s0 }
 0x3dc   : > { %3532 = vrot.lane.b32.xlu1 %v3024_v5, %s18388_s26  ;;  %11682 = vmatmul.mubr.msk.f32.gmra.mrb[16].mxu1 %vm4361_vm6, %v4334_v42 }
 0x3dd   : > { %v14637_v16 = vpop.permute.xlu0 %3138 }
 0x3de   : > { %v14639_v57 = vpop.permute.xlu1 %3264 }
 0x3df   : > { %3914 = vrot.lane.b32.xlu0 %v3025_v46, %s18391_s23 }
 0x3e0   : > { %4040 = vrot.lane.b32.xlu1 %v3056_v38, %s18392_s28 }
 0x3e1   : > { %v3647_v15 = vpop.permute.xlu0 %3646 }
 0x3e2   : > { %v3773_v62 = vpop.permute.xlu1 %3772  ;;  %v4237_v12 = vsel %vm4217_vm1, %v4204_v39, %v3647_v15  ;;  %v3028_v39 = vld [vmem:[#allocation3 + $0x181] sm:$0xff] }
 0x3e3   : > { %3152 = vrot.lane.b32.xlu0 %v3024_v5, %s18379_s20  ;;  %v4269_v60 = vsel %vm4250_vm2, %v4236_v31, %v3773_v62  ;;  %v4108_v62 = vsel %vm2210_vm7, %v14323_v59, %v14619_v3 }
 0x3e4   : > { %3534 = vrot.lane.b32.xlu1 %v3025_v46, %s18388_s26 }
 0x3e5   : > { %v14645_v35 = vpop.permute.xlu0 %3266 }
 0x3e6   : > { %v14647_v4 = vpop.permute.xlu1 %3392 }
 0x3e7   : > { %3660 = vrot.lane.b32.xlu0 %v3056_v38, %s18389_s29 }
 0x3e8   : > { %4042 = vrot.lane.b32.xlu1 %v3057_v22, %s18392_s28 }
 0x3e9   : > { %v3775_v55 = vpop.permute.xlu0 %3774 }
 0x3ea   : > { %v3901_v48 = vpop.permute.xlu1 %3900  ;;  %v4270_v36 = vsel %vm4250_vm2, %v4237_v12, %v3775_v55 }
 0x3eb   : > { %3154 = vrot.lane.b32.xlu0 %v3025_v46, %s18379_s20  ;;  %v4302_v44 = vsel %vm4283_vm4, %v4269_v60, %v3901_v48  ;;  %v3059_v46 = vld [vmem:[#allocation3 + $0x172] sm:$0xff] }
 0x3ec   : > { %3280 = vrot.lane.b32.xlu1 %v3056_v38, %s18385_s24 }
 0x3ed   : > { %v14658_v20 = vpop.permute.xlu0 %3394 }
 0x3ee   : > { %v3521_v11 = vpop.permute.xlu1 %3520 }
 0x3ef   : > { %v14663_v7 = vpop.f32.mrb[4].mxu1  ;;  %3662 = vrot.lane.b32.xlu0 %v3057_v22, %s18389_s29 }
 0x3f0   : > { %3788 = vrot.lane.b32.xlu1 %v14665_v61, %s18390_s2  ;;  %v14671_v9 = vpop.f32.mrb[5].mxu1 }
 0x3f1   : > { %v3903_v45 = vpop.permute.xlu0 %3902 }
 0x3f2   : > { %v4029_v58 = vpop.permute.xlu1 %4028  ;;  %v4303_v21 = vsel %vm4283_vm4, %v4270_v36, %v3903_v45 }
 0x3f3   : > { %v4335_v40 = vsel %vm18353_vm5, %v4302_v44, %v4029_v58  ;;  %3282 = vrot.lane.b32.xlu0 %v3057_v22, %s18385_s24  ;;  %v4140_v22 = vsel %vm2342_vm11, %v4108_v62, %v14639_v57 }
 0x3f4   : > { %3408 = vrot.lane.b32.xlu1 %v14665_v61, %s18387_s0  ;;  %11684 = vmatprep.mubr.msk.f32.mxu1 %vm4361_vm6, %v4335_v40  ;;  %v4172_v48 = vsel %vm656_vm13, %v4140_v22, %v14647_v4  ;;  %v3030_v22 = vld [vmem:[#allocation3 + $0x199] sm:$0xff] }
 0x3f5   : > { %v14685_v27 = vpop.permute.xlu0 %3140  ;;  %v4205_v29 = vsel %vm4184_vm0, %v4172_v48, %v3521_v11  ;;  %v4109_v11 = vsel %vm2210_vm7, %v14350_v18, %v14637_v16 }
 0x3f6   : > { %v3523_v50 = vpop.permute.xlu1 %3522  ;;  %v4141_v44 = vsel %vm2342_vm11, %v4109_v11, %v14645_v35  ;;  %v4110_v62 = vsel %vm2210_vm7, %v14395_v43, %v14685_v27 }
 0x3f7   : > { %3790 = vrot.lane.b32.xlu0 %v14689_v49, %s18390_s2  ;;  %v4173_v40 = vsel %vm656_vm13, %v4141_v44, %v14658_v20  ;;  %v3063_v44 = vld [vmem:[#allocation3 + $0x1a2] sm:$0xff] }
 0x3f8   : > { %3916 = vrot.lane.b32.xlu1 %v3026_v47, %s18391_s23  ;;  %v4206_v32 = vsel %vm4184_vm0, %v4173_v40, %v3523_v50 }
 0x3f9   : > { %v3649_v25 = vpop.permute.xlu0 %3648 }
 0x3fa   : > { %v4031_v19 = vpop.permute.xlu1 %4030  ;;  %v4238_v59 = vsel %vm4217_vm1, %v4205_v29, %v3649_v25  ;;  %v3029_v25 = vld [vmem:[#allocation3 + $0x189] sm:$0xff] }
 0x3fb   : > { %v4336_v17 = vsel %vm18353_vm5, %v4303_v21, %v4031_v19  ;;  %3410 = vrot.lane.b32.xlu0 %v14689_v49, %s18387_s0  ;;  %v3060_v21 = vld [vmem:[#allocation3 + $0x182] sm:$0xff] }
 0x3fc   : > { %3536 = vrot.lane.b32.xlu1 %v3026_v47, %s18388_s26  ;;  %11685 = vmatmul.mubr.msk.f32.gmra.mrb[18].mxu1 %vm4361_vm6, %v4336_v17 }
 0x3fd   : > { %v14703_v10 = vpop.permute.xlu0 %3142 }
 0x3fe   : > { %v14705_v5 = vpop.permute.xlu1 %3268 }
 0x3ff   : > { %3918 = vrot.lane.b32.xlu0 %v3027_v33, %s18391_s23  ;;  %v4142_v48 = vsel %vm2342_vm11, %v4110_v62, %v14705_v5 }
 0x400   : > { %4044 = vrot.lane.b32.xlu1 %v3058_v24, %s18392_s28 }
 0x401   : > { %v3651_v1 = vpop.permute.xlu0 %3650 }
 0x402   : > { %v3777_v23 = vpop.permute.xlu1 %3776  ;;  %v4239_v18 = vsel %vm4217_vm1, %v4206_v32, %v3651_v1  ;;  %v2966_v1 = vld [vmem:[#allocation3 + $0x18a] sm:$0xff] }
 0x403   : > { %3156 = vrot.lane.b32.xlu0 %v3026_v47, %s18379_s20  ;;  %v4271_v57 = vsel %vm4250_vm2, %v4238_v59, %v3777_v23  ;;  %v2998_v23 = vld [vmem:[#allocation3 + $0x198] sm:$0xff]  ;;  %v14791_v59 = vld [vmem:[%s18393_s4] ss:$0 sm:$0xff]  ;;  %s18348_s4 = smov 48  }
 0x404   : > { %3538 = vrot.lane.b32.xlu1 %v3027_v33, %s18388_s26  ;;  %v4534_v40 = vadd.f32 %v14531_v56, %v14791_v59 }
 0x405   : > { %v14711_v2 = vpop.permute.xlu0 %3270 }
 0x406   : > { %v14713_v42 = vpop.permute.xlu1 %3396 }
 0x407   : > { %3664 = vrot.lane.b32.xlu0 %v3058_v24, %s18389_s29 }
 0x408   : > { %4046 = vrot.lane.b32.xlu1 %v3059_v46, %s18392_s28 }
 0x409   : > { %v3779_v38 = vpop.permute.xlu0 %3778 }
 0x40a   : > { %v3905_v15 = vpop.permute.xlu1 %3904  ;;  %v4272_v16 = vsel %vm4250_vm2, %v4239_v18, %v3779_v38  ;;  %v2999_v38 = vld [vmem:[#allocation3 + $0x1a0] sm:$0xff]  ;;  %v4539_v18 = vadd.f32 %v14791_v59, %v14605_v6 }
 0x40b   : > { %3158 = vrot.lane.b32.xlu0 %v3027_v33, %s18379_s20  ;;  %v4304_v4 = vsel %vm4283_vm4, %v4271_v57, %v3905_v15  ;;  %v4174_v57 = vsel %vm656_vm13, %v4142_v48, %v14713_v42 }
 0x40c   : > { %3284 = vrot.lane.b32.xlu1 %v3058_v24, %s18385_s24 }
 0x40d   : > { %v14724_v55 = vpop.permute.xlu0 %3398 }
 0x40e   : > { %v14728_v41 = vpop.permute.xlu1 %3524 }
 0x40f   : > { %v14731_v30 = vpop.f32.mrb[6].mxu1  ;;  %3666 = vrot.lane.b32.xlu0 %v3059_v46, %s18389_s29  ;;  %v4207_v43 = vsel %vm4184_vm0, %v4174_v57, %v14728_v41 }
 0x410   : > { %3792 = vrot.lane.b32.xlu1 %v2996_v63, %s18390_s2  ;;  %v14736_v3 = vpop.f32.mrb[7].mxu1 }
 0x411   : > { %v3907_v31 = vpop.permute.xlu0 %3906 }
 0x412   : > { %v4033_v60 = vpop.permute.xlu1 %4032  ;;  %v4305_v47 = vsel %vm4283_vm4, %v4272_v16, %v3907_v31 }
 0x413   : > { %v4337_v45 = vsel %vm18353_vm5, %v4304_v4, %v4033_v60  ;;  %3286 = vrot.lane.b32.xlu0 %v3059_v46, %s18385_s24  ;;  %v3062_v60 = vld [vmem:[#allocation3 + $0x19a] sm:$0xff] }
 0x414   : > { %3412 = vrot.lane.b32.xlu1 %v2996_v63, %s18387_s0  ;;  %11687 = vmatprep.mubr.msk.f32.mxu1 %vm4361_vm6, %v4337_v45  ;;  %v3031_v63 = vld [vmem:[#allocation3 + $0x1a1] sm:$0xff]  ;;  %v4529_v45 = vadd.f32 %v14791_v59, %v14537_v53 }
 0x415   : > { %v14749_v58 = vpop.permute.xlu0 %3144 }
 0x416   : > { %v14753_v52 = vpop.permute.xlu1 %3526  ;;  %v4687_v53 = vmax.f32 %v4529_v45, 0.0 }
 0x417   : > { %3794 = vrot.lane.b32.xlu0 %v2997_v26, %s18390_s2 }
 0x418   : > { %3920 = vrot.lane.b32.xlu1 %v3028_v39, %s18391_s23 }
 0x419   : > { %v3653_v35 = vpop.permute.xlu0 %3652 }
 0x41a   : > { %v4035_v12 = vpop.permute.xlu1 %4034  ;;  %v4240_v5 = vsel %vm4217_vm1, %v4207_v43, %v3653_v35  ;;  %v4688_v35 = vmax.f32 %v4534_v40, 0.0 }
 0x41b   : > { %v4338_v20 = vsel %vm18353_vm5, %v4305_v47, %v4035_v12  ;;  %3414 = vrot.lane.b32.xlu0 %v2997_v26, %s18387_s0  ;;  %v4544_v47 = vadd.f32 %v14597_v28, %v14791_v59 }
 0x41c   : > { %3540 = vrot.lane.b32.xlu1 %v3028_v39, %s18388_s26  ;;  %11688 = vmatmul.mubr.msk.f32.gmra.mrb[20].mxu1 %vm4361_vm6, %v4338_v20  ;;  %v4111_v39 = vsel %vm2210_vm7, %v14422_v37, %v14703_v10  ;;  %v4549_v20 = vadd.f32 %v14791_v59, %v14671_v9  ;;  %v4559_v9 = vadd.f32 %v14791_v59, %v14736_v3 }
 0x41d   : > { %v14765_v50 = vpop.permute.xlu0 %3146  ;;  %v4143_v56 = vsel %vm2342_vm11, %v4111_v39, %v14711_v2  ;;  %v4689_v2 = vmax.f32 %v4539_v18, 0.0 }
 0x41e   : > { %v14767_v36 = vpop.permute.xlu1 %3272  ;;  %v4175_v37 = vsel %vm656_vm13, %v4143_v56, %v14724_v55  ;;  %v4554_v55 = vadd.f32 %v14663_v7, %v14791_v59  ;;  %v4564_v7 = vadd.f32 %v14731_v30, %v14791_v59 }
 0x41f   : > { %3922 = vrot.lane.b32.xlu0 %v3029_v25, %s18391_s23  ;;  %v4208_v12 = vsel %vm4184_vm0, %v4175_v37, %v14753_v52 }
 0x420   : > { %4048 = vrot.lane.b32.xlu1 %v3060_v21, %s18392_s28  ;;  %v4694_v48 = vmax.f32 %v4564_v7, 0.0 }
 0x421   : > { %v3655_v19 = vpop.permute.xlu0 %3654 }
 0x422   : > { %v3781_v17 = vpop.permute.xlu1 %3780  ;;  %v4241_v6 = vsel %vm4217_vm1, %v4208_v12, %v3655_v19  ;;  %v4691_v19 = vmax.f32 %v4549_v20, 0.0 }
 0x423   : > { %3542 = vrot.lane.b32.xlu0 %v3029_v25, %s18388_s26  ;;  %v4273_v11 = vsel %vm4250_vm2, %v4240_v5, %v3781_v17 }
 0x424   : > { %3668 = vrot.lane.b32.xlu1 %v3060_v21, %s18389_s29  ;;  %v4690_v21 = vmax.f32 %v4544_v47, 0.0 }
 0x425   : > { %v14773_v33 = vpop.permute.xlu0 %3274 }
 0x426   : > { %v14775_v24 = vpop.permute.xlu1 %3400 }
 0x427   : > { %4050 = vrot.lane.b32.xlu0 %v2966_v1, %s18392_s28 }
 0x428   : > { %3670 = vrot.lane.b32.xlu1 %v2966_v1, %s18389_s29 }
 0x429   : > { %v3783_v46 = vpop.permute.xlu0 %3782 }
 0x42a   : > { %v3909_v15 = vpop.permute.xlu1 %3908  ;;  %v4274_v28 = vsel %vm4250_vm2, %v4241_v6, %v3783_v46  ;;  %v4692_v46 = vmax.f32 %v4554_v55, 0.0 }
 0x42b   : > { %3796 = vrot.lane.b32.xlu0 %v2998_v23, %s18390_s2  ;;  %v4306_v41 = vsel %vm4283_vm4, %v4273_v11, %v3909_v15  ;;  %v4693_v15 = vmax.f32 %v4559_v9, 0.0 }
 0x42c   : > { %3798 = vrot.lane.b32.xlu1 %v2999_v38, %s18390_s2 }
 0x42d   : > { %v14786_v29 = vpop.permute.xlu0 %3402 }
 0x42e   : > { %v14795_v31 = vpop.permute.xlu1 %3528 }
 0x42f   : > { %v11671_v27 = vpop.f32.mrb[8].mxu1  ;;  %3924 = vrot.lane.b32.xlu0 %v3030_v22, %s18391_s23 }
 0x430   : > { %3926 = vrot.lane.b32.xlu1 %v3031_v63, %s18391_s23  ;;  %v4568_v4 = vpop.f32.mrb[9].mxu1  ;;  %v4574_v63 = vadd.f32 %v11671_v27, %v14791_v59  ;;  %v4112_v27 = vsel %vm2210_vm7, %v14468_v13, %v14749_v58 }
 0x431   : > { %v3911_v42 = vpop.permute.xlu0 %3910  ;;  %v4569_v62 = vadd.f32 %v14791_v59, %v4568_v4  ;;  %v4144_v45 = vsel %vm2342_vm11, %v4112_v27, %v14767_v36 }
 0x432   : > { %v4037_v26 = vpop.permute.xlu1 %4036  ;;  %v4307_v17 = vsel %vm4283_vm4, %v4274_v28, %v3911_v42  ;;  %v4696_v43 = vmax.f32 %v4574_v63, 0.0  ;;  %v4176_v42 = vsel %vm656_vm13, %v4144_v45, %v14775_v24 }
 0x433   : > { %v4339_v32 = vsel %vm18353_vm5, %v4306_v41, %v4037_v26  ;;  %4052 = vrot.lane.b32.xlu0 %v3062_v60, %s18392_s28  ;;  %v4695_v57 = vmax.f32 %v4569_v62, 0.0  ;;  %v4209_v40 = vsel %vm4184_vm0, %v4176_v42, %v14795_v31  ;;  %v4113_v31 = vsel %vm2210_vm7, %v14490_v54, %v14765_v50 }
 0x434   : > { %4054 = vrot.lane.b32.xlu1 %v3063_v44, %s18392_s28  ;;  %11690 = vmatprep.mubr.msk.f32.mxu1 %vm4361_vm6, %v4339_v32  ;;  %v4145_v47 = vsel %vm2342_vm11, %v4113_v31, %v14773_v33 }
 0x435   : > { %v14819_v16 = vpop.permute.xlu0 %3148  ;;  %v4177_v12 = vsel %vm656_vm13, %v4145_v47, %v14786_v29 }
 0x436   : > { %v14825_v10 = vpop.permute.xlu1 %3530  ;;  %v4114_v9 = vsel %vm2210_vm7, %v14533_v8, %v14819_v16 }
 0x437   : > { %4751 = vrot.lane.b32.xlu0 %v4687_v53, %s18379_s20 }
 0x438   : > { %4753 = vrot.lane.b32.xlu1 %v4688_v35, %s18379_s20 }
 0x439   : > { %v3657_v25 = vpop.permute.xlu0 %3656 }
 0x43a   : > { %v4039_v52 = vpop.permute.xlu1 %4038  ;;  %v4242_v26 = vsel %vm4217_vm1, %v4209_v40, %v3657_v25 }
 0x43b   : > { %v4340_v1 = vsel %vm18353_vm5, %v4307_v17, %v4039_v52  ;;  %4755 = vrot.lane.b32.xlu0 %v4689_v2, %s18379_s20  ;;  %v4210_v2 = vsel %vm4184_vm0, %v4177_v12, %v14825_v10 }
 0x43c   : > { %4757 = vrot.lane.b32.xlu1 %v4690_v21, %s18379_s20  ;;  %11691 = vmatmul.mubr.msk.f32.gmra.mrb[22].mxu1 %vm4361_vm6, %v4340_v1 }
 0x43d   : > { %v14844_v23 = vpop.permute.xlu0 %3150 }
 0x43e   : > { %v14848_v38 = vpop.permute.xlu1 %3276  ;;  %v4115_v45 = vsel %vm2210_vm7, %v14557_v51, %v14844_v23 }
 0x43f   : > { %4759 = vrot.lane.b32.xlu0 %v4691_v19, %s18379_s20 }
 0x440   : > { %4761 = vrot.lane.b32.xlu1 %v4692_v46, %s18379_s20  ;;  %v4146_v46 = vsel %vm2342_vm11, %v4114_v9, %v14848_v38 }
 0x441   : > { %v3659_v22 = vpop.permute.xlu0 %3658 }
 0x442   : > { %v3785_v3 = vpop.permute.xlu1 %3784  ;;  %v4243_v20 = vsel %vm4217_vm1, %v4210_v2, %v3659_v22 }
 0x443   : > { %4763 = vrot.lane.b32.xlu0 %v4693_v15, %s18379_s20  ;;  %v4275_v13 = vsel %vm4250_vm2, %v4242_v26, %v3785_v3 }
 0x444   : > { %4765 = vrot.lane.b32.xlu1 %v4694_v48, %s18379_s20 }
 0x445   : > { %v14856_v30 = vpop.permute.xlu0 %3278 }
 0x446   : > { %v3405_v5 = vpop.permute.xlu1 %3404  ;;  %v4147_v42 = vsel %vm2342_vm11, %v4115_v45, %v14856_v30 }
 0x447   : > { %4767 = vrot.lane.b32.xlu0 %v4695_v57, %s18379_s20  ;;  %v4178_v15 = vsel %vm656_vm13, %v4146_v46, %v3405_v5 }
 0x448   : > { %4769 = vrot.lane.b32.xlu1 %v4696_v43, %s18379_s20 }
 0x449   : > { %v3787_v60 = vpop.permute.xlu0 %3786 }
 0x44a   : > { %v3913_v4 = vpop.permute.xlu1 %3912  ;;  %v4276_v54 = vsel %vm4250_vm2, %v4243_v20, %v3787_v60 }
 0x44b   : > { %v4308_v53 = vsel %vm4283_vm4, %v4275_v13, %v3913_v4 }
 0x44d   : > { %v14865_v11 = vpop.permute.xlu0 %3406 }
 0x44e   : > { %v3533_v44 = vpop.permute.xlu1 %3532  ;;  %v4179_v40 = vsel %vm656_vm13, %v4147_v42, %v14865_v11 }
 0x44f   : > { %v11674_v41 = vpop.f32.mrb[10].mxu1  ;;  %v4211_v22 = vsel %vm4184_vm0, %v4178_v15, %v3533_v44 }
 0x450   : > { %v4584_v32 = vadd.f32 %v11674_v41, %v14791_v59  ;;  %v4578_v39 = vpop.f32.mrb[11].mxu1 }
 0x451   : > { %v4579_v58 = vadd.f32 %v14791_v59, %v4578_v39  ;;  %v3915_v36 = vpop.permute.xlu0 %3914 }
 0x452   : > { %v4698_v18 = vmax.f32 %v4584_v32, 0.0  ;;  %v4041_v56 = vpop.permute.xlu1 %4040  ;;  %v4309_v28 = vsel %vm4283_vm4, %v4276_v54, %v3915_v36 }
 0x453   : > { %v4697_v24 = vmax.f32 %v4579_v58, 0.0  ;;  %v4341_v35 = vsel %vm18353_vm5, %v4308_v53, %v4041_v56 }
 0x454   : > { %11693 = vmatprep.mubr.msk.f32.mxu1 %vm4361_vm6, %v4341_v35  ;;  %4773 = vrot.lane.b32.xlu1 %v4698_v18, %s18379_s20 }
 0x455   : > { %4771 = vrot.lane.b32.xlu0 %v4697_v24, %s18379_s20  ;;  %v3153_v37 = vpop.permute.xlu0 %3152 }
 0x456   : > { %v3535_v6 = vpop.permute.xlu1 %3534  ;;  %v4116_v31 = vsel %vm2210_vm7, %v14599_v34, %v3153_v37 }
 0x457   : > { %v4212_v26 = vsel %vm4184_vm0, %v4179_v40, %v3535_v6 }
 0x459   : > { %v3661_v50 = vpop.permute.xlu0 %3660 }
 0x45a   : > { %v4043_v25 = vpop.permute.xlu1 %4042  ;;  %v4244_v63 = vsel %vm4217_vm1, %v4211_v22, %v3661_v50 }
 0x45b   : > { %v4342_v33 = vsel %vm18353_vm5, %v4309_v28, %v4043_v25 }
 0x45c   : > { %11694 = vmatmul.mubr.msk.f32.gmra.mrb[24].mxu1 %vm4361_vm6, %v4342_v33 }
 0x45d   : > { %v14894_v21 = vpop.permute.xlu0 %3154 }
 0x45e   : > { %v3281_v55 = vpop.permute.xlu1 %3280 }
 0x45f   : > { %v4148_v47 = vsel %vm2342_vm11, %v4116_v31, %v3281_v55 }
 0x461   : > { %v3663_v29 = vpop.permute.xlu0 %3662 }
 0x462   : > { %v3789_v17 = vpop.permute.xlu1 %3788  ;;  %v4245_v32 = vsel %vm4217_vm1, %v4212_v26, %v3663_v29 }
 0x463   : > { %v4277_v43 = vsel %vm4250_vm2, %v4244_v63, %v3789_v17 }
 0x465   : > { %v14896_v52 = vpop.permute.xlu0 %3282 }
 0x466   : > { %v3409_v10 = vpop.permute.xlu1 %3408 }
 0x467   : > { %v4180_v6 = vsel %vm656_vm13, %v4148_v47, %v3409_v10  ;;  %v4117_v10 = vsel %vm2210_vm7, %v14623_v14, %v14894_v21 }
 0x468   : > { %v4149_v9 = vsel %vm2342_vm11, %v4117_v10, %v14896_v52 }
 0x469   : > { %v3791_v1 = vpop.permute.xlu0 %3790 }
 0x46a   : > { %v3917_v19 = vpop.permute.xlu1 %3916  ;;  %v4278_v51 = vsel %vm4250_vm2, %v4245_v32, %v3791_v1 }
 0x46b   : > { %v4310_v38 = vsel %vm4283_vm4, %v4277_v43, %v3917_v19 }
 0x46d   : > { %v14903_v7 = vpop.permute.xlu0 %3410 }
 0x46e   : > { %v3537_v62 = vpop.permute.xlu1 %3536  ;;  %v4181_v46 = vsel %vm656_vm13, %v4149_v9, %v14903_v7 }
 0x46f   : > { %v11677_v48 = vpop.f32.mrb[12].mxu1  ;;  %v4213_v20 = vsel %vm4184_vm0, %v4180_v6, %v3537_v62 }
 0x470   : > { %v4594_v3 = vadd.f32 %v11677_v48, %v14791_v59  ;;  %v4588_v57 = vpop.f32.mrb[13].mxu1 }
 0x471   : > { %v4589_v8 = vadd.f32 %v14791_v59, %v4588_v57  ;;  %v3919_v16 = vpop.permute.xlu0 %3918 }
 0x472   : > { %v4700_v60 = vmax.f32 %v4594_v3, 0.0  ;;  %v4045_v4 = vpop.permute.xlu1 %4044  ;;  %v4311_v39 = vsel %vm4283_vm4, %v4278_v51, %v3919_v16 }
 0x473   : > { %v4699_v27 = vmax.f32 %v4589_v8, 0.0  ;;  %v4343_v5 = vsel %vm18353_vm5, %v4310_v38, %v4045_v4 }
 0x474   : > { %11696 = vmatprep.mubr.msk.f32.mxu1 %vm4361_vm6, %v4343_v5  ;;  %4777 = vrot.lane.b32.xlu1 %v4700_v60, %s18379_s20 }
 0x475   : > { %4775 = vrot.lane.b32.xlu0 %v4699_v27, %s18379_s20  ;;  %v3157_v44 = vpop.permute.xlu0 %3156 }
 0x476   : > { %v3539_v41 = vpop.permute.xlu1 %3538  ;;  %v4118_v43 = vsel %vm2210_vm7, %v14665_v61, %v3157_v44 }
 0x477   : > { %v4214_v62 = vsel %vm4184_vm0, %v4181_v46, %v3539_v41 }
 0x479   : > { %v3665_v23 = vpop.permute.xlu0 %3664 }
 0x47a   : > { %v4047_v13 = vpop.permute.xlu1 %4046  ;;  %v4246_v50 = vsel %vm4217_vm1, %v4213_v20, %v3665_v23 }
 0x47b   : > { %v4344_v58 = vsel %vm18353_vm5, %v4311_v39, %v4047_v13 }
 0x47c   : > { %11697 = vmatmul.mubr.msk.f32.gmra.mrb[26].mxu1 %vm4361_vm6, %v4344_v58 }
 0x47d   : > { %v3159_v30 = vpop.permute.xlu0 %3158 }
 0x47e   : > { %v3285_v36 = vpop.permute.xlu1 %3284  ;;  %v4119_v16 = vsel %vm2210_vm7, %v14689_v49, %v3159_v30  ;;  %vm4847_vm7 = vcmask 64544  }
 0x47f   : > { %v4150_v8 = vsel %vm2342_vm11, %v4118_v43, %v3285_v36 }
 0x481   : > { %v3667_v53 = vpop.permute.xlu0 %3666 }
 0x482   : > { %v3793_v18 = vpop.permute.xlu1 %3792  ;;  %v4247_v14 = vsel %vm4217_vm1, %v4214_v62, %v3667_v53 }
 0x483   : > { %v4279_v33 = vsel %vm4250_vm2, %v4246_v50, %v3793_v18 }
 0x485   : > { %v3287_v11 = vpop.permute.xlu0 %3286 }
 0x486   : > { %v3413_v56 = vpop.permute.xlu1 %3412  ;;  %v4151_v60 = vsel %vm2342_vm11, %v4119_v16, %v3287_v11 }
 0x487   : > { %v4182_v38 = vsel %vm656_vm13, %v4150_v8, %v3413_v56 }
 0x489   : > { %v3795_v24 = vpop.permute.xlu0 %3794 }
 0x48a   : > { %v3921_v35 = vpop.permute.xlu1 %3920  ;;  %v4280_v21 = vsel %vm4250_vm2, %v4247_v14, %v3795_v24 }
 0x48b   : > { %v4312_v34 = vsel %vm4283_vm4, %v4279_v33, %v3921_v35 }
 0x48d   : > { %v3415_v12 = vpop.permute.xlu0 %3414 }
 0x48e   : > { %v3541_v2 = vpop.permute.xlu1 %3540  ;;  %v4183_v5 = vsel %vm656_vm13, %v4151_v60, %v3415_v12 }
 0x48f   : > { %v11680_v54 = vpop.f32.mrb[14].mxu1  ;;  %v4215_v27 = vsel %vm4184_vm0, %v4182_v38, %v3541_v2 }
 0x490   : > { %v4604_v28 = vadd.f32 %v11680_v54, %v14791_v59  ;;  %v4598_v25 = vpop.f32.mrb[15].mxu1 }
 0x491   : > { %v4599_v29 = vadd.f32 %v14791_v59, %v4598_v25  ;;  %v3923_v17 = vpop.permute.xlu0 %3922 }
 0x492   : > { %v4702_v37 = vmax.f32 %v4604_v28, 0.0  ;;  %v4049_v55 = vpop.permute.xlu1 %4048  ;;  %v4313_v48 = vsel %vm4283_vm4, %v4280_v21, %v3923_v17 }
 0x493   : > { %v4701_v1 = vmax.f32 %v4599_v29, 0.0  ;;  %v4345_v19 = vsel %vm18353_vm5, %v4312_v34, %v4049_v55 }
 0x494   : > { %11699 = vmatprep.mubr.msk.f32.mxu1 %vm4361_vm6, %v4345_v19  ;;  %4781 = vrot.lane.b32.xlu1 %v4702_v37, %s18379_s20 }
 0x495   : > { %4779 = vrot.lane.b32.xlu0 %v4701_v1, %s18379_s20  ;;  %v3543_v15 = vpop.permute.xlu0 %3542 }
 0x496   : > { %v3669_v22 = vpop.permute.xlu1 %3668  ;;  %v4216_v40 = vsel %vm4184_vm0, %v4183_v5, %v3543_v15 }
 0x497   : > { %v4248_v42 = vsel %vm4217_vm1, %v4215_v27, %v3669_v22 }
 0x499   : > { %v4051_v52 = vpop.permute.xlu0 %4050 }
 0x49a   : > { %v3671_v63 = vpop.permute.xlu1 %3670  ;;  %v4346_v3 = vsel %vm18353_vm5, %v4313_v48, %v4051_v52 }
 0x49b   : > { %11700 = vmatmul.mubr.msk.f32.gmra.mrb[28].mxu1 %vm4361_vm6, %v4346_v3  ;;  %v4249_v61 = vsel %vm4217_vm1, %v4216_v40, %v3671_v63 }
 0x49d   : > { %v3797_v57 = vpop.permute.xlu0 %3796 }
 0x49e   : > { %v3799_v7 = vpop.permute.xlu1 %3798  ;;  %v4281_v44 = vsel %vm4250_vm2, %v4248_v42, %v3797_v57 }
 0x49f   : > { %v4282_v49 = vsel %vm4250_vm2, %v4249_v61, %v3799_v7 }
 0x4a1   : > { %v3925_v4 = vpop.permute.xlu0 %3924 }
 0x4a2   : > { %v3927_v45 = vpop.permute.xlu1 %3926  ;;  %v4314_v41 = vsel %vm4283_vm4, %v4281_v44, %v3925_v4 }
 0x4a3   : > { %v4315_v32 = vsel %vm4283_vm4, %v4282_v49, %v3927_v45 }
 0x4a5   : > { %v4053_v26 = vpop.permute.xlu0 %4052 }
 0x4a6   : > { %v4055_v51 = vpop.permute.xlu1 %4054  ;;  %v4347_v23 = vsel %vm18353_vm5, %v4314_v41, %v4053_v26 }
 0x4a7   : > { %v4348_v39 = vsel %vm18353_vm5, %v4315_v32, %v4055_v51  ;;  %11702 = vmatprep.mubr.msk.f32.mxu1 %vm4361_vm6, %v4347_v23 }
 0x4a8   : > { %11703 = vmatmul.mubr.msk.f32.gmra.mrb[30].mxu1 %vm4361_vm6, %v4348_v39 }
 0x4a9   : > { %v4752_v13 = vpop.permute.xlu0 %4751 }
 0x4aa   : > { %v4754_v58 = vpop.permute.xlu1 %4753  ;;  %4848 = vst.msk [vmem:[#allocation3 + $0x19] sm:$0xff] %vm4847_vm7, %v4752_v13 }
 0x4ab   : > { %4849 = vst.msk [vmem:[#allocation3 + $0x21] sm:$0xff] %vm4847_vm7, %v4754_v58 }
 0x4ad   : > { %v4756_v30 = vpop.permute.xlu0 %4755 }
 0x4ae   : > { %v4758_v36 = vpop.permute.xlu1 %4757  ;;  %4850 = vst.msk [vmem:[#allocation3 + $0x31] sm:$0xff] %vm4847_vm7, %v4756_v30 }
 0x4af   : > { %4851 = vst.msk [vmem:[#allocation3 + $0x39] sm:$0xff] %vm4847_vm7, %v4758_v36  ;;  %v11683_v53 = vpop.f32.mrb[16].mxu1 }
 0x4b0   : > { %v4614_v18 = vadd.f32 %v11683_v53, %v14791_v59  ;;  %v4608_v11 = vpop.f32.mrb[17].mxu1 }
 0x4b1   : > { %v4609_v56 = vadd.f32 %v14791_v59, %v4608_v11  ;;  %v4760_v24 = vpop.permute.xlu0 %4759 }
 0x4b2   : > { %v4704_v35 = vmax.f32 %v4614_v18, 0.0  ;;  %v4762_v31 = vpop.permute.xlu1 %4761  ;;  %4852 = vst.msk [vmem:[#allocation3 + $0x49] sm:$0xff] %vm4847_vm7, %v4760_v24  ;;  %v4913_v24 = vld [vmem:[#allocation3 + $0x9] sm:$0xff] }
 0x4b3   : > { %v4703_v47 = vmax.f32 %v4609_v56, 0.0  ;;  %4853 = vst.msk [vmem:[#allocation3 + $0x51] sm:$0xff] %vm4847_vm7, %v4762_v31  ;;  %v4945_v31 = vld [vmem:[#allocation3 + $0xa] sm:$0xff] }
 0x4b4   : > { %4785 = vrot.lane.b32.xlu1 %v4704_v35, %s18379_s20  ;;  %v4912_v35 = vld [vmem:[#allocation3 + $0x1] sm:$0xff] }
 0x4b5   : > { %4783 = vrot.lane.b32.xlu0 %v4703_v47, %s18379_s20  ;;  %v4764_v12 = vpop.permute.xlu0 %4763 }
 0x4b6   : > { %v4766_v6 = vpop.permute.xlu1 %4765  ;;  %4854 = vst.msk [vmem:[#allocation3 + $0x61] sm:$0xff] %vm4847_vm7, %v4764_v12  ;;  %v4944_v12 = vld [vmem:[#allocation3 + $0x2] sm:$0xff] }
 0x4b7   : > { %4855 = vst.msk [vmem:[#allocation3 + $0x69] sm:$0xff] %vm4847_vm7, %v4766_v6 }
 0x4b9   : > { %v4768_v2 = vpop.permute.xlu0 %4767 }
 0x4ba   : > { %v4770_v20 = vpop.permute.xlu1 %4769  ;;  %4856 = vst.msk [vmem:[#allocation3 + $0x79] sm:$0xff] %vm4847_vm7, %v4768_v2  ;;  %v15040_v2 = vld [vmem:[#allocation3 + $0x18] sm:$0xff] }
 0x4bb   : > { %4857 = vst.msk [vmem:[#allocation3 + $0x81] sm:$0xff] %vm4847_vm7, %v4770_v20  ;;  %v4914_v20 = vld [vmem:[#allocation3 + $0x19] sm:$0xff] }
 0x4c6   : > { %v4774_v54 = vpop.permute.xlu1 %4773 }
 0x4c7   : > { %4859 = vst.msk [vmem:[#allocation3 + $0x99] sm:$0xff] %vm4847_vm7, %v4774_v54  ;;  %v4772_v50 = vpop.permute.xlu0 %4771  ;;  %v5040_v54 = vld [vmem:[#allocation3 + $0x1a] sm:$0xff] }
 0x4c8   : > { %4858 = vst.msk [vmem:[#allocation3 + $0x91] sm:$0xff] %vm4847_vm7, %v4772_v50  ;;  %v5009_v50 = vld [vmem:[#allocation3 + $0x21] sm:$0xff] }
 0x4cf   : > { %v11686_v28 = vpop.f32.mrb[18].mxu1 }
 0x4d0   : > { %v4624_v25 = vadd.f32 %v11686_v28, %v14791_v59  ;;  %v4618_v33 = vpop.f32.mrb[19].mxu1  ;;  %v6452_v28 = vld [vmem:[%s18288_s5] sm:$0xff] }
 0x4d1   : > { %v4619_v29 = vadd.f32 %v14791_v59, %v4618_v33 }
 0x4d2   : > { %v4706_v17 = vmax.f32 %v4624_v25, 0.0  ;;  %v6453_v25 = vld [vmem:[%s18288_s5 + $0x8] sm:$0xff] }
 0x4d3   : > { %v4705_v34 = vmax.f32 %v4619_v29, 0.0  ;;  %v12009_v33 = vpack.c.bf16 %v6453_v25, %v6452_v28  ;;  %v6454_v29 = vld [vmem:[%s18288_s5 + $0x10] sm:$0xff] }
 0x4d4   : > { %4789 = vrot.lane.b32.xlu1 %v4706_v17, %s18379_s20  ;;  %v6455_v17 = vld [vmem:[%s18288_s5 + $0x18] sm:$0xff]  ;;  %v4880_v25 = vld [vmem:[#allocation3] sm:$0xff] }
 0x4d5   : > { %4787 = vrot.lane.b32.xlu0 %v4705_v34, %s18379_s20  ;;  %12010 = vmatprep.subr.bf16.mxu0 %v12009_v33  ;;  %v12013_v34 = vpack.c.bf16 %v6455_v17, %v6454_v29  ;;  %v5143_v28 = vld [vmem:[#allocation3 + $0x82] sm:$0xff] }
 0x4d6   : > { %12012 = vmatpush3.bf16.msra.mxu0 %v12009_v33 }
 0x4d7   : > { %12014 = vmatprep.subr.bf16.mxu0 %v12013_v34 }
 0x4da   : > { %12016 = vmatpush3.bf16.msra.mxu0 %v12013_v34 }
 0x4e6   : > { %v4778_v37 = vpop.permute.xlu1 %4777 }
 0x4e7   : > { %4861 = vst.msk [vmem:[#allocation3 + $0xb1] sm:$0xff] %vm4847_vm7, %v4778_v37  ;;  %v4776_v55 = vpop.permute.xlu0 %4775  ;;  %v15062_v37 = vld [vmem:[#allocation3 + $0x30] sm:$0xff] }
 0x4e8   : > { %4860 = vst.msk [vmem:[#allocation3 + $0xa9] sm:$0xff] %vm4847_vm7, %v4776_v55  ;;  %v5041_v55 = vld [vmem:[#allocation3 + $0x22] sm:$0xff] }
 0x4ef   : > { %v11689_v10 = vpop.f32.mrb[20].mxu1 }
 0x4f0   : > { %v4634_v1 = vadd.f32 %v11689_v10, %v14791_v59  ;;  %v4628_v19 = vpop.f32.mrb[21].mxu1  ;;  %v6456_v10 = vld [vmem:[%s18288_s5 + $0x20] sm:$0xff] }
 0x4f1   : > { %v4629_v9 = vadd.f32 %v14791_v59, %v4628_v19 }
 0x4f2   : > { %v4708_v46 = vmax.f32 %v4634_v1, 0.0  ;;  %v6457_v1 = vld [vmem:[%s18288_s5 + $0x28] sm:$0xff] }
 0x4f3   : > { %v4707_v15 = vmax.f32 %v4629_v9, 0.0  ;;  %v12017_v19 = vpack.c.bf16 %v6457_v1, %v6456_v10  ;;  %v6458_v9 = vld [vmem:[%s18288_s5 + $0x30] sm:$0xff]  ;;  %v4881_v1 = vld [vmem:[#allocation3 + $0x8] sm:$0xff] }
 0x4f4   : > { %4793 = vrot.lane.b32.xlu1 %v4708_v46, %s18379_s20  ;;  %v6459_v46 = vld [vmem:[%s18288_s5 + $0x38] sm:$0xff] }
 0x4f5   : > { %4791 = vrot.lane.b32.xlu0 %v4707_v15, %s18379_s20  ;;  %12018 = vmatprep.subr.bf16.mxu0 %v12017_v19  ;;  %v12021_v15 = vpack.c.bf16 %v6459_v46, %v6458_v9  ;;  %v15199_v46 = vld [vmem:[#allocation3 + $0x90] sm:$0xff] }
 0x4f6   : > { %12020 = vmatpush3.bf16.msra.mxu0 %v12017_v19 }
 0x4f7   : > { %12022 = vmatprep.subr.bf16.mxu0 %v12021_v15 }
 0x4fa   : > { %12024 = vmatpush3.bf16.msra.mxu0 %v12021_v15 }
 0x506   : > { %v4782_v62 = vpop.permute.xlu1 %4781 }
 0x507   : > { %4863 = vst.msk [vmem:[#allocation3 + $0xc9] sm:$0xff] %vm4847_vm7, %v4782_v62  ;;  %v4780_v22 = vpop.permute.xlu0 %4779  ;;  %v5104_v62 = vld [vmem:[#allocation3 + $0x31] sm:$0xff] }
 0x508   : > { %4862 = vst.msk [vmem:[#allocation3 + $0xc1] sm:$0xff] %vm4847_vm7, %v4780_v22  ;;  %v15083_v22 = vld [vmem:[#allocation3 + $0x38] sm:$0xff] }
 0x50f   : > { %v11692_v14 = vpop.f32.mrb[22].mxu1 }
 0x510   : > { %v4644_v21 = vadd.f32 %v11692_v14, %v14791_v59  ;;  %v4638_v48 = vpop.f32.mrb[23].mxu1  ;;  %v6460_v14 = vld [vmem:[%s18288_s5 + $0x40] sm:$0xff] }
 0x511   : > { %v4639_v52 = vadd.f32 %v14791_v59, %v4638_v48  ;;  %11721 = vmatprep.subr.mxu0 %v6460_v14 }
 0x512   : > { %v4710_v63 = vmax.f32 %v4644_v21, 0.0  ;;  %11722 = vmatpush3.msra.mxu0 %v6460_v14 }
 0x513   : > { %v4709_v3 = vmax.f32 %v4639_v52, 0.0  ;;  %v5136_v52 = vld [vmem:[#allocation3 + $0x32] sm:$0xff] }
 0x514   : > { %4797 = vrot.lane.b32.xlu1 %v4710_v63, %s18379_s20  ;;  %v5105_v63 = vld [vmem:[#allocation3 + $0x39] sm:$0xff] }
 0x515   : > { %4795 = vrot.lane.b32.xlu0 %v4709_v3, %s18379_s20  ;;  %v5137_v3 = vld [vmem:[#allocation3 + $0x3a] sm:$0xff] }
 0x526   : > { %v4786_v57 = vpop.permute.xlu1 %4785 }
 0x527   : > { %4865 = vst.msk [vmem:[#allocation3 + $0xe1] sm:$0xff] %vm4847_vm7, %v4786_v57  ;;  %v4784_v7 = vpop.permute.xlu0 %4783  ;;  %v15103_v57 = vld [vmem:[#allocation3 + $0x48] sm:$0xff] }
 0x528   : > { %4864 = vst.msk [vmem:[#allocation3 + $0xd9] sm:$0xff] %vm4847_vm7, %v4784_v7  ;;  %v5106_v7 = vld [vmem:[#allocation3 + $0x49] sm:$0xff] }
 0x52f   : > { %v11695_v43 = vpop.f32.mrb[24].mxu1 }
 0x530   : > { %v4654_v8 = vadd.f32 %v11695_v43, %v14791_v59  ;;  %v4648_v16 = vpop.f32.mrb[25].mxu1  ;;  %v15112_v43 = vld [vmem:[#allocation3 + $0x50] sm:$0xff] }
 0x531   : > { %v4649_v38 = vadd.f32 %v14791_v59, %v4648_v16 }
 0x532   : > { %v4712_v60 = vmax.f32 %v4654_v8, 0.0 }
 0x533   : > { %v4711_v4 = vmax.f32 %v4649_v38, 0.0  ;;  %v5138_v38 = vld [vmem:[#allocation3 + $0x4a] sm:$0xff] }
 0x534   : > { %4801 = vrot.lane.b32.xlu1 %v4712_v60, %s18379_s20  ;;  %v5107_v60 = vld [vmem:[#allocation3 + $0x51] sm:$0xff] }
 0x535   : > { %4799 = vrot.lane.b32.xlu0 %v4711_v4, %s18379_s20  ;;  %v5139_v4 = vld [vmem:[#allocation3 + $0x52] sm:$0xff] }
 0x546   : > { %v4790_v27 = vpop.permute.xlu1 %4789 }
 0x547   : > { %4867 = vst.msk [vmem:[#allocation3 + $0xf9] sm:$0xff] %vm4847_vm7, %v4790_v27  ;;  %v4788_v5 = vpop.permute.xlu0 %4787  ;;  %v15129_v27 = vld [vmem:[#allocation3 + $0x60] sm:$0xff] }
 0x548   : > { %4866 = vst.msk [vmem:[#allocation3 + $0xf1] sm:$0xff] %vm4847_vm7, %v4788_v5  ;;  %v5108_v5 = vld [vmem:[#allocation3 + $0x61] sm:$0xff] }
 0x54f   : > { %v11698_v45 = vpop.f32.mrb[26].mxu1 }
 0x550   : > { %v4664_v42 = vadd.f32 %v11698_v45, %v14791_v59  ;;  %v4658_v40 = vpop.f32.mrb[27].mxu1  ;;  %v15138_v45 = vld [vmem:[#allocation3 + $0x68] sm:$0xff] }
 0x551   : > { %v4659_v61 = vadd.f32 %v14791_v59, %v4658_v40 }
 0x552   : > { %v4714_v44 = vmax.f32 %v4664_v42, 0.0 }
 0x553   : > { %v4713_v49 = vmax.f32 %v4659_v61, 0.0  ;;  %v5140_v61 = vld [vmem:[#allocation3 + $0x62] sm:$0xff] }
 0x554   : > { %4805 = vrot.lane.b32.xlu1 %v4714_v44, %s18379_s20  ;;  %v5109_v44 = vld [vmem:[#allocation3 + $0x69] sm:$0xff] }
 0x555   : > { %4803 = vrot.lane.b32.xlu0 %v4713_v49, %s18379_s20 }
 0x566   : > { %v4794_v41 = vpop.permute.xlu1 %4793 }
 0x567   : > { %4869 = vst.msk [vmem:[#allocation3 + $0x111] sm:$0xff] %vm4847_vm7, %v4794_v41  ;;  %v4792_v26 = vpop.permute.xlu0 %4791 }
 0x568   : > { %4868 = vst.msk [vmem:[#allocation3 + $0x109] sm:$0xff] %vm4847_vm7, %v4792_v26  ;;  %v5141_v26 = vld [vmem:[#allocation3 + $0x6a] sm:$0xff] }
 0x56e   : > { %v11701_v32 = vpop.f32.mrb[28].mxu1 }
 0x56f   : > { %v4674_v51 = vadd.f32 %v11701_v32, %v14791_v59  ;;  %v4668_v23 = vpop.f32.mrb[29].mxu1 }
 0x570   : > { %v4669_v39 = vadd.f32 %v14791_v59, %v4668_v23 }
 0x571   : > { %v4716_v13 = vmax.f32 %v4674_v51, 0.0 }
 0x572   : > { %v4715_v58 = vmax.f32 %v4669_v39, 0.0 }
 0x573   : > { %4809 = vrot.lane.b32.xlu1 %v4716_v13, %s18379_s20  ;;  %v15159_v13 = vld [vmem:[#allocation3 + $0x78] sm:$0xff] }
 0x574   : > { %4807 = vrot.lane.b32.xlu0 %v4715_v58, %s18379_s20 }
 0x57b   : > { %v11704_v30 = vpop.f32.mrb[30].mxu1 }
 0x57c   : > { %v4684_v36 = vadd.f32 %v11704_v30, %v14791_v59  ;;  %v4678_v53 = vpop.f32.mrb[31].mxu1 }
 0x57d   : > { %v4679_v18 = vadd.f32 %v14791_v59, %v4678_v53  ;;  %v15036_v59 = vld [vmem:[#allocation3 + $0x20] sm:$0xff] }
 0x57e   : > { %v4718_v11 = vmax.f32 %v4684_v36, 0.0 }
 0x57f   : > { %v4717_v56 = vmax.f32 %v4679_v18, 0.0  ;;  %v5110_v18 = vld [vmem:[#allocation3 + $0x79] sm:$0xff] }
 0x580   : > { %4813 = vrot.lane.b32.xlu1 %v4718_v11, %s18379_s20  ;;  %v15170_v11 = vld [vmem:[#allocation3 + $0x80] sm:$0xff] }
 0x581   : > { %4811 = vrot.lane.b32.xlu0 %v4717_v56, %s18379_s20  ;;  %s18351_s20 = smov 56  }
 0x584   : > { %5202 = vrot.lane.b32.xlu1 %v4913_v24, %s18385_s24 }
 0x585   : > { %5200 = vrot.lane.b32.xlu0 %v4912_v35, %s18385_s24 }
 0x586   : > { %v4798_v47 = vpop.permute.xlu1 %4797 }
 0x587   : > { %4871 = vst.msk [vmem:[#allocation3 + $0x129] sm:$0xff] %vm4847_vm7, %v4798_v47  ;;  %v4796_v6 = vpop.permute.xlu0 %4795  ;;  %v5142_v47 = vld [vmem:[#allocation3 + $0x7a] sm:$0xff] }
 0x588   : > { %4870 = vst.msk [vmem:[#allocation3 + $0x121] sm:$0xff] %vm4847_vm7, %v4796_v6  ;;  %5330 = vrot.lane.b32.xlu1 %v4945_v31, %s18388_s26 }
 0x589   : > { %5328 = vrot.lane.b32.xlu0 %v4944_v12, %s18388_s26  ;;  %v5111_v12 = vld [vmem:[#allocation3 + $0x81] sm:$0xff] }
 0x58c   : > { %5458 = vrot.lane.b32.xlu1 %v15036_v59, %s18390_s2 }
 0x58d   : > { %5456 = vrot.lane.b32.xlu0 %v15040_v2, %s18390_s2 }
 0x590   : > { %5204 = vrot.lane.b32.xlu1 %v4914_v20, %s18385_s24 }
 0x591   : > { %5584 = vrot.lane.b32.xlu0 %v4914_v20, %s18392_s28 }
 0x594   : > { %5712 = vrot.lane.b32.xlu1 %v5040_v54, %s18344_s27  ;;  %s12324_s27 = smov 60  }
 0x595   : > { %5586 = vrot.lane.b32.xlu0 %v5009_v50, %s18392_s28 }
 0x598   : > { %5332 = vrot.lane.b32.xlu1 %v5040_v54, %s18388_s26 }
 0x599   : > { %5206 = vrot.lane.b32.xlu0 %v5009_v50, %s18385_s24 }
 0x59c   : > { %5840 = vrot.lane.b32.xlu1 %v15062_v37, %s18348_s4 }
 0x59d   : > { %5714 = vrot.lane.b32.xlu0 %v5041_v55, %s18394_s21 }
 0x5a0   : > { %5460 = vrot.lane.b32.xlu1 %v15062_v37, %s18390_s2 }
 0x5a1   : > { %5334 = vrot.lane.b32.xlu0 %v5041_v55, %s18388_s26 }
 0x5a4   : > { %5968 = vrot.lane.b32.xlu1 %v5104_v62, %s18351_s20 }
 0x5a5   : > { %5842 = vrot.lane.b32.xlu0 %v15083_v22, %s18395_s22 }
 0x5a6   : > { %v4802_v21 = vpop.permute.xlu1 %4801 }
 0x5a7   : > { %4873 = vst.msk [vmem:[#allocation3 + $0x141] sm:$0xff] %vm4847_vm7, %v4802_v21  ;;  %v4800_v48 = vpop.permute.xlu0 %4799 }
 0x5a8   : > { %4872 = vst.msk [vmem:[#allocation3 + $0x139] sm:$0xff] %vm4847_vm7, %v4800_v48  ;;  %5588 = vrot.lane.b32.xlu1 %v5104_v62, %s18392_s28 }
 0x5a9   : > { %5462 = vrot.lane.b32.xlu0 %v15083_v22, %s18390_s2 }
 0x5ac   : > { %6096 = vrot.lane.b32.xlu1 %v5136_v52, %s12322_s16 }
 0x5ad   : > { %5970 = vrot.lane.b32.xlu0 %v5105_v63, %s18351_s20 }
 0x5b0   : > { %5590 = vrot.lane.b32.xlu1 %v5105_v63, %s18392_s28 }
 0x5b1   : > { %5208 = vrot.lane.b32.xlu0 %v5104_v62, %s18385_s24 }
 0x5b4   : > { %6098 = vrot.lane.b32.xlu1 %v5137_v3, %s12322_s16 }
 0x5b5   : > { %5716 = vrot.lane.b32.xlu0 %v5136_v52, %s18394_s21 }
 0x5b8   : > { %5336 = vrot.lane.b32.xlu1 %v5136_v52, %s18388_s26 }
 0x5b9   : > { %5210 = vrot.lane.b32.xlu0 %v5105_v63, %s18385_s24 }
 0x5bc   : > { %5844 = vrot.lane.b32.xlu1 %v15103_v57, %s18395_s22 }
 0x5bd   : > { %5718 = vrot.lane.b32.xlu0 %v5137_v3, %s18394_s21 }
 0x5c0   : > { %5464 = vrot.lane.b32.xlu1 %v15103_v57, %s18390_s2 }
 0x5c1   : > { %5338 = vrot.lane.b32.xlu0 %v5137_v3, %s18388_s26 }
 0x5c4   : > { %5972 = vrot.lane.b32.xlu1 %v5106_v7, %s18351_s20 }
 0x5c5   : > { %5846 = vrot.lane.b32.xlu0 %v15112_v43, %s18395_s22 }
 0x5c6   : > { %v4806_v8 = vpop.permute.xlu1 %4805 }
 0x5c7   : > { %4875 = vst.msk [vmem:[#allocation3 + $0x159] sm:$0xff] %vm4847_vm7, %v4806_v8  ;;  %v4804_v16 = vpop.permute.xlu0 %4803 }
 0x5c8   : > { %4874 = vst.msk [vmem:[#allocation3 + $0x151] sm:$0xff] %vm4847_vm7, %v4804_v16  ;;  %5592 = vrot.lane.b32.xlu1 %v5106_v7, %s18392_s28 }
 0x5c9   : > { %5466 = vrot.lane.b32.xlu0 %v15112_v43, %s18390_s2 }
 0x5cc   : > { %6100 = vrot.lane.b32.xlu1 %v5138_v38, %s12322_s16 }
 0x5cd   : > { %5974 = vrot.lane.b32.xlu0 %v5107_v60, %s18351_s20 }
 0x5d0   : > { %5594 = vrot.lane.b32.xlu1 %v5107_v60, %s18392_s28 }
 0x5d1   : > { %5212 = vrot.lane.b32.xlu0 %v5106_v7, %s18385_s24 }
 0x5d4   : > { %6102 = vrot.lane.b32.xlu1 %v5139_v4, %s12322_s16 }
 0x5d5   : > { %5720 = vrot.lane.b32.xlu0 %v5138_v38, %s18394_s21 }
 0x5d8   : > { %5340 = vrot.lane.b32.xlu1 %v5138_v38, %s18388_s26 }
 0x5d9   : > { %5214 = vrot.lane.b32.xlu0 %v5107_v60, %s18385_s24  ;;  %v5112_v60 = vld [vmem:[#allocation3 + $0x91] sm:$0xff] }
 0x5dc   : > { %5848 = vrot.lane.b32.xlu1 %v15129_v27, %s18395_s22 }
 0x5dd   : > { %5722 = vrot.lane.b32.xlu0 %v5139_v4, %s18394_s21 }
 0x5e0   : > { %5468 = vrot.lane.b32.xlu1 %v15129_v27, %s18390_s2 }
 0x5e1   : > { %5342 = vrot.lane.b32.xlu0 %v5139_v4, %s18388_s26 }
 0x5e4   : > { %5976 = vrot.lane.b32.xlu1 %v5108_v5, %s18351_s20 }
 0x5e5   : > { %v4810_v42 = vpop.permute.xlu1 %4809  ;;  %5850 = vrot.lane.b32.xlu0 %v15138_v45, %s18395_s22 }
 0x5e6   : > { %4877 = vst.msk [vmem:[#allocation3 + $0x171] sm:$0xff] %vm4847_vm7, %v4810_v42  ;;  %v4808_v40 = vpop.permute.xlu0 %4807 }
 0x5e7   : > { %4876 = vst.msk [vmem:[#allocation3 + $0x169] sm:$0xff] %vm4847_vm7, %v4808_v40 }
 0x5e8   : > { %5596 = vrot.lane.b32.xlu1 %v5108_v5, %s18392_s28 }
 0x5e9   : > { %5470 = vrot.lane.b32.xlu0 %v15138_v45, %s18390_s2 }
 0x5ec   : > { %6104 = vrot.lane.b32.xlu1 %v5140_v61, %s12322_s16 }
 0x5ed   : > { %5978 = vrot.lane.b32.xlu0 %v5109_v44, %s18351_s20 }
 0x5f0   : > { %5598 = vrot.lane.b32.xlu1 %v5109_v44, %s18392_s28 }
 0x5f1   : > { %5216 = vrot.lane.b32.xlu0 %v5108_v5, %s18385_s24  ;;  %v15221_v5 = vld [vmem:[#allocation3 + $0x98] sm:$0xff] }
 0x5f2   : > { %v4814_v49 = vpop.permute.xlu1 %4813 }
 0x5f3   : > { %4879 = vst.msk [vmem:[#allocation3 + $0x189] sm:$0xff] %vm4847_vm7, %v4814_v49  ;;  %v4812_v41 = vpop.permute.xlu0 %4811 }
 0x5f4   : > { %4878 = vst.msk [vmem:[#allocation3 + $0x181] sm:$0xff] %vm4847_vm7, %v4812_v41  ;;  %6106 = vrot.lane.b32.xlu1 %v5141_v26, %s12322_s16  ;;  %vm6419_vm7 = vcmask 523264  }
 0x5f5   : > { %5724 = vrot.lane.b32.xlu0 %v5140_v61, %s18394_s21 }
 0x5f6   : > { %v5203_v32 = vpop.permute.xlu1 %5202 }
 0x5f7   : > { %v5201_v51 = vpop.permute.xlu0 %5200  ;;  %v6193_v14 = vsel %vm2342_vm11, %v4881_v1, %v5203_v32  ;;  %v5144_v32 = vld [vmem:[#allocation3 + $0x92] sm:$0xff] }
 0x5f8   : > { %5344 = vrot.lane.b32.xlu1 %v5140_v61, %s18388_s26  ;;  %v6192_v17 = vsel %vm2342_vm11, %v4880_v25, %v5201_v51  ;;  %v5113_v51 = vld [vmem:[#allocation3 + $0x99] sm:$0xff]  ;;  %v15258_v25 = vld [vmem:[#allocation3 + $0xa8] sm:$0xff] }
 0x5f9   : > { %5218 = vrot.lane.b32.xlu0 %v5109_v44, %s18385_s24 }
 0x5fa   : > { %v15157_v23 = vpop.permute.xlu1 %5330 }
 0x5fb   : > { %v5329_v39 = vpop.permute.xlu0 %5328  ;;  %v6225_v3 = vsel %vm4184_vm0, %v6193_v14, %v15157_v23 }
 0x5fc   : > { %5852 = vrot.lane.b32.xlu1 %v15159_v13, %s18395_s22  ;;  %v6224_v34 = vsel %vm4184_vm0, %v6192_v17, %v5329_v39 }
 0x5fd   : > { %5726 = vrot.lane.b32.xlu0 %v5141_v26, %s18394_s21 }
 0x5fe   : > { %v5459_v58 = vpop.permute.xlu1 %5458 }
 0x5ff   : > { %v5457_v30 = vpop.permute.xlu0 %5456  ;;  %v6257_v7 = vsel %vm4250_vm2, %v6225_v3, %v5459_v58  ;;  %v5115_v3 = vld [vmem:[#allocation3 + $0xb1] sm:$0xff] }
 0x600   : > { %5472 = vrot.lane.b32.xlu1 %v15159_v13, %s18390_s2  ;;  %v6256_v55 = vsel %vm4250_vm2, %v6224_v34, %v5457_v30 }
 0x601   : > { %5346 = vrot.lane.b32.xlu0 %v5141_v26, %s18388_s26 }
 0x602   : > { %v15167_v36 = vpop.permute.xlu1 %5204 }
 0x603   : > { %v5585_v53 = vpop.permute.xlu0 %5584 }
 0x604   : > { %5980 = vrot.lane.b32.xlu1 %v5110_v18, %s18351_s20  ;;  %v6288_v19 = vsel %vm18353_vm5, %v6256_v55, %v5585_v53  ;;  %v5145_v53 = vld [vmem:[#allocation3 + $0x9a] sm:$0xff] }
 0x605   : > { %5854 = vrot.lane.b32.xlu0 %v15170_v11, %s18395_s22 }
 0x606   : > { %v5713_v56 = vpop.permute.xlu1 %5712 }
 0x607   : > { %v5587_v24 = vpop.permute.xlu0 %5586  ;;  %v6321_v15 = vsel %vm6320_vm8, %v6288_v19, %v5713_v56 }
 0x608   : > { %5600 = vrot.lane.b32.xlu1 %v5110_v18, %s18392_s28  ;;  %v6289_v16 = vsel %vm18353_vm5, %v6257_v7, %v5587_v24  ;;  %v6194_v24 = vsel %vm2342_vm11, %v15040_v2, %v15167_v36 }
 0x609   : > { %5474 = vrot.lane.b32.xlu0 %v15170_v11, %s18390_s2 }
 0x60a   : > { %v15177_v35 = vpop.permute.xlu1 %5332 }
 0x60b   : > { %v15179_v31 = vpop.permute.xlu0 %5206 }
 0x60c   : > { %6108 = vrot.lane.b32.xlu1 %v5142_v47, %s12322_s16  ;;  %v6195_v17 = vsel %vm2342_vm11, %v15036_v59, %v15179_v31  ;;  %v15283_v31 = vld [vmem:[#allocation3 + $0xb0] sm:$0xff] }
 0x60d   : > { %5982 = vrot.lane.b32.xlu0 %v5111_v12, %s18351_s20 }
 0x60e   : > { %v5841_v6 = vpop.permute.xlu1 %5840 }
 0x60f   : > { %v5715_v20 = vpop.permute.xlu0 %5714  ;;  %v6354_v62 = vsel %vm6353_vm12, %v6321_v15, %v5841_v6  ;;  %v5114_v15 = vld [vmem:[#allocation3 + $0xa9] sm:$0xff] }
 0x610   : > { %5602 = vrot.lane.b32.xlu1 %v5111_v12, %s18392_s28  ;;  %v6322_v4 = vsel %vm6320_vm8, %v6289_v16, %v5715_v20 }
 0x611   : > { %5220 = vrot.lane.b32.xlu0 %v5110_v18, %s18385_s24 }
 0x612   : > { %v15185_v54 = vpop.permute.xlu1 %5460 }
 0x613   : > { %v15187_v50 = vpop.permute.xlu0 %5334 }
 0x614   : > { %6110 = vrot.lane.b32.xlu1 %v5143_v28, %s12322_s16  ;;  %v6227_v34 = vsel %vm4184_vm0, %v6195_v17, %v15187_v50  ;;  %v5148_v17 = vld [vmem:[#allocation3 + $0xc2] sm:$0xff] }
 0x615   : > { %5728 = vrot.lane.b32.xlu0 %v5142_v47, %s18394_s21 }
 0x616   : > { %v5969_v33 = vpop.permute.xlu1 %5968 }
 0x617   : > { %v5843_v29 = vpop.permute.xlu0 %5842  ;;  %v6387_v21 = vsel %vm18354_vm14, %v6354_v62, %v5969_v33 }
 0x618   : > { %5348 = vrot.lane.b32.xlu1 %v5142_v47, %s18388_s26  ;;  %v6355_v42 = vsel %vm6353_vm12, %v6322_v4, %v5843_v29  ;;  %v6226_v47 = vsel %vm4184_vm0, %v6194_v24, %v15177_v35  ;;  %v5147_v4 = vld [vmem:[#allocation3 + $0xb2] sm:$0xff] }
 0x619   : > { %5222 = vrot.lane.b32.xlu0 %v5111_v12, %s18385_s24  ;;  %v6258_v12 = vsel %vm4250_vm2, %v6226_v47, %v15185_v54 }
 0x61a   : > { %v5589_v10 = vpop.permute.xlu1 %5588 }
 0x61b   : > { %v15197_v9 = vpop.permute.xlu0 %5462  ;;  %v6290_v20 = vsel %vm18353_vm5, %v6258_v12, %v5589_v10 }
 0x61c   : > { %5856 = vrot.lane.b32.xlu1 %v15199_v46, %s18395_s22  ;;  %v6259_v55 = vsel %vm4250_vm2, %v6227_v34, %v15197_v9  ;;  %v5117_v34 = vld [vmem:[#allocation3 + $0xc9] sm:$0xff] }
 0x61d   : > { %5730 = vrot.lane.b32.xlu0 %v5143_v28, %s18394_s21 }
 0x61e   : > { %v6097_v48 = vpop.permute.xlu1 %6096 }
 0x61f   : > { %v6420_v52 = vsel %vm6419_vm7, %v6387_v21, %v6097_v48  ;;  %v5971_v63 = vpop.permute.xlu0 %5970 }
 0x620   : > { %5476 = vrot.lane.b32.xlu1 %v15199_v46, %s18390_s2  ;;  %11723 = vmatprep.mubr.msk.f32.mxu0 %vm6468_vm10, %v6420_v52  ;;  %v6388_v40 = vsel %vm18354_vm14, %v6355_v42, %v5971_v63  ;;  %v5146_v63 = vld [vmem:[#allocation3 + $0xaa] sm:$0xff] }
 0x621   : > { %5350 = vrot.lane.b32.xlu0 %v5143_v28, %s18388_s26 }
 0x622   : > { %v5591_v8 = vpop.permute.xlu1 %5590 }
 0x623   : > { %v15217_v38 = vpop.permute.xlu0 %5208  ;;  %v6291_v1 = vsel %vm18353_vm5, %v6259_v55, %v5591_v8 }
 0x624   : > { %5984 = vrot.lane.b32.xlu1 %v5112_v60, %s18351_s20 }
 0x625   : > { %5858 = vrot.lane.b32.xlu0 %v15221_v5, %s18395_s22 }
 0x626   : > { %v6099_v61 = vpop.permute.xlu1 %6098 }
 0x627   : > { %v6421_v44 = vsel %vm6419_vm7, %v6388_v40, %v6099_v61  ;;  %v5717_v49 = vpop.permute.xlu0 %5716  ;;  %v6196_v61 = vsel %vm2342_vm11, %v15062_v37, %v15217_v38 }
 0x628   : > { %5604 = vrot.lane.b32.xlu1 %v5112_v60, %s18392_s28  ;;  %11724 = vmatmul.mubr.msk.f32.vlgmr.msra.gmra.mrb[32].mxu0 %vm6468_vm10, %v6421_v44  ;;  %v6323_v33 = vsel %vm6320_vm8, %v6290_v20, %v5717_v49 }
 0x629   : > { %5478 = vrot.lane.b32.xlu0 %v15221_v5, %s18390_s2 }
 0x62a   : > { %v15232_v41 = vpop.permute.xlu1 %5336 }
 0x62b   : > { %v15234_v26 = vpop.permute.xlu0 %5210  ;;  %v6228_v44 = vsel %vm4184_vm0, %v6196_v61, %v15232_v41 }
 0x62c   : > { %6112 = vrot.lane.b32.xlu1 %v5144_v32, %s12322_s16 }
 0x62d   : > { %5986 = vrot.lane.b32.xlu0 %v5113_v51, %s18351_s20 }
 0x62e   : > { %v5845_v23 = vpop.permute.xlu1 %5844 }
 0x62f   : > { %v5719_v39 = vpop.permute.xlu0 %5718  ;;  %v6356_v2 = vsel %vm6353_vm12, %v6323_v33, %v5845_v23  ;;  %v5116_v33 = vld [vmem:[#allocation3 + $0xc1] sm:$0xff] }
 0x630   : > { %5606 = vrot.lane.b32.xlu1 %v5113_v51, %s18392_s28  ;;  %v6324_v59 = vsel %vm6320_vm8, %v6291_v1, %v5719_v39  ;;  %v15320_v39 = vld [vmem:[#allocation3 + $0xc0] sm:$0xff] }
 0x631   : > { %5224 = vrot.lane.b32.xlu0 %v5112_v60, %s18385_s24 }
 0x632   : > { %v15240_v58 = vpop.permute.xlu1 %5464 }
 0x633   : > { %v15242_v30 = vpop.permute.xlu0 %5338  ;;  %v6260_v49 = vsel %vm4250_vm2, %v6228_v44, %v15240_v58 }
 0x634   : > { %6114 = vrot.lane.b32.xlu1 %v5145_v53, %s12322_s16 }
 0x635   : > { %5732 = vrot.lane.b32.xlu0 %v5144_v32, %s18394_s21 }
 0x636   : > { %v5973_v18 = vpop.permute.xlu1 %5972 }
 0x637   : > { %v5847_v56 = vpop.permute.xlu0 %5846  ;;  %v6389_v36 = vsel %vm18354_vm14, %v6356_v2, %v5973_v18 }
 0x638   : > { %5352 = vrot.lane.b32.xlu1 %v5144_v32, %s18388_s26  ;;  %v6357_v62 = vsel %vm6353_vm12, %v6324_v59, %v5847_v56  ;;  %v6197_v56 = vsel %vm2342_vm11, %v15083_v22, %v15234_v26  ;;  %v15345_v26 = vld [vmem:[#allocation3 + $0xc8] sm:$0xff] }
 0x639   : > { %5226 = vrot.lane.b32.xlu0 %v5113_v51, %s18385_s24  ;;  %v6229_v24 = vsel %vm4184_vm0, %v6197_v56, %v15242_v30  ;;  %v5149_v59 = vld [vmem:[#allocation3 + $0xca] sm:$0xff]  ;;  %v5150_v56 = vld [vmem:[#allocation3 + $0xda] sm:$0xff] }
 0x63a   : > { %v5593_v6 = vpop.permute.xlu1 %5592 }
 0x63b   : > { %v15256_v28 = vpop.permute.xlu0 %5466  ;;  %v6292_v51 = vsel %vm18353_vm5, %v6260_v49, %v5593_v6 }
 0x63c   : > { %5860 = vrot.lane.b32.xlu1 %v15258_v25, %s18395_s22  ;;  %v6261_v47 = vsel %vm4250_vm2, %v6229_v24, %v15256_v28  ;;  %v5119_v24 = vld [vmem:[#allocation3 + $0xe1] sm:$0xff] }
 0x63d   : > { %5734 = vrot.lane.b32.xlu0 %v5145_v53, %s18394_s21 }
 0x63e   : > { %v6101_v35 = vpop.permute.xlu1 %6100 }
 0x63f   : > { %v6422_v54 = vsel %vm6419_vm7, %v6389_v36, %v6101_v35  ;;  %v5975_v29 = vpop.permute.xlu0 %5974 }
 0x640   : > { %5480 = vrot.lane.b32.xlu1 %v15258_v25, %s18390_s2  ;;  %11726 = vmatprep.mubr.msk.f32.mxu0 %vm6468_vm10, %v6422_v54  ;;  %v6390_v50 = vsel %vm18354_vm14, %v6357_v62, %v5975_v29 }
 0x641   : > { %5354 = vrot.lane.b32.xlu0 %v5145_v53, %s18388_s26 }
 0x642   : > { %v5595_v10 = vpop.permute.xlu1 %5594 }
 0x643   : > { %v15279_v19 = vpop.permute.xlu0 %5212  ;;  %v6293_v6 = vsel %vm18353_vm5, %v6261_v47, %v5595_v10 }
 0x644   : > { %5988 = vrot.lane.b32.xlu1 %v5114_v15, %s18351_s20 }
 0x645   : > { %5862 = vrot.lane.b32.xlu0 %v15283_v31, %s18395_s22 }
 0x646   : > { %v6103_v9 = vpop.permute.xlu1 %6102 }
 0x647   : > { %v6423_v14 = vsel %vm6419_vm7, %v6390_v50, %v6103_v9  ;;  %v5721_v21 = vpop.permute.xlu0 %5720  ;;  %v6198_v9 = vsel %vm2342_vm11, %v15103_v57, %v15279_v19 }
 0x648   : > { %5608 = vrot.lane.b32.xlu1 %v5114_v15, %s18392_s28  ;;  %11727 = vmatmul.mubr.msk.f32.gmra.mrb[34].mxu0 %vm6468_vm10, %v6423_v14  ;;  %v6325_v53 = vsel %vm6320_vm8, %v6292_v51, %v5721_v21 }
 0x649   : > { %5482 = vrot.lane.b32.xlu0 %v15283_v31, %s18390_s2 }
 0x64a   : > { %v15294_v48 = vpop.permute.xlu1 %5340 }
 0x64b   : > { %v15296_v52 = vpop.permute.xlu0 %5214  ;;  %v6230_v14 = vsel %vm4184_vm0, %v6198_v9, %v15294_v48 }
 0x64c   : > { %6116 = vrot.lane.b32.xlu1 %v5146_v63, %s12322_s16 }
 0x64d   : > { %5990 = vrot.lane.b32.xlu0 %v5115_v3, %s18351_s20 }
 0x64e   : > { %v5849_v7 = vpop.permute.xlu1 %5848 }
 0x64f   : > { %v5723_v8 = vpop.permute.xlu0 %5722  ;;  %v6358_v37 = vsel %vm6353_vm12, %v6325_v53, %v5849_v7  ;;  %v5118_v53 = vld [vmem:[#allocation3 + $0xd9] sm:$0xff] }
 0x650   : > { %5610 = vrot.lane.b32.xlu1 %v5115_v3, %s18392_s28  ;;  %v6326_v22 = vsel %vm6320_vm8, %v6293_v6, %v5723_v8  ;;  %v15382_v8 = vld [vmem:[#allocation3 + $0xd8] sm:$0xff] }
 0x651   : > { %5228 = vrot.lane.b32.xlu0 %v5114_v15, %s18385_s24 }
 0x652   : > { %v15302_v16 = vpop.permute.xlu1 %5468 }
 0x653   : > { %v15304_v60 = vpop.permute.xlu0 %5342  ;;  %v6262_v21 = vsel %vm4250_vm2, %v6230_v14, %v15302_v16 }
 0x654   : > { %6118 = vrot.lane.b32.xlu1 %v5147_v4, %s12322_s16 }
 0x655   : > { %5736 = vrot.lane.b32.xlu0 %v5146_v63, %s18394_s21 }
 0x656   : > { %v5977_v42 = vpop.permute.xlu1 %5976 }
 0x657   : > { %v5851_v40 = vpop.permute.xlu0 %5850  ;;  %v6391_v38 = vsel %vm18354_vm14, %v6358_v37, %v5977_v42 }
 0x658   : > { %5356 = vrot.lane.b32.xlu1 %v5146_v63, %s18388_s26  ;;  %v6359_v2 = vsel %vm6353_vm12, %v6326_v22, %v5851_v40  ;;  %v6199_v40 = vsel %vm2342_vm11, %v15112_v43, %v15296_v52  ;;  %v15407_v52 = vld [vmem:[#allocation3 + $0xe0] sm:$0xff] }
 0x659   : > { %5230 = vrot.lane.b32.xlu0 %v5115_v3, %s18385_s24  ;;  %v6231_v61 = vsel %vm4184_vm0, %v6199_v40, %v15304_v60  ;;  %v5151_v22 = vld [vmem:[#allocation3 + $0xe2] sm:$0xff]  ;;  %v5152_v40 = vld [vmem:[#allocation3 + $0xf2] sm:$0xff] }
 0x65a   : > { %v5597_v32 = vpop.permute.xlu1 %5596 }
 0x65b   : > { %v15318_v23 = vpop.permute.xlu0 %5470  ;;  %v6294_v3 = vsel %vm18353_vm5, %v6262_v21, %v5597_v32 }
 0x65c   : > { %5864 = vrot.lane.b32.xlu1 %v15320_v39, %s18395_s22  ;;  %v6263_v44 = vsel %vm4250_vm2, %v6231_v61, %v15318_v23  ;;  %v5121_v61 = vld [vmem:[#allocation3 + $0xf9] sm:$0xff] }
 0x65d   : > { %5738 = vrot.lane.b32.xlu0 %v5147_v4, %s18394_s21 }
 0x65e   : > { %v6105_v41 = vpop.permute.xlu1 %6104 }
 0x65f   : > { %v6424_v58 = vsel %vm6419_vm7, %v6391_v38, %v6105_v41  ;;  %v5979_v18 = vpop.permute.xlu0 %5978 }
 0x660   : > { %5484 = vrot.lane.b32.xlu1 %v15320_v39, %s18390_s2  ;;  %11729 = vmatprep.mubr.msk.f32.mxu0 %vm6468_vm10, %v6424_v58  ;;  %v6392_v30 = vsel %vm18354_vm14, %v6359_v2, %v5979_v18 }
 0x661   : > { %5358 = vrot.lane.b32.xlu0 %v5147_v4, %s18388_s26 }
 0x662   : > { %v5599_v12 = vpop.permute.xlu1 %5598 }
 0x663   : > { %v15341_v20 = vpop.permute.xlu0 %5216  ;;  %v6295_v32 = vsel %vm18353_vm5, %v6263_v44, %v5599_v12 }
 0x664   : > { %5992 = vrot.lane.b32.xlu1 %v5116_v33, %s18351_s20 }
 0x665   : > { %5866 = vrot.lane.b32.xlu0 %v15345_v26, %s18395_s22 }
 0x666   : > { %v6107_v28 = vpop.permute.xlu1 %6106 }
 0x667   : > { %v6425_v36 = vsel %vm6419_vm7, %v6392_v30, %v6107_v28  ;;  %v5725_v35 = vpop.permute.xlu0 %5724  ;;  %v6200_v28 = vsel %vm2342_vm11, %v15129_v27, %v15341_v20 }
 0x668   : > { %5612 = vrot.lane.b32.xlu1 %v5116_v33, %s18392_s28  ;;  %11730 = vmatmul.mubr.msk.f32.gmra.mrb[36].mxu0 %vm6468_vm10, %v6425_v36  ;;  %v6327_v4 = vsel %vm6320_vm8, %v6294_v3, %v5725_v35 }
 0x669   : > { %5486 = vrot.lane.b32.xlu0 %v15345_v26, %s18390_s2 }
 0x66a   : > { %v15356_v54 = vpop.permute.xlu1 %5344 }
 0x66b   : > { %v15358_v29 = vpop.permute.xlu0 %5218  ;;  %v6232_v36 = vsel %vm4184_vm0, %v6200_v28, %v15356_v54 }
 0x66c   : > { %6120 = vrot.lane.b32.xlu1 %v5148_v17, %s12322_s16 }
 0x66d   : > { %5994 = vrot.lane.b32.xlu0 %v5117_v34, %s18351_s20 }
 0x66e   : > { %v5853_v55 = vpop.permute.xlu1 %5852 }
 0x66f   : > { %v5727_v10 = vpop.permute.xlu0 %5726  ;;  %v6360_v57 = vsel %vm6353_vm12, %v6327_v4, %v5853_v55  ;;  %v5120_v4 = vld [vmem:[#allocation3 + $0xf1] sm:$0xff] }
 0x670   : > { %5614 = vrot.lane.b32.xlu1 %v5117_v34, %s18392_s28  ;;  %v6328_v43 = vsel %vm6320_vm8, %v6295_v32, %v5727_v10  ;;  %v15444_v10 = vld [vmem:[#allocation3 + $0xf0] sm:$0xff] }
 0x671   : > { %5232 = vrot.lane.b32.xlu0 %v5116_v33, %s18385_s24 }
 0x672   : > { %v15364_v1 = vpop.permute.xlu1 %5472 }
 0x673   : > { %v15366_v15 = vpop.permute.xlu0 %5346  ;;  %v6264_v35 = vsel %vm4250_vm2, %v6232_v36, %v15364_v1 }
 0x674   : > { %6122 = vrot.lane.b32.xlu1 %v5149_v59, %s12322_s16 }
 0x675   : > { %5740 = vrot.lane.b32.xlu0 %v5148_v17, %s18394_s21 }
 0x676   : > { %v5981_v62 = vpop.permute.xlu1 %5980 }
 0x677   : > { %v5855_v50 = vpop.permute.xlu0 %5854  ;;  %v6393_v19 = vsel %vm18354_vm14, %v6360_v57, %v5981_v62 }
 0x678   : > { %5360 = vrot.lane.b32.xlu1 %v5148_v17, %s18388_s26  ;;  %v6361_v37 = vsel %vm6353_vm12, %v6328_v43, %v5855_v50  ;;  %v6201_v50 = vsel %vm2342_vm11, %v15138_v45, %v15358_v29  ;;  %v15469_v29 = vld [vmem:[#allocation3 + $0xf8] sm:$0xff] }
 0x679   : > { %5234 = vrot.lane.b32.xlu0 %v5117_v34, %s18385_s24  ;;  %v6233_v9 = vsel %vm4184_vm0, %v6201_v50, %v15366_v15  ;;  %v5153_v43 = vld [vmem:[#allocation3 + $0xfa] sm:$0xff]  ;;  %v5154_v50 = vld [vmem:[#allocation3 + $0x10a] sm:$0xff] }
 0x67a   : > { %v5601_v63 = vpop.permute.xlu1 %5600 }
 0x67b   : > { %v15380_v7 = vpop.permute.xlu0 %5474  ;;  %v6296_v34 = vsel %vm18353_vm5, %v6264_v35, %v5601_v63 }
 0x67c   : > { %5868 = vrot.lane.b32.xlu1 %v15382_v8, %s18395_s22  ;;  %v6265_v14 = vsel %vm4250_vm2, %v6233_v9, %v15380_v7  ;;  %v5123_v9 = vld [vmem:[#allocation3 + $0x111] sm:$0xff] }
 0x67d   : > { %5742 = vrot.lane.b32.xlu0 %v5149_v59, %s18394_s21 }
 0x67e   : > { %v6109_v48 = vpop.permute.xlu1 %6108 }
 0x67f   : > { %v6426_v16 = vsel %vm6419_vm7, %v6393_v19, %v6109_v48  ;;  %v5983_v42 = vpop.permute.xlu0 %5982 }
 0x680   : > { %5488 = vrot.lane.b32.xlu1 %v15382_v8, %s18390_s2  ;;  %11732 = vmatprep.mubr.msk.f32.mxu0 %vm6468_vm10, %v6426_v16  ;;  %v6394_v60 = vsel %vm18354_vm14, %v6361_v37, %v5983_v42 }
 0x681   : > { %5362 = vrot.lane.b32.xlu0 %v5149_v59, %s18388_s26 }
 0x682   : > { %v5603_v49 = vpop.permute.xlu1 %5602 }
 0x683   : > { %v15403_v51 = vpop.permute.xlu0 %5220  ;;  %v6297_v63 = vsel %vm18353_vm5, %v6265_v14, %v5603_v49 }
 0x684   : > { %5996 = vrot.lane.b32.xlu1 %v5118_v53, %s18351_s20 }
 0x685   : > { %5870 = vrot.lane.b32.xlu0 %v15407_v52, %s18395_s22 }
 0x686   : > { %v6111_v23 = vpop.permute.xlu1 %6110 }
 0x687   : > { %v6427_v38 = vsel %vm6419_vm7, %v6394_v60, %v6111_v23  ;;  %v5729_v41 = vpop.permute.xlu0 %5728  ;;  %v6202_v23 = vsel %vm2342_vm11, %v15159_v13, %v15403_v51 }
 0x688   : > { %5616 = vrot.lane.b32.xlu1 %v5118_v53, %s18392_s28  ;;  %11733 = vmatmul.mubr.msk.f32.gmra.mrb[38].mxu0 %vm6468_vm10, %v6427_v38  ;;  %v6329_v59 = vsel %vm6320_vm8, %v6296_v34, %v5729_v41 }
 0x689   : > { %5490 = vrot.lane.b32.xlu0 %v15407_v52, %s18390_s2 }
 0x68a   : > { %v15418_v58 = vpop.permute.xlu1 %5348 }
 0x68b   : > { %v15420_v18 = vpop.permute.xlu0 %5222  ;;  %v6234_v38 = vsel %vm4184_vm0, %v6202_v23, %v15418_v58 }
 0x68c   : > { %6124 = vrot.lane.b32.xlu1 %v5150_v56, %s12322_s16 }
 0x68d   : > { %5998 = vrot.lane.b32.xlu0 %v5119_v24, %s18351_s20 }
 0x68e   : > { %v5857_v47 = vpop.permute.xlu1 %5856 }
 0x68f   : > { %v5731_v12 = vpop.permute.xlu0 %5730  ;;  %v6362_v27 = vsel %vm6353_vm12, %v6329_v59, %v5857_v47  ;;  %v5122_v59 = vld [vmem:[#allocation3 + $0x109] sm:$0xff] }
 0x690   : > { %5618 = vrot.lane.b32.xlu1 %v5119_v24, %s18392_s28  ;;  %v6330_v45 = vsel %vm6320_vm8, %v6297_v63, %v5731_v12  ;;  %v15506_v12 = vld [vmem:[#allocation3 + $0x108] sm:$0xff] }
 0x691   : > { %5236 = vrot.lane.b32.xlu0 %v5118_v53, %s18385_s24 }
 0x692   : > { %v15426_v6 = vpop.permute.xlu1 %5476 }
 0x693   : > { %v15428_v33 = vpop.permute.xlu0 %5350  ;;  %v6266_v41 = vsel %vm4250_vm2, %v6234_v38, %v15426_v6 }
 0x694   : > { %6126 = vrot.lane.b32.xlu1 %v5151_v22, %s12322_s16 }
 0x695   : > { %5744 = vrot.lane.b32.xlu0 %v5150_v56, %s18394_s21 }
 0x696   : > { %v5985_v2 = vpop.permute.xlu1 %5984 }
 0x697   : > { %v5859_v30 = vpop.permute.xlu0 %5858  ;;  %v6395_v20 = vsel %vm18354_vm14, %v6362_v27, %v5985_v2 }
 0x698   : > { %5364 = vrot.lane.b32.xlu1 %v5150_v56, %s18388_s26  ;;  %v6363_v57 = vsel %vm6353_vm12, %v6330_v45, %v5859_v30  ;;  %v6203_v30 = vsel %vm2342_vm11, %v15170_v11, %v15420_v18  ;;  %v15531_v18 = vld [vmem:[#allocation3 + $0x110] sm:$0xff] }
 0x699   : > { %5238 = vrot.lane.b32.xlu0 %v5119_v24, %s18385_s24  ;;  %v6235_v28 = vsel %vm4184_vm0, %v6203_v30, %v15428_v33  ;;  %v5155_v45 = vld [vmem:[#allocation3 + $0x112] sm:$0xff]  ;;  %v5156_v30 = vld [vmem:[#allocation3 + $0x122] sm:$0xff] }
 0x69a   : > { %v5605_v17 = vpop.permute.xlu1 %5604 }
 0x69b   : > { %v15442_v55 = vpop.permute.xlu0 %5478  ;;  %v6298_v24 = vsel %vm18353_vm5, %v6266_v41, %v5605_v17 }
 0x69c   : > { %5872 = vrot.lane.b32.xlu1 %v15444_v10, %s18395_s22  ;;  %v6267_v36 = vsel %vm4250_vm2, %v6235_v28, %v15442_v55  ;;  %v5125_v28 = vld [vmem:[#allocation3 + $0x129] sm:$0xff] }
 0x69d   : > { %5746 = vrot.lane.b32.xlu0 %v5151_v22, %s18394_s21 }
 0x69e   : > { %v6113_v54 = vpop.permute.xlu1 %6112 }
 0x69f   : > { %v6428_v1 = vsel %vm6419_vm7, %v6395_v20, %v6113_v54  ;;  %v5987_v62 = vpop.permute.xlu0 %5986 }
 0x6a0   : > { %5492 = vrot.lane.b32.xlu1 %v15444_v10, %s18390_s2  ;;  %11735 = vmatprep.mubr.msk.f32.mxu0 %vm6468_vm10, %v6428_v1  ;;  %v6396_v15 = vsel %vm18354_vm14, %v6363_v57, %v5987_v62 }
 0x6a1   : > { %5366 = vrot.lane.b32.xlu0 %v5151_v22, %s18388_s26 }
 0x6a2   : > { %v5607_v21 = vpop.permute.xlu1 %5606 }
 0x6a3   : > { %v15465_v3 = vpop.permute.xlu0 %5224  ;;  %v6299_v17 = vsel %vm18353_vm5, %v6267_v36, %v5607_v21 }
 0x6a4   : > { %6000 = vrot.lane.b32.xlu1 %v5120_v4, %s18351_s20 }
 0x6a5   : > { %5874 = vrot.lane.b32.xlu0 %v15469_v29, %s18395_s22 }
 0x6a6   : > { %v6115_v7 = vpop.permute.xlu1 %6114 }
 0x6a7   : > { %v6429_v19 = vsel %vm6419_vm7, %v6396_v15, %v6115_v7  ;;  %v5733_v48 = vpop.permute.xlu0 %5732  ;;  %v6204_v7 = vsel %vm2342_vm11, %v15199_v46, %v15465_v3 }
 0x6a8   : > { %5620 = vrot.lane.b32.xlu1 %v5120_v4, %s18392_s28  ;;  %11736 = vmatmul.mubr.msk.f32.gmra.mrb[40].mxu0 %vm6468_vm10, %v6429_v19  ;;  %v6331_v22 = vsel %vm6320_vm8, %v6298_v24, %v5733_v48 }
 0x6a9   : > { %5494 = vrot.lane.b32.xlu0 %v15469_v29, %s18390_s2 }
 0x6aa   : > { %v15480_v16 = vpop.permute.xlu1 %5352 }
 0x6ab   : > { %v15482_v42 = vpop.permute.xlu0 %5226  ;;  %v6236_v19 = vsel %vm4184_vm0, %v6204_v7, %v15480_v16 }
 0x6ac   : > { %6128 = vrot.lane.b32.xlu1 %v5152_v40, %s12322_s16 }
 0x6ad   : > { %6002 = vrot.lane.b32.xlu0 %v5121_v61, %s18351_s20 }
 0x6ae   : > { %v5861_v44 = vpop.permute.xlu1 %5860 }
 0x6af   : > { %v5735_v49 = vpop.permute.xlu0 %5734  ;;  %v6364_v13 = vsel %vm6353_vm12, %v6331_v22, %v5861_v44  ;;  %v5124_v22 = vld [vmem:[#allocation3 + $0x121] sm:$0xff] }
 0x6b0   : > { %5622 = vrot.lane.b32.xlu1 %v5121_v61, %s18392_s28  ;;  %v6332_v11 = vsel %vm6320_vm8, %v6299_v17, %v5735_v49  ;;  %v15568_v49 = vld [vmem:[#allocation3 + $0x120] sm:$0xff] }
 0x6b1   : > { %5240 = vrot.lane.b32.xlu0 %v5120_v4, %s18385_s24 }
 0x6b2   : > { %v15488_v32 = vpop.permute.xlu1 %5480 }
 0x6b3   : > { %v15490_v53 = vpop.permute.xlu0 %5354  ;;  %v6268_v48 = vsel %vm4250_vm2, %v6236_v19, %v15488_v32 }
 0x6b4   : > { %6130 = vrot.lane.b32.xlu1 %v5153_v43, %s12322_s16 }
 0x6b5   : > { %5748 = vrot.lane.b32.xlu0 %v5152_v40, %s18394_s21 }
 0x6b6   : > { %v5989_v37 = vpop.permute.xlu1 %5988 }
 0x6b7   : > { %v5863_v60 = vpop.permute.xlu0 %5862  ;;  %v6397_v51 = vsel %vm18354_vm14, %v6364_v13, %v5989_v37 }
 0x6b8   : > { %5368 = vrot.lane.b32.xlu1 %v5152_v40, %s18388_s26  ;;  %v6365_v27 = vsel %vm6353_vm12, %v6332_v11, %v5863_v60  ;;  %v6205_v60 = vsel %vm2342_vm11, %v15221_v5, %v15482_v42  ;;  %v15593_v42 = vld [vmem:[#allocation3 + $0x128] sm:$0xff] }
 0x6b9   : > { %5242 = vrot.lane.b32.xlu0 %v5121_v61, %s18385_s24  ;;  %v6237_v23 = vsel %vm4184_vm0, %v6205_v60, %v15490_v53  ;;  %v5157_v11 = vld [vmem:[#allocation3 + $0x12a] sm:$0xff] }
 0x6ba   : > { %v5609_v56 = vpop.permute.xlu1 %5608 }
 0x6bb   : > { %v15504_v47 = vpop.permute.xlu0 %5482  ;;  %v6300_v61 = vsel %vm18353_vm5, %v6268_v48, %v5609_v56 }
 0x6bc   : > { %5876 = vrot.lane.b32.xlu1 %v15506_v12, %s18395_s22  ;;  %v6269_v38 = vsel %vm4250_vm2, %v6237_v23, %v15504_v47 }
 0x6bd   : > { %5750 = vrot.lane.b32.xlu0 %v5153_v43, %s18394_s21 }
 0x6be   : > { %v6117_v58 = vpop.permute.xlu1 %6116 }
 0x6bf   : > { %v6430_v6 = vsel %vm6419_vm7, %v6397_v51, %v6117_v58  ;;  %v5991_v2 = vpop.permute.xlu0 %5990 }
 0x6c0   : > { %5496 = vrot.lane.b32.xlu1 %v15506_v12, %s18390_s2  ;;  %11738 = vmatprep.mubr.msk.f32.mxu0 %vm6468_vm10, %v6430_v6  ;;  %v6398_v33 = vsel %vm18354_vm14, %v6365_v27, %v5991_v2 }
 0x6c1   : > { %5370 = vrot.lane.b32.xlu0 %v5153_v43, %s18388_s26 }
 0x6c2   : > { %v5611_v35 = vpop.permute.xlu1 %5610 }
 0x6c3   : > { %v15527_v34 = vpop.permute.xlu0 %5228  ;;  %v6301_v56 = vsel %vm18353_vm5, %v6269_v38, %v5611_v35  ;;  %v5158_v38 = vld [vmem:[#allocation3 + $0x13a] sm:$0xff] }
 0x6c4   : > { %6004 = vrot.lane.b32.xlu1 %v5122_v59, %s18351_s20 }
 0x6c5   : > { %5878 = vrot.lane.b32.xlu0 %v15531_v18, %s18395_s22 }
 0x6c6   : > { %v6119_v55 = vpop.permute.xlu1 %6118 }
 0x6c7   : > { %v6431_v20 = vsel %vm6419_vm7, %v6398_v33, %v6119_v55  ;;  %v5737_v54 = vpop.permute.xlu0 %5736  ;;  %v6206_v55 = vsel %vm2342_vm11, %v15258_v25, %v15527_v34 }
 0x6c8   : > { %5624 = vrot.lane.b32.xlu1 %v5122_v59, %s18392_s28  ;;  %11739 = vmatmul.mubr.msk.f32.gmra.mrb[42].mxu0 %vm6468_vm10, %v6431_v20  ;;  %v6333_v43 = vsel %vm6320_vm8, %v6300_v61, %v5737_v54 }
 0x6c9   : > { %5498 = vrot.lane.b32.xlu0 %v15531_v18, %s18390_s2 }
 0x6ca   : > { %v15542_v1 = vpop.permute.xlu1 %5356 }
 0x6cb   : > { %v15544_v62 = vpop.permute.xlu0 %5230  ;;  %v6238_v20 = vsel %vm4184_vm0, %v6206_v55, %v15542_v1 }
 0x6cc   : > { %6132 = vrot.lane.b32.xlu1 %v5154_v50, %s12322_s16  ;;  %v6207_v19 = vsel %vm2342_vm11, %v15283_v31, %v15544_v62  ;;  %v15659_v62 = vld [vmem:[#allocation3 + $0x140] sm:$0xff] }
 0x6cd   : > { %6006 = vrot.lane.b32.xlu0 %v5123_v9, %s18351_s20 }
 0x6ce   : > { %v5865_v14 = vpop.permute.xlu1 %5864 }
 0x6cf   : > { %v5739_v21 = vpop.permute.xlu0 %5738  ;;  %v6366_v46 = vsel %vm6353_vm12, %v6333_v43, %v5865_v14 }
 0x6d0   : > { %5626 = vrot.lane.b32.xlu1 %v5123_v9, %s18392_s28  ;;  %v6334_v5 = vsel %vm6320_vm8, %v6301_v56, %v5739_v21 }
 0x6d1   : > { %5244 = vrot.lane.b32.xlu0 %v5122_v59, %s18385_s24 }
 0x6d2   : > { %v15550_v63 = vpop.permute.xlu1 %5484 }
 0x6d3   : > { %v15552_v4 = vpop.permute.xlu0 %5358  ;;  %v6270_v54 = vsel %vm4250_vm2, %v6238_v20, %v15550_v63 }
 0x6d4   : > { %6134 = vrot.lane.b32.xlu1 %v5155_v45, %s12322_s16  ;;  %v6239_v48 = vsel %vm4184_vm0, %v6207_v19, %v15552_v4 }
 0x6d5   : > { %5752 = vrot.lane.b32.xlu0 %v5154_v50, %s18394_s21 }
 0x6d6   : > { %v5993_v57 = vpop.permute.xlu1 %5992 }
 0x6d7   : > { %v5867_v15 = vpop.permute.xlu0 %5866  ;;  %v6399_v3 = vsel %vm18354_vm14, %v6366_v46, %v5993_v57 }
 0x6d8   : > { %5372 = vrot.lane.b32.xlu1 %v5154_v50, %s18388_s26  ;;  %v6367_v13 = vsel %vm6353_vm12, %v6334_v5, %v5867_v15 }
 0x6d9   : > { %5246 = vrot.lane.b32.xlu0 %v5123_v9, %s18385_s24 }
 0x6da   : > { %v5613_v40 = vpop.permute.xlu1 %5612 }
 0x6db   : > { %v15566_v44 = vpop.permute.xlu0 %5486  ;;  %v6302_v9 = vsel %vm18353_vm5, %v6270_v54, %v5613_v40 }
 0x6dc   : > { %5880 = vrot.lane.b32.xlu1 %v15568_v49, %s18395_s22  ;;  %v6271_v40 = vsel %vm4250_vm2, %v6239_v48, %v15566_v44 }
 0x6dd   : > { %5754 = vrot.lane.b32.xlu0 %v5155_v45, %s18394_s21 }
 0x6de   : > { %v6121_v16 = vpop.permute.xlu1 %6120 }
 0x6df   : > { %v6432_v32 = vsel %vm6419_vm7, %v6399_v3, %v6121_v16  ;;  %v5995_v37 = vpop.permute.xlu0 %5994  ;;  %v5126_v3 = vld [vmem:[#allocation3 + $0x139] sm:$0xff] }
 0x6e0   : > { %5500 = vrot.lane.b32.xlu1 %v15568_v49, %s18390_s2  ;;  %11741 = vmatprep.mubr.msk.f32.mxu0 %vm6468_vm10, %v6432_v32  ;;  %v6400_v53 = vsel %vm18354_vm14, %v6367_v13, %v5995_v37 }
 0x6e1   : > { %5374 = vrot.lane.b32.xlu0 %v5155_v45, %s18388_s26  ;;  %v15632_v45 = vld [vmem:[#allocation3 + $0x138] sm:$0xff] }
 0x6e2   : > { %v5615_v41 = vpop.permute.xlu1 %5614 }
 0x6e3   : > { %v15589_v24 = vpop.permute.xlu0 %5232  ;;  %v6303_v43 = vsel %vm18353_vm5, %v6271_v40, %v5615_v41  ;;  %v5127_v41 = vld [vmem:[#allocation3 + $0x141] sm:$0xff] }
 0x6e4   : > { %6008 = vrot.lane.b32.xlu1 %v5124_v22, %s18351_s20 }
 0x6e5   : > { %5882 = vrot.lane.b32.xlu0 %v15593_v42, %s18395_s22 }
 0x6e6   : > { %v6123_v47 = vpop.permute.xlu1 %6122 }
 0x6e7   : > { %v6433_v51 = vsel %vm6419_vm7, %v6400_v53, %v6123_v47  ;;  %v5741_v58 = vpop.permute.xlu0 %5740  ;;  %v5159_v53 = vld [vmem:[#allocation3 + $0x142] sm:$0xff] }
 0x6e8   : > { %5628 = vrot.lane.b32.xlu1 %v5124_v22, %s18392_s28  ;;  %11742 = vmatmul.mubr.msk.f32.gmra.mrb[44].mxu0 %vm6468_vm10, %v6433_v51  ;;  %v6335_v25 = vsel %vm6320_vm8, %v6302_v9, %v5741_v58  ;;  %v6208_v58 = vsel %vm2342_vm11, %v15320_v39, %v15589_v24 }
 0x6e9   : > { %5502 = vrot.lane.b32.xlu0 %v15593_v42, %s18390_s2 }
 0x6ea   : > { %v15604_v6 = vpop.permute.xlu1 %5360 }
 0x6eb   : > { %v15606_v2 = vpop.permute.xlu0 %5234 }
 0x6ec   : > { %6136 = vrot.lane.b32.xlu1 %v5156_v30, %s12322_s16 }
 0x6ed   : > { %6010 = vrot.lane.b32.xlu0 %v5125_v28, %s18351_s20 }
 0x6ee   : > { %v5869_v36 = vpop.permute.xlu1 %5868 }
 0x6ef   : > { %v5743_v35 = vpop.permute.xlu0 %5742  ;;  %v6368_v1 = vsel %vm6353_vm12, %v6335_v25, %v5869_v36 }
 0x6f0   : > { %5630 = vrot.lane.b32.xlu1 %v5125_v28, %s18392_s28  ;;  %v6336_v31 = vsel %vm6320_vm8, %v6303_v43, %v5743_v35  ;;  %v5160_v43 = vld [vmem:[#allocation3 + $0x152] sm:$0xff] }
 0x6f1   : > { %5248 = vrot.lane.b32.xlu0 %v5124_v22, %s18385_s24 }
 0x6f2   : > { %v15612_v17 = vpop.permute.xlu1 %5488 }
 0x6f3   : > { %v15614_v59 = vpop.permute.xlu0 %5362 }
 0x6f4   : > { %6138 = vrot.lane.b32.xlu1 %v5157_v11, %s12322_s16 }
 0x6f5   : > { %5756 = vrot.lane.b32.xlu0 %v5156_v30, %s18394_s21 }
 0x6f6   : > { %v5997_v27 = vpop.permute.xlu1 %5996 }
 0x6f7   : > { %v5871_v33 = vpop.permute.xlu0 %5870  ;;  %v6401_v63 = vsel %vm18354_vm14, %v6368_v1, %v5997_v27 }
 0x6f8   : > { %5376 = vrot.lane.b32.xlu1 %v5156_v30, %s18388_s26  ;;  %v6369_v16 = vsel %vm6353_vm12, %v6336_v31, %v5871_v33  ;;  %v6240_v30 = vsel %vm4184_vm0, %v6208_v58, %v15604_v6  ;;  %v15698_v33 = vld [vmem:[#allocation3 + $0x150] sm:$0xff] }
 0x6f9   : > { %5250 = vrot.lane.b32.xlu0 %v5125_v28, %s18385_s24  ;;  %v6272_v28 = vsel %vm4250_vm2, %v6240_v30, %v15612_v17  ;;  %v15764_v30 = vld [vmem:[#allocation3 + $0x168] sm:$0xff] }
 0x6fa   : > { %v5617_v50 = vpop.permute.xlu1 %5616 }
 0x6fb   : > { %v15628_v14 = vpop.f32.mrb[32].mxu0  ;;  %v15630_v21 = vpop.permute.xlu0 %5490  ;;  %v6304_v35 = vsel %vm18353_vm5, %v6272_v28, %v5617_v50  ;;  %v6209_v50 = vsel %vm2342_vm11, %v15345_v26, %v15606_v2  ;;  %v15725_v2 = vld [vmem:[#allocation3 + $0x158] sm:$0xff] }
 0x6fc   : > { %5884 = vrot.lane.b32.xlu1 %v15632_v45, %s18395_s22  ;;  %v15637_v34 = vpop.f32.mrb[33].mxu0  ;;  %v6241_v9 = vsel %vm4184_vm0, %v6209_v50, %v15614_v59  ;;  %v5130_v50 = vld [vmem:[#allocation3 + $0x169] sm:$0xff] }
 0x6fd   : > { %5758 = vrot.lane.b32.xlu0 %v5157_v11, %s18394_s21  ;;  %v6273_v25 = vsel %vm4250_vm2, %v6241_v9, %v15630_v21 }
 0x6fe   : > { %v6125_v57 = vpop.permute.xlu1 %6124 }
 0x6ff   : > { %v6434_v15 = vsel %vm6419_vm7, %v6401_v63, %v6125_v57  ;;  %v5999_v7 = vpop.permute.xlu0 %5998 }
 0x700   : > { %5504 = vrot.lane.b32.xlu1 %v15632_v45, %s18390_s2  ;;  %11744 = vmatprep.mubr.msk.f32.mxu0 %vm6468_vm10, %v6434_v15  ;;  %v6402_v4 = vsel %vm18354_vm14, %v6369_v16, %v5999_v7  ;;  %v5128_v15 = vld [vmem:[#allocation3 + $0x151] sm:$0xff] }
 0x701   : > { %5378 = vrot.lane.b32.xlu0 %v5157_v11, %s18388_s26 }
 0x702   : > { %v5619_v61 = vpop.permute.xlu1 %5618 }
 0x703   : > { %v15655_v46 = vpop.permute.xlu0 %5236  ;;  %v6305_v63 = vsel %vm18353_vm5, %v6273_v25, %v5619_v61 }
 0x704   : > { %6012 = vrot.lane.b32.xlu1 %v5126_v3, %s18351_s20 }
 0x705   : > { %5886 = vrot.lane.b32.xlu0 %v15659_v62, %s18395_s22 }
 0x706   : > { %v6127_v44 = vpop.permute.xlu1 %6126 }
 0x707   : > { %v6435_v32 = vsel %vm6419_vm7, %v6402_v4, %v6127_v44  ;;  %v5745_v37 = vpop.permute.xlu0 %5744 }
 0x708   : > { %5632 = vrot.lane.b32.xlu1 %v5126_v3, %s18392_s28  ;;  %11745 = vmatmul.mubr.msk.f32.gmra.mrb[46].mxu0 %vm6468_vm10, %v6435_v32  ;;  %v6337_v39 = vsel %vm6320_vm8, %v6304_v35, %v5745_v37  ;;  %v5161_v32 = vld [vmem:[#allocation3 + $0x15a] sm:$0xff] }
 0x709   : > { %5506 = vrot.lane.b32.xlu0 %v15659_v62, %s18390_s2 }
 0x70a   : > { %v15670_v60 = vpop.permute.xlu1 %5364 }
 0x70b   : > { %v15672_v23 = vpop.permute.xlu0 %5238 }
 0x70c   : > { %6140 = vrot.lane.b32.xlu1 %v5158_v38, %s12322_s16 }
 0x70d   : > { %6014 = vrot.lane.b32.xlu0 %v5127_v41, %s18351_s20 }
 0x70e   : > { %v5873_v56 = vpop.permute.xlu1 %5872 }
 0x70f   : > { %v5747_v22 = vpop.permute.xlu0 %5746  ;;  %v6370_v6 = vsel %vm6353_vm12, %v6337_v39, %v5873_v56  ;;  %v6211_v39 = vsel %vm2342_vm11, %v15407_v52, %v15672_v23  ;;  %v15791_v23 = vld [vmem:[#allocation3 + $0x170] sm:$0xff] }
 0x710   : > { %5634 = vrot.lane.b32.xlu1 %v5127_v41, %s18392_s28  ;;  %v6338_v26 = vsel %vm6320_vm8, %v6305_v63, %v5747_v22 }
 0x711   : > { %5252 = vrot.lane.b32.xlu0 %v5126_v3, %s18385_s24  ;;  %v5129_v3 = vld [vmem:[#allocation3 + $0x159] sm:$0xff] }
 0x712   : > { %v15678_v5 = vpop.permute.xlu1 %5492 }
 0x713   : > { %v15680_v13 = vpop.permute.xlu0 %5366 }
 0x714   : > { %6142 = vrot.lane.b32.xlu1 %v5159_v53, %s12322_s16 }
 0x715   : > { %5760 = vrot.lane.b32.xlu0 %v5158_v38, %s18394_s21 }
 0x716   : > { %v6001_v47 = vpop.permute.xlu1 %6000 }
 0x717   : > { %v5875_v51 = vpop.permute.xlu0 %5874  ;;  %v6403_v17 = vsel %vm18354_vm14, %v6370_v6, %v6001_v47  ;;  %v6243_v6 = vsel %vm4184_vm0, %v6211_v39, %v15680_v13 }
 0x718   : > { %5380 = vrot.lane.b32.xlu1 %v5158_v38, %s18388_s26  ;;  %v6371_v7 = vsel %vm6353_vm12, %v6338_v26, %v5875_v51  ;;  %v5162_v26 = vld [vmem:[#allocation3 + $0x16a] sm:$0xff] }
 0x719   : > { %5254 = vrot.lane.b32.xlu0 %v5127_v41, %s18385_s24  ;;  %v6210_v41 = vsel %vm2342_vm11, %v15382_v8, %v15655_v46 }
 0x71a   : > { %v5621_v36 = vpop.permute.xlu1 %5620  ;;  %v6242_v56 = vsel %vm4184_vm0, %v6210_v41, %v15670_v60 }
 0x71b   : > { %v15694_v11 = vpop.f32.mrb[34].mxu0  ;;  %v15696_v27 = vpop.permute.xlu0 %5494  ;;  %v6274_v22 = vsel %vm4250_vm2, %v6242_v56, %v15678_v5 }
 0x71c   : > { %5888 = vrot.lane.b32.xlu1 %v15698_v33, %s18395_s22  ;;  %v15703_v24 = vpop.f32.mrb[35].mxu0  ;;  %v6306_v47 = vsel %vm18353_vm5, %v6274_v22, %v5621_v36 }
 0x71d   : > { %5762 = vrot.lane.b32.xlu0 %v5159_v53, %s18394_s21 }
 0x71e   : > { %v6129_v55 = vpop.permute.xlu1 %6128 }
 0x71f   : > { %v6436_v20 = vsel %vm6419_vm7, %v6403_v17, %v6129_v55  ;;  %v6003_v54 = vpop.permute.xlu0 %6002  ;;  %v6275_v17 = vsel %vm4250_vm2, %v6243_v6, %v15696_v27 }
 0x720   : > { %5508 = vrot.lane.b32.xlu1 %v15698_v33, %s18390_s2  ;;  %11747 = vmatprep.mubr.msk.f32.mxu0 %vm6468_vm10, %v6436_v20  ;;  %v6404_v59 = vsel %vm18354_vm14, %v6371_v7, %v6003_v54  ;;  %v5131_v7 = vld [vmem:[#allocation3 + $0x171] sm:$0xff] }
 0x721   : > { %5382 = vrot.lane.b32.xlu0 %v5159_v53, %s18388_s26 }
 0x722   : > { %v5623_v1 = vpop.permute.xlu1 %5622 }
 0x723   : > { %v15721_v57 = vpop.permute.xlu0 %5240  ;;  %v6307_v20 = vsel %vm18353_vm5, %v6275_v17, %v5623_v1  ;;  %v5132_v17 = vld [vmem:[#allocation3 + $0x181] sm:$0xff] }
 0x724   : > { %6016 = vrot.lane.b32.xlu1 %v5128_v15, %s18351_s20 }
 0x725   : > { %5890 = vrot.lane.b32.xlu0 %v15725_v2, %s18395_s22 }
 0x726   : > { %v6131_v21 = vpop.permute.xlu1 %6130 }
 0x727   : > { %v6437_v19 = vsel %vm6419_vm7, %v6404_v59, %v6131_v21  ;;  %v5749_v48 = vpop.permute.xlu0 %5748 }
 0x728   : > { %5636 = vrot.lane.b32.xlu1 %v5128_v15, %s18392_s28  ;;  %11748 = vmatmul.mubr.msk.f32.gmra.mrb[48].mxu0 %vm6468_vm10, %v6437_v19  ;;  %v6339_v8 = vsel %vm6320_vm8, %v6306_v47, %v5749_v48  ;;  %v5100_v47 = vld [vmem:[#allocation3 + $0x180] sm:$0xff] }
 0x729   : > { %5510 = vrot.lane.b32.xlu0 %v15725_v2, %s18390_s2 }
 0x72a   : > { %v15736_v40 = vpop.permute.xlu1 %5368 }
 0x72b   : > { %v15738_v61 = vpop.permute.xlu0 %5242 }
 0x72c   : > { %6144 = vrot.lane.b32.xlu1 %v5160_v43, %s12322_s16 }
 0x72d   : > { %6018 = vrot.lane.b32.xlu0 %v5129_v3, %s18351_s20 }
 0x72e   : > { %v5877_v31 = vpop.permute.xlu1 %5876 }
 0x72f   : > { %v5751_v16 = vpop.permute.xlu0 %5750  ;;  %v6372_v60 = vsel %vm6353_vm12, %v6339_v8, %v5877_v31 }
 0x730   : > { %5638 = vrot.lane.b32.xlu1 %v5129_v3, %s18392_s28  ;;  %v6340_v52 = vsel %vm6320_vm8, %v6307_v20, %v5751_v16  ;;  %v6212_v16 = vsel %vm2342_vm11, %v15444_v10, %v15721_v57 }
 0x731   : > { %5256 = vrot.lane.b32.xlu0 %v5128_v15, %s18385_s24 }
 0x732   : > { %v15744_v4 = vpop.permute.xlu1 %5496 }
 0x733   : > { %v15746_v44 = vpop.permute.xlu0 %5370 }
 0x734   : > { %6146 = vrot.lane.b32.xlu1 %v5161_v32, %s12322_s16 }
 0x735   : > { %5764 = vrot.lane.b32.xlu0 %v5160_v43, %s18394_s21 }
 0x736   : > { %v6005_v37 = vpop.permute.xlu1 %6004 }
 0x737   : > { %v5879_v38 = vpop.permute.xlu0 %5878  ;;  %v6405_v5 = vsel %vm18354_vm14, %v6372_v60, %v6005_v37 }
 0x738   : > { %5384 = vrot.lane.b32.xlu1 %v5160_v43, %s18388_s26  ;;  %v6373_v9 = vsel %vm6353_vm12, %v6340_v52, %v5879_v38  ;;  %v5163_v43 = vld [vmem:[#allocation3 + $0x172] sm:$0xff] }
 0x739   : > { %5258 = vrot.lane.b32.xlu0 %v5129_v3, %s18385_s24 }
 0x73a   : > { %v5625_v53 = vpop.permute.xlu1 %5624 }
 0x73b   : > { %v15760_v51 = vpop.f32.mrb[36].mxu0  ;;  %v15762_v58 = vpop.permute.xlu0 %5498 }
 0x73c   : > { %5892 = vrot.lane.b32.xlu1 %v15764_v30, %s18395_s22  ;;  %v15769_v46 = vpop.f32.mrb[37].mxu0 }
 0x73d   : > { %5766 = vrot.lane.b32.xlu0 %v5161_v32, %s18394_s21 }
 0x73e   : > { %v6133_v28 = vpop.permute.xlu1 %6132 }
 0x73f   : > { %v6438_v36 = vsel %vm6419_vm7, %v6405_v5, %v6133_v28  ;;  %v6007_v35 = vpop.permute.xlu0 %6006  ;;  %v6213_v5 = vsel %vm2342_vm11, %v15469_v29, %v15738_v61  ;;  %v5101_v61 = vld [vmem:[#allocation3 + $0x188] sm:$0xff] }
 0x740   : > { %5512 = vrot.lane.b32.xlu1 %v15764_v30, %s18390_s2  ;;  %11750 = vmatprep.mubr.msk.f32.mxu0 %vm6468_vm10, %v6438_v36  ;;  %v6406_v13 = vsel %vm18354_vm14, %v6373_v9, %v6007_v35  ;;  %v6245_v28 = vsel %vm4184_vm0, %v6213_v5, %v15746_v44 }
 0x741   : > { %5386 = vrot.lane.b32.xlu0 %v5161_v32, %s18388_s26  ;;  %v6244_v32 = vsel %vm4184_vm0, %v6212_v16, %v15736_v40  ;;  %v6277_v36 = vsel %vm4250_vm2, %v6245_v28, %v15762_v58 }
 0x742   : > { %v5627_v55 = vpop.permute.xlu1 %5626  ;;  %v6276_v37 = vsel %vm4250_vm2, %v6244_v32, %v15744_v4 }
 0x743   : > { %v15787_v54 = vpop.permute.xlu0 %5244  ;;  %v6308_v41 = vsel %vm18353_vm5, %v6276_v37, %v5625_v53  ;;  %v6309_v39 = vsel %vm18353_vm5, %v6277_v36, %v5627_v55  ;;  %v5135_v37 = vld [vmem:[#allocation3 + $0x1a1] sm:$0xff] }
 0x744   : > { %6020 = vrot.lane.b32.xlu1 %v5130_v50, %s18351_s20  ;;  %v6214_v16 = vsel %vm2342_vm11, %v15506_v12, %v15787_v54 }
 0x745   : > { %5894 = vrot.lane.b32.xlu0 %v15791_v23, %s18395_s22 }
 0x746   : > { %v6135_v27 = vpop.permute.xlu1 %6134 }
 0x747   : > { %v6439_v25 = vsel %vm6419_vm7, %v6406_v13, %v6135_v27  ;;  %v5753_v1 = vpop.permute.xlu0 %5752  ;;  %v5164_v13 = vld [vmem:[#allocation3 + $0x182] sm:$0xff] }
 0x748   : > { %5640 = vrot.lane.b32.xlu1 %v5130_v50, %s18392_s28  ;;  %11751 = vmatmul.mubr.msk.f32.gmra.mrb[50].mxu0 %vm6468_vm10, %v6439_v25  ;;  %v6341_v10 = vsel %vm6320_vm8, %v6308_v41, %v5753_v1  ;;  %v5133_v27 = vld [vmem:[#allocation3 + $0x189] sm:$0xff] }
 0x749   : > { %5514 = vrot.lane.b32.xlu0 %v15791_v23, %s18390_s2 }
 0x74a   : > { %v15802_v63 = vpop.permute.xlu1 %5372 }
 0x74b   : > { %v15804_v15 = vpop.permute.xlu0 %5246  ;;  %v6246_v32 = vsel %vm4184_vm0, %v6214_v16, %v15802_v63 }
 0x74c   : > { %6148 = vrot.lane.b32.xlu1 %v5162_v26, %s12322_s16 }
 0x74d   : > { %6022 = vrot.lane.b32.xlu0 %v5131_v7, %s18351_s20 }
 0x74e   : > { %v5881_v59 = vpop.permute.xlu1 %5880 }
 0x74f   : > { %v5755_v21 = vpop.permute.xlu0 %5754  ;;  %v6374_v40 = vsel %vm6353_vm12, %v6341_v10, %v5881_v59  ;;  %v5071_v59 = vld [vmem:[#allocation3 + $0x18a] sm:$0xff]  ;;  %v5134_v10 = vld [vmem:[#allocation3 + $0x199] sm:$0xff] }
 0x750   : > { %5642 = vrot.lane.b32.xlu1 %v5131_v7, %s18392_s28  ;;  %v6342_v29 = vsel %vm6320_vm8, %v6309_v39, %v5755_v21  ;;  %v5103_v21 = vld [vmem:[#allocation3 + $0x1a0] sm:$0xff] }
 0x751   : > { %5260 = vrot.lane.b32.xlu0 %v5130_v50, %s18385_s24 }
 0x752   : > { %v15810_v19 = vpop.permute.xlu1 %5500 }
 0x753   : > { %v15812_v48 = vpop.permute.xlu0 %5374  ;;  %v6278_v41 = vsel %vm4250_vm2, %v6246_v32, %v15810_v19 }
 0x754   : > { %6150 = vrot.lane.b32.xlu1 %v5163_v43, %s12322_s16 }
 0x755   : > { %5768 = vrot.lane.b32.xlu0 %v5162_v26, %s18394_s21 }
 0x756   : > { %v6009_v3 = vpop.permute.xlu1 %6008 }
 0x757   : > { %v5883_v31 = vpop.permute.xlu0 %5882  ;;  %v6407_v4 = vsel %vm18354_vm14, %v6374_v40, %v6009_v3  ;;  %v5102_v3 = vld [vmem:[#allocation3 + $0x198] sm:$0xff]  ;;  %v15892_v40 = vld [vmem:[%s18289_s6] ss:$0 sm:$0xff] }
 0x758   : > { %5388 = vrot.lane.b32.xlu1 %v5162_v26, %s18388_s26  ;;  %v6375_v20 = vsel %vm6353_vm12, %v6342_v29, %v5883_v31  ;;  %v6632_v36 = vadd.f32 %v15892_v40, %v15637_v34  ;;  %v6215_v29 = vsel %vm2342_vm11, %v15531_v18, %v15804_v15  ;;  %v6647_v34 = vadd.f32 %v15694_v11, %v15892_v40 }
 0x759   : > { %5262 = vrot.lane.b32.xlu0 %v5131_v7, %s18385_s24  ;;  %v6642_v18 = vadd.f32 %v15892_v40, %v15703_v24 }
 0x75a   : > { %v15825_v38 = vpop.permute.xlu1 %5628 }
 0x75b   : > { %v15828_v56 = vpop.f32.mrb[38].mxu0  ;;  %v15830_v22 = vpop.permute.xlu0 %5502  ;;  %v6310_v12 = vsel %vm18353_vm5, %v6278_v41, %v15825_v38  ;;  %v5166_v38 = vld [vmem:[#allocation3 + $0x19a] sm:$0xff] }
 0x75c   : > { %5896 = vrot.lane.b32.xlu1 %v5100_v47, %s18395_s22  ;;  %v15834_v57 = vpop.f32.mrb[39].mxu0 }
 0x75d   : > { %5770 = vrot.lane.b32.xlu0 %v5163_v43, %s18394_s21 }
 0x75e   : > { %v6137_v8 = vpop.permute.xlu1 %6136 }
 0x75f   : > { %v6440_v53 = vsel %vm6419_vm7, %v6407_v4, %v6137_v8  ;;  %v6011_v60 = vpop.permute.xlu0 %6010 }
 0x760   : > { %5516 = vrot.lane.b32.xlu1 %v5100_v47, %s18390_s2  ;;  %11753 = vmatprep.mubr.msk.f32.mxu0 %vm6468_vm10, %v6440_v53  ;;  %v6408_v44 = vsel %vm18354_vm14, %v6375_v20, %v6011_v60  ;;  %v5167_v53 = vld [vmem:[#allocation3 + $0x1a2] sm:$0xff]  ;;  %v6637_v60 = vadd.f32 %v15628_v14, %v15892_v40  ;;  %v6247_v14 = vsel %vm4184_vm0, %v6215_v29, %v15812_v48 }
 0x761   : > { %5390 = vrot.lane.b32.xlu0 %v5163_v43, %s18388_s26  ;;  %v6279_v20 = vsel %vm4250_vm2, %v6247_v14, %v15830_v22  ;;  %v6793_v22 = vmax.f32 %v6647_v34, 0.0  ;;  %s12325_s26 = smov 72  }
 0x762   : > { %v15850_v35 = vpop.permute.xlu1 %5630 }
 0x763   : > { %v15853_v6 = vpop.permute.xlu0 %5248  ;;  %v6311_v15 = vsel %vm18353_vm5, %v6279_v20, %v15850_v35  ;;  %v6652_v35 = vadd.f32 %v15892_v40, %v15769_v46 }
 0x764   : > { %6024 = vrot.lane.b32.xlu1 %v5132_v17, %s18351_s20 }
 0x765   : > { %5898 = vrot.lane.b32.xlu0 %v5101_v61, %s18395_s22 }
 0x766   : > { %v6139_v50 = vpop.permute.xlu1 %6138 }
 0x767   : > { %v6441_v58 = vsel %vm6419_vm7, %v6408_v44, %v6139_v50  ;;  %v5757_v52 = vpop.permute.xlu0 %5756  ;;  %v6790_v50 = vmax.f32 %v6632_v36, 0.0 }
 0x768   : > { %5644 = vrot.lane.b32.xlu1 %v5132_v17, %s18392_s28  ;;  %11754 = vmatmul.mubr.msk.f32.gmra.mrb[52].mxu0 %vm6468_vm10, %v6441_v58  ;;  %v6343_v63 = vsel %vm6320_vm8, %v6310_v12, %v5757_v52  ;;  %v6657_v52 = vadd.f32 %v15760_v51, %v15892_v40  ;;  %v6667_v51 = vadd.f32 %v15828_v56, %v15892_v40 }
 0x769   : > { %5518 = vrot.lane.b32.xlu0 %v5101_v61, %s18390_s2  ;;  %v6791_v61 = vmax.f32 %v6637_v60, 0.0 }
 0x76a   : > { %v15864_v55 = vpop.permute.xlu1 %5376 }
 0x76b   : > { %v15866_v9 = vpop.permute.xlu0 %5250 }
 0x76c   : > { %6152 = vrot.lane.b32.xlu1 %v5164_v13, %s12322_s16 }
 0x76d   : > { %6026 = vrot.lane.b32.xlu0 %v5133_v27, %s18351_s20 }
 0x76e   : > { %v5885_v25 = vpop.permute.xlu1 %5884 }
 0x76f   : > { %v5759_v1 = vpop.permute.xlu0 %5758  ;;  %v6376_v19 = vsel %vm6353_vm12, %v6343_v63, %v5885_v25 }
 0x770   : > { %5772 = vrot.lane.b32.xlu1 %v5164_v13, %s18394_s21  ;;  %v6344_v48 = vsel %vm6320_vm8, %v6311_v15, %v5759_v1 }
 0x771   : > { %5646 = vrot.lane.b32.xlu0 %v5133_v27, %s18392_s28  ;;  %v6792_v27 = vmax.f32 %v6642_v18, 0.0  ;;  %s12330_s28 = smov 42  }
 0x772   : > { %v15872_v26 = vpop.permute.xlu1 %5504 }
 0x773   : > { %v15874_v7 = vpop.permute.xlu0 %5378 }
 0x774   : > { %5774 = vrot.lane.b32.xlu1 %v5071_v59, %s18394_s21 }
 0x775   : > { %6154 = vrot.lane.b32.xlu0 %v5071_v59, %s12322_s16  ;;  %v6795_v59 = vmax.f32 %v6657_v52, 0.0 }
 0x776   : > { %v6013_v43 = vpop.permute.xlu1 %6012 }
 0x777   : > { %v5887_v31 = vpop.permute.xlu0 %5886  ;;  %v6409_v5 = vsel %vm18354_vm14, %v6376_v19, %v6013_v43  ;;  %v6794_v43 = vmax.f32 %v6652_v35, 0.0 }
 0x778   : > { %5902 = vrot.lane.b32.xlu1 %v5103_v21, %s18395_s22  ;;  %v6377_v11 = vsel %vm6353_vm12, %v6344_v48, %v5887_v31  ;;  %v6797_v31 = vmax.f32 %v6667_v51, 0.0 }
 0x779   : > { %5900 = vrot.lane.b32.xlu0 %v5102_v3, %s18395_s22  ;;  %v6662_v3 = vadd.f32 %v15892_v40, %v15834_v57 }
 0x77a   : > { %v15887_v47 = vpop.permute.xlu1 %5632 }
 0x77b   : > { %v11737_v54 = vpop.f32.mrb[40].mxu0  ;;  %v15896_v4 = vpop.permute.xlu0 %5506 }
 0x77c   : > { %6030 = vrot.lane.b32.xlu1 %v5135_v37, %s18351_s20  ;;  %v6671_v8 = vpop.f32.mrb[41].mxu0  ;;  %v6677_v16 = vadd.f32 %v11737_v54, %v15892_v40  ;;  %v6796_v37 = vmax.f32 %v6662_v3, 0.0 }
 0x77d   : > { %6028 = vrot.lane.b32.xlu0 %v5134_v10, %s18351_s20  ;;  %v6672_v41 = vadd.f32 %v15892_v40, %v6671_v8  ;;  %v6216_v8 = vsel %vm2342_vm11, %v15568_v49, %v15853_v6  ;;  %s12327_s20 = smov 96  }
 0x77e   : > { %v6141_v28 = vpop.permute.xlu1 %6140  ;;  %v6799_v10 = vmax.f32 %v6677_v16, 0.0 }
 0x77f   : > { %v6442_v39 = vsel %vm6419_vm7, %v6409_v5, %v6141_v28  ;;  %v6015_v17 = vpop.permute.xlu0 %6014  ;;  %v6798_v12 = vmax.f32 %v6672_v41, 0.0 }
 0x780   : > { %6158 = vrot.lane.b32.xlu1 %v5167_v53, %s12322_s16  ;;  %11756 = vmatprep.mubr.msk.f32.mxu0 %vm6468_vm10, %v6442_v39  ;;  %v6410_v13 = vsel %vm18354_vm14, %v6377_v11, %v6015_v17  ;;  %v6248_v53 = vsel %vm4184_vm0, %v6216_v8, %v15864_v55 }
 0x781   : > { %6156 = vrot.lane.b32.xlu0 %v5166_v38, %s12322_s16  ;;  %v6280_v60 = vsel %vm4250_vm2, %v6248_v53, %v15872_v26  ;;  %s12329_s16 = smov 30  }
 0x782   : > { %v15920_v44 = vpop.permute.xlu1 %5634  ;;  %v6312_v28 = vsel %vm18353_vm5, %v6280_v60, %v15887_v47  ;;  %v6217_v47 = vsel %vm2342_vm11, %v15593_v42, %v15866_v9 }
 0x783   : > { %v15926_v58 = vpop.permute.xlu0 %5252 }
 0x784   : > { %6856 = vrot.lane.b32.xlu1 %v6791_v61, %s18385_s24  ;;  %v6218_v51 = vsel %vm2342_vm11, %v15632_v45, %v15926_v58 }
 0x785   : > { %6854 = vrot.lane.b32.xlu0 %v6790_v50, %s18385_s24  ;;  %v6249_v50 = vsel %vm4184_vm0, %v6217_v47, %v15874_v7 }
 0x786   : > { %v6143_v24 = vpop.permute.xlu1 %6142  ;;  %v6281_v18 = vsel %vm4250_vm2, %v6249_v50, %v15896_v4 }
 0x787   : > { %v6443_v25 = vsel %vm6419_vm7, %v6410_v13, %v6143_v24  ;;  %v5761_v1 = vpop.permute.xlu0 %5760  ;;  %v6313_v48 = vsel %vm18353_vm5, %v6281_v18, %v15920_v44 }
 0x788   : > { %6860 = vrot.lane.b32.xlu1 %v6793_v22, %s18385_s24  ;;  %11757 = vmatmul.mubr.msk.f32.gmra.mrb[54].mxu0 %vm6468_vm10, %v6443_v25  ;;  %v6345_v39 = vsel %vm6320_vm8, %v6312_v28, %v5761_v1 }
 0x789   : > { %6858 = vrot.lane.b32.xlu0 %v6792_v27, %s18385_s24 }
 0x78a   : > { %v15943_v21 = vpop.permute.xlu1 %5380 }
 0x78b   : > { %v15947_v46 = vpop.permute.xlu0 %5254 }
 0x78c   : > { %6864 = vrot.lane.b32.xlu1 %v6795_v59, %s18385_s24  ;;  %v6219_v53 = vsel %vm2342_vm11, %v15659_v62, %v15947_v46 }
 0x78d   : > { %6862 = vrot.lane.b32.xlu0 %v6794_v43, %s18385_s24  ;;  %v6250_v43 = vsel %vm4184_vm0, %v6218_v51, %v15943_v21 }
 0x78e   : > { %v5889_v32 = vpop.permute.xlu1 %5888 }
 0x78f   : > { %v5763_v56 = vpop.permute.xlu0 %5762  ;;  %v6378_v14 = vsel %vm6353_vm12, %v6345_v39, %v5889_v32 }
 0x790   : > { %6868 = vrot.lane.b32.xlu1 %v6797_v31, %s18385_s24  ;;  %v6346_v22 = vsel %vm6320_vm8, %v6313_v48, %v5763_v56 }
 0x791   : > { %6866 = vrot.lane.b32.xlu0 %v6796_v37, %s18385_s24 }
 0x792   : > { %v5509_v57 = vpop.permute.xlu1 %5508 }
 0x793   : > { %v15955_v63 = vpop.permute.xlu0 %5382  ;;  %v6282_v3 = vsel %vm4250_vm2, %v6250_v43, %v5509_v57 }
 0x794   : > { %6872 = vrot.lane.b32.xlu1 %v6799_v10, %s18385_s24  ;;  %v6251_v60 = vsel %vm4184_vm0, %v6219_v53, %v15955_v63 }
 0x795   : > { %6870 = vrot.lane.b32.xlu0 %v6798_v12, %s18385_s24 }
 0x796   : > { %v6017_v19 = vpop.permute.xlu1 %6016 }
 0x797   : > { %v5891_v54 = vpop.permute.xlu0 %5890  ;;  %v6411_v6 = vsel %vm18354_vm14, %v6378_v14, %v6017_v19 }
 0x798   : > { %v6379_v42 = vsel %vm6353_vm12, %v6346_v22, %v5891_v54 }
 0x79a   : > { %v5637_v5 = vpop.permute.xlu1 %5636 }
 0x79b   : > { %v11740_v38 = vpop.f32.mrb[42].mxu0  ;;  %v5511_v36 = vpop.permute.xlu0 %5510  ;;  %v6314_v16 = vsel %vm18353_vm5, %v6282_v3, %v5637_v5 }
 0x79c   : > { %v6687_v17 = vadd.f32 %v11740_v38, %v15892_v40  ;;  %v6681_v29 = vpop.f32.mrb[43].mxu0  ;;  %v6283_v5 = vsel %vm4250_vm2, %v6251_v60, %v5511_v36 }
 0x79d   : > { %v6682_v49 = vadd.f32 %v15892_v40, %v6681_v29 }
 0x79e   : > { %v6801_v55 = vmax.f32 %v6687_v17, 0.0  ;;  %v6145_v61 = vpop.permute.xlu1 %6144 }
 0x79f   : > { %v6800_v26 = vmax.f32 %v6682_v49, 0.0  ;;  %v6444_v34 = vsel %vm6419_vm7, %v6411_v6, %v6145_v61  ;;  %v6019_v20 = vpop.permute.xlu0 %6018 }
 0x7a0   : > { %6876 = vrot.lane.b32.xlu1 %v6801_v55, %s18385_s24  ;;  %11759 = vmatprep.mubr.msk.f32.mxu0 %vm6468_vm10, %v6444_v34  ;;  %v6412_v9 = vsel %vm18354_vm14, %v6379_v42, %v6019_v20 }
 0x7a1   : > { %6874 = vrot.lane.b32.xlu0 %v6800_v26, %s18385_s24 }
 0x7a2   : > { %v5639_v15 = vpop.permute.xlu1 %5638 }
 0x7a3   : > { %v5257_v11 = vpop.permute.xlu0 %5256  ;;  %v6315_v38 = vsel %vm18353_vm5, %v6283_v5, %v5639_v15 }
 0x7a4   : > { %v6220_v47 = vsel %vm2342_vm11, %v15698_v33, %v5257_v11 }
 0x7a6   : > { %v6147_v52 = vpop.permute.xlu1 %6146 }
 0x7a7   : > { %v6445_v13 = vsel %vm6419_vm7, %v6412_v9, %v6147_v52  ;;  %v5765_v7 = vpop.permute.xlu0 %5764 }
 0x7a8   : > { %11760 = vmatmul.mubr.msk.f32.gmra.mrb[56].mxu0 %vm6468_vm10, %v6445_v13  ;;  %v6347_v41 = vsel %vm6320_vm8, %v6314_v16, %v5765_v7 }
 0x7aa   : > { %v5385_v24 = vpop.permute.xlu1 %5384 }
 0x7ab   : > { %v15991_v27 = vpop.permute.xlu0 %5258  ;;  %v6252_v50 = vsel %vm4184_vm0, %v6220_v47, %v5385_v24 }
 0x7ae   : > { %v5893_v4 = vpop.permute.xlu1 %5892 }
 0x7af   : > { %v5767_v35 = vpop.permute.xlu0 %5766  ;;  %v6380_v12 = vsel %vm6353_vm12, %v6347_v41, %v5893_v4 }
 0x7b0   : > { %v6348_v17 = vsel %vm6320_vm8, %v6315_v38, %v5767_v35 }
 0x7b2   : > { %v5513_v25 = vpop.permute.xlu1 %5512 }
 0x7b3   : > { %v15993_v44 = vpop.permute.xlu0 %5386  ;;  %v6284_v18 = vsel %vm4250_vm2, %v6252_v50, %v5513_v25 }
 0x7b6   : > { %v6021_v1 = vpop.permute.xlu1 %6020 }
 0x7b7   : > { %v5895_v59 = vpop.permute.xlu0 %5894  ;;  %v6413_v45 = vsel %vm18354_vm14, %v6380_v12, %v6021_v1 }
 0x7b8   : > { %v6381_v29 = vsel %vm6353_vm12, %v6348_v17, %v5895_v59  ;;  %v6221_v59 = vsel %vm2342_vm11, %v15725_v2, %v15991_v27 }
 0x7b9   : > { %v6253_v51 = vsel %vm4184_vm0, %v6221_v59, %v15993_v44 }
 0x7ba   : > { %v5641_v31 = vpop.permute.xlu1 %5640 }
 0x7bb   : > { %v11743_v32 = vpop.f32.mrb[44].mxu0  ;;  %v5515_v37 = vpop.permute.xlu0 %5514  ;;  %v6316_v48 = vsel %vm18353_vm5, %v6284_v18, %v5641_v31 }
 0x7bc   : > { %v6697_v56 = vadd.f32 %v11743_v32, %v15892_v40  ;;  %v6691_v10 = vpop.f32.mrb[45].mxu0  ;;  %v6285_v3 = vsel %vm4250_vm2, %v6253_v51, %v5515_v37 }
 0x7bd   : > { %v6692_v19 = vadd.f32 %v15892_v40, %v6691_v10 }
 0x7be   : > { %v6803_v58 = vmax.f32 %v6697_v56, 0.0  ;;  %v6149_v21 = vpop.permute.xlu1 %6148 }
 0x7bf   : > { %v6802_v54 = vmax.f32 %v6692_v19, 0.0  ;;  %v6446_v57 = vsel %vm6419_vm7, %v6413_v45, %v6149_v21  ;;  %v6023_v8 = vpop.permute.xlu0 %6022 }
 0x7c0   : > { %6880 = vrot.lane.b32.xlu1 %v6803_v58, %s18385_s24  ;;  %11762 = vmatprep.mubr.msk.f32.mxu0 %vm6468_vm10, %v6446_v57  ;;  %v6414_v62 = vsel %vm18354_vm14, %v6381_v29, %v6023_v8 }
 0x7c1   : > { %6878 = vrot.lane.b32.xlu0 %v6802_v54, %s18385_s24 }
 0x7c2   : > { %v5643_v28 = vpop.permute.xlu1 %5642 }
 0x7c3   : > { %v5261_v39 = vpop.permute.xlu0 %5260  ;;  %v6317_v16 = vsel %vm18353_vm5, %v6285_v3, %v5643_v28 }
 0x7c4   : > { %v6222_v37 = vsel %vm2342_vm11, %v15764_v30, %v5261_v39 }
 0x7c6   : > { %v6151_v46 = vpop.permute.xlu1 %6150 }
 0x7c7   : > { %v6447_v14 = vsel %vm6419_vm7, %v6414_v62, %v6151_v46  ;;  %v5769_v49 = vpop.permute.xlu0 %5768 }
 0x7c8   : > { %11763 = vmatmul.mubr.msk.f32.gmra.mrb[58].mxu0 %vm6468_vm10, %v6447_v14  ;;  %v6349_v9 = vsel %vm6320_vm8, %v6316_v48, %v5769_v49 }
 0x7ca   : > { %v5389_v63 = vpop.permute.xlu1 %5388 }
 0x7cb   : > { %v5263_v6 = vpop.permute.xlu0 %5262  ;;  %v6254_v19 = vsel %vm4184_vm0, %v6222_v37, %v5389_v63 }
 0x7cc   : > { %v6223_v45 = vsel %vm2342_vm11, %v15791_v23, %v5263_v6  ;;  %vm6950_vm11 = vcmask 97344  }
 0x7ce   : > { %v5897_v55 = vpop.permute.xlu1 %5896 }
 0x7cf   : > { %v5771_v36 = vpop.permute.xlu0 %5770  ;;  %v6382_v7 = vsel %vm6353_vm12, %v6349_v9, %v5897_v55 }
 0x7d0   : > { %v6350_v32 = vsel %vm6320_vm8, %v6317_v16, %v5771_v36 }
 0x7d2   : > { %v5517_v61 = vpop.permute.xlu1 %5516 }
 0x7d3   : > { %v5391_v26 = vpop.permute.xlu0 %5390  ;;  %v6286_v21 = vsel %vm4250_vm2, %v6254_v19, %v5517_v61 }
 0x7d4   : > { %v6255_v54 = vsel %vm4184_vm0, %v6223_v45, %v5391_v26  ;;  %vm12050_vm0 = vmpackc.low %vm4458_vm15, %vm12311_vm3  ;;  %vm8423_vm15 = vcmask 490496  }
 0x7d6   : > { %v6025_v34 = vpop.permute.xlu1 %6024 }
 0x7d7   : > { %v5899_v20 = vpop.permute.xlu0 %5898  ;;  %v6415_v33 = vsel %vm18354_vm14, %v6382_v7, %v6025_v34 }
 0x7d8   : > { %v6383_v41 = vsel %vm6353_vm12, %v6350_v32, %v5899_v20 }
 0x7da   : > { %v5645_v15 = vpop.permute.xlu1 %5644 }
 0x7db   : > { %v11746_v22 = vpop.f32.mrb[46].mxu0  ;;  %v5519_v42 = vpop.permute.xlu0 %5518  ;;  %v6318_v8 = vsel %vm18353_vm5, %v6286_v21, %v5645_v15 }
 0x7dc   : > { %v6707_v52 = vadd.f32 %v11746_v22, %v15892_v40  ;;  %v6701_v13 = vpop.f32.mrb[47].mxu0  ;;  %v6287_v53 = vsel %vm4250_vm2, %v6255_v54, %v5519_v42 }
 0x7dd   : > { %v6702_v4 = vadd.f32 %v15892_v40, %v6701_v13 }
 0x7de   : > { %v6805_v11 = vmax.f32 %v6707_v52, 0.0  ;;  %v6153_v24 = vpop.permute.xlu1 %6152 }
 0x7df   : > { %v6804_v35 = vmax.f32 %v6702_v4, 0.0  ;;  %v6448_v25 = vsel %vm6419_vm7, %v6415_v33, %v6153_v24  ;;  %v6027_v1 = vpop.permute.xlu0 %6026 }
 0x7e0   : > { %6884 = vrot.lane.b32.xlu1 %v6805_v11, %s18385_s24  ;;  %11765 = vmatprep.mubr.msk.f32.mxu0 %vm6468_vm10, %v6448_v25  ;;  %v6416_v10 = vsel %vm18354_vm14, %v6383_v41, %v6027_v1 }
 0x7e1   : > { %6882 = vrot.lane.b32.xlu0 %v6804_v35, %s18385_s24 }
 0x7e2   : > { %v5773_v43 = vpop.permute.xlu1 %5772 }
 0x7e3   : > { %v5647_v31 = vpop.permute.xlu0 %5646  ;;  %v6351_v60 = vsel %vm6320_vm8, %v6318_v8, %v5773_v43 }
 0x7e4   : > { %v6319_v5 = vsel %vm18353_vm5, %v6287_v53, %v5647_v31  ;;  %vm712_vm5 = vcmask 113664  }
 0x7e5   : > { %716 = vst.msk [vmem:[#allocation4 + $0x10] sm:$0xff] %vm712_vm5, %v12303_v0  ;;  %713 = vst.msk [vmem:[#allocation4] sm:$0xff] %vm712_vm5, %v12303_v0 }
 0x7e6   : > { %v5775_v56 = vpop.permute.xlu1 %5774  ;;  %718 = vst.msk [vmem:[#allocation4 + $0x20] sm:$0xff] %vm712_vm5, %v12303_v0  ;;  %720 = vst.msk [vmem:[#allocation4 + $0x30] sm:$0xff] %vm712_vm5, %v12303_v0 }
 0x7e7   : > { %v6155_v12 = vpop.permute.xlu0 %6154  ;;  %v6352_v30 = vsel %vm6320_vm8, %v6319_v5, %v5775_v56  ;;  %722 = vst.msk [vmem:[#allocation4 + $0x40] sm:$0xff] %vm712_vm5, %v12303_v0  ;;  %724 = vst.msk [vmem:[#allocation4 + $0x50] sm:$0xff] %vm712_vm5, %v12303_v0 }
 0x7e8   : > { %v6449_v2 = vsel %vm6419_vm7, %v6416_v10, %v6155_v12  ;;  %726 = vst.msk [vmem:[#allocation4 + $0x60] sm:$0xff] %vm712_vm5, %v12303_v0  ;;  %728 = vst.msk [vmem:[#allocation4 + $0x70] sm:$0xff] %vm712_vm5, %v12303_v0 }
 0x7e9   : > { %11766 = vmatmul.mubr.msk.f32.gmra.mrb[60].mxu0 %vm6468_vm10, %v6449_v2  ;;  %730 = vst.msk [vmem:[#allocation4 + $0x80] sm:$0xff] %vm712_vm5, %v12303_v0  ;;  %732 = vst.msk [vmem:[#allocation4 + $0x90] sm:$0xff] %vm712_vm5, %v12303_v0 }
 0x7ea   : > { %v5903_v27 = vpop.permute.xlu1 %5902 }
 0x7eb   : > { %v5901_v44 = vpop.permute.xlu0 %5900  ;;  %v6385_v23 = vsel %vm6353_vm12, %v6352_v30, %v5903_v27 }
 0x7ec   : > { %v6384_v28 = vsel %vm6353_vm12, %v6351_v60, %v5901_v44 }
 0x7ee   : > { %v6031_v58 = vpop.permute.xlu1 %6030 }
 0x7ef   : > { %v6029_v57 = vpop.permute.xlu0 %6028  ;;  %v6418_v29 = vsel %vm18354_vm14, %v6385_v23, %v6031_v58 }
 0x7f0   : > { %v6417_v39 = vsel %vm18354_vm14, %v6384_v28, %v6029_v57  ;;  %vm714_vm14 = vcmask 107520  }
 0x7f1   : > { %717 = vst.msk [vmem:[#allocation4 + $0x18] sm:$0x3] %vm714_vm14, %v12303_v0  ;;  %715 = vst.msk [vmem:[#allocation4 + $0x8] sm:$0x3] %vm714_vm14, %v12303_v0 }
 0x7f2   : > { %v6159_v38 = vpop.permute.xlu1 %6158  ;;  %719 = vst.msk [vmem:[#allocation4 + $0x28] sm:$0x3] %vm714_vm14, %v12303_v0  ;;  %721 = vst.msk [vmem:[#allocation4 + $0x38] sm:$0x3] %vm714_vm14, %v12303_v0 }
 0x7f3   : > { %v6157_v17 = vpop.permute.xlu0 %6156  ;;  %v6451_v46 = vsel %vm6419_vm7, %v6418_v29, %v6159_v38  ;;  %723 = vst.msk [vmem:[#allocation4 + $0x48] sm:$0x3] %vm714_vm14, %v12303_v0  ;;  %725 = vst.msk [vmem:[#allocation4 + $0x58] sm:$0x3] %vm714_vm14, %v12303_v0 }
 0x7f4   : > { %v6450_v62 = vsel %vm6419_vm7, %v6417_v39, %v6157_v17  ;;  %vm18357_vm7 = vcmask 687104   ;;  %727 = vst.msk [vmem:[#allocation4 + $0x68] sm:$0x3] %vm714_vm14, %v12303_v0  ;;  %729 = vst.msk [vmem:[#allocation4 + $0x78] sm:$0x3] %vm714_vm14, %v12303_v0 }
 0x7f5   : > { %11768 = vmatprep.mubr.msk.f32.mxu0 %vm6468_vm10, %v6450_v62  ;;  %731 = vst.msk [vmem:[#allocation4 + $0x88] sm:$0x3] %vm714_vm14, %v12303_v0  ;;  %733 = vst.msk [vmem:[#allocation4 + $0x98] sm:$0x3] %vm714_vm14, %v12303_v0  ;;  %vm9422_vm14 = vcmask 146432  }
 0x7f6   : > { %v6857_v14 = vpop.permute.xlu1 %6856  ;;  %11769 = vmatmul.mubr.msk.f32.gmra.mrb[62].mxu0 %vm6468_vm10, %v6451_v46 }
 0x7f7   : > { %v6855_v49 = vpop.permute.xlu0 %6854  ;;  %6952 = vst.msk [vmem:[#allocation3 + $0x21] sm:$0xff] %vm6950_vm11, %v6857_v14 }
 0x7f8   : > { %6951 = vst.msk [vmem:[#allocation3 + $0x19] sm:$0xff] %vm6950_vm11, %v6855_v49 }
 0x7fa   : > { %v6861_v63 = vpop.permute.xlu1 %6860 }
 0x7fb   : > { %v11749_v6 = vpop.f32.mrb[48].mxu0  ;;  %v6859_v55 = vpop.permute.xlu0 %6858  ;;  %6954 = vst.msk [vmem:[#allocation3 + $0x39] sm:$0xff] %vm6950_vm11, %v6861_v63 }
 0x7fc   : > { %v6717_v36 = vadd.f32 %v11749_v6, %v15892_v40  ;;  %v6711_v61 = vpop.f32.mrb[49].mxu0  ;;  %6953 = vst.msk [vmem:[#allocation3 + $0x31] sm:$0xff] %vm6950_vm11, %v6859_v55 }
 0x7fd   : > { %v6712_v26 = vadd.f32 %v15892_v40, %v6711_v61 }
 0x7fe   : > { %v6807_v34 = vmax.f32 %v6717_v36, 0.0  ;;  %v6865_v20 = vpop.permute.xlu1 %6864 }
 0x7ff   : > { %v6806_v47 = vmax.f32 %v6712_v26, 0.0  ;;  %v6863_v50 = vpop.permute.xlu0 %6862  ;;  %6956 = vst.msk [vmem:[#allocation3 + $0x51] sm:$0xff] %vm6950_vm11, %v6865_v20  ;;  %v7015_v20 = vld [vmem:[#allocation3 + $0x1] sm:$0xff] }
 0x800   : > { %6888 = vrot.lane.b32.xlu1 %v6807_v34, %s18385_s24  ;;  %6955 = vst.msk [vmem:[#allocation3 + $0x49] sm:$0xff] %vm6950_vm11, %v6863_v50  ;;  %v7016_v34 = vld [vmem:[#allocation3 + $0x9] sm:$0xff] }
 0x801   : > { %6886 = vrot.lane.b32.xlu0 %v6806_v47, %s18385_s24 }
 0x802   : > { %v6869_v18 = vpop.permute.xlu1 %6868 }
 0x803   : > { %v6867_v15 = vpop.permute.xlu0 %6866  ;;  %6958 = vst.msk [vmem:[#allocation3 + $0x69] sm:$0xff] %vm6950_vm11, %v6869_v18  ;;  %v7048_v18 = vld [vmem:[#allocation3 + $0xa] sm:$0xff] }
 0x804   : > { %6957 = vst.msk [vmem:[#allocation3 + $0x61] sm:$0xff] %vm6950_vm11, %v6867_v15  ;;  %v7047_v15 = vld [vmem:[#allocation3 + $0x2] sm:$0xff] }
 0x806   : > { %v6873_v48 = vpop.permute.xlu1 %6872 }
 0x807   : > { %v6871_v22 = vpop.permute.xlu0 %6870  ;;  %6960 = vst.msk [vmem:[#allocation3 + $0x81] sm:$0xff] %vm6950_vm11, %v6873_v48  ;;  %v8554_v48 = vld [vmem:[%s18290_s7] sm:$0xff] }
 0x808   : > { %6959 = vst.msk [vmem:[#allocation3 + $0x79] sm:$0xff] %vm6950_vm11, %v6871_v22  ;;  %v8555_v22 = vld [vmem:[%s18290_s7 + $0x8] sm:$0xff] }
 0x812   : > { %v6877_v42 = vpop.permute.xlu1 %6876 }
 0x813   : > { %v6875_v9 = vpop.permute.xlu0 %6874  ;;  %6962 = vst.msk [vmem:[#allocation3 + $0x99] sm:$0xff] %vm6950_vm11, %v6877_v42  ;;  %v16139_v42 = vld [vmem:[#allocation3 + $0x18] sm:$0xff] }
 0x814   : > { %6961 = vst.msk [vmem:[#allocation3 + $0x91] sm:$0xff] %vm6950_vm11, %v6875_v9  ;;  %v12025_v9 = vpack.c.bf16 %v8555_v22, %v8554_v48  ;;  %v16280_v48 = vld [vmem:[#allocation3 + $0x80] sm:$0xff] }
 0x816   : > { %12026 = vmatprep.subr.bf16.mxu1 %v12025_v9 }
 0x817   : > { %12028 = vmatpush3.bf16.msra.mxu1 %v12025_v9 }
 0x81b   : > { %v11752_v52 = vpop.f32.mrb[50].mxu0 }
 0x81c   : > { %v6727_v13 = vadd.f32 %v11752_v52, %v15892_v40  ;;  %v6721_v7 = vpop.f32.mrb[51].mxu0  ;;  %v7017_v52 = vld [vmem:[#allocation3 + $0x19] sm:$0xff] }
 0x81d   : > { %v6722_v4 = vadd.f32 %v15892_v40, %v6721_v7  ;;  %v8557_v7 = vld [vmem:[%s18290_s7 + $0x18] sm:$0xff] }
 0x81e   : > { %v6809_v33 = vmax.f32 %v6727_v13, 0.0  ;;  %v8556_v13 = vld [vmem:[%s18290_s7 + $0x10] sm:$0xff] }
 0x81f   : > { %v6808_v11 = vmax.f32 %v6722_v4, 0.0  ;;  %v12029_v4 = vpack.c.bf16 %v8557_v7, %v8556_v13  ;;  %v7245_v7 = vld [vmem:[#allocation3 + $0x7a] sm:$0xff] }
 0x820   : > { %6892 = vrot.lane.b32.xlu1 %v6809_v33, %s18385_s24  ;;  %v7143_v33 = vld [vmem:[#allocation3 + $0x1a] sm:$0xff] }
 0x821   : > { %6890 = vrot.lane.b32.xlu0 %v6808_v11, %s18385_s24  ;;  %12030 = vmatprep.subr.bf16.mxu1 %v12029_v4  ;;  %v8558_v11 = vld [vmem:[%s18290_s7 + $0x20] sm:$0xff] }
 0x822   : > { %12032 = vmatpush3.bf16.msra.mxu1 %v12029_v4  ;;  %v7214_v4 = vld [vmem:[#allocation3 + $0x81] sm:$0xff] }
 0x832   : > { %v6881_v24 = vpop.permute.xlu1 %6880 }
 0x833   : > { %v6879_v35 = vpop.permute.xlu0 %6878  ;;  %6964 = vst.msk [vmem:[#allocation3 + $0xb1] sm:$0xff] %vm6950_vm11, %v6881_v24  ;;  %v8559_v24 = vld [vmem:[%s18290_s7 + $0x28] sm:$0xff] }
 0x834   : > { %6963 = vst.msk [vmem:[#allocation3 + $0xa9] sm:$0xff] %vm6950_vm11, %v6879_v35  ;;  %v7112_v35 = vld [vmem:[#allocation3 + $0x21] sm:$0xff] }
 0x83b   : > { %v11755_v25 = vpop.f32.mrb[52].mxu0 }
 0x83c   : > { %v6737_v1 = vadd.f32 %v11755_v25, %v15892_v40  ;;  %v6731_v59 = vpop.f32.mrb[53].mxu0  ;;  %v12033_v25 = vpack.c.bf16 %v8559_v24, %v8558_v11 }
 0x83d   : > { %v6732_v51 = vadd.f32 %v15892_v40, %v6731_v59  ;;  %v8561_v59 = vld [vmem:[%s18290_s7 + $0x38] sm:$0xff] }
 0x83e   : > { %v6811_v43 = vmax.f32 %v6737_v1, 0.0  ;;  %12034 = vmatprep.subr.bf16.mxu1 %v12033_v25  ;;  %v8560_v1 = vld [vmem:[%s18290_s7 + $0x30] sm:$0xff] }
 0x83f   : > { %v6810_v3 = vmax.f32 %v6732_v51, 0.0  ;;  %12036 = vmatpush3.bf16.msra.mxu1 %v12033_v25  ;;  %v12037_v51 = vpack.c.bf16 %v8561_v59, %v8560_v1  ;;  %v7246_v25 = vld [vmem:[#allocation3 + $0x82] sm:$0xff] }
 0x840   : > { %6896 = vrot.lane.b32.xlu1 %v6811_v43, %s18385_s24  ;;  %v16167_v43 = vld [vmem:[#allocation3 + $0x30] sm:$0xff]  ;;  %v6983_v1 = vld [vmem:[#allocation3] sm:$0xff] }
 0x841   : > { %6894 = vrot.lane.b32.xlu0 %v6810_v3, %s18385_s24  ;;  %12038 = vmatprep.subr.bf16.mxu1 %v12037_v51  ;;  %v8562_v3 = vld [vmem:[%s18290_s7 + $0x40] sm:$0xff] }
 0x843   : > { %12040 = vmatpush3.bf16.msra.mxu1 %v12037_v51 }
 0x852   : > { %v6885_v31 = vpop.permute.xlu1 %6884 }
 0x853   : > { %v6883_v16 = vpop.permute.xlu0 %6882  ;;  %6966 = vst.msk [vmem:[#allocation3 + $0xc9] sm:$0xff] %vm6950_vm11, %v6885_v31  ;;  %v8563_v31 = vld [vmem:[%s18290_s7 + $0x48] sm:$0xff] }
 0x854   : > { %6965 = vst.msk [vmem:[#allocation3 + $0xc1] sm:$0xff] %vm6950_vm11, %v6883_v16  ;;  %v7144_v16 = vld [vmem:[#allocation3 + $0x22] sm:$0xff] }
 0x85b   : > { %v11758_v32 = vpop.f32.mrb[54].mxu0 }
 0x85c   : > { %v6747_v41 = vadd.f32 %v11758_v32, %v15892_v40  ;;  %v6741_v56 = vpop.f32.mrb[55].mxu0  ;;  %v12041_v32 = vpack.c.bf16 %v8563_v31, %v8562_v3 }
 0x85d   : > { %v6742_v10 = vadd.f32 %v15892_v40, %v6741_v56  ;;  %v8565_v56 = vld [vmem:[%s18290_s7 + $0x58] sm:$0xff] }
 0x85e   : > { %v6813_v12 = vmax.f32 %v6747_v41, 0.0  ;;  %12042 = vmatprep.subr.bf16.mxu1 %v12041_v32  ;;  %v8564_v41 = vld [vmem:[%s18290_s7 + $0x50] sm:$0xff] }
 0x85f   : > { %v6812_v2 = vmax.f32 %v6742_v10, 0.0  ;;  %12044 = vmatpush3.bf16.msra.mxu1 %v12041_v32  ;;  %v12045_v10 = vpack.c.bf16 %v8565_v56, %v8564_v41  ;;  %v6984_v41 = vld [vmem:[#allocation3 + $0x8] sm:$0xff] }
 0x860   : > { %6900 = vrot.lane.b32.xlu1 %v6813_v12, %s18385_s24  ;;  %v7207_v12 = vld [vmem:[#allocation3 + $0x31] sm:$0xff] }
 0x861   : > { %6898 = vrot.lane.b32.xlu0 %v6812_v2, %s18385_s24  ;;  %12046 = vmatprep.subr.bf16.mxu1 %v12045_v10  ;;  %v8566_v2 = vld [vmem:[%s18290_s7 + $0x60] sm:$0xff] }
 0x863   : > { %12048 = vmatpush3.bf16.msra.mxu1 %v12045_v10 }
 0x872   : > { %v6889_v27 = vpop.permute.xlu1 %6888 }
 0x873   : > { %v6887_v44 = vpop.permute.xlu0 %6886  ;;  %6968 = vst.msk [vmem:[#allocation3 + $0xe1] sm:$0xff] %vm6950_vm11, %v6889_v27  ;;  %v8567_v27 = vld [vmem:[%s18290_s7 + $0x68] sm:$0xf] }
 0x874   : > { %6967 = vst.msk [vmem:[#allocation3 + $0xd9] sm:$0xff] %vm6950_vm11, %v6887_v44 }
 0x87b   : > { %v11761_v37 = vpop.f32.mrb[56].mxu0 }
 0x87c   : > { %v6757_v19 = vadd.f32 %v11761_v37, %v15892_v40  ;;  %v6751_v45 = vpop.f32.mrb[57].mxu0  ;;  %v16194_v37 = vld [vmem:[#allocation3 + $0x38] sm:$0xff] }
 0x87d   : > { %v6752_v58 = vadd.f32 %v15892_v40, %v6751_v45 }
 0x87e   : > { %v6815_v21 = vmax.f32 %v6757_v19, 0.0  ;;  %v12049_v19 = vpack.c.bf16 %v8567_v27, %v8566_v2 }
 0x87f   : > { %v6814_v54 = vmax.f32 %v6752_v58, 0.0  ;;  %v7239_v58 = vld [vmem:[#allocation3 + $0x32] sm:$0xff] }
 0x880   : > { %6904 = vrot.lane.b32.xlu1 %v6815_v21, %s18385_s24  ;;  %12051 = vmatprep.subr.msk.bf16.mxu1 %vm12050_vm0, %v12049_v19  ;;  %v7208_v21 = vld [vmem:[#allocation3 + $0x39] sm:$0xff] }
 0x881   : > { %6902 = vrot.lane.b32.xlu0 %v6814_v54, %s18385_s24  ;;  %12054 = vmatpush3.bf16.msk.msra.mxu1 %vm12050_vm0, %v12049_v19  ;;  %v7240_v54 = vld [vmem:[#allocation3 + $0x3a] sm:$0xff]  ;;  %vm8575_vm0 = vcmask 883712  }
 0x892   : > { %v6893_v57 = vpop.permute.xlu1 %6892 }
 0x893   : > { %v6891_v8 = vpop.permute.xlu0 %6890  ;;  %6970 = vst.msk [vmem:[#allocation3 + $0xf9] sm:$0xff] %vm6950_vm11, %v6893_v57  ;;  %v16213_v57 = vld [vmem:[#allocation3 + $0x48] sm:$0xff] }
 0x894   : > { %6969 = vst.msk [vmem:[#allocation3 + $0xf1] sm:$0xff] %vm6950_vm11, %v6891_v8  ;;  %v7209_v8 = vld [vmem:[#allocation3 + $0x49] sm:$0xff] }
 0x89b   : > { %v11764_v53 = vpop.f32.mrb[58].mxu0 }
 0x89c   : > { %v6767_v60 = vadd.f32 %v11764_v53, %v15892_v40  ;;  %v6761_v5 = vpop.f32.mrb[59].mxu0 }
 0x89d   : > { %v6762_v30 = vadd.f32 %v15892_v40, %v6761_v5 }
 0x89e   : > { %v6817_v28 = vmax.f32 %v6767_v60, 0.0  ;;  %v16222_v60 = vld [vmem:[#allocation3 + $0x50] sm:$0xff] }
 0x89f   : > { %v6816_v38 = vmax.f32 %v6762_v30, 0.0  ;;  %v7241_v30 = vld [vmem:[#allocation3 + $0x4a] sm:$0xff] }
 0x8a0   : > { %6908 = vrot.lane.b32.xlu1 %v6817_v28, %s18385_s24  ;;  %v7210_v28 = vld [vmem:[#allocation3 + $0x51] sm:$0xff] }
 0x8a1   : > { %6906 = vrot.lane.b32.xlu0 %v6816_v38, %s18385_s24  ;;  %v7242_v38 = vld [vmem:[#allocation3 + $0x52] sm:$0xff] }
 0x8b2   : > { %v6897_v23 = vpop.permute.xlu1 %6896 }
 0x8b3   : > { %v6895_v39 = vpop.permute.xlu0 %6894  ;;  %6972 = vst.msk [vmem:[#allocation3 + $0x111] sm:$0xff] %vm6950_vm11, %v6897_v23  ;;  %v16239_v23 = vld [vmem:[#allocation3 + $0x60] sm:$0xff] }
 0x8b4   : > { %6971 = vst.msk [vmem:[#allocation3 + $0x109] sm:$0xff] %vm6950_vm11, %v6895_v39  ;;  %v7211_v39 = vld [vmem:[#allocation3 + $0x61] sm:$0xff] }
 0x8bc   : > { %v11767_v17 = vpop.f32.mrb[60].mxu0 }
 0x8bd   : > { %v6777_v29 = vadd.f32 %v11767_v17, %v15892_v40  ;;  %v6771_v62 = vpop.f32.mrb[61].mxu0  ;;  %v16248_v17 = vld [vmem:[#allocation3 + $0x68] sm:$0xff] }
 0x8be   : > { %v6772_v46 = vadd.f32 %v15892_v40, %v6771_v62 }
 0x8bf   : > { %v6819_v14 = vmax.f32 %v6777_v29, 0.0 }
 0x8c0   : > { %v6818_v49 = vmax.f32 %v6772_v46, 0.0  ;;  %v7243_v46 = vld [vmem:[#allocation3 + $0x62] sm:$0xff] }
 0x8c1   : > { %6912 = vrot.lane.b32.xlu1 %v6819_v14, %s18385_s24  ;;  %v7212_v14 = vld [vmem:[#allocation3 + $0x69] sm:$0xff] }
 0x8c2   : > { %6910 = vrot.lane.b32.xlu0 %v6818_v49, %s18385_s24 }
 0x8c9   : > { %v11770_v63 = vpop.f32.mrb[62].mxu0 }
 0x8ca   : > { %v6787_v6 = vadd.f32 %v11770_v63, %v15892_v40  ;;  %v6781_v55 = vpop.f32.mrb[63].mxu0 }
 0x8cb   : > { %v6782_v36 = vadd.f32 %v15892_v40, %v6781_v55  ;;  %v16129_v40 = vld [vmem:[#allocation3 + $0x20] sm:$0xff] }
 0x8cc   : > { %v6821_v61 = vmax.f32 %v6787_v6, 0.0  ;;  %v7244_v6 = vld [vmem:[#allocation3 + $0x6a] sm:$0xff] }
 0x8cd   : > { %v6820_v26 = vmax.f32 %v6782_v36, 0.0 }
 0x8ce   : > { %6916 = vrot.lane.b32.xlu1 %v6821_v61, %s18385_s24 }
 0x8cf   : > { %6914 = vrot.lane.b32.xlu0 %v6820_v26, %s18385_s24  ;;  %s18355_s24 = smov 84  }
 0x8d2   : > { %v6901_v47 = vpop.permute.xlu1 %6900  ;;  %7305 = vrot.lane.b32.xlu1 %v7016_v34, %s18387_s0  ;;  %v16269_v34 = vld [vmem:[#allocation3 + $0x78] sm:$0xff] }
 0x8d3   : > { %7303 = vrot.lane.b32.xlu0 %v7015_v20, %s18387_s0  ;;  %v6899_v50 = vpop.permute.xlu0 %6898  ;;  %6974 = vst.msk [vmem:[#allocation3 + $0x129] sm:$0xff] %vm6950_vm11, %v6901_v47 }
 0x8d4   : > { %6973 = vst.msk [vmem:[#allocation3 + $0x121] sm:$0xff] %vm6950_vm11, %v6899_v50 }
 0x8d6   : > { %7433 = vrot.lane.b32.xlu1 %v7048_v18, %s18390_s2 }
 0x8d7   : > { %7431 = vrot.lane.b32.xlu0 %v7047_v15, %s18390_s2  ;;  %v7213_v15 = vld [vmem:[#allocation3 + $0x79] sm:$0xff] }
 0x8da   : > { %7561 = vrot.lane.b32.xlu1 %v16129_v40, %s12323_s19 }
 0x8db   : > { %7559 = vrot.lane.b32.xlu0 %v16139_v42, %s12323_s19 }
 0x8de   : > { %7307 = vrot.lane.b32.xlu1 %v7017_v52, %s18387_s0 }
 0x8df   : > { %7687 = vrot.lane.b32.xlu0 %v7017_v52, %s18395_s22 }
 0x8e2   : > { %7815 = vrot.lane.b32.xlu1 %v7143_v33, %s12324_s27 }
 0x8e3   : > { %7689 = vrot.lane.b32.xlu0 %v7112_v35, %s18395_s22 }
 0x8e6   : > { %7435 = vrot.lane.b32.xlu1 %v7143_v33, %s18390_s2 }
 0x8e7   : > { %7309 = vrot.lane.b32.xlu0 %v7112_v35, %s18387_s0 }
 0x8ea   : > { %7943 = vrot.lane.b32.xlu1 %v16167_v43, %s12325_s26 }
 0x8eb   : > { %7817 = vrot.lane.b32.xlu0 %v7144_v16, %s12324_s27 }
 0x8ee   : > { %7563 = vrot.lane.b32.xlu1 %v16167_v43, %s12323_s19 }
 0x8ef   : > { %7437 = vrot.lane.b32.xlu0 %v7144_v16, %s18390_s2 }
 0x8f2   : > { %v6905_v44 = vpop.permute.xlu1 %6904  ;;  %8071 = vrot.lane.b32.xlu1 %v7207_v12, %s18355_s24 }
 0x8f3   : > { %6976 = vst.msk [vmem:[#allocation3 + $0x141] sm:$0xff] %vm6950_vm11, %v6905_v44  ;;  %7945 = vrot.lane.b32.xlu0 %v16194_v37, %s12325_s26  ;;  %v6903_v45 = vpop.permute.xlu0 %6902 }
 0x8f4   : > { %6975 = vst.msk [vmem:[#allocation3 + $0x139] sm:$0xff] %vm6950_vm11, %v6903_v45 }
 0x8f6   : > { %7691 = vrot.lane.b32.xlu1 %v7207_v12, %s18395_s22 }
 0x8f7   : > { %7565 = vrot.lane.b32.xlu0 %v16194_v37, %s12323_s19 }
 0x8fa   : > { %8199 = vrot.lane.b32.xlu1 %v7239_v58, %s12327_s20 }
 0x8fb   : > { %8073 = vrot.lane.b32.xlu0 %v7208_v21, %s18355_s24 }
 0x8fe   : > { %7693 = vrot.lane.b32.xlu1 %v7208_v21, %s18395_s22 }
 0x8ff   : > { %7311 = vrot.lane.b32.xlu0 %v7207_v12, %s18387_s0  ;;  %v16309_v12 = vld [vmem:[#allocation3 + $0x90] sm:$0xff] }
 0x902   : > { %8201 = vrot.lane.b32.xlu1 %v7240_v54, %s12327_s20 }
 0x903   : > { %7819 = vrot.lane.b32.xlu0 %v7239_v58, %s12324_s27 }
 0x906   : > { %7439 = vrot.lane.b32.xlu1 %v7239_v58, %s18390_s2 }
 0x907   : > { %7313 = vrot.lane.b32.xlu0 %v7208_v21, %s18387_s0 }
 0x90a   : > { %7947 = vrot.lane.b32.xlu1 %v16213_v57, %s12325_s26 }
 0x90b   : > { %7821 = vrot.lane.b32.xlu0 %v7240_v54, %s12324_s27 }
 0x90e   : > { %7567 = vrot.lane.b32.xlu1 %v16213_v57, %s12323_s19 }
 0x90f   : > { %7441 = vrot.lane.b32.xlu0 %v7240_v54, %s18390_s2 }
 0x912   : > { %v6909_v53 = vpop.permute.xlu1 %6908  ;;  %8075 = vrot.lane.b32.xlu1 %v7209_v8, %s18355_s24 }
 0x913   : > { %6978 = vst.msk [vmem:[#allocation3 + $0x159] sm:$0xff] %vm6950_vm11, %v6909_v53  ;;  %7949 = vrot.lane.b32.xlu0 %v16222_v60, %s12325_s26  ;;  %v6907_v5 = vpop.permute.xlu0 %6906 }
 0x914   : > { %6977 = vst.msk [vmem:[#allocation3 + $0x151] sm:$0xff] %vm6950_vm11, %v6907_v5 }
 0x916   : > { %7695 = vrot.lane.b32.xlu1 %v7209_v8, %s18395_s22 }
 0x917   : > { %7569 = vrot.lane.b32.xlu0 %v16222_v60, %s12323_s19 }
 0x91a   : > { %8203 = vrot.lane.b32.xlu1 %v7241_v30, %s12327_s20 }
 0x91b   : > { %8077 = vrot.lane.b32.xlu0 %v7210_v28, %s18355_s24 }
 0x91e   : > { %7697 = vrot.lane.b32.xlu1 %v7210_v28, %s18395_s22 }
 0x91f   : > { %7315 = vrot.lane.b32.xlu0 %v7209_v8, %s18387_s0 }
 0x922   : > { %8205 = vrot.lane.b32.xlu1 %v7242_v38, %s12327_s20 }
 0x923   : > { %7823 = vrot.lane.b32.xlu0 %v7241_v30, %s12324_s27 }
 0x926   : > { %7443 = vrot.lane.b32.xlu1 %v7241_v30, %s18390_s2 }
 0x927   : > { %7317 = vrot.lane.b32.xlu0 %v7210_v28, %s18387_s0  ;;  %v7215_v28 = vld [vmem:[#allocation3 + $0x91] sm:$0xff] }
 0x92a   : > { %7951 = vrot.lane.b32.xlu1 %v16239_v23, %s12325_s26 }
 0x92b   : > { %7825 = vrot.lane.b32.xlu0 %v7242_v38, %s12324_s27 }
 0x92e   : > { %7571 = vrot.lane.b32.xlu1 %v16239_v23, %s12323_s19 }
 0x92f   : > { %7445 = vrot.lane.b32.xlu0 %v7242_v38, %s18390_s2 }
 0x932   : > { %8079 = vrot.lane.b32.xlu1 %v7211_v39, %s18355_s24 }
 0x933   : > { %v6913_v29 = vpop.permute.xlu1 %6912  ;;  %7953 = vrot.lane.b32.xlu0 %v16248_v17, %s12325_s26 }
 0x934   : > { %6980 = vst.msk [vmem:[#allocation3 + $0x171] sm:$0xff] %vm6950_vm11, %v6913_v29  ;;  %v6911_v62 = vpop.permute.xlu0 %6910 }
 0x935   : > { %6979 = vst.msk [vmem:[#allocation3 + $0x169] sm:$0xff] %vm6950_vm11, %v6911_v62 }
 0x936   : > { %7699 = vrot.lane.b32.xlu1 %v7211_v39, %s18395_s22 }
 0x937   : > { %7573 = vrot.lane.b32.xlu0 %v16248_v17, %s12323_s19 }
 0x93a   : > { %8207 = vrot.lane.b32.xlu1 %v7243_v46, %s12327_s20 }
 0x93b   : > { %8081 = vrot.lane.b32.xlu0 %v7212_v14, %s18355_s24 }
 0x93e   : > { %7701 = vrot.lane.b32.xlu1 %v7212_v14, %s18395_s22 }
 0x93f   : > { %7319 = vrot.lane.b32.xlu0 %v7211_v39, %s18387_s0  ;;  %v16331_v39 = vld [vmem:[#allocation3 + $0x98] sm:$0xff] }
 0x940   : > { %v6917_v49 = vpop.permute.xlu1 %6916 }
 0x941   : > { %6982 = vst.msk [vmem:[#allocation3 + $0x189] sm:$0xff] %vm6950_vm11, %v6917_v49  ;;  %v6915_v63 = vpop.permute.xlu0 %6914 }
 0x942   : > { %6981 = vst.msk [vmem:[#allocation3 + $0x181] sm:$0xff] %vm6950_vm11, %v6915_v63  ;;  %8209 = vrot.lane.b32.xlu1 %v7244_v6, %s12327_s20  ;;  %vm8521_vm11 = vcmask 785408  }
 0x943   : > { %7827 = vrot.lane.b32.xlu0 %v7243_v46, %s12324_s27 }
 0x944   : > { %v7306_v55 = vpop.permute.xlu1 %7305 }
 0x945   : > { %v7304_v36 = vpop.permute.xlu0 %7303  ;;  %v8296_v44 = vsel %vm656_vm13, %v6984_v41, %v7306_v55  ;;  %v7247_v55 = vld [vmem:[#allocation3 + $0x92] sm:$0xff] }
 0x946   : > { %7447 = vrot.lane.b32.xlu1 %v7243_v46, %s18390_s2  ;;  %v8295_v3 = vsel %vm656_vm13, %v6983_v1, %v7304_v36  ;;  %v7216_v36 = vld [vmem:[#allocation3 + $0x99] sm:$0xff]  ;;  %v16368_v1 = vld [vmem:[#allocation3 + $0xa8] sm:$0xff] }
 0x947   : > { %7321 = vrot.lane.b32.xlu0 %v7212_v14, %s18387_s0 }
 0x948   : > { %v16267_v61 = vpop.permute.xlu1 %7433 }
 0x949   : > { %v7432_v26 = vpop.permute.xlu0 %7431  ;;  %v8328_v54 = vsel %vm4250_vm2, %v8296_v44, %v16267_v61 }
 0x94a   : > { %7955 = vrot.lane.b32.xlu1 %v16269_v34, %s12325_s26  ;;  %v8327_v31 = vsel %vm4250_vm2, %v8295_v3, %v7432_v26 }
 0x94b   : > { %7829 = vrot.lane.b32.xlu0 %v7244_v6, %s12324_s27 }
 0x94c   : > { %v7562_v20 = vpop.permute.xlu1 %7561 }
 0x94d   : > { %v7560_v47 = vpop.permute.xlu0 %7559  ;;  %v8360_v8 = vsel %vm4361_vm6, %v8328_v54, %v7562_v20  ;;  %v7218_v54 = vld [vmem:[#allocation3 + $0xb1] sm:$0xff] }
 0x94e   : > { %7575 = vrot.lane.b32.xlu1 %v16269_v34, %s12323_s19  ;;  %v8359_v16 = vsel %vm4361_vm6, %v8327_v31, %v7560_v47 }
 0x94f   : > { %7449 = vrot.lane.b32.xlu0 %v7244_v6, %s18390_s2 }
 0x950   : > { %v16277_v50 = vpop.permute.xlu1 %7307 }
 0x951   : > { %v7688_v18 = vpop.permute.xlu0 %7687 }
 0x952   : > { %8083 = vrot.lane.b32.xlu1 %v7213_v15, %s18355_s24  ;;  %v8391_v56 = vsel %vm6353_vm12, %v8359_v16, %v7688_v18  ;;  %v7248_v18 = vld [vmem:[#allocation3 + $0x9a] sm:$0xff] }
 0x953   : > { %7957 = vrot.lane.b32.xlu0 %v16280_v48, %s12325_s26 }
 0x954   : > { %v7816_v22 = vpop.permute.xlu1 %7815 }
 0x955   : > { %v7690_v9 = vpop.permute.xlu0 %7689  ;;  %v8424_v2 = vsel %vm8423_vm15, %v8391_v56, %v7816_v22 }
 0x956   : > { %7703 = vrot.lane.b32.xlu1 %v7213_v15, %s18395_s22  ;;  %v8392_v5 = vsel %vm6353_vm12, %v8360_v8, %v7690_v9  ;;  %v8297_v9 = vsel %vm656_vm13, %v16139_v42, %v16277_v50 }
 0x957   : > { %7577 = vrot.lane.b32.xlu0 %v16280_v48, %s12323_s19 }
 0x958   : > { %v16287_v52 = vpop.permute.xlu1 %7435 }
 0x959   : > { %v16289_v13 = vpop.permute.xlu0 %7309 }
 0x95a   : > { %8211 = vrot.lane.b32.xlu1 %v7245_v7, %s12327_s20  ;;  %v8298_v3 = vsel %vm656_vm13, %v16129_v40, %v16289_v13  ;;  %v16393_v13 = vld [vmem:[#allocation3 + $0xb0] sm:$0xff] }
 0x95b   : > { %8085 = vrot.lane.b32.xlu0 %v7214_v4, %s18355_s24 }
 0x95c   : > { %v7944_v33 = vpop.permute.xlu1 %7943 }
 0x95d   : > { %v7818_v11 = vpop.permute.xlu0 %7817  ;;  %v8456_v27 = vsel %vm6468_vm10, %v8424_v2, %v7944_v33  ;;  %v7217_v2 = vld [vmem:[#allocation3 + $0xa9] sm:$0xff] }
 0x95e   : > { %7705 = vrot.lane.b32.xlu1 %v7214_v4, %s18395_s22  ;;  %v8425_v38 = vsel %vm8423_vm15, %v8392_v5, %v7818_v11 }
 0x95f   : > { %7323 = vrot.lane.b32.xlu0 %v7213_v15, %s18387_s0 }
 0x960   : > { %v16295_v24 = vpop.permute.xlu1 %7563 }
 0x961   : > { %v16297_v35 = vpop.permute.xlu0 %7437 }
 0x962   : > { %8213 = vrot.lane.b32.xlu1 %v7246_v25, %s12327_s20  ;;  %v8330_v31 = vsel %vm4250_vm2, %v8298_v3, %v16297_v35  ;;  %v7251_v3 = vld [vmem:[#allocation3 + $0xc2] sm:$0xff] }
 0x963   : > { %7831 = vrot.lane.b32.xlu0 %v7245_v7, %s12324_s27 }
 0x964   : > { %v8072_v59 = vpop.permute.xlu1 %8071 }
 0x965   : > { %v7946_v51 = vpop.permute.xlu0 %7945  ;;  %v8489_v19 = vsel %vm18357_vm7, %v8456_v27, %v8072_v59 }
 0x966   : > { %7451 = vrot.lane.b32.xlu1 %v7245_v7, %s18390_s2  ;;  %v8457_v29 = vsel %vm6468_vm10, %v8425_v38, %v7946_v51  ;;  %v8329_v7 = vsel %vm4250_vm2, %v8297_v9, %v16287_v52  ;;  %v7250_v38 = vld [vmem:[#allocation3 + $0xb2] sm:$0xff] }
 0x967   : > { %7325 = vrot.lane.b32.xlu0 %v7214_v4, %s18387_s0  ;;  %v8361_v4 = vsel %vm4361_vm6, %v8329_v7, %v16295_v24 }
 0x968   : > { %v7692_v32 = vpop.permute.xlu1 %7691 }
 0x969   : > { %v16307_v10 = vpop.permute.xlu0 %7565  ;;  %v8393_v11 = vsel %vm6353_vm12, %v8361_v4, %v7692_v32 }
 0x96a   : > { %7959 = vrot.lane.b32.xlu1 %v16309_v12, %s12325_s26  ;;  %v8362_v16 = vsel %vm4361_vm6, %v8330_v31, %v16307_v10  ;;  %v7220_v31 = vld [vmem:[#allocation3 + $0xc9] sm:$0xff] }
 0x96b   : > { %7833 = vrot.lane.b32.xlu0 %v7246_v25, %s12324_s27 }
 0x96c   : > { %v8200_v45 = vpop.permute.xlu1 %8199 }
 0x96d   : > { %v8522_v58 = vsel %vm8521_vm11, %v8489_v19, %v8200_v45  ;;  %v8074_v21 = vpop.permute.xlu0 %8073 }
 0x96e   : > { %7579 = vrot.lane.b32.xlu1 %v16309_v12, %s12323_s19  ;;  %11799 = vmatprep.mubr.msk.f32.mxu1 %vm8575_vm0, %v8522_v58  ;;  %v8490_v62 = vsel %vm18357_vm7, %v8457_v29, %v8074_v21  ;;  %v7249_v21 = vld [vmem:[#allocation3 + $0xaa] sm:$0xff] }
 0x96f   : > { %7453 = vrot.lane.b32.xlu0 %v7246_v25, %s18390_s2 }
 0x970   : > { %v7694_v53 = vpop.permute.xlu1 %7693 }
 0x971   : > { %v16327_v30 = vpop.permute.xlu0 %7311  ;;  %v8394_v41 = vsel %vm6353_vm12, %v8362_v16, %v7694_v53 }
 0x972   : > { %8087 = vrot.lane.b32.xlu1 %v7215_v28, %s18355_s24 }
 0x973   : > { %7961 = vrot.lane.b32.xlu0 %v16331_v39, %s12325_s26 }
 0x974   : > { %v8202_v46 = vpop.permute.xlu1 %8201 }
 0x975   : > { %v8523_v14 = vsel %vm8521_vm11, %v8490_v62, %v8202_v46  ;;  %v7820_v49 = vpop.permute.xlu0 %7819  ;;  %v8299_v46 = vsel %vm656_vm13, %v16167_v43, %v16327_v30 }
 0x976   : > { %7707 = vrot.lane.b32.xlu1 %v7215_v28, %s18395_s22  ;;  %11800 = vmatmul.mubr.msk.f32.vlgmr.msra.gmra.mrb[32].mxu1 %vm8575_vm0, %v8523_v14  ;;  %v8426_v59 = vsel %vm8423_vm15, %v8393_v11, %v7820_v49 }
 0x977   : > { %7581 = vrot.lane.b32.xlu0 %v16331_v39, %s12323_s19 }
 0x978   : > { %v16342_v63 = vpop.permute.xlu1 %7439 }
 0x979   : > { %v16344_v6 = vpop.permute.xlu0 %7313  ;;  %v8331_v14 = vsel %vm4250_vm2, %v8299_v46, %v16342_v63 }
 0x97a   : > { %8215 = vrot.lane.b32.xlu1 %v7247_v55, %s12327_s20 }
 0x97b   : > { %8089 = vrot.lane.b32.xlu0 %v7216_v36, %s18355_s24 }
 0x97c   : > { %v7948_v61 = vpop.permute.xlu1 %7947 }
 0x97d   : > { %v7822_v26 = vpop.permute.xlu0 %7821  ;;  %v8458_v42 = vsel %vm6468_vm10, %v8426_v59, %v7948_v61  ;;  %v7219_v59 = vld [vmem:[#allocation3 + $0xc1] sm:$0xff] }
 0x97e   : > { %7709 = vrot.lane.b32.xlu1 %v7216_v36, %s18395_s22  ;;  %v8427_v40 = vsel %vm8423_vm15, %v8394_v41, %v7822_v26  ;;  %v16430_v26 = vld [vmem:[#allocation3 + $0xc0] sm:$0xff] }
 0x97f   : > { %7327 = vrot.lane.b32.xlu0 %v7215_v28, %s18387_s0 }
 0x980   : > { %v16350_v20 = vpop.permute.xlu1 %7567 }
 0x981   : > { %v16352_v47 = vpop.permute.xlu0 %7441  ;;  %v8363_v49 = vsel %vm4361_vm6, %v8331_v14, %v16350_v20 }
 0x982   : > { %8217 = vrot.lane.b32.xlu1 %v7248_v18, %s12327_s20 }
 0x983   : > { %7835 = vrot.lane.b32.xlu0 %v7247_v55, %s12324_s27 }
 0x984   : > { %v8076_v15 = vpop.permute.xlu1 %8075 }
 0x985   : > { %v7950_v22 = vpop.permute.xlu0 %7949  ;;  %v8491_v50 = vsel %vm18357_vm7, %v8458_v42, %v8076_v15 }
 0x986   : > { %7455 = vrot.lane.b32.xlu1 %v7247_v55, %s18390_s2  ;;  %v8459_v27 = vsel %vm6468_vm10, %v8427_v40, %v7950_v22  ;;  %v8300_v22 = vsel %vm656_vm13, %v16194_v37, %v16344_v6  ;;  %v16455_v6 = vld [vmem:[#allocation3 + $0xc8] sm:$0xff] }
 0x987   : > { %7329 = vrot.lane.b32.xlu0 %v7216_v36, %s18387_s0  ;;  %v8332_v9 = vsel %vm4250_vm2, %v8300_v22, %v16352_v47  ;;  %v7252_v40 = vld [vmem:[#allocation3 + $0xca] sm:$0xff]  ;;  %v7253_v22 = vld [vmem:[#allocation3 + $0xda] sm:$0xff] }
 0x988   : > { %v7696_v33 = vpop.permute.xlu1 %7695 }
 0x989   : > { %v16366_v25 = vpop.permute.xlu0 %7569  ;;  %v8395_v36 = vsel %vm6353_vm12, %v8363_v49, %v7696_v33 }
 0x98a   : > { %7963 = vrot.lane.b32.xlu1 %v16368_v1, %s12325_s26  ;;  %v8364_v7 = vsel %vm4361_vm6, %v8332_v9, %v16366_v25  ;;  %v7222_v9 = vld [vmem:[#allocation3 + $0xe1] sm:$0xff] }
 0x98b   : > { %7837 = vrot.lane.b32.xlu0 %v7248_v18, %s12324_s27 }
 0x98c   : > { %v8204_v52 = vpop.permute.xlu1 %8203 }
 0x98d   : > { %v8524_v24 = vsel %vm8521_vm11, %v8491_v50, %v8204_v52  ;;  %v8078_v51 = vpop.permute.xlu0 %8077 }
 0x98e   : > { %7583 = vrot.lane.b32.xlu1 %v16368_v1, %s12323_s19  ;;  %11802 = vmatprep.mubr.msk.f32.mxu1 %vm8575_vm0, %v8524_v24  ;;  %v8492_v35 = vsel %vm18357_vm7, %v8459_v27, %v8078_v51 }
 0x98f   : > { %7457 = vrot.lane.b32.xlu0 %v7248_v18, %s18390_s2 }
 0x990   : > { %v7698_v32 = vpop.permute.xlu1 %7697 }
 0x991   : > { %v16389_v56 = vpop.permute.xlu0 %7315  ;;  %v8396_v33 = vsel %vm6353_vm12, %v8364_v7, %v7698_v32 }
 0x992   : > { %8091 = vrot.lane.b32.xlu1 %v7217_v2, %s18355_s24 }
 0x993   : > { %7965 = vrot.lane.b32.xlu0 %v16393_v13, %s12325_s26 }
 0x994   : > { %v8206_v10 = vpop.permute.xlu1 %8205 }
 0x995   : > { %v8525_v44 = vsel %vm8521_vm11, %v8492_v35, %v8206_v10  ;;  %v7824_v19 = vpop.permute.xlu0 %7823  ;;  %v8301_v10 = vsel %vm656_vm13, %v16213_v57, %v16389_v56 }
 0x996   : > { %7711 = vrot.lane.b32.xlu1 %v7217_v2, %s18395_s22  ;;  %11803 = vmatmul.mubr.msk.f32.gmra.mrb[34].mxu1 %vm8575_vm0, %v8525_v44  ;;  %v8428_v18 = vsel %vm8423_vm15, %v8395_v36, %v7824_v19 }
 0x997   : > { %7585 = vrot.lane.b32.xlu0 %v16393_v13, %s12323_s19 }
 0x998   : > { %v16404_v45 = vpop.permute.xlu1 %7443 }
 0x999   : > { %v16406_v58 = vpop.permute.xlu0 %7317  ;;  %v8333_v44 = vsel %vm4250_vm2, %v8301_v10, %v16404_v45 }
 0x99a   : > { %8219 = vrot.lane.b32.xlu1 %v7249_v21, %s12327_s20 }
 0x99b   : > { %8093 = vrot.lane.b32.xlu0 %v7218_v54, %s18355_s24 }
 0x99c   : > { %v7952_v8 = vpop.permute.xlu1 %7951 }
 0x99d   : > { %v7826_v53 = vpop.permute.xlu0 %7825  ;;  %v8460_v43 = vsel %vm6468_vm10, %v8428_v18, %v7952_v8  ;;  %v7221_v18 = vld [vmem:[#allocation3 + $0xd9] sm:$0xff] }
 0x99e   : > { %7713 = vrot.lane.b32.xlu1 %v7218_v54, %s18395_s22  ;;  %v8429_v37 = vsel %vm8423_vm15, %v8396_v33, %v7826_v53  ;;  %v16492_v53 = vld [vmem:[#allocation3 + $0xd8] sm:$0xff] }
 0x99f   : > { %7331 = vrot.lane.b32.xlu0 %v7217_v2, %s18387_s0 }
 0x9a0   : > { %v16412_v5 = vpop.permute.xlu1 %7571 }
 0x9a1   : > { %v16414_v28 = vpop.permute.xlu0 %7445  ;;  %v8365_v19 = vsel %vm4361_vm6, %v8333_v44, %v16412_v5 }
 0x9a2   : > { %8221 = vrot.lane.b32.xlu1 %v7250_v38, %s12327_s20 }
 0x9a3   : > { %7839 = vrot.lane.b32.xlu0 %v7249_v21, %s12324_s27 }
 0x9a4   : > { %v8080_v29 = vpop.permute.xlu1 %8079 }
 0x9a5   : > { %v7954_v62 = vpop.permute.xlu0 %7953  ;;  %v8493_v30 = vsel %vm18357_vm7, %v8460_v43, %v8080_v29 }
 0x9a6   : > { %7459 = vrot.lane.b32.xlu1 %v7249_v21, %s18390_s2  ;;  %v8461_v42 = vsel %vm6468_vm10, %v8429_v37, %v7954_v62  ;;  %v8302_v62 = vsel %vm656_vm13, %v16222_v60, %v16406_v58  ;;  %v16517_v58 = vld [vmem:[#allocation3 + $0xe0] sm:$0xff] }
 0x9a7   : > { %7333 = vrot.lane.b32.xlu0 %v7218_v54, %s18387_s0  ;;  %v8334_v46 = vsel %vm4250_vm2, %v8302_v62, %v16414_v28  ;;  %v7254_v37 = vld [vmem:[#allocation3 + $0xe2] sm:$0xff]  ;;  %v7255_v62 = vld [vmem:[#allocation3 + $0xf2] sm:$0xff] }
 0x9a8   : > { %v7700_v55 = vpop.permute.xlu1 %7699 }
 0x9a9   : > { %v16428_v61 = vpop.permute.xlu0 %7573  ;;  %v8397_v54 = vsel %vm6353_vm12, %v8365_v19, %v7700_v55 }
 0x9aa   : > { %7967 = vrot.lane.b32.xlu1 %v16430_v26, %s12325_s26  ;;  %v8366_v14 = vsel %vm4361_vm6, %v8334_v46, %v16428_v61  ;;  %v7224_v46 = vld [vmem:[#allocation3 + $0xf9] sm:$0xff] }
 0x9ab   : > { %7841 = vrot.lane.b32.xlu0 %v7250_v38, %s12324_s27 }
 0x9ac   : > { %v8208_v63 = vpop.permute.xlu1 %8207 }
 0x9ad   : > { %v8526_v20 = vsel %vm8521_vm11, %v8493_v30, %v8208_v63  ;;  %v8082_v15 = vpop.permute.xlu0 %8081 }
 0x9ae   : > { %7587 = vrot.lane.b32.xlu1 %v16430_v26, %s12323_s19  ;;  %11805 = vmatprep.mubr.msk.f32.mxu1 %vm8575_vm0, %v8526_v20  ;;  %v8494_v47 = vsel %vm18357_vm7, %v8461_v42, %v8082_v15 }
 0x9af   : > { %7461 = vrot.lane.b32.xlu0 %v7250_v38, %s18390_s2 }
 0x9b0   : > { %v7702_v4 = vpop.permute.xlu1 %7701 }
 0x9b1   : > { %v16451_v11 = vpop.permute.xlu0 %7319  ;;  %v8398_v55 = vsel %vm6353_vm12, %v8366_v14, %v7702_v4 }
 0x9b2   : > { %8095 = vrot.lane.b32.xlu1 %v7219_v59, %s18355_s24 }
 0x9b3   : > { %7969 = vrot.lane.b32.xlu0 %v16455_v6, %s12325_s26 }
 0x9b4   : > { %v8210_v25 = vpop.permute.xlu1 %8209 }
 0x9b5   : > { %v8527_v50 = vsel %vm8521_vm11, %v8494_v47, %v8210_v25  ;;  %v7828_v52 = vpop.permute.xlu0 %7827  ;;  %v8303_v25 = vsel %vm656_vm13, %v16239_v23, %v16451_v11 }
 0x9b6   : > { %7715 = vrot.lane.b32.xlu1 %v7219_v59, %s18395_s22  ;;  %11806 = vmatmul.mubr.msk.f32.gmra.mrb[36].mxu1 %vm8575_vm0, %v8527_v50  ;;  %v8430_v38 = vsel %vm8423_vm15, %v8397_v54, %v7828_v52 }
 0x9b7   : > { %7589 = vrot.lane.b32.xlu0 %v16455_v6, %s12323_s19 }
 0x9b8   : > { %v16466_v24 = vpop.permute.xlu1 %7447 }
 0x9b9   : > { %v16468_v51 = vpop.permute.xlu0 %7321  ;;  %v8335_v50 = vsel %vm4250_vm2, %v8303_v25, %v16466_v24 }
 0x9ba   : > { %8223 = vrot.lane.b32.xlu1 %v7251_v3, %s12327_s20 }
 0x9bb   : > { %8097 = vrot.lane.b32.xlu0 %v7220_v31, %s18355_s24 }
 0x9bc   : > { %v7956_v16 = vpop.permute.xlu1 %7955 }
 0x9bd   : > { %v7830_v32 = vpop.permute.xlu0 %7829  ;;  %v8462_v57 = vsel %vm6468_vm10, %v8430_v38, %v7956_v16  ;;  %v16583_v38 = vld [vmem:[#allocation3 + $0xf8] sm:$0xff] }
 0x9be   : > { %7717 = vrot.lane.b32.xlu1 %v7220_v31, %s18395_s22  ;;  %v8431_v60 = vsel %vm8423_vm15, %v8398_v55, %v7830_v32  ;;  %v16556_v32 = vld [vmem:[#allocation3 + $0xf0] sm:$0xff] }
 0x9bf   : > { %7335 = vrot.lane.b32.xlu0 %v7219_v59, %s18387_s0 }
 0x9c0   : > { %v16474_v41 = vpop.permute.xlu1 %7575 }
 0x9c1   : > { %v16476_v2 = vpop.permute.xlu0 %7449  ;;  %v8367_v52 = vsel %vm4361_vm6, %v8335_v50, %v16474_v41 }
 0x9c2   : > { %8225 = vrot.lane.b32.xlu1 %v7252_v40, %s12327_s20 }
 0x9c3   : > { %7843 = vrot.lane.b32.xlu0 %v7251_v3, %s12324_s27 }
 0x9c4   : > { %v8084_v27 = vpop.permute.xlu1 %8083 }
 0x9c5   : > { %v7958_v35 = vpop.permute.xlu0 %7957  ;;  %v8495_v56 = vsel %vm18357_vm7, %v8462_v57, %v8084_v27 }
 0x9c6   : > { %7463 = vrot.lane.b32.xlu1 %v7251_v3, %s18390_s2  ;;  %v8463_v43 = vsel %vm6468_vm10, %v8431_v60, %v7958_v35  ;;  %v8304_v35 = vsel %vm656_vm13, %v16248_v17, %v16468_v51  ;;  %v7223_v17 = vld [vmem:[#allocation3 + $0xf1] sm:$0xff]  ;;  %v7256_v60 = vld [vmem:[#allocation3 + $0xfa] sm:$0xff] }
 0x9c7   : > { %7337 = vrot.lane.b32.xlu0 %v7220_v31, %s18387_s0  ;;  %v8336_v10 = vsel %vm4250_vm2, %v8304_v35, %v16476_v2  ;;  %v7257_v35 = vld [vmem:[#allocation3 + $0x10a] sm:$0xff] }
 0x9c8   : > { %v7704_v21 = vpop.permute.xlu1 %7703 }
 0x9c9   : > { %v16490_v8 = vpop.permute.xlu0 %7577  ;;  %v8399_v31 = vsel %vm6353_vm12, %v8367_v52, %v7704_v21 }
 0x9ca   : > { %7971 = vrot.lane.b32.xlu1 %v16492_v53, %s12325_s26  ;;  %v8368_v44 = vsel %vm4361_vm6, %v8336_v10, %v16490_v8  ;;  %v7226_v10 = vld [vmem:[#allocation3 + $0x111] sm:$0xff] }
 0x9cb   : > { %7845 = vrot.lane.b32.xlu0 %v7252_v40, %s12324_s27 }
 0x9cc   : > { %v8212_v45 = vpop.permute.xlu1 %8211 }
 0x9cd   : > { %v8528_v5 = vsel %vm8521_vm11, %v8495_v56, %v8212_v45  ;;  %v8086_v29 = vpop.permute.xlu0 %8085 }
 0x9ce   : > { %7591 = vrot.lane.b32.xlu1 %v16492_v53, %s12323_s19  ;;  %11808 = vmatprep.mubr.msk.f32.mxu1 %vm8575_vm0, %v8528_v5  ;;  %v8496_v28 = vsel %vm18357_vm7, %v8463_v43, %v8086_v29 }
 0x9cf   : > { %7465 = vrot.lane.b32.xlu0 %v7252_v40, %s18390_s2 }
 0x9d0   : > { %v7706_v49 = vpop.permute.xlu1 %7705 }
 0x9d1   : > { %v16513_v36 = vpop.permute.xlu0 %7323  ;;  %v8400_v21 = vsel %vm6353_vm12, %v8368_v44, %v7706_v49 }
 0x9d2   : > { %8099 = vrot.lane.b32.xlu1 %v7221_v18, %s18355_s24 }
 0x9d3   : > { %7973 = vrot.lane.b32.xlu0 %v16517_v58, %s12325_s26 }
 0x9d4   : > { %v8214_v61 = vpop.permute.xlu1 %8213 }
 0x9d5   : > { %v8529_v30 = vsel %vm8521_vm11, %v8496_v28, %v8214_v61  ;;  %v7832_v63 = vpop.permute.xlu0 %7831  ;;  %v8305_v61 = vsel %vm656_vm13, %v16269_v34, %v16513_v36 }
 0x9d6   : > { %7719 = vrot.lane.b32.xlu1 %v7221_v18, %s18395_s22  ;;  %11809 = vmatmul.mubr.msk.f32.gmra.mrb[38].mxu1 %vm8575_vm0, %v8529_v30  ;;  %v8432_v23 = vsel %vm8423_vm15, %v8399_v31, %v7832_v63 }
 0x9d7   : > { %7593 = vrot.lane.b32.xlu0 %v16517_v58, %s12323_s19 }
 0x9d8   : > { %v16528_v20 = vpop.permute.xlu1 %7451 }
 0x9d9   : > { %v16530_v15 = vpop.permute.xlu0 %7325  ;;  %v8337_v30 = vsel %vm4250_vm2, %v8305_v61, %v16528_v20 }
 0x9da   : > { %8227 = vrot.lane.b32.xlu1 %v7253_v22, %s12327_s20 }
 0x9db   : > { %8101 = vrot.lane.b32.xlu0 %v7222_v9, %s18355_s24 }
 0x9dc   : > { %v7960_v7 = vpop.permute.xlu1 %7959 }
 0x9dd   : > { %v7834_v4 = vpop.permute.xlu0 %7833  ;;  %v8464_v11 = vsel %vm6468_vm10, %v8432_v23, %v7960_v7  ;;  %v16687_v23 = vld [vmem:[#allocation3 + $0x110] sm:$0xff] }
 0x9de   : > { %7721 = vrot.lane.b32.xlu1 %v7222_v9, %s18395_s22  ;;  %v8433_v51 = vsel %vm8423_vm15, %v8400_v21, %v7834_v4  ;;  %v16661_v4 = vld [vmem:[#allocation3 + $0x108] sm:$0xff] }
 0x9df   : > { %7339 = vrot.lane.b32.xlu0 %v7221_v18, %s18387_s0 }
 0x9e0   : > { %v16536_v33 = vpop.permute.xlu1 %7579 }
 0x9e1   : > { %v16538_v59 = vpop.permute.xlu0 %7453  ;;  %v8369_v63 = vsel %vm4361_vm6, %v8337_v30, %v16536_v33 }
 0x9e2   : > { %8229 = vrot.lane.b32.xlu1 %v7254_v37, %s12327_s20 }
 0x9e3   : > { %7847 = vrot.lane.b32.xlu0 %v7253_v22, %s12324_s27 }
 0x9e4   : > { %v8088_v42 = vpop.permute.xlu1 %8087 }
 0x9e5   : > { %v7962_v47 = vpop.permute.xlu0 %7961  ;;  %v8497_v24 = vsel %vm18357_vm7, %v8464_v11, %v8088_v42 }
 0x9e6   : > { %7467 = vrot.lane.b32.xlu1 %v7253_v22, %s18390_s2  ;;  %v8465_v2 = vsel %vm6468_vm10, %v8433_v51, %v7962_v47  ;;  %v8306_v47 = vsel %vm656_vm13, %v16280_v48, %v16530_v15  ;;  %v7225_v48 = vld [vmem:[#allocation3 + $0x109] sm:$0xff]  ;;  %v7258_v51 = vld [vmem:[#allocation3 + $0x112] sm:$0xff] }
 0x9e7   : > { %7341 = vrot.lane.b32.xlu0 %v7222_v9, %s18387_s0  ;;  %v8338_v25 = vsel %vm4250_vm2, %v8306_v47, %v16538_v59  ;;  %v7259_v47 = vld [vmem:[#allocation3 + $0x122] sm:$0xff] }
 0x9e8   : > { %v16551_v3 = vpop.permute.xlu1 %7707 }
 0x9e9   : > { %v16554_v16 = vpop.permute.xlu0 %7581  ;;  %v8401_v9 = vsel %vm6353_vm12, %v8369_v63, %v16551_v3 }
 0x9ea   : > { %7975 = vrot.lane.b32.xlu1 %v16556_v32, %s12325_s26  ;;  %v8370_v50 = vsel %vm4361_vm6, %v8338_v25, %v16554_v16  ;;  %v7228_v25 = vld [vmem:[#allocation3 + $0x129] sm:$0xff] }
 0x9eb   : > { %7849 = vrot.lane.b32.xlu0 %v7254_v37, %s12324_s27 }
 0x9ec   : > { %v8216_v41 = vpop.permute.xlu1 %8215 }
 0x9ed   : > { %v8530_v40 = vsel %vm8521_vm11, %v8497_v24, %v8216_v41  ;;  %v8090_v27 = vpop.permute.xlu0 %8089 }
 0x9ee   : > { %7595 = vrot.lane.b32.xlu1 %v16556_v32, %s12323_s19  ;;  %11811 = vmatprep.mubr.msk.f32.mxu1 %vm8575_vm0, %v8530_v40  ;;  %v8498_v8 = vsel %vm18357_vm7, %v8465_v2, %v8090_v27 }
 0x9ef   : > { %7469 = vrot.lane.b32.xlu0 %v7254_v37, %s18390_s2 }
 0x9f0   : > { %v16576_v19 = vpop.permute.xlu1 %7709 }
 0x9f1   : > { %v16579_v54 = vpop.permute.xlu0 %7327  ;;  %v8402_v3 = vsel %vm6353_vm12, %v8370_v50, %v16576_v19 }
 0x9f2   : > { %8103 = vrot.lane.b32.xlu1 %v7223_v17, %s18355_s24 }
 0x9f3   : > { %7977 = vrot.lane.b32.xlu0 %v16583_v38, %s12325_s26 }
 0x9f4   : > { %v8218_v57 = vpop.permute.xlu1 %8217 }
 0x9f5   : > { %v8531_v56 = vsel %vm8521_vm11, %v8498_v8, %v8218_v57  ;;  %v7836_v45 = vpop.permute.xlu0 %7835  ;;  %v8307_v57 = vsel %vm656_vm13, %v16309_v12, %v16579_v54 }
 0x9f6   : > { %7723 = vrot.lane.b32.xlu1 %v7223_v17, %s18395_s22  ;;  %11812 = vmatmul.mubr.msk.f32.gmra.mrb[40].mxu1 %vm8575_vm0, %v8531_v56  ;;  %v8434_v34 = vsel %vm8423_vm15, %v8401_v9, %v7836_v45 }
 0x9f7   : > { %7597 = vrot.lane.b32.xlu0 %v16583_v38, %s12323_s19 }
 0x9f8   : > { %v16594_v5 = vpop.permute.xlu1 %7455 }
 0x9f9   : > { %v16596_v29 = vpop.permute.xlu0 %7329  ;;  %v8339_v56 = vsel %vm4250_vm2, %v8307_v57, %v16594_v5 }
 0x9fa   : > { %8231 = vrot.lane.b32.xlu1 %v7255_v62, %s12327_s20 }
 0x9fb   : > { %8105 = vrot.lane.b32.xlu0 %v7224_v46, %s18355_s24 }
 0x9fc   : > { %v7964_v14 = vpop.permute.xlu1 %7963 }
 0x9fd   : > { %v7838_v49 = vpop.permute.xlu0 %7837  ;;  %v8466_v36 = vsel %vm6468_vm10, %v8434_v34, %v7964_v14  ;;  %v16751_v34 = vld [vmem:[#allocation3 + $0x128] sm:$0xff] }
 0x9fe   : > { %7725 = vrot.lane.b32.xlu1 %v7224_v46, %s18395_s22  ;;  %v8435_v15 = vsel %vm8423_vm15, %v8402_v3, %v7838_v49  ;;  %v16724_v49 = vld [vmem:[#allocation3 + $0x120] sm:$0xff] }
 0x9ff   : > { %7343 = vrot.lane.b32.xlu0 %v7223_v17, %s18387_s0 }
 0xa00   : > { %v16602_v55 = vpop.permute.xlu1 %7583 }
 0xa01   : > { %v16604_v18 = vpop.permute.xlu0 %7457  ;;  %v8371_v45 = vsel %vm4361_vm6, %v8339_v56, %v16602_v55 }
 0xa02   : > { %8233 = vrot.lane.b32.xlu1 %v7256_v60, %s12327_s20 }
 0xa03   : > { %7851 = vrot.lane.b32.xlu0 %v7255_v62, %s12324_s27 }
 0xa04   : > { %v8092_v43 = vpop.permute.xlu1 %8091 }
 0xa05   : > { %v7966_v28 = vpop.permute.xlu0 %7965  ;;  %v8499_v20 = vsel %vm18357_vm7, %v8466_v36, %v8092_v43 }
 0xa06   : > { %7471 = vrot.lane.b32.xlu1 %v7255_v62, %s18390_s2  ;;  %v8467_v59 = vsel %vm6468_vm10, %v8435_v15, %v7966_v28  ;;  %v8308_v28 = vsel %vm656_vm13, %v16331_v39, %v16596_v29  ;;  %v7227_v39 = vld [vmem:[#allocation3 + $0x121] sm:$0xff]  ;;  %v7260_v15 = vld [vmem:[#allocation3 + $0x12a] sm:$0xff] }
 0xa07   : > { %7345 = vrot.lane.b32.xlu0 %v7224_v46, %s18387_s0  ;;  %v8340_v61 = vsel %vm4250_vm2, %v8308_v28, %v16604_v18 }
 0xa08   : > { %v7712_v22 = vpop.permute.xlu1 %7711 }
 0xa09   : > { %v16659_v7 = vpop.permute.xlu0 %7585  ;;  %v8403_v46 = vsel %vm6353_vm12, %v8371_v45, %v7712_v22 }
 0xa0a   : > { %7979 = vrot.lane.b32.xlu1 %v16661_v4, %s12325_s26  ;;  %v8372_v30 = vsel %vm4361_vm6, %v8340_v61, %v16659_v7 }
 0xa0b   : > { %7853 = vrot.lane.b32.xlu0 %v7256_v60, %s12324_s27 }
 0xa0c   : > { %v8220_v33 = vpop.permute.xlu1 %8219 }
 0xa0d   : > { %v8532_v37 = vsel %vm8521_vm11, %v8499_v20, %v8220_v33  ;;  %v8094_v42 = vpop.permute.xlu0 %8093 }
 0xa0e   : > { %7599 = vrot.lane.b32.xlu1 %v16661_v4, %s12323_s19  ;;  %11814 = vmatprep.mubr.msk.f32.mxu1 %vm8575_vm0, %v8532_v37  ;;  %v8500_v16 = vsel %vm18357_vm7, %v8467_v59, %v8094_v42 }
 0xa0f   : > { %7473 = vrot.lane.b32.xlu0 %v7256_v60, %s18390_s2 }
 0xa10   : > { %v7714_v52 = vpop.permute.xlu1 %7713 }
 0xa11   : > { %v16683_v31 = vpop.permute.xlu0 %7331  ;;  %v8404_v22 = vsel %vm6353_vm12, %v8372_v30, %v7714_v52 }
 0xa12   : > { %8107 = vrot.lane.b32.xlu1 %v7225_v48, %s18355_s24 }
 0xa13   : > { %7981 = vrot.lane.b32.xlu0 %v16687_v23, %s12325_s26 }
 0xa14   : > { %v8222_v11 = vpop.permute.xlu1 %8221 }
 0xa15   : > { %v8533_v24 = vsel %vm8521_vm11, %v8500_v16, %v8222_v11  ;;  %v7840_v41 = vpop.permute.xlu0 %7839  ;;  %v8309_v11 = vsel %vm656_vm13, %v16368_v1, %v16683_v31 }
 0xa16   : > { %7727 = vrot.lane.b32.xlu1 %v7225_v48, %s18395_s22  ;;  %11815 = vmatmul.mubr.msk.f32.gmra.mrb[42].mxu1 %vm8575_vm0, %v8533_v24  ;;  %v8436_v60 = vsel %vm8423_vm15, %v8403_v46, %v7840_v41  ;;  %v16786_v41 = vld [vmem:[%s18291_s8] ss:$0 sm:$0xff] }
 0xa17   : > { %7601 = vrot.lane.b32.xlu0 %v16687_v23, %s12323_s19 }
 0xa18   : > { %v16698_v40 = vpop.permute.xlu1 %7459 }
 0xa19   : > { %v16700_v27 = vpop.permute.xlu0 %7333  ;;  %v8341_v24 = vsel %vm4250_vm2, %v8309_v11, %v16698_v40 }
 0xa1a   : > { %8235 = vrot.lane.b32.xlu1 %v7257_v35, %s12327_s20 }
 0xa1b   : > { %8109 = vrot.lane.b32.xlu0 %v7226_v10, %s18355_s24 }
 0xa1c   : > { %v7968_v44 = vpop.permute.xlu1 %7967 }
 0xa1d   : > { %v7842_v19 = vpop.permute.xlu0 %7841  ;;  %v8468_v12 = vsel %vm6468_vm10, %v8436_v60, %v7968_v44 }
 0xa1e   : > { %7729 = vrot.lane.b32.xlu1 %v7226_v10, %s18395_s22  ;;  %v8437_v29 = vsel %vm8423_vm15, %v8404_v22, %v7842_v19  ;;  %v16795_v19 = vld [vmem:[#allocation3 + $0x138] sm:$0xff] }
 0xa1f   : > { %7347 = vrot.lane.b32.xlu0 %v7225_v48, %s18387_s0 }
 0xa20   : > { %v16706_v21 = vpop.permute.xlu1 %7587 }
 0xa21   : > { %v16708_v17 = vpop.permute.xlu0 %7461 }
 0xa22   : > { %8237 = vrot.lane.b32.xlu1 %v7258_v51, %s12327_s20 }
 0xa23   : > { %7855 = vrot.lane.b32.xlu0 %v7257_v35, %s12324_s27 }
 0xa24   : > { %v8096_v2 = vpop.permute.xlu1 %8095 }
 0xa25   : > { %v7970_v8 = vpop.permute.xlu0 %7969  ;;  %v8501_v54 = vsel %vm18357_vm7, %v8468_v12, %v8096_v2  ;;  %v8310_v12 = vsel %vm656_vm13, %v16393_v13, %v16700_v27 }
 0xa26   : > { %7475 = vrot.lane.b32.xlu1 %v7257_v35, %s18390_s2  ;;  %v8469_v18 = vsel %vm6468_vm10, %v8437_v29, %v7970_v8  ;;  %v8373_v35 = vsel %vm4361_vm6, %v8341_v24, %v16706_v21 }
 0xa27   : > { %7349 = vrot.lane.b32.xlu0 %v7226_v10, %s18387_s0 }
 0xa28   : > { %v7716_v62 = vpop.permute.xlu1 %7715 }
 0xa29   : > { %v16722_v14 = vpop.permute.xlu0 %7589  ;;  %v8405_v44 = vsel %vm6353_vm12, %v8373_v35, %v7716_v62 }
 0xa2a   : > { %7983 = vrot.lane.b32.xlu1 %v16724_v49, %s12325_s26 }
 0xa2b   : > { %7857 = vrot.lane.b32.xlu0 %v7258_v51, %s12324_s27 }
 0xa2c   : > { %v8224_v5 = vpop.permute.xlu1 %8223 }
 0xa2d   : > { %v8534_v55 = vsel %vm8521_vm11, %v8501_v54, %v8224_v5  ;;  %v8098_v43 = vpop.permute.xlu0 %8097  ;;  %v8342_v54 = vsel %vm4250_vm2, %v8310_v12, %v16708_v17  ;;  %v16827_v17 = vld [vmem:[#allocation3 + $0x140] sm:$0xff] }
 0xa2e   : > { %7603 = vrot.lane.b32.xlu1 %v16724_v49, %s12323_s19  ;;  %11817 = vmatprep.mubr.msk.f32.mxu1 %vm8575_vm0, %v8534_v55  ;;  %v8502_v7 = vsel %vm18357_vm7, %v8469_v18, %v8098_v43  ;;  %v8374_v5 = vsel %vm4361_vm6, %v8342_v54, %v16722_v14  ;;  %v7229_v43 = vld [vmem:[#allocation3 + $0x139] sm:$0xff] }
 0xa2f   : > { %7477 = vrot.lane.b32.xlu0 %v7258_v51, %s18390_s2  ;;  %v7261_v18 = vld [vmem:[#allocation3 + $0x13a] sm:$0xff] }
 0xa30   : > { %v16744_v63 = vpop.permute.xlu1 %7717 }
 0xa31   : > { %v16747_v9 = vpop.permute.xlu0 %7335  ;;  %v8406_v13 = vsel %vm6353_vm12, %v8374_v5, %v16744_v63 }
 0xa32   : > { %8111 = vrot.lane.b32.xlu1 %v7227_v39, %s18355_s24 }
 0xa33   : > { %7985 = vrot.lane.b32.xlu0 %v16751_v34, %s12325_s26 }
 0xa34   : > { %v8226_v36 = vpop.permute.xlu1 %8225 }
 0xa35   : > { %v8535_v20 = vsel %vm8521_vm11, %v8502_v7, %v8226_v36  ;;  %v7844_v33 = vpop.permute.xlu0 %7843  ;;  %v7230_v7 = vld [vmem:[#allocation3 + $0x141] sm:$0xff] }
 0xa36   : > { %7731 = vrot.lane.b32.xlu1 %v7227_v39, %s18395_s22  ;;  %11818 = vmatmul.mubr.msk.f32.gmra.mrb[44].mxu1 %vm8575_vm0, %v8535_v20  ;;  %v8438_v40 = vsel %vm8423_vm15, %v8405_v44, %v7844_v33 }
 0xa37   : > { %7605 = vrot.lane.b32.xlu0 %v16751_v34, %s12323_s19 }
 0xa38   : > { %v16762_v37 = vpop.permute.xlu1 %7463 }
 0xa39   : > { %v16764_v42 = vpop.permute.xlu0 %7337 }
 0xa3a   : > { %8239 = vrot.lane.b32.xlu1 %v7259_v47, %s12327_s20 }
 0xa3b   : > { %8113 = vrot.lane.b32.xlu0 %v7228_v25, %s18355_s24 }
 0xa3c   : > { %v7972_v50 = vpop.permute.xlu1 %7971 }
 0xa3d   : > { %v7846_v52 = vpop.permute.xlu0 %7845  ;;  %v8470_v8 = vsel %vm6468_vm10, %v8438_v40, %v7972_v50 }
 0xa3e   : > { %7733 = vrot.lane.b32.xlu1 %v7228_v25, %s18395_s22  ;;  %v8439_v28 = vsel %vm8423_vm15, %v8406_v13, %v7846_v52 }
 0xa3f   : > { %7351 = vrot.lane.b32.xlu0 %v7227_v39, %s18387_s0 }
 0xa40   : > { %v16770_v3 = vpop.permute.xlu1 %7591 }
 0xa41   : > { %v16772_v48 = vpop.permute.xlu0 %7465 }
 0xa42   : > { %8241 = vrot.lane.b32.xlu1 %v7260_v15, %s12327_s20 }
 0xa43   : > { %7859 = vrot.lane.b32.xlu0 %v7259_v47, %s12324_s27 }
 0xa44   : > { %v8100_v59 = vpop.permute.xlu1 %8099 }
 0xa45   : > { %v7974_v16 = vpop.permute.xlu0 %7973  ;;  %v8503_v57 = vsel %vm18357_vm7, %v8470_v8, %v8100_v59 }
 0xa46   : > { %7479 = vrot.lane.b32.xlu1 %v7259_v47, %s18390_s2  ;;  %v8471_v61 = vsel %vm6468_vm10, %v8439_v28, %v7974_v16 }
 0xa47   : > { %7353 = vrot.lane.b32.xlu0 %v7228_v25, %s18387_s0  ;;  %v7262_v25 = vld [vmem:[#allocation3 + $0x142] sm:$0xff] }
 0xa48   : > { %v16790_v10 = vpop.permute.xlu1 %7719 }
 0xa49   : > { %v11801_v1 = vpop.f32.mrb[32].mxu1  ;;  %v16793_v31 = vpop.permute.xlu0 %7593 }
 0xa4a   : > { %v8747_v51 = vadd.f32 %v11801_v1, %v16786_v41  ;;  %7987 = vrot.lane.b32.xlu1 %v16795_v19, %s12325_s26  ;;  %v8741_v2 = vpop.f32.mrb[33].mxu1  ;;  %v16867_v1 = vld [vmem:[#allocation3 + $0x150] sm:$0xff] }
 0xa4b   : > { %v8742_v21 = vadd.f32 %v16786_v41, %v8741_v2  ;;  %7861 = vrot.lane.b32.xlu0 %v7260_v15, %s12324_s27 }
 0xa4c   : > { %v8901_v56 = vmax.f32 %v8747_v51, 0.0  ;;  %v8228_v45 = vpop.permute.xlu1 %8227 }
 0xa4d   : > { %v8900_v62 = vmax.f32 %v8742_v21, 0.0  ;;  %v8536_v46 = vsel %vm8521_vm11, %v8503_v57, %v8228_v45  ;;  %v8102_v60 = vpop.permute.xlu0 %8101 }
 0xa4e   : > { %8933 = vst.msk [vmem:[#allocation5 + $0x8] sm:$0xff] %vm2276_vm9, %v8901_v56  ;;  %7607 = vrot.lane.b32.xlu1 %v16795_v19, %s12323_s19  ;;  %11820 = vmatprep.mubr.msk.f32.mxu1 %vm8575_vm0, %v8536_v46  ;;  %v8504_v14 = vsel %vm18357_vm7, %v8471_v61, %v8102_v60  ;;  %v8312_v56 = vsel %vm656_vm13, %v16455_v6, %v16764_v42  ;;  %v7231_v60 = vld [vmem:[#allocation3 + $0x151] sm:$0xff] }
 0xa4f   : > { %8932 = vst.msk [vmem:[#allocation5] sm:$0xff] %vm2276_vm9, %v8900_v62  ;;  %7481 = vrot.lane.b32.xlu0 %v7260_v15, %s18390_s2  ;;  %v8311_v15 = vsel %vm656_vm13, %v16430_v26, %v16747_v9  ;;  %v8344_v45 = vsel %vm4250_vm2, %v8312_v56, %v16772_v48  ;;  %v16899_v48 = vld [vmem:[#allocation3 + $0x158] sm:$0xff] }
 0xa50   : > { %v16819_v55 = vpop.permute.xlu1 %7721  ;;  %v8343_v59 = vsel %vm4250_vm2, %v8311_v15, %v16762_v37  ;;  %v8376_v62 = vsel %vm4361_vm6, %v8344_v45, %v16793_v31 }
 0xa51   : > { %v16823_v27 = vpop.permute.xlu0 %7339  ;;  %v8375_v16 = vsel %vm4361_vm6, %v8343_v59, %v16770_v3  ;;  %v8408_v6 = vsel %vm6353_vm12, %v8376_v62, %v16819_v55 }
 0xa52   : > { %8115 = vrot.lane.b32.xlu1 %v7229_v43, %s18355_s24  ;;  %v8407_v24 = vsel %vm6353_vm12, %v8375_v16, %v16790_v10  ;;  %v7264_v16 = vld [vmem:[#allocation3 + $0x15a] sm:$0xff] }
 0xa53   : > { %7989 = vrot.lane.b32.xlu0 %v16827_v17, %s12325_s26 }
 0xa54   : > { %v8230_v30 = vpop.permute.xlu1 %8229 }
 0xa55   : > { %v8537_v22 = vsel %vm8521_vm11, %v8504_v14, %v8230_v30  ;;  %v7848_v63 = vpop.permute.xlu0 %7847  ;;  %v8965_v13 = vld [vmem:[#allocation5 + $0x8] sm:$0xff] }
 0xa56   : > { %7735 = vrot.lane.b32.xlu1 %v7229_v43, %s18395_s22  ;;  %11821 = vmatmul.mubr.msk.f32.gmra.mrb[46].mxu1 %vm8575_vm0, %v8537_v22  ;;  %v8440_v26 = vsel %vm8423_vm15, %v8407_v24, %v7848_v63  ;;  %v8964_v61 = vld [vmem:[#allocation5] sm:$0xff] }
 0xa57   : > { %7609 = vrot.lane.b32.xlu0 %v16827_v17, %s12323_s19 }
 0xa58   : > { %v16838_v39 = vpop.permute.xlu1 %7467 }
 0xa59   : > { %v16840_v29 = vpop.permute.xlu0 %7341 }
 0xa5a   : > { %8243 = vrot.lane.b32.xlu1 %v7261_v18, %s12327_s20 }
 0xa5b   : > { %8117 = vrot.lane.b32.xlu0 %v7230_v7, %s18355_s24 }
 0xa5c   : > { %v7976_v36 = vpop.permute.xlu1 %7975 }
 0xa5d   : > { %v7850_v20 = vpop.permute.xlu0 %7849  ;;  %v8472_v3 = vsel %vm6468_vm10, %v8440_v26, %v7976_v36  ;;  %v7232_v36 = vld [vmem:[#allocation3 + $0x159] sm:$0xff] }
 0xa5e   : > { %7737 = vrot.lane.b32.xlu1 %v7230_v7, %s18395_s22  ;;  %v8441_v12 = vsel %vm8423_vm15, %v8408_v6, %v7850_v20 }
 0xa5f   : > { %7355 = vrot.lane.b32.xlu0 %v7229_v43, %s18387_s0 }
 0xa60   : > { %v16846_v33 = vpop.permute.xlu1 %7595 }
 0xa61   : > { %v16848_v47 = vpop.permute.xlu0 %7469 }
 0xa62   : > { %8245 = vrot.lane.b32.xlu1 %v7262_v25, %s12327_s20 }
 0xa63   : > { %7863 = vrot.lane.b32.xlu0 %v7261_v18, %s12324_s27 }
 0xa64   : > { %v8104_v50 = vpop.permute.xlu1 %8103 }
 0xa65   : > { %v7978_v52 = vpop.permute.xlu0 %7977  ;;  %v8505_v10 = vsel %vm18357_vm7, %v8472_v3, %v8104_v50 }
 0xa66   : > { %7483 = vrot.lane.b32.xlu1 %v7261_v18, %s18390_s2  ;;  %v8473_v54 = vsel %vm6468_vm10, %v8441_v12, %v7978_v52 }
 0xa67   : > { %7357 = vrot.lane.b32.xlu0 %v7230_v7, %s18387_s0  ;;  %v7263_v7 = vld [vmem:[#allocation3 + $0x152] sm:$0xff] }
 0xa68   : > { %v16861_v11 = vpop.permute.xlu1 %7723 }
 0xa69   : > { %v11804_v35 = vpop.f32.mrb[34].mxu1  ;;  %v16865_v44 = vpop.permute.xlu0 %7597 }
 0xa6a   : > { %v8757_v9 = vadd.f32 %v11804_v35, %v16786_v41  ;;  %7991 = vrot.lane.b32.xlu1 %v16867_v1, %s12325_s26  ;;  %v8751_v37 = vpop.f32.mrb[35].mxu1 }
 0xa6b   : > { %v8752_v40 = vadd.f32 %v16786_v41, %v8751_v37  ;;  %7865 = vrot.lane.b32.xlu0 %v7262_v25, %s12324_s27 }
 0xa6c   : > { %v8903_v51 = vmax.f32 %v8757_v9, 0.0  ;;  %v8232_v2 = vpop.permute.xlu1 %8231  ;;  %v8313_v9 = vsel %vm656_vm13, %v16492_v53, %v16823_v27 }
 0xa6d   : > { %v8902_v8 = vmax.f32 %v8752_v40, 0.0  ;;  %v8538_v21 = vsel %vm8521_vm11, %v8505_v10, %v8232_v2  ;;  %v8106_v57 = vpop.permute.xlu0 %8105  ;;  %v8345_v37 = vsel %vm4250_vm2, %v8313_v9, %v16838_v39 }
 0xa6e   : > { %8935 = vst.msk [vmem:[#allocation5 + $0x18] sm:$0xff] %vm2276_vm9, %v8903_v51  ;;  %7611 = vrot.lane.b32.xlu1 %v16867_v1, %s12323_s19  ;;  %11823 = vmatprep.mubr.msk.f32.mxu1 %vm8575_vm0, %v8538_v21  ;;  %v8506_v31 = vsel %vm18357_vm7, %v8473_v54, %v8106_v57  ;;  %v8377_v3 = vsel %vm4361_vm6, %v8345_v37, %v16846_v33 }
 0xa6f   : > { %8934 = vst.msk [vmem:[#allocation5 + $0x10] sm:$0xff] %vm2276_vm9, %v8902_v8  ;;  %7485 = vrot.lane.b32.xlu0 %v7262_v25, %s18390_s2  ;;  %v8409_v10 = vsel %vm6353_vm12, %v8377_v3, %v16861_v11  ;;  %v16942_v8 = vld [vmem:[#allocation3 + $0x168] sm:$0xff] }
 0xa70   : > { %v16891_v46 = vpop.permute.xlu1 %7725 }
 0xa71   : > { %v16895_v42 = vpop.permute.xlu0 %7343 }
 0xa72   : > { %8119 = vrot.lane.b32.xlu1 %v7231_v60, %s18355_s24 }
 0xa73   : > { %7993 = vrot.lane.b32.xlu0 %v16899_v48, %s12325_s26 }
 0xa74   : > { %v8234_v5 = vpop.permute.xlu1 %8233 }
 0xa75   : > { %v8982_v43 = vld [vmem:[#allocation5 + $0x18] sm:$0xff]  ;;  %v8539_v55 = vsel %vm8521_vm11, %v8506_v31, %v8234_v5  ;;  %v7852_v28 = vpop.permute.xlu0 %7851 }
 0xa76   : > { %v8998_v14 = vmax.f32 %v8965_v13, %v8982_v43  ;;  %v8981_v30 = vld [vmem:[#allocation5 + $0x10] sm:$0xff]  ;;  %7739 = vrot.lane.b32.xlu1 %v7231_v60, %s18395_s22  ;;  %11824 = vmatmul.mubr.msk.f32.gmra.mrb[48].mxu1 %vm8575_vm0, %v8539_v55  ;;  %v8442_v53 = vsel %vm8423_vm15, %v8409_v10, %v7852_v28  ;;  %v7233_v5 = vld [vmem:[#allocation3 + $0x169] sm:$0xff] }
 0xa77   : > { %v8997_v22 = vmax.f32 %v8964_v61, %v8981_v30  ;;  %7613 = vrot.lane.b32.xlu0 %v16899_v48, %s12323_s19  ;;  %v7265_v30 = vld [vmem:[#allocation3 + $0x16a] sm:$0xff] }
 0xa78   : > { %9014 = vst.msk [vmem:[#allocation6 + $0x8] sm:$0xff] %vm2276_vm9, %v8998_v14  ;;  %v16911_v63 = vpop.permute.xlu1 %7471 }
 0xa79   : > { %9013 = vst.msk [vmem:[#allocation6] sm:$0xff] %vm2276_vm9, %v8997_v22  ;;  %v16914_v18 = vpop.permute.xlu0 %7345  ;;  %v7234_v22 = vld [vmem:[#allocation3 + $0x171] sm:$0xff] }
 0xa7a   : > { %8247 = vrot.lane.b32.xlu1 %v7263_v7, %s12327_s20 }
 0xa7b   : > { %8121 = vrot.lane.b32.xlu0 %v7232_v36, %s18355_s24 }
 0xa7c   : > { %v7980_v20 = vpop.permute.xlu1 %7979 }
 0xa7d   : > { %v7854_v25 = vpop.permute.xlu0 %7853  ;;  %v8474_v33 = vsel %vm6468_vm10, %v8442_v53, %v7980_v20 }
 0xa7e   : > { %7741 = vrot.lane.b32.xlu1 %v7232_v36, %s18395_s22 }
 0xa7f   : > { %7359 = vrot.lane.b32.xlu0 %v7231_v60, %s18387_s0  ;;  %v8314_v60 = vsel %vm656_vm13, %v16517_v58, %v16840_v29 }
 0xa80   : > { %v16920_v50 = vpop.permute.xlu1 %7599  ;;  %v9029_v52 = vld [vmem:[#allocation6] ss:$2 sm:$0xff]  ;;  %v9045_v15 = vld [vmem:[#allocation6 + $0x1] ss:$2 sm:$0xff]  ;;  %v8346_v12 = vsel %vm4250_vm2, %v8314_v60, %v16848_v47 }
 0xa81   : > { %v16922_v59 = vpop.permute.xlu0 %7473  ;;  %v9060_v24 = vmax.f32 %v9029_v52, %v9045_v15  ;;  %v8378_v54 = vsel %vm4361_vm6, %v8346_v12, %v16865_v44  ;;  %v16974_v47 = vld [vmem:[#allocation3 + $0x170] sm:$0xff] }
 0xa82   : > { %8249 = vrot.lane.b32.xlu1 %v7264_v16, %s12327_s20  ;;  %v8410_v58 = vsel %vm6353_vm12, %v8378_v54, %v16891_v46  ;;  %v7266_v52 = vld [vmem:[#allocation3 + $0x172] sm:$0xff] }
 0xa83   : > { %7867 = vrot.lane.b32.xlu0 %v7263_v7, %s12324_s27  ;;  %9069 = vst.msk [vmem:[#allocation4 + $0x11] sm:$0xff] %vm2276_vm9, %v9060_v24  ;;  %v8443_v13 = vsel %vm8423_vm15, %v8410_v58, %v7854_v25  ;;  %v8315_v24 = vsel %vm656_vm13, %v16556_v32, %v16895_v42 }
 0xa84   : > { %v8108_v35 = vpop.permute.xlu1 %8107 }
 0xa85   : > { %v7982_v26 = vpop.permute.xlu0 %7981  ;;  %v8507_v11 = vsel %vm18357_vm7, %v8474_v33, %v8108_v35  ;;  %v8347_v35 = vsel %vm4250_vm2, %v8315_v24, %v16911_v63 }
 0xa86   : > { %7487 = vrot.lane.b32.xlu1 %v7263_v7, %s18390_s2  ;;  %v8475_v43 = vsel %vm6468_vm10, %v8443_v13, %v7982_v26  ;;  %v8379_v26 = vsel %vm4361_vm6, %v8347_v35, %v16920_v50 }
 0xa87   : > { %7361 = vrot.lane.b32.xlu0 %v7232_v36, %s18387_s0 }
 0xa88   : > { %v16936_v40 = vpop.permute.xlu1 %7727 }
 0xa89   : > { %v11807_v51 = vpop.f32.mrb[36].mxu1  ;;  %v16940_v2 = vpop.permute.xlu0 %7601  ;;  %v8411_v37 = vsel %vm6353_vm12, %v8379_v26, %v16936_v40  ;;  %v7174_v26 = vld [vmem:[#allocation3 + $0x18a] sm:$0xff] }
 0xa8a   : > { %v8767_v27 = vadd.f32 %v11807_v51, %v16786_v41  ;;  %7995 = vrot.lane.b32.xlu1 %v16942_v8, %s12325_s26  ;;  %v8761_v39 = vpop.f32.mrb[37].mxu1  ;;  %v7203_v51 = vld [vmem:[#allocation3 + $0x180] sm:$0xff] }
 0xa8b   : > { %v8762_v21 = vadd.f32 %v16786_v41, %v8761_v39  ;;  %7869 = vrot.lane.b32.xlu0 %v7264_v16, %s12324_s27 }
 0xa8c   : > { %v8905_v57 = vmax.f32 %v8767_v27, 0.0  ;;  %v8236_v56 = vpop.permute.xlu1 %8235 }
 0xa8d   : > { %v8904_v45 = vmax.f32 %v8762_v21, 0.0  ;;  %v8540_v62 = vsel %vm8521_vm11, %v8507_v11, %v8236_v56  ;;  %v8110_v6 = vpop.permute.xlu0 %8109 }
 0xa8e   : > { %8937 = vst.msk [vmem:[#allocation5 + $0x28] sm:$0xff] %vm2276_vm9, %v8905_v57  ;;  %7615 = vrot.lane.b32.xlu1 %v16942_v8, %s12323_s19  ;;  %11826 = vmatprep.mubr.msk.f32.mxu1 %vm8575_vm0, %v8540_v62  ;;  %v8508_v44 = vsel %vm18357_vm7, %v8475_v43, %v8110_v6  ;;  %v8316_v57 = vsel %vm656_vm13, %v16583_v38, %v16914_v18  ;;  %v7235_v6 = vld [vmem:[#allocation3 + $0x181] sm:$0xff] }
 0xa8f   : > { %8936 = vst.msk [vmem:[#allocation5 + $0x20] sm:$0xff] %vm2276_vm9, %v8904_v45  ;;  %7489 = vrot.lane.b32.xlu0 %v7264_v16, %s18390_s2  ;;  %v8348_v56 = vsel %vm4250_vm2, %v8316_v57, %v16922_v59  ;;  %v7204_v59 = vld [vmem:[#allocation3 + $0x188] sm:$0xff] }
 0xa90   : > { %v16966_v31 = vpop.permute.xlu1 %7729  ;;  %v8380_v45 = vsel %vm4361_vm6, %v8348_v56, %v16940_v2  ;;  %v7270_v56 = vld [vmem:[#allocation3 + $0x1a2] sm:$0xff] }
 0xa91   : > { %v16970_v29 = vpop.permute.xlu0 %7347  ;;  %v8412_v38 = vsel %vm6353_vm12, %v8380_v45, %v16966_v31 }
 0xa92   : > { %8123 = vrot.lane.b32.xlu1 %v7233_v5, %s18355_s24 }
 0xa93   : > { %7997 = vrot.lane.b32.xlu0 %v16974_v47, %s12325_s26 }
 0xa94   : > { %v8238_v55 = vpop.permute.xlu1 %8237 }
 0xa95   : > { %v8541_v28 = vsel %vm8521_vm11, %v8508_v44, %v8238_v55  ;;  %v7856_v46 = vpop.permute.xlu0 %7855  ;;  %v8967_v58 = vld [vmem:[#allocation5 + $0x28] sm:$0xff] }
 0xa96   : > { %7743 = vrot.lane.b32.xlu1 %v7233_v5, %s18395_s22  ;;  %11827 = vmatmul.mubr.msk.f32.gmra.mrb[50].mxu1 %vm8575_vm0, %v8541_v28  ;;  %v8444_v32 = vsel %vm8423_vm15, %v8411_v37, %v7856_v46  ;;  %v8966_v43 = vld [vmem:[#allocation5 + $0x20] sm:$0xff] }
 0xa97   : > { %7617 = vrot.lane.b32.xlu0 %v16974_v47, %s12323_s19 }
 0xa98   : > { %v16985_v61 = vpop.permute.xlu1 %7475 }
 0xa99   : > { %v16987_v14 = vpop.permute.xlu0 %7349 }
 0xa9a   : > { %8251 = vrot.lane.b32.xlu1 %v7265_v30, %s12327_s20 }
 0xa9b   : > { %8125 = vrot.lane.b32.xlu0 %v7234_v22, %s18355_s24 }
 0xa9c   : > { %v7984_v7 = vpop.permute.xlu1 %7983 }
 0xa9d   : > { %v7858_v36 = vpop.permute.xlu0 %7857  ;;  %v8476_v53 = vsel %vm6468_vm10, %v8444_v32, %v7984_v7  ;;  %v7236_v7 = vld [vmem:[#allocation3 + $0x189] sm:$0xff]  ;;  %v7205_v32 = vld [vmem:[#allocation3 + $0x198] sm:$0xff] }
 0xa9e   : > { %7745 = vrot.lane.b32.xlu1 %v7234_v22, %s18395_s22  ;;  %v8445_v60 = vsel %vm8423_vm15, %v8412_v38, %v7858_v36 }
 0xa9f   : > { %7363 = vrot.lane.b32.xlu0 %v7233_v5, %s18387_s0 }
 0xaa0   : > { %v16993_v20 = vpop.permute.xlu1 %7603 }
 0xaa1   : > { %v16995_v25 = vpop.permute.xlu0 %7477 }
 0xaa2   : > { %8253 = vrot.lane.b32.xlu1 %v7266_v52, %s12327_s20 }
 0xaa3   : > { %7871 = vrot.lane.b32.xlu0 %v7265_v30, %s12324_s27 }
 0xaa4   : > { %v8112_v15 = vpop.permute.xlu1 %8111 }
 0xaa5   : > { %v7986_v16 = vpop.permute.xlu0 %7985  ;;  %v8509_v27 = vsel %vm18357_vm7, %v8476_v53, %v8112_v15 }
 0xaa6   : > { %7491 = vrot.lane.b32.xlu1 %v7265_v30, %s18390_s2  ;;  %v8477_v12 = vsel %vm6468_vm10, %v8445_v60, %v7986_v16 }
 0xaa7   : > { %7365 = vrot.lane.b32.xlu0 %v7234_v22, %s18387_s0  ;;  %v7267_v22 = vld [vmem:[#allocation3 + $0x182] sm:$0xff] }
 0xaa8   : > { %v17008_v9 = vpop.permute.xlu1 %7731 }
 0xaa9   : > { %v11810_v3 = vpop.f32.mrb[38].mxu1  ;;  %v17012_v10 = vpop.permute.xlu0 %7605 }
 0xaaa   : > { %v8777_v42 = vadd.f32 %v11810_v3, %v16786_v41  ;;  %7999 = vrot.lane.b32.xlu1 %v7203_v51, %s12325_s26  ;;  %v8771_v63 = vpop.f32.mrb[39].mxu1  ;;  %v7206_v3 = vld [vmem:[#allocation3 + $0x1a0] sm:$0xff] }
 0xaab   : > { %v8772_v50 = vadd.f32 %v16786_v41, %v8771_v63  ;;  %7873 = vrot.lane.b32.xlu0 %v7266_v52, %s12324_s27  ;;  %v8317_v63 = vsel %vm656_vm13, %v16661_v4, %v16970_v29 }
 0xaac   : > { %v8907_v40 = vmax.f32 %v8777_v42, 0.0  ;;  %v8240_v39 = vpop.permute.xlu1 %8239  ;;  %v8349_v53 = vsel %vm4250_vm2, %v8317_v63, %v16985_v61 }
 0xaad   : > { %v8906_v33 = vmax.f32 %v8772_v50, 0.0  ;;  %v8542_v21 = vsel %vm8521_vm11, %v8509_v27, %v8240_v39  ;;  %v8114_v11 = vpop.permute.xlu0 %8113  ;;  %v7238_v50 = vld [vmem:[#allocation3 + $0x1a1] sm:$0xff]  ;;  %v8381_v27 = vsel %vm4361_vm6, %v8349_v53, %v16993_v20  ;;  %v7237_v39 = vld [vmem:[#allocation3 + $0x199] sm:$0xff] }
 0xaae   : > { %8939 = vst.msk [vmem:[#allocation5 + $0x38] sm:$0xff] %vm2276_vm9, %v8907_v40  ;;  %7619 = vrot.lane.b32.xlu1 %v7203_v51, %s12323_s19  ;;  %11829 = vmatprep.mubr.msk.f32.mxu1 %vm8575_vm0, %v8542_v21  ;;  %v8510_v54 = vsel %vm18357_vm7, %v8477_v12, %v8114_v11 }
 0xaaf   : > { %8938 = vst.msk [vmem:[#allocation5 + $0x30] sm:$0xff] %vm2276_vm9, %v8906_v33  ;;  %7493 = vrot.lane.b32.xlu0 %v7266_v52, %s18390_s2  ;;  %v8413_v33 = vsel %vm6353_vm12, %v8381_v27, %v17008_v9 }
 0xab0   : > { %v17034_v62 = vpop.permute.xlu1 %7733 }
 0xab1   : > { %v17038_v18 = vpop.permute.xlu0 %7351 }
 0xab2   : > { %8127 = vrot.lane.b32.xlu1 %v7235_v6, %s18355_s24  ;;  %v8319_v53 = vsel %vm656_vm13, %v16724_v49, %v17038_v18 }
 0xab3   : > { %8001 = vrot.lane.b32.xlu0 %v7204_v59, %s12325_s26 }
 0xab4   : > { %v8242_v2 = vpop.permute.xlu1 %8241 }
 0xab5   : > { %v8984_v5 = vld [vmem:[#allocation5 + $0x38] sm:$0xff]  ;;  %v8543_v13 = vsel %vm8521_vm11, %v8510_v54, %v8242_v2  ;;  %v7860_v31 = vpop.permute.xlu0 %7859  ;;  %v8318_v54 = vsel %vm656_vm13, %v16687_v23, %v16987_v14 }
 0xab6   : > { %v9000_v44 = vmax.f32 %v8967_v58, %v8984_v5  ;;  %v8983_v55 = vld [vmem:[#allocation5 + $0x30] sm:$0xff]  ;;  %7747 = vrot.lane.b32.xlu1 %v7235_v6, %s18395_s22  ;;  %11830 = vmatmul.mubr.msk.f32.gmra.mrb[52].mxu1 %vm8575_vm0, %v8543_v13  ;;  %v8446_v4 = vsel %vm8423_vm15, %v8413_v33, %v7860_v31  ;;  %v8350_v2 = vsel %vm4250_vm2, %v8318_v54, %v16995_v25  ;;  %v9085_v13 = vld [vmem:[#allocation4 + $0x1] sm:$0xff] }
 0xab7   : > { %v8999_v28 = vmax.f32 %v8966_v43, %v8983_v55  ;;  %7621 = vrot.lane.b32.xlu0 %v7204_v59, %s12323_s19  ;;  %v7269_v6 = vld [vmem:[#allocation3 + $0x19a] sm:$0xff]  ;;  %v8382_v58 = vsel %vm4361_vm6, %v8350_v2, %v17012_v10  ;;  %v9093_v55 = vld [vmem:[#allocation4 + $0x2] sm:$0xff] }
 0xab8   : > { %9016 = vst.msk [vmem:[#allocation6 + $0x18] sm:$0xff] %vm2276_vm9, %v9000_v44  ;;  %v17050_v46 = vpop.permute.xlu1 %7479  ;;  %v8414_v23 = vsel %vm6353_vm12, %v8382_v58, %v17034_v62  ;;  %v9086_v31 = vld [vmem:[#allocation4 + $0x11] sm:$0xff] }
 0xab9   : > { %9015 = vst.msk [vmem:[#allocation6 + $0x10] sm:$0xff] %vm2276_vm9, %v8999_v28  ;;  %v17053_v30 = vpop.permute.xlu0 %7353 }
 0xaba   : > { %8255 = vrot.lane.b32.xlu1 %v7267_v22, %s12327_s20 }
 0xabb   : > { %8129 = vrot.lane.b32.xlu0 %v7236_v7, %s18355_s24 }
 0xabc   : > { %v7988_v36 = vpop.permute.xlu1 %7987 }
 0xabd   : > { %v7862_v52 = vpop.permute.xlu0 %7861  ;;  %v8478_v57 = vsel %vm6468_vm10, %v8446_v4, %v7988_v36 }
 0xabe   : > { %7875 = vrot.lane.b32.xlu1 %v7267_v22, %s12324_s27  ;;  %v8447_v43 = vsel %vm8423_vm15, %v8414_v23, %v7862_v52 }
 0xabf   : > { %7749 = vrot.lane.b32.xlu0 %v7236_v7, %s18395_s22  ;;  %v9094_v7 = vld [vmem:[#allocation4 + $0x12] sm:$0xff] }
 0xac0   : > { %v17059_v15 = vpop.permute.xlu1 %7607  ;;  %v9031_v16 = vld [vmem:[#allocation6 + $0x10] ss:$2 sm:$0xff]  ;;  %v9047_v24 = vld [vmem:[#allocation6 + $0x11] ss:$2 sm:$0xff] }
 0xac1   : > { %v17061_v35 = vpop.permute.xlu0 %7481  ;;  %v9061_v37 = vmax.f32 %v9031_v16, %v9047_v24  ;;  %v17124_v16 = vld [vmem:[#allocation4 + $0x10] sm:$0xff] }
 0xac2   : > { %7877 = vrot.lane.b32.xlu1 %v7174_v26, %s12324_s27 }
 0xac3   : > { %8257 = vrot.lane.b32.xlu0 %v7174_v26, %s12327_s20  ;;  %9070 = vst.msk [vmem:[#allocation4 + $0x21] sm:$0xff] %vm2276_vm9, %v9061_v37 }
 0xac4   : > { %v8116_v51 = vpop.permute.xlu1 %8115 }
 0xac5   : > { %v7990_v42 = vpop.permute.xlu0 %7989  ;;  %v8511_v45 = vsel %vm18357_vm7, %v8478_v57, %v8116_v51 }
 0xac6   : > { %8005 = vrot.lane.b32.xlu1 %v7206_v3, %s12325_s26  ;;  %v8479_v25 = vsel %vm6468_vm10, %v8447_v43, %v7990_v42 }
 0xac7   : > { %8003 = vrot.lane.b32.xlu0 %v7205_v32, %s12325_s26  ;;  %s18396_s26 = smov 6  }
 0xac8   : > { %v17075_v40 = vpop.permute.xlu1 %7735 }
 0xac9   : > { %v11813_v21 = vpop.f32.mrb[40].mxu1  ;;  %v17079_v11 = vpop.permute.xlu0 %7609 }
 0xaca   : > { %v8787_v29 = vadd.f32 %v11813_v21, %v16786_v41  ;;  %8133 = vrot.lane.b32.xlu1 %v7238_v50, %s18355_s24  ;;  %v8781_v61 = vpop.f32.mrb[41].mxu1  ;;  %v17120_v52 = vld [vmem:[#allocation4 + $0x20] sm:$0xff]  ;;  %v8351_v50 = vsel %vm4250_vm2, %v8319_v53, %v17050_v46 }
 0xacb   : > { %v8782_v20 = vadd.f32 %v16786_v41, %v8781_v61  ;;  %8131 = vrot.lane.b32.xlu0 %v7237_v39, %s18355_s24  ;;  %v17128_v37 = vld [vmem:[#allocation4 + $0x21] sm:$0xff]  ;;  %v8383_v27 = vsel %vm4361_vm6, %v8351_v50, %v17059_v15  ;;  %s12338_s24 = smov 21  }
 0xacc   : > { %v8909_v9 = vmax.f32 %v8787_v29, 0.0  ;;  %v8244_v38 = vpop.permute.xlu1 %8243  ;;  %v17140_v63 = vld [vmem:[#allocation4 + $0x22] sm:$0xff]  ;;  %v8415_v33 = vsel %vm6353_vm12, %v8383_v27, %v17075_v40 }
 0xacd   : > { %v8908_v60 = vmax.f32 %v8782_v20, 0.0  ;;  %v8544_v59 = vsel %vm8521_vm11, %v8511_v45, %v8244_v38  ;;  %v8118_v12 = vpop.permute.xlu0 %8117 }
 0xace   : > { %8941 = vst.msk [vmem:[#allocation5 + $0x48] sm:$0xff] %vm2276_vm9, %v8909_v9  ;;  %8261 = vrot.lane.b32.xlu1 %v7270_v56, %s12327_s20  ;;  %11832 = vmatprep.mubr.msk.f32.mxu1 %vm8575_vm0, %v8544_v59  ;;  %v8512_v44 = vsel %vm18357_vm7, %v8479_v25, %v8118_v12  ;;  %v8320_v9 = vsel %vm656_vm13, %v16751_v34, %v17053_v30 }
 0xacf   : > { %8940 = vst.msk [vmem:[#allocation5 + $0x40] sm:$0xff] %vm2276_vm9, %v8908_v60  ;;  %8259 = vrot.lane.b32.xlu0 %v7269_v6, %s12327_s20  ;;  %v8352_v38 = vsel %vm4250_vm2, %v8320_v9, %v17061_v35  ;;  %s12341_s20 = smov 49  }
 0xad0   : > { %v17101_v5 = vpop.permute.xlu1 %7737  ;;  %v8384_v6 = vsel %vm4361_vm6, %v8352_v38, %v17079_v11 }
 0xad1   : > { %v17105_v14 = vpop.permute.xlu0 %7355  ;;  %v8416_v59 = vsel %vm6353_vm12, %v8384_v6, %v17101_v5 }
 0xad2   : > { %9160 = vrot.lane.b32.xlu1 %v9086_v31, %s18396_s26  ;;  %v8321_v53 = vsel %vm656_vm13, %v16795_v19, %v17105_v14 }
 0xad3   : > { %9158 = vrot.lane.b32.xlu0 %v9085_v13, %s18396_s26 }
 0xad4   : > { %v8246_v10 = vpop.permute.xlu1 %8245 }
 0xad5   : > { %v8545_v28 = vsel %vm8521_vm11, %v8512_v44, %v8246_v10  ;;  %v7864_v22 = vpop.permute.xlu0 %7863  ;;  %v8969_v35 = vld [vmem:[#allocation5 + $0x48] sm:$0xff] }
 0xad6   : > { %9192 = vrot.lane.b32.xlu1 %v9094_v7, %s18387_s0  ;;  %11833 = vmatmul.mubr.msk.f32.gmra.mrb[54].mxu1 %vm8575_vm0, %v8545_v28  ;;  %v8448_v29 = vsel %vm8423_vm15, %v8415_v33, %v7864_v22  ;;  %v8968_v11 = vld [vmem:[#allocation5 + $0x40] sm:$0xff] }
 0xad7   : > { %9190 = vrot.lane.b32.xlu0 %v9093_v55, %s18387_s0 }
 0xad8   : > { %v17116_v62 = vpop.permute.xlu1 %7483 }
 0xad9   : > { %v17118_v36 = vpop.permute.xlu0 %7357  ;;  %v8353_v50 = vsel %vm4250_vm2, %v8321_v53, %v17116_v62 }
 0xada   : > { %9224 = vrot.lane.b32.xlu1 %v17120_v52, %s12328_s3 }
 0xadb   : > { %9222 = vrot.lane.b32.xlu0 %v17124_v16, %s12328_s3 }
 0xadc   : > { %v7992_v24 = vpop.permute.xlu1 %7991 }
 0xadd   : > { %v7866_v26 = vpop.permute.xlu0 %7865  ;;  %v8480_v46 = vsel %vm6468_vm10, %v8448_v29, %v7992_v24 }
 0xade   : > { %9162 = vrot.lane.b32.xlu1 %v17128_v37, %s18396_s26  ;;  %v8449_v34 = vsel %vm8423_vm15, %v8416_v59, %v7866_v26 }
 0xadf   : > { %9254 = vrot.lane.b32.xlu0 %v9086_v31, %s18390_s2 }
 0xae0   : > { %v17133_v3 = vpop.permute.xlu1 %7611 }
 0xae1   : > { %v17135_v51 = vpop.permute.xlu0 %7485  ;;  %v8385_v27 = vsel %vm4361_vm6, %v8353_v50, %v17133_v3 }
 0xae2   : > { %9286 = vrot.lane.b32.xlu1 %v9094_v7, %s12329_s16 }
 0xae3   : > { %9256 = vrot.lane.b32.xlu0 %v17128_v37, %s18390_s2 }
 0xae4   : > { %v8120_v32 = vpop.permute.xlu1 %8119 }
 0xae5   : > { %v7994_v42 = vpop.permute.xlu0 %7993  ;;  %v8513_v15 = vsel %vm18357_vm7, %v8480_v46, %v8120_v32 }
 0xae6   : > { %9194 = vrot.lane.b32.xlu1 %v17140_v63, %s18387_s0  ;;  %v8481_v30 = vsel %vm6468_vm10, %v8449_v34, %v7994_v42 }
 0xae8   : > { %v7740_v39 = vpop.permute.xlu1 %7739 }
 0xae9   : > { %v11816_v21 = vpop.f32.mrb[42].mxu1  ;;  %v17153_v4 = vpop.permute.xlu0 %7613 }
 0xaea   : > { %v8797_v49 = vadd.f32 %v11816_v21, %v16786_v41  ;;  %9318 = vrot.lane.b32.xlu1 %v17120_v52, %s12323_s19  ;;  %v8791_v18 = vpop.f32.mrb[43].mxu1  ;;  %v8417_v21 = vsel %vm6353_vm12, %v8385_v27, %v7740_v39 }
 0xaeb   : > { %v8792_v61 = vadd.f32 %v16786_v41, %v8791_v18 }
 0xaec   : > { %v8911_v57 = vmax.f32 %v8797_v49, 0.0  ;;  %v8248_v20 = vpop.permute.xlu1 %8247 }
 0xaed   : > { %v8910_v40 = vmax.f32 %v8792_v61, 0.0  ;;  %v8546_v56 = vsel %vm8521_vm11, %v8513_v15, %v8248_v20  ;;  %v8122_v45 = vpop.permute.xlu0 %8121 }
 0xaee   : > { %8943 = vst.msk [vmem:[#allocation5 + $0x58] sm:$0xff] %vm2276_vm9, %v8911_v57  ;;  %11835 = vmatprep.mubr.msk.f32.mxu1 %vm8575_vm0, %v8546_v56  ;;  %v8514_v54 = vsel %vm18357_vm7, %v8481_v30, %v8122_v45  ;;  %v8322_v45 = vsel %vm656_vm13, %v16827_v17, %v17118_v36 }
 0xaef   : > { %8942 = vst.msk [vmem:[#allocation5 + $0x50] sm:$0xff] %vm2276_vm9, %v8910_v40  ;;  %v8354_v9 = vsel %vm4250_vm2, %v8322_v45, %v17135_v51 }
 0xaf0   : > { %v17173_v60 = vpop.permute.xlu1 %7741  ;;  %v8386_v38 = vsel %vm4361_vm6, %v8354_v9, %v17153_v4 }
 0xaf1   : > { %v17177_v12 = vpop.permute.xlu0 %7359  ;;  %v8418_v36 = vsel %vm6353_vm12, %v8386_v38, %v17173_v60 }
 0xaf4   : > { %v8250_v2 = vpop.permute.xlu1 %8249 }
 0xaf5   : > { %v8986_v58 = vld [vmem:[#allocation5 + $0x58] sm:$0xff]  ;;  %v8547_v13 = vsel %vm8521_vm11, %v8514_v54, %v8250_v2  ;;  %v7868_v23 = vpop.permute.xlu0 %7867 }
 0xaf6   : > { %v9002_v31 = vmax.f32 %v8969_v35, %v8986_v58  ;;  %v8985_v43 = vld [vmem:[#allocation5 + $0x50] sm:$0xff]  ;;  %11836 = vmatmul.mubr.msk.f32.gmra.mrb[56].mxu1 %vm8575_vm0, %v8547_v13  ;;  %v8450_v18 = vsel %vm8423_vm15, %v8417_v21, %v7868_v23 }
 0xaf7   : > { %v9001_v5 = vmax.f32 %v8968_v11, %v8985_v43  ;;  %v8323_v43 = vsel %vm656_vm13, %v16867_v1, %v17177_v12 }
 0xaf8   : > { %9018 = vst.msk [vmem:[#allocation6 + $0x28] sm:$0xff] %vm2276_vm9, %v9002_v31  ;;  %v17185_v25 = vpop.permute.xlu1 %7487 }
 0xaf9   : > { %9017 = vst.msk [vmem:[#allocation6 + $0x20] sm:$0xff] %vm2276_vm9, %v9001_v5  ;;  %v17188_v44 = vpop.permute.xlu0 %7361  ;;  %v8355_v5 = vsel %vm4250_vm2, %v8323_v43, %v17185_v25  ;;  %v9477_v43 = vld [vmem:[%s18292_s9 + $0x20] sm:$0xff] }
 0xafc   : > { %v7996_v10 = vpop.permute.xlu1 %7995 }
 0xafd   : > { %v7870_v55 = vpop.permute.xlu0 %7869  ;;  %v8482_v14 = vsel %vm6468_vm10, %v8450_v18, %v7996_v10 }
 0xafe   : > { %v8451_v51 = vsel %vm8423_vm15, %v8418_v36, %v7870_v55 }
 0xb00   : > { %v17190_v28 = vpop.permute.xlu1 %7615  ;;  %v9033_v22 = vld [vmem:[#allocation6 + $0x20] ss:$2 sm:$0xff]  ;;  %v9049_v7 = vld [vmem:[#allocation6 + $0x21] ss:$2 sm:$0xff] }
 0xb01   : > { %v17192_v24 = vpop.permute.xlu0 %7489  ;;  %v9062_v26 = vmax.f32 %v9033_v22, %v9049_v7 }
 0xb03   : > { %9071 = vst.msk [vmem:[#allocation4 + $0x31] sm:$0xff] %vm2276_vm9, %v9062_v26 }
 0xb04   : > { %v8124_v32 = vpop.permute.xlu1 %8123 }
 0xb05   : > { %v7998_v42 = vpop.permute.xlu0 %7997  ;;  %v8515_v3 = vsel %vm18357_vm7, %v8482_v14, %v8124_v32 }
 0xb06   : > { %v8483_v34 = vsel %vm6468_vm10, %v8451_v51, %v7998_v42  ;;  %v9475_v51 = vld [vmem:[%s18292_s9 + $0x10] sm:$0xff] }
 0xb08   : > { %v7744_v33 = vpop.permute.xlu1 %7743 }
 0xb09   : > { %v11819_v29 = vpop.f32.mrb[44].mxu1  ;;  %v17203_v49 = vpop.permute.xlu0 %7617 }
 0xb0a   : > { %v8807_v46 = vadd.f32 %v11819_v29, %v16786_v41  ;;  %v8801_v61 = vpop.f32.mrb[45].mxu1  ;;  %v17207_v15 = vld [vmem:[#allocation4 + $0x30] sm:$0xff] }
 0xb0b   : > { %v17209_v19 = vld [vmem:[#allocation4 + $0x31] sm:$0xff]  ;;  %v8802_v62 = vadd.f32 %v16786_v41, %v8801_v61  ;;  %9226 = vrot.lane.b32.xlu1 %v17207_v15, %s12328_s3 }
 0xb0c   : > { %9164 = vrot.lane.b32.xlu0 %v17209_v19, %s18396_s26  ;;  %v8913_v39 = vmax.f32 %v8807_v46, 0.0  ;;  %v8252_v57 = vpop.permute.xlu1 %8251  ;;  %v17238_v59 = vld [vmem:[#allocation4 + $0x32] sm:$0xff] }
 0xb0d   : > { %v8912_v20 = vmax.f32 %v8802_v62, 0.0  ;;  %v8548_v40 = vsel %vm8521_vm11, %v8515_v3, %v8252_v57  ;;  %v8126_v56 = vpop.permute.xlu0 %8125 }
 0xb0e   : > { %8945 = vst.msk [vmem:[#allocation5 + $0x68] sm:$0xff] %vm2276_vm9, %v8913_v39  ;;  %11838 = vmatprep.mubr.msk.f32.mxu1 %vm8575_vm0, %v8548_v40 }
 0xb0f   : > { %8944 = vst.msk [vmem:[#allocation5 + $0x60] sm:$0xff] %vm2276_vm9, %v8912_v20  ;;  %9350 = vrot.lane.b32.xlu1 %v17128_v37, %s12330_s28  ;;  %v8516_v37 = vsel %vm18357_vm7, %v8483_v34, %v8126_v56  ;;  %v9476_v34 = vld [vmem:[%s18292_s9 + $0x18] sm:$0xff] }
 0xb10   : > { %9288 = vrot.lane.b32.xlu0 %v17140_v63, %s12329_s16  ;;  %v7746_v17 = vpop.permute.xlu1 %7745 }
 0xb11   : > { %v17235_v6 = vpop.permute.xlu0 %7363 }
 0xb13   : > { %9258 = vrot.lane.b32.xlu1 %v17209_v19, %s18390_s2 }
 0xb14   : > { %9196 = vrot.lane.b32.xlu0 %v17238_v59, %s18387_s0  ;;  %v8254_v4 = vpop.permute.xlu1 %8253 }
 0xb15   : > { %v8549_v30 = vsel %vm8521_vm11, %v8516_v37, %v8254_v4  ;;  %v7872_v60 = vpop.permute.xlu0 %7871  ;;  %v8971_v62 = vld [vmem:[#allocation5 + $0x68] sm:$0xff]  ;;  %v12059_v37 = vpack.c.bf16 %v9476_v34, %v9475_v51  ;;  %v8325_v4 = vsel %vm656_vm13, %v16942_v8, %v17235_v6  ;;  %v17376_v34 = vld [vmem:[#allocation4] sm:$0xff] }
 0xb16   : > { %11839 = vmatmul.mubr.msk.f32.gmra.mrb[58].mxu1 %vm8575_vm0, %v8549_v30  ;;  %v8970_v20 = vld [vmem:[#allocation5 + $0x60] sm:$0xff]  ;;  %v9478_v8 = vld [vmem:[%s18292_s9 + $0x28] sm:$0xff] }
 0xb17   : > { %9382 = vrot.lane.b32.xlu1 %v17140_v63, %s18395_s22  ;;  %v8387_v63 = vsel %vm4361_vm6, %v8355_v5, %v17190_v28 }
 0xb18   : > { %9320 = vrot.lane.b32.xlu0 %v17207_v15, %s12323_s19  ;;  %v7492_v54 = vpop.permute.xlu1 %7491  ;;  %v8419_v55 = vsel %vm6353_vm12, %v8387_v63, %v7744_v33  ;;  %v8324_v33 = vsel %vm656_vm13, %v16899_v48, %v17188_v44 }
 0xb19   : > { %v7366_v2 = vpop.permute.xlu0 %7365  ;;  %v8452_v26 = vsel %vm8423_vm15, %v8419_v55, %v7872_v60  ;;  %v8357_v30 = vsel %vm4250_vm2, %v8325_v4, %v7492_v54  ;;  %v12063_v54 = vpack.c.bf16 %v9478_v8, %v9477_v43 }
 0xb1a   : > { %v8326_v60 = vsel %vm656_vm13, %v16974_v47, %v7366_v2 }
 0xb1c   : > { %v8000_v35 = vpop.permute.xlu1 %7999 }
 0xb1d   : > { %v7874_v58 = vpop.permute.xlu0 %7873  ;;  %v8484_v53 = vsel %vm6468_vm10, %v8452_v26, %v8000_v35 }
 0xb20   : > { %v7620_v13 = vpop.permute.xlu1 %7619 }
 0xb21   : > { %v7494_v23 = vpop.permute.xlu0 %7493 }
 0xb24   : > { %v8128_v11 = vpop.permute.xlu1 %8127 }
 0xb25   : > { %v8002_v31 = vpop.permute.xlu0 %8001  ;;  %v8517_v12 = vsel %vm18357_vm7, %v8484_v53, %v8128_v11  ;;  %v8358_v11 = vsel %vm4250_vm2, %v8326_v60, %v7494_v23 }
 0xb28   : > { %v7748_v10 = vpop.permute.xlu1 %7747 }
 0xb29   : > { %v11822_v22 = vpop.f32.mrb[46].mxu1  ;;  %v7622_v7 = vpop.permute.xlu0 %7621 }
 0xb2a   : > { %v8817_v32 = vadd.f32 %v11822_v22, %v16786_v41  ;;  %v8811_v42 = vpop.f32.mrb[47].mxu1  ;;  %v8390_v47 = vsel %vm4361_vm6, %v8358_v11, %v7622_v7 }
 0xb2b   : > { %v8812_v1 = vadd.f32 %v16786_v41, %v8811_v42  ;;  %v8356_v41 = vsel %vm4250_vm2, %v8324_v33, %v17192_v24  ;;  %v9473_v24 = vld [vmem:[%s18292_s9] sm:$0xff] }
 0xb2c   : > { %v8915_v25 = vmax.f32 %v8817_v32, 0.0  ;;  %v8256_v50 = vpop.permute.xlu1 %8255  ;;  %v8388_v18 = vsel %vm4361_vm6, %v8356_v41, %v17203_v49  ;;  %v9474_v49 = vld [vmem:[%s18292_s9 + $0x8] sm:$0xff] }
 0xb2d   : > { %v8914_v27 = vmax.f32 %v8812_v1, 0.0  ;;  %v8550_v28 = vsel %vm8521_vm11, %v8517_v12, %v8256_v50  ;;  %v8130_v21 = vpop.permute.xlu0 %8129  ;;  %v8420_v61 = vsel %vm6353_vm12, %v8388_v18, %v7746_v17  ;;  %v12055_v9 = vpack.c.bf16 %v9474_v49, %v9473_v24  ;;  %v9479_v12 = vld [vmem:[%s18292_s9 + $0x30] sm:$0x3f]  ;;  %v17332_v50 = vld [vmem:[%s18291_s8] ss:$0 sm:$0xff] }
 0xb2e   : > { %8947 = vst.msk [vmem:[#allocation5 + $0x78] sm:$0xff] %vm2276_vm9, %v8915_v25  ;;  %11841 = vmatprep.mubr.msk.f32.mxu1 %vm8575_vm0, %v8550_v28  ;;  %v8453_v14 = vsel %vm8423_vm15, %v8420_v61, %v7874_v58  ;;  %v8389_v58 = vsel %vm4361_vm6, %v8357_v30, %v7620_v13 }
 0xb2f   : > { %8946 = vst.msk [vmem:[#allocation5 + $0x70] sm:$0xff] %vm2276_vm9, %v8914_v27  ;;  %v8485_v3 = vsel %vm6468_vm10, %v8453_v14, %v8002_v31  ;;  %12056 = vmatprep.subr.bf16.mxu0 %v12055_v9  ;;  %v8421_v6 = vsel %vm6353_vm12, %v8389_v58, %v7748_v10 }
 0xb30   : > { %v7876_v29 = vpop.permute.xlu1 %7875  ;;  %v8518_v48 = vsel %vm18357_vm7, %v8485_v3, %v8130_v21  ;;  %12058 = vmatpush3.bf16.msra.mxu0 %v12055_v9 }
 0xb31   : > { %v7750_v46 = vpop.permute.xlu0 %7749  ;;  %12060 = vmatprep.subr.bf16.mxu0 %v12059_v37  ;;  %v8454_v2 = vsel %vm8423_vm15, %v8421_v6, %v7876_v29 }
 0xb32   : > { %v8422_v13 = vsel %vm6353_vm12, %v8390_v47, %v7750_v46 }
 0xb34   : > { %v7878_v39 = vpop.permute.xlu1 %7877  ;;  %12062 = vmatpush3.bf16.msra.mxu0 %v12059_v37 }
 0xb35   : > { %v8988_v57 = vld [vmem:[#allocation5 + $0x78] sm:$0xff]  ;;  %v8258_v44 = vpop.permute.xlu0 %8257  ;;  %v8455_v23 = vsel %vm8423_vm15, %v8422_v13, %v7878_v39  ;;  %12064 = vmatprep.subr.bf16.mxu0 %v12063_v54 }
 0xb36   : > { %v9004_v40 = vmax.f32 %v8971_v62, %v8988_v57  ;;  %v8987_v56 = vld [vmem:[#allocation5 + $0x70] sm:$0xff]  ;;  %v8551_v45 = vsel %vm8521_vm11, %v8518_v48, %v8258_v44 }
 0xb37   : > { %v9003_v38 = vmax.f32 %v8970_v20, %v8987_v56  ;;  %11842 = vmatmul.mubr.msk.f32.gmra.mrb[60].mxu1 %vm8575_vm0, %v8551_v45 }
 0xb38   : > { %9020 = vst.msk [vmem:[#allocation6 + $0x38] sm:$0xff] %vm2276_vm9, %v9004_v40  ;;  %v8006_v17 = vpop.permute.xlu1 %8005  ;;  %12066 = vmatpush3.bf16.msra.mxu0 %v12063_v54 }
 0xb39   : > { %9019 = vst.msk [vmem:[#allocation6 + $0x30] sm:$0xff] %vm2276_vm9, %v9003_v38  ;;  %v8004_v36 = vpop.permute.xlu0 %8003  ;;  %v8487_v26 = vsel %vm6468_vm10, %v8455_v23, %v8006_v17 }
 0xb3a   : > { %v8486_v5 = vsel %vm6468_vm10, %v8454_v2, %v8004_v36  ;;  %vm9512_vm10 = vcmask 1045504  }
 0xb3b   : > { %11859 = vmatprep.subr.msk.mxu0 %vm9512_vm10, %v9479_v12 }
 0xb3c   : > { %v8134_v35 = vpop.permute.xlu1 %8133  ;;  %11860 = vmatpush3.msk.msra.mxu0 %vm9512_vm10, %v9479_v12 }
 0xb3d   : > { %v8132_v31 = vpop.permute.xlu0 %8131  ;;  %v8520_v7 = vsel %vm18357_vm7, %v8487_v26, %v8134_v35 }
 0xb3e   : > { %v8519_v32 = vsel %vm18357_vm7, %v8486_v5, %v8132_v31  ;;  %vm9487_vm7 = vcmask 441344  }
 0xb40   : > { %v8262_v63 = vpop.permute.xlu1 %8261  ;;  %v9035_v55 = vld [vmem:[#allocation6 + $0x30] ss:$2 sm:$0xff]  ;;  %v9051_v22 = vld [vmem:[#allocation6 + $0x31] ss:$2 sm:$0xff] }
 0xb41   : > { %v8260_v10 = vpop.permute.xlu0 %8259  ;;  %v9063_v42 = vmax.f32 %v9035_v55, %v9051_v22  ;;  %v8553_v1 = vsel %vm8521_vm11, %v8520_v7, %v8262_v63 }
 0xb42   : > { %v8552_v53 = vsel %vm8521_vm11, %v8519_v32, %v8260_v10  ;;  %vm9439_vm11 = vcmask 244736  }
 0xb43   : > { %11844 = vmatprep.mubr.msk.f32.mxu1 %vm8575_vm0, %v8552_v53  ;;  %9072 = vst.msk [vmem:[#allocation4 + $0x41] sm:$0xff] %vm2276_vm9, %v9063_v42 }
 0xb44   : > { %11845 = vmatmul.mubr.msk.f32.gmra.mrb[62].mxu1 %vm8575_vm0, %v8553_v1  ;;  %v17356_v61 = vpop.permute.xlu1 %9160  ;;  %vm9456_vm0 = vcmask 343040  }
 0xb48   : > { %v17362_v14 = vpop.permute.xlu1 %9192 }
 0xb49   : > { %v11825_v25 = vpop.f32.mrb[48].mxu1 }
 0xb4a   : > { %v8827_v27 = vadd.f32 %v17332_v50, %v11825_v25  ;;  %v8821_v28 = vpop.f32.mrb[49].mxu1  ;;  %v17335_v21 = vld [vmem:[#allocation4 + $0x41] sm:$0xff] }
 0xb4b   : > { %v17337_v33 = vld [vmem:[#allocation4 + $0x40] sm:$0xff]  ;;  %v8822_v41 = vadd.f32 %v17332_v50, %v8821_v28  ;;  %9260 = vrot.lane.b32.xlu1 %v17335_v21, %s18390_s2 }
 0xb4c   : > { %9228 = vrot.lane.b32.xlu0 %v17337_v33, %s12328_s3  ;;  %v8917_v29 = vmax.f32 %v8827_v27, 0.0  ;;  %v17350_v46 = vld [vmem:[#allocation4 + $0x42] sm:$0xff]  ;;  %v17364_v62 = vpop.permute.xlu1 %9224 }
 0xb4d   : > { %v8916_v18 = vmax.f32 %v8822_v41, 0.0 }
 0xb4e   : > { %8949 = vst.msk [vmem:[#allocation5 + $0x88] sm:$0xff] %vm2276_vm9, %v8917_v29 }
 0xb4f   : > { %8948 = vst.msk [vmem:[#allocation5 + $0x80] sm:$0xff] %vm2276_vm9, %v8916_v18  ;;  %9384 = vrot.lane.b32.xlu1 %v17238_v59, %s18395_s22 }
 0xb50   : > { %9352 = vrot.lane.b32.xlu0 %v17209_v19, %s12330_s28  ;;  %v17366_v19 = vpop.permute.xlu1 %9162 }
 0xb53   : > { %9198 = vrot.lane.b32.xlu1 %v17350_v46, %s18387_s0 }
 0xb54   : > { %9166 = vrot.lane.b32.xlu0 %v17335_v21, %s18396_s26  ;;  %v9287_v24 = vpop.permute.xlu1 %9286 }
 0xb55   : > { %v8973_v40 = vld [vmem:[#allocation5 + $0x88] sm:$0xff] }
 0xb56   : > { %v8972_v45 = vld [vmem:[#allocation5 + $0x80] sm:$0xff] }
 0xb57   : > { %9322 = vrot.lane.b32.xlu1 %v17337_v33, %s12323_s19 }
 0xb58   : > { %9290 = vrot.lane.b32.xlu0 %v17238_v59, %s12329_s16  ;;  %v9159_v59 = vpop.permute.xlu0 %9158  ;;  %v17372_v20 = vpop.permute.xlu1 %9194 }
 0xb59   : > { %v9406_v30 = vsel %vm2276_vm9, %v17376_v34, %v9159_v59  ;;  %v9407_v59 = vsel %vm2276_vm9, %v17124_v16, %v17356_v61 }
 0xb5c   : > { %v9191_v17 = vpop.permute.xlu0 %9190  ;;  %v9319_v51 = vpop.permute.xlu1 %9318 }
 0xb5d   : > { %v9414_v31 = vsel %vm656_vm13, %v9406_v30, %v9191_v17 }
 0xb60   : > { %v9223_v37 = vpop.permute.xlu0 %9222 }
 0xb61   : > { %v9423_v8 = vsel %vm9422_vm14, %v9414_v31, %v9223_v37 }
 0xb64   : > { %v9255_v43 = vpop.permute.xlu0 %9254 }
 0xb65   : > { %v9431_v47 = vsel %vm4250_vm2, %v9423_v8, %v9255_v43 }
 0xb66   : > { %v9440_v54 = vsel %vm9439_vm11, %v9431_v47, %v9287_v24 }
 0xb67   : > { %v9448_v2 = vsel %vm4361_vm6, %v9440_v54, %v9319_v51 }
 0xb68   : > { %v9257_v1 = vpop.permute.xlu0 %9256 }
 0xb69   : > { %v11828_v3 = vpop.f32.mrb[50].mxu1 }
 0xb6a   : > { %v8837_v39 = vadd.f32 %v17332_v50, %v11828_v3  ;;  %v8831_v57 = vpop.f32.mrb[51].mxu1 }
 0xb6b   : > { %v8832_v48 = vadd.f32 %v17332_v50, %v8831_v57 }
 0xb6c   : > { %v8919_v44 = vmax.f32 %v8837_v39, 0.0 }
 0xb6d   : > { %v8918_v49 = vmax.f32 %v8832_v48, 0.0 }
 0xb6e   : > { %8951 = vst.msk [vmem:[#allocation5 + $0x98] sm:$0xff] %vm2276_vm9, %v8919_v44 }
 0xb6f   : > { %8950 = vst.msk [vmem:[#allocation5 + $0x90] sm:$0xff] %vm2276_vm9, %v8918_v49 }
 0xb75   : > { %v8990_v56 = vld [vmem:[#allocation5 + $0x98] sm:$0xff] }
 0xb76   : > { %v9006_v9 = vmax.f32 %v8973_v40, %v8990_v56  ;;  %v8989_v38 = vld [vmem:[#allocation5 + $0x90] sm:$0xff]  ;;  %v9415_v40 = vsel %vm656_vm13, %v9407_v59, %v17362_v14 }
 0xb77   : > { %v9005_v36 = vmax.f32 %v8972_v45, %v8989_v38 }
 0xb78   : > { %9022 = vst.msk [vmem:[#allocation6 + $0x48] sm:$0xff] %vm2276_vm9, %v9006_v9  ;;  %v9424_v9 = vsel %vm9422_vm14, %v9415_v40, %v17364_v62 }
 0xb79   : > { %9021 = vst.msk [vmem:[#allocation6 + $0x40] sm:$0xff] %vm2276_vm9, %v9005_v36  ;;  %v9432_v38 = vsel %vm4250_vm2, %v9424_v9, %v9257_v1 }
 0xb7d   : > { %v17378_v4 = vpop.permute.xlu1 %9226 }
 0xb7e   : > { %v17416_v12 = vpop.permute.xlu0 %9164 }
 0xb80   : > { %v9037_v60 = vld [vmem:[#allocation6 + $0x40] ss:$2 sm:$0xff]  ;;  %v9053_v35 = vld [vmem:[#allocation6 + $0x41] ss:$2 sm:$0xff] }
 0xb81   : > { %v9351_v58 = vpop.permute.xlu1 %9350  ;;  %v9064_v11 = vmax.f32 %v9037_v60, %v9053_v35 }
 0xb82   : > { %v9457_v13 = vsel %vm9456_vm0, %v9448_v2, %v9351_v58  ;;  %v9289_v29 = vpop.permute.xlu0 %9288 }
 0xb83   : > { %9073 = vst.msk [vmem:[#allocation4 + $0x51] sm:$0xff] %vm2276_vm9, %v9064_v11  ;;  %v9441_v17 = vsel %vm9439_vm11, %v9432_v38, %v9289_v29  ;;  %v9408_v29 = vsel %vm2276_vm9, %v17120_v52, %v17366_v19 }
 0xb85   : > { %v17385_v6 = vpop.permute.xlu1 %9258 }
 0xb89   : > { %v9383_v23 = vpop.permute.xlu1 %9382  ;;  %v11831_v5 = vpop.f32.mrb[52].mxu1 }
 0xb8a   : > { %v9465_v63 = vsel %vm6353_vm12, %v9457_v13, %v9383_v23  ;;  %v8847_v55 = vadd.f32 %v17332_v50, %v11831_v5  ;;  %v8841_v22 = vpop.f32.mrb[53].mxu1  ;;  %v17393_v26 = vld [vmem:[#allocation4 + $0x50] sm:$0xff] }
 0xb8b   : > { %v17395_v32 = vld [vmem:[#allocation4 + $0x51] sm:$0xff]  ;;  %v8842_v10 = vadd.f32 %v17332_v50, %v8841_v22  ;;  %9230 = vrot.lane.b32.xlu1 %v17393_v26, %s12328_s3  ;;  %11861 = vmatprep.mubr.msk.f32.mxu0 %vm9487_vm7, %v9465_v63 }
 0xb8c   : > { %9168 = vrot.lane.b32.xlu0 %v17395_v32, %s18396_s26  ;;  %v8921_v42 = vmax.f32 %v8847_v55, 0.0  ;;  %v9098_v53 = vld [vmem:[#allocation4 + $0x52] sm:$0xff] }
 0xb8d   : > { %v8920_v7 = vmax.f32 %v8842_v10, 0.0 }
 0xb8e   : > { %8953 = vst.msk [vmem:[#allocation5 + $0xa8] sm:$0xff] %vm2276_vm9, %v8921_v42 }
 0xb8f   : > { %8952 = vst.msk [vmem:[#allocation5 + $0xa0] sm:$0xff] %vm2276_vm9, %v8920_v7  ;;  %9354 = vrot.lane.b32.xlu1 %v17335_v21, %s12330_s28 }
 0xb90   : > { %9292 = vrot.lane.b32.xlu0 %v17350_v46, %s12329_s16 }
 0xb93   : > { %9262 = vrot.lane.b32.xlu1 %v17395_v32, %s18390_s2 }
 0xb94   : > { %9200 = vrot.lane.b32.xlu0 %v9098_v53, %s18387_s0 }
 0xb95   : > { %v8975_v3 = vld [vmem:[#allocation5 + $0xa8] sm:$0xff] }
 0xb96   : > { %v8974_v57 = vld [vmem:[#allocation5 + $0xa0] sm:$0xff] }
 0xb97   : > { %9386 = vrot.lane.b32.xlu1 %v17350_v46, %s18395_s22  ;;  %v17422_v46 = vpop.permute.xlu0 %9196 }
 0xb98   : > { %9324 = vrot.lane.b32.xlu0 %v17393_v26, %s12323_s19 }
 0xb9b   : > { %v9321_v49 = vpop.permute.xlu0 %9320 }
 0xb9c   : > { %v9449_v37 = vsel %vm4361_vm6, %v9441_v17, %v9321_v49 }
 0xba9   : > { %v11834_v25 = vpop.f32.mrb[54].mxu1 }
 0xbaa   : > { %v8857_v27 = vadd.f32 %v17332_v50, %v11834_v25  ;;  %v8851_v28 = vpop.f32.mrb[55].mxu1 }
 0xbab   : > { %v8852_v21 = vadd.f32 %v17332_v50, %v8851_v28 }
 0xbac   : > { %v8923_v41 = vmax.f32 %v8857_v27, 0.0 }
 0xbad   : > { %v8922_v18 = vmax.f32 %v8852_v21, 0.0 }
 0xbae   : > { %8955 = vst.msk [vmem:[#allocation5 + $0xb8] sm:$0xff] %vm2276_vm9, %v8923_v41 }
 0xbaf   : > { %8954 = vst.msk [vmem:[#allocation5 + $0xb0] sm:$0xff] %vm2276_vm9, %v8922_v18 }
 0xbb5   : > { %v8992_v39 = vld [vmem:[#allocation5 + $0xb8] sm:$0xff] }
 0xbb6   : > { %v9008_v48 = vmax.f32 %v8975_v3, %v8992_v39  ;;  %v8991_v44 = vld [vmem:[#allocation5 + $0xb0] sm:$0xff]  ;;  %v9416_v39 = vsel %vm656_vm13, %v9408_v29, %v17372_v20 }
 0xbb7   : > { %v9007_v24 = vmax.f32 %v8974_v57, %v8991_v44 }
 0xbb8   : > { %9024 = vst.msk [vmem:[#allocation6 + $0x58] sm:$0xff] %vm2276_vm9, %v9008_v48  ;;  %v9425_v48 = vsel %vm9422_vm14, %v9416_v39, %v17378_v4 }
 0xbb9   : > { %9023 = vst.msk [vmem:[#allocation6 + $0x50] sm:$0xff] %vm2276_vm9, %v9007_v24  ;;  %v9433_v44 = vsel %vm4250_vm2, %v9425_v48, %v17385_v6 }
 0xbbd   : > { %v17431_v56 = vpop.permute.xlu1 %9260 }
 0xbbe   : > { %v17433_v45 = vpop.permute.xlu0 %9228 }
 0xbc0   : > { %v9039_v36 = vld [vmem:[#allocation6 + $0x50] ss:$2 sm:$0xff]  ;;  %v9055_v51 = vld [vmem:[#allocation6 + $0x51] ss:$2 sm:$0xff] }
 0xbc1   : > { %v9385_v30 = vpop.permute.xlu1 %9384  ;;  %v9065_v61 = vmax.f32 %v9039_v36, %v9055_v51 }
 0xbc2   : > { %v9353_v16 = vpop.permute.xlu0 %9352 }
 0xbc3   : > { %v9458_v14 = vsel %vm9456_vm0, %v9449_v37, %v9353_v16  ;;  %9074 = vst.msk [vmem:[#allocation4 + $0x61] sm:$0xff] %vm2276_vm9, %v9065_v61 }
 0xbc4   : > { %v9466_v60 = vsel %vm6353_vm12, %v9458_v14, %v9385_v30 }
 0xbc5   : > { %11862 = vmatmul.mubr.msk.f32.vlgmr.msra.gmra.mrb[64].mxu0 %vm9487_vm7, %v9466_v60  ;;  %v17469_v22 = vpop.permute.xlu1 %9198 }
 0xbc6   : > { %v17473_v27 = vpop.permute.xlu0 %9166 }
 0xbc9   : > { %v11837_v62 = vpop.f32.mrb[56].mxu1  ;;  %v9323_v25 = vpop.permute.xlu1 %9322 }
 0xbca   : > { %v8867_v35 = vadd.f32 %v17332_v50, %v11837_v62  ;;  %v8861_v58 = vpop.f32.mrb[57].mxu1  ;;  %v17445_v11 = vld [vmem:[#allocation4 + $0x61] sm:$0xff]  ;;  %v9291_v57 = vpop.permute.xlu0 %9290 }
 0xbcb   : > { %v17447_v31 = vld [vmem:[#allocation4 + $0x60] sm:$0xff]  ;;  %v8862_v43 = vadd.f32 %v17332_v50, %v8861_v58  ;;  %9264 = vrot.lane.b32.xlu1 %v17445_v11, %s18390_s2  ;;  %v9442_v24 = vsel %vm9439_vm11, %v9433_v44, %v9291_v57 }
 0xbcc   : > { %9232 = vrot.lane.b32.xlu0 %v17447_v31, %s12328_s3  ;;  %v8925_v8 = vmax.f32 %v8867_v35, 0.0  ;;  %v9099_v54 = vld [vmem:[#allocation4 + $0x62] sm:$0xff]  ;;  %v9450_v52 = vsel %vm4361_vm6, %v9442_v24, %v9323_v25  ;;  %v9410_v24 = vsel %vm2276_vm9, %v17337_v33, %v17473_v27  ;;  %v17574_v27 = vld [vmem:[%s18293_s10] ss:$0 sm:$0xff] }
 0xbcd   : > { %v8924_v47 = vmax.f32 %v8862_v43, 0.0 }
 0xbce   : > { %8957 = vst.msk [vmem:[#allocation5 + $0xc8] sm:$0xff] %vm2276_vm9, %v8925_v8 }
 0xbcf   : > { %8956 = vst.msk [vmem:[#allocation5 + $0xc0] sm:$0xff] %vm2276_vm9, %v8924_v47  ;;  %9388 = vrot.lane.b32.xlu1 %v9098_v53, %s18395_s22 }
 0xbd0   : > { %9356 = vrot.lane.b32.xlu0 %v17395_v32, %s12330_s28 }
 0xbd3   : > { %9202 = vrot.lane.b32.xlu1 %v9099_v54, %s18387_s0 }
 0xbd4   : > { %9170 = vrot.lane.b32.xlu0 %v17445_v11, %s18396_s26 }
 0xbd5   : > { %v8977_v32 = vld [vmem:[#allocation5 + $0xc8] sm:$0xff] }
 0xbd6   : > { %v8976_v42 = vld [vmem:[#allocation5 + $0xc0] sm:$0xff] }
 0xbd7   : > { %9326 = vrot.lane.b32.xlu1 %v17447_v31, %s12323_s19 }
 0xbd8   : > { %9294 = vrot.lane.b32.xlu0 %v9098_v53, %s12329_s16 }
 0xbe9   : > { %v11840_v2 = vpop.f32.mrb[58].mxu1 }
 0xbea   : > { %v8877_v13 = vadd.f32 %v17332_v50, %v11840_v2  ;;  %v8871_v23 = vpop.f32.mrb[59].mxu1 }
 0xbeb   : > { %v8872_v5 = vadd.f32 %v17332_v50, %v8871_v23 }
 0xbec   : > { %v8927_v63 = vmax.f32 %v8877_v13, 0.0 }
 0xbed   : > { %v8926_v55 = vmax.f32 %v8872_v5, 0.0 }
 0xbee   : > { %8959 = vst.msk [vmem:[#allocation5 + $0xd8] sm:$0xff] %vm2276_vm9, %v8927_v63 }
 0xbef   : > { %8958 = vst.msk [vmem:[#allocation5 + $0xd0] sm:$0xff] %vm2276_vm9, %v8926_v55 }
 0xbf5   : > { %v8994_v10 = vld [vmem:[#allocation5 + $0xd8] sm:$0xff] }
 0xbf6   : > { %v9010_v7 = vmax.f32 %v8977_v32, %v8994_v10  ;;  %v8993_v1 = vld [vmem:[#allocation5 + $0xd0] sm:$0xff]  ;;  %v9409_v10 = vsel %vm2276_vm9, %v17207_v15, %v17416_v12 }
 0xbf7   : > { %v9009_v53 = vmax.f32 %v8976_v42, %v8993_v1  ;;  %v17528_v42 = vld [vmem:[#allocation4 + $0x90] sm:$0xff] }
 0xbf8   : > { %9026 = vst.msk [vmem:[#allocation6 + $0x68] sm:$0xff] %vm2276_vm9, %v9010_v7  ;;  %v9417_v7 = vsel %vm656_vm13, %v9409_v10, %v17422_v46 }
 0xbf9   : > { %9025 = vst.msk [vmem:[#allocation6 + $0x60] sm:$0xff] %vm2276_vm9, %v9009_v53  ;;  %v9426_v1 = vsel %vm9422_vm14, %v9417_v7, %v17433_v45 }
 0xbfa   : > { %v9434_v15 = vsel %vm4250_vm2, %v9426_v1, %v17431_v56 }
 0xbfd   : > { %v17475_v28 = vpop.permute.xlu1 %9230 }
 0xc00   : > { %v9041_v21 = vld [vmem:[#allocation6 + $0x60] ss:$2 sm:$0xff]  ;;  %v9057_v41 = vld [vmem:[#allocation6 + $0x61] ss:$2 sm:$0xff] }
 0xc01   : > { %v9355_v18 = vpop.permute.xlu1 %9354  ;;  %v9066_v3 = vmax.f32 %v9041_v21, %v9057_v41  ;;  %v17537_v21 = vld [vmem:[#allocation4 + $0x91] sm:$0xff] }
 0xc02   : > { %v9459_v19 = vsel %vm9456_vm0, %v9450_v52, %v9355_v18 }
 0xc03   : > { %9075 = vst.msk [vmem:[#allocation4 + $0x71] sm:$0xff] %vm2276_vm9, %v9066_v3  ;;  %v17547_v3 = vld [vmem:[#allocation4 + $0x92] sm:$0xff] }
 0xc05   : > { %v17488_v49 = vpop.permute.xlu1 %9262 }
 0xc09   : > { %v9387_v59 = vpop.permute.xlu1 %9386 }
 0xc0a   : > { %v9467_v20 = vsel %vm6353_vm12, %v9459_v19, %v9387_v59  ;;  %v11843_v40 = vpop.f32.mrb[60].mxu1  ;;  %v17493_v9 = vld [vmem:[#allocation4 + $0x70] sm:$0xff]  ;;  %v9418_v19 = vsel %vm656_vm13, %v9410_v24, %v17469_v22 }
 0xc0b   : > { %v9092_v4 = vld [vmem:[#allocation4 + $0x71] sm:$0xff]  ;;  %v8887_v38 = vadd.f32 %v17332_v50, %v11843_v40  ;;  %9234 = vrot.lane.b32.xlu1 %v17493_v9, %s12328_s3  ;;  %v8881_v6 = vpop.f32.mrb[61].mxu1  ;;  %11864 = vmatprep.mubr.msk.f32.mxu0 %vm9487_vm7, %v9467_v20  ;;  %v9427_v20 = vsel %vm9422_vm14, %v9418_v19, %v17475_v28 }
 0xc0c   : > { %9172 = vrot.lane.b32.xlu0 %v9092_v4, %s18396_s26  ;;  %v8882_v17 = vadd.f32 %v17332_v50, %v8881_v6  ;;  %v9100_v37 = vld [vmem:[#allocation4 + $0x72] sm:$0xff]  ;;  %v9435_v40 = vsel %vm4250_vm2, %v9427_v20, %v17488_v49 }
 0xc0d   : > { %v8929_v36 = vmax.f32 %v8887_v38, 0.0 }
 0xc0e   : > { %v8928_v51 = vmax.f32 %v8882_v17, 0.0 }
 0xc0f   : > { %8961 = vst.msk [vmem:[#allocation5 + $0xe8] sm:$0xff] %vm2276_vm9, %v8929_v36  ;;  %9358 = vrot.lane.b32.xlu1 %v17445_v11, %s12330_s28 }
 0xc10   : > { %9296 = vrot.lane.b32.xlu0 %v9099_v54, %s12329_s16  ;;  %8960 = vst.msk [vmem:[#allocation5 + $0xe0] sm:$0xff] %vm2276_vm9, %v8928_v51 }
 0xc13   : > { %9266 = vrot.lane.b32.xlu1 %v9092_v4, %s18390_s2 }
 0xc14   : > { %9204 = vrot.lane.b32.xlu0 %v9100_v37, %s18387_s0 }
 0xc16   : > { %v8979_v35 = vld [vmem:[#allocation5 + $0xe8] sm:$0xff] }
 0xc17   : > { %9390 = vrot.lane.b32.xlu1 %v9099_v54, %s18395_s22  ;;  %v11846_v30 = vpop.f32.mrb[62].mxu1  ;;  %v8978_v11 = vld [vmem:[#allocation5 + $0xe0] sm:$0xff]  ;;  %v17517_v54 = vpop.permute.xlu0 %9168 }
 0xc18   : > { %9328 = vrot.lane.b32.xlu0 %v17493_v9, %s12323_s19  ;;  %v8897_v16 = vadd.f32 %v17332_v50, %v11846_v30  ;;  %v8891_v61 = vpop.f32.mrb[63].mxu1 }
 0xc19   : > { %v8892_v14 = vadd.f32 %v17332_v50, %v8891_v61 }
 0xc1a   : > { %v8931_v60 = vmax.f32 %v8897_v16, 0.0 }
 0xc1b   : > { %v8930_v62 = vmax.f32 %v8892_v14, 0.0  ;;  %9298 = vrot.lane.b32.xlu1 %v9100_v37, %s12329_s16  ;;  %v9293_v50 = vpop.permute.xlu0 %9292 }
 0xc1c   : > { %8963 = vst.msk [vmem:[#allocation5 + $0xf8] sm:$0xff] %vm2276_vm9, %v8931_v60  ;;  %v9443_v12 = vsel %vm9439_vm11, %v9434_v15, %v9293_v50 }
 0xc1d   : > { %8962 = vst.msk [vmem:[#allocation5 + $0xf0] sm:$0xff] %vm2276_vm9, %v8930_v62 }
 0xc1f   : > { %v17521_v5 = vpop.permute.xlu0 %9200 }
 0xc23   : > { %v8996_v58 = vld [vmem:[#allocation5 + $0xf8] sm:$0xff]  ;;  %v9325_v32 = vpop.permute.xlu0 %9324 }
 0xc24   : > { %v9012_v43 = vmax.f32 %v8979_v35, %v8996_v58  ;;  %v8995_v8 = vld [vmem:[#allocation5 + $0xf0] sm:$0xff]  ;;  %v9451_v46 = vsel %vm4361_vm6, %v9443_v12, %v9325_v32  ;;  %v9411_v58 = vsel %vm2276_vm9, %v17393_v26, %v17517_v54 }
 0xc25   : > { %v9011_v47 = vmax.f32 %v8978_v11, %v8995_v8 }
 0xc26   : > { %9028 = vst.msk [vmem:[#allocation6 + $0x78] sm:$0xff] %vm2276_vm9, %v9012_v43  ;;  %v9419_v43 = vsel %vm656_vm13, %v9411_v58, %v17521_v5  ;;  %v17633_v58 = vld [vmem:[#allocation4 + $0x2] sm:$0xff] }
 0xc27   : > { %9027 = vst.msk [vmem:[#allocation6 + $0x70] sm:$0xff] %vm2276_vm9, %v9011_v47 }
 0xc2e   : > { %v9043_v2 = vld [vmem:[#allocation6 + $0x70] ss:$2 sm:$0xff]  ;;  %v9059_v13 = vld [vmem:[#allocation6 + $0x71] ss:$2 sm:$0xff] }
 0xc2f   : > { %v9067_v23 = vmax.f32 %v9043_v2, %v9059_v13 }
 0xc31   : > { %9076 = vst.msk [vmem:[#allocation4 + $0x81] sm:$0xff] %vm2276_vm9, %v9067_v23 }
 0xc38   : > { %v9124_v63 = vld [vmem:[#allocation4 + $0x82] sm:$0xff] }
 0xc39   : > { %v9108_v55 = vld [vmem:[#allocation4 + $0x80] sm:$0xff]  ;;  %9300 = vrot.lane.b32.xlu1 %v9124_v63, %s12329_s16 }
 0xc3a   : > { %9236 = vrot.lane.b32.xlu0 %v9108_v55, %s12328_s3  ;;  %v9116_v41 = vld [vmem:[#allocation4 + $0x81] sm:$0xff]  ;;  %s18398_s3 = smov 56  }
 0xc3d   : > { %v9265_v53 = vpop.permute.xlu1 %9264  ;;  %9332 = vrot.lane.b32.xlu1 %v17528_v42, %s12323_s19 }
 0xc3e   : > { %9360 = vrot.lane.b32.xlu0 %v9092_v4, %s12330_s28  ;;  %v9233_v25 = vpop.permute.xlu0 %9232 }
 0xc3f   : > { %v9428_v47 = vsel %vm9422_vm14, %v9419_v43, %v9233_v25 }
 0xc40   : > { %v9436_v2 = vsel %vm4250_vm2, %v9428_v47, %v9265_v53  ;;  %v10066_v47 = vld [vmem:[%s18294_s11] sm:$0xff] }
 0xc41   : > { %v9389_v29 = vpop.permute.xlu1 %9388  ;;  %9364 = vrot.lane.b32.xlu1 %v17537_v21, %s12330_s28 }
 0xc42   : > { %9268 = vrot.lane.b32.xlu0 %v9116_v41, %s18390_s2  ;;  %v9357_v45 = vpop.permute.xlu0 %9356  ;;  %s12332_s2 = smov 50  }
 0xc43   : > { %v9460_v18 = vsel %vm9456_vm0, %v9451_v46, %v9357_v45 }
 0xc44   : > { %v9468_v39 = vsel %vm6353_vm12, %v9460_v18, %v9389_v29 }
 0xc45   : > { %11865 = vmatmul.mubr.msk.f32.gmra.mrb[66].mxu0 %vm9487_vm7, %v9468_v39  ;;  %9396 = vrot.lane.b32.xlu1 %v17547_v3, %s18395_s22  ;;  %v9203_v56 = vpop.permute.xlu1 %9202 }
 0xc46   : > { %9392 = vrot.lane.b32.xlu0 %v9100_v37, %s18395_s22  ;;  %v9171_v48 = vpop.permute.xlu0 %9170 }
 0xc47   : > { %v9412_v1 = vsel %vm2276_vm9, %v17447_v31, %v9171_v48 }
 0xc48   : > { %v9420_v15 = vsel %vm656_vm13, %v9412_v1, %v9203_v56 }
 0xc49   : > { %v9327_v57 = vpop.permute.xlu1 %9326 }
 0xc4a   : > { %9330 = vrot.lane.b32.xlu0 %v9108_v55, %s12323_s19  ;;  %v9295_v59 = vpop.permute.xlu0 %9294  ;;  %s12333_s19 = smov 70  }
 0xc4b   : > { %v9444_v4 = vsel %vm9439_vm11, %v9435_v40, %v9295_v59 }
 0xc4c   : > { %v9452_v6 = vsel %vm4361_vm6, %v9444_v4, %v9327_v57 }
 0xc4e   : > { %9362 = vrot.lane.b32.xlu0 %v9116_v41, %s12330_s28 }
 0xc52   : > { %9394 = vrot.lane.b32.xlu0 %v9124_v63, %s18395_s22  ;;  %s12331_s22 = smov 10  }
 0xc7d   : > { %v9235_v44 = vpop.permute.xlu1 %9234 }
 0xc7e   : > { %v9173_v22 = vpop.permute.xlu0 %9172  ;;  %v9429_v12 = vsel %vm9422_vm14, %v9420_v15, %v9235_v44 }
 0xc7f   : > { %v9413_v23 = vsel %vm2276_vm9, %v17493_v9, %v9173_v22  ;;  %vm9661_vm9 = vcmask 80944  }
 0xc81   : > { %v9359_v52 = vpop.permute.xlu1 %9358 }
 0xc82   : > { %v9461_v17 = vsel %vm9456_vm0, %v9452_v6, %v9359_v52  ;;  %v9297_v16 = vpop.permute.xlu0 %9296 }
 0xc83   : > { %v9445_v13 = vsel %vm9439_vm11, %v9436_v2, %v9297_v16 }
 0xc85   : > { %v9267_v38 = vpop.permute.xlu1 %9266 }
 0xc86   : > { %v9205_v14 = vpop.permute.xlu0 %9204  ;;  %v9437_v29 = vsel %vm4250_vm2, %v9429_v12, %v9267_v38 }
 0xc87   : > { %v9421_v26 = vsel %vm656_vm13, %v9413_v23, %v9205_v14  ;;  %v10069_v23 = vld [vmem:[%s18294_s11 + $0x18] sm:$0xff]  ;;  %vm10110_vm13 = vcmask 1041408  }
 0xc89   : > { %v9391_v36 = vpop.permute.xlu1 %9390 }
 0xc8a   : > { %v9469_v33 = vsel %vm6353_vm12, %v9461_v17, %v9391_v36  ;;  %v9329_v60 = vpop.permute.xlu0 %9328 }
 0xc8b   : > { %11867 = vmatprep.mubr.msk.f32.mxu0 %vm9487_vm7, %v9469_v33  ;;  %v9453_v63 = vsel %vm4361_vm6, %v9445_v13, %v9329_v60  ;;  %v10068_v13 = vld [vmem:[%s18294_s11 + $0x10] sm:$0xff] }
 0xc8d   : > { %v9299_v35 = vpop.permute.xlu1 %9298 }
 0xc8e   : > { %v9446_v45 = vsel %vm9439_vm11, %v9437_v29, %v9299_v35 }
 0xc98   : > { %v11863_v28 = vpop.f32.mrb[64].mxu0 }
 0xc99   : > { %v9588_v49 = vadd.f32 %v11863_v28, %v17574_v27  ;;  %v9582_v51 = vpop.f32.mrb[65].mxu0 }
 0xc9a   : > { %v9583_v37 = vadd.f32 %v17574_v27, %v9582_v51 }
 0xc9b   : > { %v9622_v30 = vmax.f32 %v9588_v49, 0.0 }
 0xc9c   : > { %v9621_v61 = vmax.f32 %v9583_v37, 0.0 }
 0xc9d   : > { %9639 = vrot.lane.b32.xlu1 %v9622_v30, %s18396_s26 }
 0xc9e   : > { %9637 = vrot.lane.b32.xlu0 %v9621_v61, %s18396_s26 }
 0xcab   : > { %v9301_v8 = vpop.permute.xlu1 %9300 }
 0xcac   : > { %v9237_v62 = vpop.permute.xlu0 %9236 }
 0xcad   : > { %v9430_v5 = vsel %vm9422_vm14, %v9421_v26, %v9237_v62  ;;  %v17628_v62 = vld [vmem:[#allocation4 + $0x1] sm:$0xff]  ;;  %vm10057_vm14 = vcmask 654336  }
 0xcae   : > { %v10070_v26 = vld [vmem:[%s18294_s11 + $0x20] sm:$0xff] }
 0xcaf   : > { %v9333_v55 = vpop.permute.xlu1 %9332 }
 0xcb0   : > { %v9361_v11 = vpop.permute.xlu0 %9360 }
 0xcb1   : > { %v9462_v54 = vsel %vm9456_vm0, %v9453_v63, %v9361_v11  ;;  %v12071_v63 = vpack.c.bf16 %v10069_v23, %v10068_v13 }
 0xcb3   : > { %v9365_v53 = vpop.permute.xlu1 %9364 }
 0xcb4   : > { %v9269_v50 = vpop.permute.xlu0 %9268 }
 0xcb5   : > { %v9438_v7 = vsel %vm4250_vm2, %v9430_v5, %v9269_v50  ;;  %v10067_v50 = vld [vmem:[%s18294_s11 + $0x8] sm:$0xff]  ;;  %vm12088_vm2 = vmpackc.low %vm10110_vm13, %vm12311_vm3  ;;  %vm18401_vm13 = vcmask 687104  }
 0xcb6   : > { %v9447_v25 = vsel %vm9439_vm11, %v9438_v7, %v9301_v8  ;;  %v12067_v2 = vpack.c.bf16 %v10067_v50, %v10066_v47  ;;  %v10073_v7 = vld [vmem:[%s18294_s11 + $0x38] sm:$0xff] }
 0xcb7   : > { %v9455_v41 = vsel %vm4361_vm6, %v9447_v25, %v9333_v55  ;;  %v9397_v18 = vpop.permute.xlu1 %9396  ;;  %v10075_v25 = vld [vmem:[%s18294_s11 + $0x48] sm:$0xff] }
 0xcb8   : > { %v9393_v32 = vpop.permute.xlu0 %9392  ;;  %v9464_v39 = vsel %vm9456_vm0, %v9455_v41, %v9365_v53  ;;  %12068 = vmatprep.subr.bf16.mxu1 %v12067_v2  ;;  %v10074_v53 = vld [vmem:[%s18294_s11 + $0x40] sm:$0xff]  ;;  %v10076_v41 = vld [vmem:[%s18294_s11 + $0x50] sm:$0xff] }
 0xcb9   : > { %v9470_v10 = vsel %vm6353_vm12, %v9462_v54, %v9393_v32  ;;  %v9472_v56 = vsel %vm6353_vm12, %v9464_v39, %v9397_v18  ;;  %12070 = vmatpush3.bf16.msra.mxu1 %v12067_v2  ;;  %v10071_v54 = vld [vmem:[%s18294_s11 + $0x28] sm:$0xff]  ;;  %v12083_v12 = vpack.c.bf16 %v10075_v25, %v10074_v53 }
 0xcba   : > { %11868 = vmatmul.mubr.msk.f32.gmra.mrb[68].mxu0 %vm9487_vm7, %v9470_v10  ;;  %12072 = vmatprep.subr.bf16.mxu1 %v12071_v63  ;;  %v12075_v5 = vpack.c.bf16 %v10071_v54, %v10070_v26  ;;  %v10072_v10 = vld [vmem:[%s18294_s11 + $0x30] sm:$0xff] }
 0xcbb   : > { %v12079_v1 = vpack.c.bf16 %v10073_v7, %v10072_v10 }
 0xcbc   : > { %v9331_v9 = vpop.permute.xlu0 %9330 }
 0xcbd   : > { %v9454_v31 = vsel %vm4361_vm6, %v9446_v45, %v9331_v9  ;;  %12074 = vmatpush3.bf16.msra.mxu1 %v12071_v63  ;;  %vm9998_vm6 = vcmask 80896  }
 0xcbe   : > { %12076 = vmatprep.subr.bf16.mxu1 %v12075_v5 }
 0xcc0   : > { %v9363_v46 = vpop.permute.xlu0 %9362 }
 0xcc1   : > { %v9463_v57 = vsel %vm9456_vm0, %v9454_v31, %v9363_v46  ;;  %12078 = vmatpush3.bf16.msra.mxu1 %v12075_v5  ;;  %v10077_v46 = vld [vmem:[%s18294_s11 + $0x58] sm:$0x3] }
 0xcc2   : > { %12080 = vmatprep.subr.bf16.mxu1 %v12079_v1  ;;  %v12087_v29 = vpack.c.bf16 %v10077_v46, %v10076_v41 }
 0xcc4   : > { %v9395_v48 = vpop.permute.xlu0 %9394 }
 0xcc5   : > { %v9471_v24 = vsel %vm6353_vm12, %v9463_v57, %v9395_v48  ;;  %12082 = vmatpush3.bf16.msra.mxu1 %v12079_v1  ;;  %vm10031_vm12 = vcmask 408576  }
 0xcc6   : > { %11870 = vmatprep.mubr.msk.f32.mxu0 %vm9487_vm7, %v9471_v24  ;;  %12084 = vmatprep.subr.bf16.mxu1 %v12083_v12 }
 0xcc7   : > { %11871 = vmatmul.mubr.msk.f32.gmra.mrb[70].mxu0 %vm9487_vm7, %v9472_v56  ;;  %vm10048_vm7 = vcmask 572416  }
 0xcc9   : > { %12086 = vmatpush3.bf16.msra.mxu1 %v12083_v12 }
 0xcca   : > { %12089 = vmatprep.subr.msk.bf16.mxu1 %vm12088_vm2, %v12087_v29 }
 0xccd   : > { %12092 = vmatpush3.bf16.msk.msra.mxu1 %vm12088_vm2, %v12087_v29  ;;  %vm10685_vm2 = vcmask 1031168  }
 0xd0f   : > { %v9640_v44 = vpop.permute.xlu1 %9639 }
 0xd10   : > { %v9638_v52 = vpop.permute.xlu0 %9637  ;;  %9663 = vst.msk [vmem:[#allocation4 + $0x21] sm:$0xff] %vm9661_vm9, %v9640_v44 }
 0xd11   : > { %9662 = vst.msk [vmem:[#allocation4 + $0x11] sm:$0xff] %vm9661_vm9, %v9638_v52 }
 0xd17   : > { %v9680_v8 = vld [vmem:[#allocation4 + $0x21] sm:$0xff] }
 0xd18   : > { %v11866_v19 = vpop.f32.mrb[66].mxu0  ;;  %v9679_v35 = vld [vmem:[#allocation4 + $0x11] sm:$0xff]  ;;  %v9688_v55 = vld [vmem:[#allocation4 + $0x22] sm:$0xff] }
 0xd19   : > { %v9598_v59 = vadd.f32 %v11866_v19, %v17574_v27  ;;  %v9592_v20 = vpop.f32.mrb[67].mxu0  ;;  %v9687_v11 = vld [vmem:[#allocation4 + $0x12] sm:$0xff] }
 0xd1a   : > { %v9593_v40 = vadd.f32 %v17574_v27, %v9592_v20  ;;  %v17642_v43 = vld [vmem:[#allocation4 + $0x10] sm:$0xff] }
 0xd1b   : > { %v9624_v4 = vmax.f32 %v9598_v59, 0.0 }
 0xd1c   : > { %v9623_v38 = vmax.f32 %v9593_v40, 0.0 }
 0xd1d   : > { %9643 = vrot.lane.b32.xlu1 %v9624_v4, %s18396_s26 }
 0xd1e   : > { %9641 = vrot.lane.b32.xlu0 %v9623_v38, %s18396_s26 }
 0xd8d   : > { %v11869_v6 = vpop.f32.mrb[68].mxu0 }
 0xd8e   : > { %v9608_v17 = vadd.f32 %v11869_v6, %v17574_v27  ;;  %v9602_v36 = vpop.f32.mrb[69].mxu0 }
 0xd8f   : > { %v9603_v33 = vadd.f32 %v17574_v27, %v9602_v36  ;;  %v9644_v22 = vpop.permute.xlu1 %9643 }
 0xd90   : > { %v9626_v28 = vmax.f32 %v9608_v17, 0.0  ;;  %9665 = vst.msk [vmem:[#allocation4 + $0x41] sm:$0xff] %vm9661_vm9, %v9644_v22  ;;  %v9642_v49 = vpop.permute.xlu0 %9641 }
 0xd91   : > { %v9625_v51 = vmax.f32 %v9603_v33, 0.0  ;;  %9664 = vst.msk [vmem:[#allocation4 + $0x31] sm:$0xff] %vm9661_vm9, %v9642_v49 }
 0xd92   : > { %9647 = vrot.lane.b32.xlu1 %v9626_v28, %s18396_s26 }
 0xd93   : > { %9645 = vrot.lane.b32.xlu0 %v9625_v51, %s18396_s26 }
 0xd97   : > { %v17701_v45 = vld [vmem:[#allocation4 + $0x40] sm:$0xff] }
 0xd98   : > { %v9681_v32 = vld [vmem:[#allocation4 + $0x31] sm:$0xff]  ;;  %v9705_v18 = vld [vmem:[#allocation4 + $0x41] sm:$0xff] }
 0xd99   : > { %v17679_v9 = vld [vmem:[#allocation4 + $0x30] sm:$0xff]  ;;  %v9690_v39 = vld [vmem:[#allocation4 + $0x42] sm:$0xff] }
 0xd9a   : > { %v11872_v37 = vpop.f32.mrb[70].mxu0  ;;  %v9689_v15 = vld [vmem:[#allocation4 + $0x32] sm:$0xff] }
 0xd9b   : > { %v9618_v30 = vadd.f32 %v11872_v37, %v17574_v27  ;;  %v9612_v16 = vpop.f32.mrb[71].mxu0 }
 0xd9c   : > { %v9613_v61 = vadd.f32 %v17574_v27, %v9612_v16  ;;  %v17638_v27 = vld [vmem:[#allocation4 + $0x20] sm:$0xff] }
 0xd9d   : > { %v9628_v14 = vmax.f32 %v9618_v30, 0.0 }
 0xd9e   : > { %v9627_v60 = vmax.f32 %v9613_v61, 0.0 }
 0xd9f   : > { %9651 = vrot.lane.b32.xlu1 %v9628_v14, %s18396_s26 }
 0xda0   : > { %9649 = vrot.lane.b32.xlu0 %v9627_v60, %s18396_s26  ;;  %s12334_s26 = smov 80  }
 0xda3   : > { %9752 = vrot.lane.b32.xlu1 %v9679_v35, %s12331_s22 }
 0xda4   : > { %9750 = vrot.lane.b32.xlu0 %v17628_v62, %s12331_s22 }
 0xda7   : > { %9784 = vrot.lane.b32.xlu1 %v9687_v11, %s18389_s29 }
 0xda8   : > { %9782 = vrot.lane.b32.xlu0 %v17633_v58, %s18389_s29 }
 0xdab   : > { %9816 = vrot.lane.b32.xlu1 %v17638_v27, %s12329_s16 }
 0xdac   : > { %9814 = vrot.lane.b32.xlu0 %v17642_v43, %s12329_s16 }
 0xdaf   : > { %9754 = vrot.lane.b32.xlu1 %v9680_v8, %s12331_s22 }
 0xdb0   : > { %9846 = vrot.lane.b32.xlu0 %v9679_v35, %s18394_s21 }
 0xdb3   : > { %9878 = vrot.lane.b32.xlu1 %v9687_v11, %s12332_s2 }
 0xdb4   : > { %9848 = vrot.lane.b32.xlu0 %v9680_v8, %s18394_s21 }
 0xdb7   : > { %9786 = vrot.lane.b32.xlu1 %v9688_v55, %s18389_s29 }
 0xdb8   : > { %9756 = vrot.lane.b32.xlu0 %v9681_v32, %s12331_s22 }
 0xdbb   : > { %9910 = vrot.lane.b32.xlu1 %v17638_v27, %s12324_s27 }
 0xdbc   : > { %9880 = vrot.lane.b32.xlu0 %v9688_v55, %s12332_s2 }
 0xdbf   : > { %9818 = vrot.lane.b32.xlu1 %v17679_v9, %s12329_s16 }
 0xdc0   : > { %9788 = vrot.lane.b32.xlu0 %v9689_v15, %s18389_s29 }
 0xdc3   : > { %9942 = vrot.lane.b32.xlu1 %v9680_v8, %s12333_s19 }
 0xdc4   : > { %9912 = vrot.lane.b32.xlu0 %v17679_v9, %s12324_s27 }
 0xdc7   : > { %9850 = vrot.lane.b32.xlu1 %v9681_v32, %s18394_s21 }
 0xdc8   : > { %9820 = vrot.lane.b32.xlu0 %v17701_v45, %s12329_s16 }
 0xdcb   : > { %9974 = vrot.lane.b32.xlu1 %v9688_v55, %s12334_s26 }
 0xdcc   : > { %9944 = vrot.lane.b32.xlu0 %v9681_v32, %s12333_s19 }
 0xdcf   : > { %9852 = vrot.lane.b32.xlu1 %v9705_v18, %s18394_s21 }
 0xdd0   : > { %9758 = vrot.lane.b32.xlu0 %v9705_v18, %s12331_s22 }
 0xdd3   : > { %9976 = vrot.lane.b32.xlu1 %v9689_v15, %s12334_s26 }
 0xdd4   : > { %9882 = vrot.lane.b32.xlu0 %v9689_v15, %s12332_s2 }
 0xdd7   : > { %9790 = vrot.lane.b32.xlu1 %v9690_v39, %s18389_s29 }
 0xddb   : > { %9914 = vrot.lane.b32.xlu1 %v17701_v45, %s12324_s27 }
 0xe04   : > { %v9648_v31 = vpop.permute.xlu1 %9647 }
 0xe05   : > { %9667 = vst.msk [vmem:[#allocation4 + $0x61] sm:$0xff] %vm9661_vm9, %v9648_v31  ;;  %v9646_v57 = vpop.permute.xlu0 %9645 }
 0xe06   : > { %9666 = vst.msk [vmem:[#allocation4 + $0x51] sm:$0xff] %vm9661_vm9, %v9646_v57 }
 0xe0c   : > { %v9707_v38 = vld [vmem:[#allocation4 + $0x61] sm:$0xff] }
 0xe0d   : > { %v17716_v48 = vld [vmem:[#allocation4 + $0x50] sm:$0xff]  ;;  %v17732_v6 = vld [vmem:[#allocation4 + $0x60] sm:$0xff] }
 0xe0e   : > { %v9683_v24 = vld [vmem:[#allocation4 + $0x51] sm:$0xff]  ;;  %9822 = vrot.lane.b32.xlu1 %v17716_v48, %s12329_s16  ;;  %v9692_v28 = vld [vmem:[#allocation4 + $0x62] sm:$0xff] }
 0xe0f   : > { %9760 = vrot.lane.b32.xlu0 %v9683_v24, %s12331_s22  ;;  %v9691_v19 = vld [vmem:[#allocation4 + $0x52] sm:$0xff] }
 0xe11   : > { %v9652_v56 = vpop.permute.xlu1 %9651 }
 0xe12   : > { %9669 = vst.msk [vmem:[#allocation4 + $0x81] sm:$0xff] %vm9661_vm9, %v9652_v56  ;;  %9946 = vrot.lane.b32.xlu1 %v9705_v18, %s12333_s19  ;;  %v9650_v44 = vpop.permute.xlu0 %9649 }
 0xe13   : > { %9884 = vrot.lane.b32.xlu0 %v9690_v39, %s12332_s2  ;;  %9668 = vst.msk [vmem:[#allocation4 + $0x71] sm:$0xff] %vm9661_vm9, %v9650_v44  ;;  %vm10085_vm9 = vcmask 736256  }
 0xe15   : > { %v17725_v52 = vpop.permute.xlu1 %9752 }
 0xe16   : > { %9854 = vrot.lane.b32.xlu1 %v9683_v24, %s18394_s21  ;;  %v9751_v59 = vpop.permute.xlu0 %9750  ;;  %v10000_v7 = vsel %vm9998_vm6, %v17642_v43, %v17725_v52 }
 0xe17   : > { %9792 = vrot.lane.b32.xlu0 %v9691_v19, %s18389_s29  ;;  %v9999_v11 = vsel %vm9998_vm6, %v17376_v34, %v9751_v59 }
 0xe19   : > { %v9785_v20 = vpop.permute.xlu1 %9784  ;;  %v9701_v5 = vld [vmem:[#allocation4 + $0x80] sm:$0xff] }
 0xe1a   : > { %9978 = vrot.lane.b32.xlu1 %v9690_v39, %s12334_s26  ;;  %v9783_v40 = vpop.permute.xlu0 %9782  ;;  %v17750_v16 = vld [vmem:[#allocation4 + $0x70] sm:$0xff]  ;;  %v10008_v1 = vsel %vm4217_vm1, %v10000_v7, %v9785_v20  ;;  %v9717_v15 = vld [vmem:[#allocation4 + $0x82] sm:$0xff] }
 0xe1b   : > { %9916 = vrot.lane.b32.xlu0 %v17716_v48, %s12324_s27  ;;  %v9685_v61 = vld [vmem:[#allocation4 + $0x71] sm:$0xff]  ;;  %v10007_v50 = vsel %vm4217_vm1, %v9999_v11, %v9783_v40  ;;  %v9709_v39 = vld [vmem:[#allocation4 + $0x81] sm:$0xff] }
 0xe1c   : > { %v9693_v47 = vld [vmem:[#allocation4 + $0x72] sm:$0xff] }
 0xe1d   : > { %v9817_v4 = vpop.permute.xlu1 %9816 }
 0xe1e   : > { %9856 = vrot.lane.b32.xlu1 %v9707_v38, %s18394_s21  ;;  %v9815_v17 = vpop.permute.xlu0 %9814  ;;  %v10016_v53 = vsel %vm9439_vm11, %v10008_v1, %v9817_v4 }
 0xe1f   : > { %9824 = vrot.lane.b32.xlu0 %v17732_v6, %s12329_s16  ;;  %v10015_v13 = vsel %vm9439_vm11, %v10007_v50, %v9815_v17 }
 0xe21   : > { %v17737_v36 = vpop.permute.xlu1 %9754 }
 0xe22   : > { %9980 = vrot.lane.b32.xlu1 %v9691_v19, %s12334_s26  ;;  %v9847_v33 = vpop.permute.xlu0 %9846 }
 0xe23   : > { %9948 = vrot.lane.b32.xlu0 %v9683_v24, %s12333_s19  ;;  %v10023_v63 = vsel %vm6320_vm8, %v10015_v13, %v9847_v33 }
 0xe25   : > { %v9879_v22 = vpop.permute.xlu1 %9878 }
 0xe26   : > { %9794 = vrot.lane.b32.xlu1 %v9692_v28, %s18389_s29  ;;  %v9849_v49 = vpop.permute.xlu0 %9848  ;;  %v10032_v34 = vsel %vm10031_vm12, %v10023_v63, %v9879_v22 }
 0xe27   : > { %9762 = vrot.lane.b32.xlu0 %v9707_v38, %s12331_s22  ;;  %v10024_v12 = vsel %vm6320_vm8, %v10016_v53, %v9849_v49 }
 0xe29   : > { %v17743_v51 = vpop.permute.xlu1 %9786 }
 0xe2a   : > { %9918 = vrot.lane.b32.xlu1 %v17732_v6, %s12324_s27  ;;  %v17748_v37 = vpop.permute.xlu0 %9756 }
 0xe2b   : > { %9886 = vrot.lane.b32.xlu0 %v9691_v19, %s12332_s2 }
 0xe2d   : > { %v9911_v30 = vpop.permute.xlu1 %9910 }
 0xe2e   : > { %9826 = vrot.lane.b32.xlu1 %v17750_v16, %s12329_s16  ;;  %v9881_v14 = vpop.permute.xlu0 %9880  ;;  %v10040_v55 = vsel %vm8423_vm15, %v10032_v34, %v9911_v30 }
 0xe2f   : > { %9764 = vrot.lane.b32.xlu0 %v9685_v61, %s12331_s22  ;;  %v10033_v46 = vsel %vm10031_vm12, %v10024_v12, %v9881_v14 }
 0xe31   : > { %v17755_v60 = vpop.permute.xlu1 %9818 }
 0xe32   : > { %9950 = vrot.lane.b32.xlu1 %v9707_v38, %s12333_s19  ;;  %v17759_v35 = vpop.permute.xlu0 %9788 }
 0xe33   : > { %9888 = vrot.lane.b32.xlu0 %v9692_v28, %s12332_s2 }
 0xe35   : > { %v9943_v8 = vpop.permute.xlu1 %9942 }
 0xe36   : > { %9858 = vrot.lane.b32.xlu1 %v9685_v61, %s18394_s21  ;;  %v9913_v2 = vpop.permute.xlu0 %9912  ;;  %v10049_v54 = vsel %vm10048_vm7, %v10040_v55, %v9943_v8 }
 0xe37   : > { %9796 = vrot.lane.b32.xlu0 %v9693_v47, %s18389_s29  ;;  %v10041_v29 = vsel %vm8423_vm15, %v10033_v46, %v9913_v2  ;;  %s18397_s29 = smov 84  }
 0xe39   : > { %v9851_v23 = vpop.permute.xlu1 %9850 }
 0xe3a   : > { %9982 = vrot.lane.b32.xlu1 %v9692_v28, %s12334_s26  ;;  %v17773_v26 = vpop.permute.xlu0 %9820 }
 0xe3b   : > { %9920 = vrot.lane.b32.xlu0 %v17750_v16, %s12324_s27 }
 0xe3d   : > { %v9975_v32 = vpop.permute.xlu1 %9974 }
 0xe3e   : > { %v10058_v10 = vsel %vm10057_vm14, %v10049_v54, %v9975_v32  ;;  %9890 = vrot.lane.b32.xlu1 %v9693_v47, %s12332_s2  ;;  %v9945_v41 = vpop.permute.xlu0 %9944 }
 0xe3f   : > { %9828 = vrot.lane.b32.xlu0 %v9701_v5, %s12329_s16  ;;  %11897 = vmatprep.mubr.msk.f32.mxu1 %vm10085_vm9, %v10058_v10  ;;  %v10050_v43 = vsel %vm10048_vm7, %v10041_v29, %v9945_v41  ;;  %s12346_s16 = smov 105  }
 0xe41   : > { %v9853_v25 = vpop.permute.xlu1 %9852 }
 0xe42   : > { %9892 = vrot.lane.b32.xlu1 %v9717_v15, %s12332_s2  ;;  %v9759_v57 = vpop.permute.xlu0 %9758 }
 0xe43   : > { %9952 = vrot.lane.b32.xlu0 %v9685_v61, %s12333_s19  ;;  %v10003_v34 = vsel %vm9998_vm6, %v17701_v45, %v9759_v57 }
 0xe45   : > { %v9977_v18 = vpop.permute.xlu1 %9976 }
 0xe46   : > { %v10059_v31 = vsel %vm10057_vm14, %v10050_v43, %v9977_v18  ;;  %9924 = vrot.lane.b32.xlu1 %v17528_v42, %s12324_s27  ;;  %v9883_v56 = vpop.permute.xlu0 %9882 }
 0xe47   : > { %9860 = vrot.lane.b32.xlu0 %v9709_v39, %s18394_s21  ;;  %11898 = vmatmul.mubr.msk.f32.vlgmr.msra.gmra.mrb[64].mxu1 %vm10085_vm9, %v10059_v31  ;;  %s12335_s21 = smov 14  }
 0xe49   : > { %v9791_v24 = vpop.permute.xlu1 %9790 }
 0xe4a   : > { %9956 = vrot.lane.b32.xlu1 %v17537_v21, %s12333_s19  ;;  %v10011_v54 = vsel %vm4217_vm1, %v10003_v34, %v9791_v24 }
 0xe4b   : > { %9984 = vrot.lane.b32.xlu0 %v9693_v47, %s12334_s26 }
 0xe4e   : > { %9988 = vrot.lane.b32.xlu1 %v17547_v3, %s12334_s26  ;;  %v9915_v3 = vpop.permute.xlu1 %9914 }
 0xe4f   : > { %9922 = vrot.lane.b32.xlu0 %v9701_v5, %s12324_s27  ;;  %s12336_s27 = smov 98  }
 0xe52   : > { %10522 = vrot.lane.b32.xlu1 %v17528_v42, %s18397_s29  ;;  %v10001_v42 = vsel %vm9998_vm6, %v17638_v27, %v17737_v36  ;;  %v10002_v36 = vsel %vm9998_vm6, %v17679_v9, %v17748_v37 }
 0xe53   : > { %9954 = vrot.lane.b32.xlu0 %v9709_v39, %s12333_s19  ;;  %v10009_v20 = vsel %vm4217_vm1, %v10001_v42, %v17743_v51  ;;  %v10010_v49 = vsel %vm4217_vm1, %v10002_v36, %v17759_v35 }
 0xe54   : > { %v10018_v61 = vsel %vm9439_vm11, %v10010_v49, %v17773_v26 }
 0xe55   : > { %v10026_v14 = vsel %vm6320_vm8, %v10018_v61, %v9853_v25 }
 0xe56   : > { %10554 = vrot.lane.b32.xlu1 %v17537_v21, %s12336_s27 }
 0xe57   : > { %9986 = vrot.lane.b32.xlu0 %v9717_v15, %s12334_s26  ;;  %s12345_s26 = smov 91  }
 0xe5b   : > { %10348 = vrot.lane.b32.xlu0 %v17628_v62, %s12335_s21  ;;  %v10017_v62 = vsel %vm9439_vm11, %v10009_v20, %v17755_v60 }
 0xe5c   : > { %v10025_v4 = vsel %vm6320_vm8, %v10017_v62, %v9851_v23 }
 0xe5d   : > { %v10034_v38 = vsel %vm10031_vm12, %v10025_v4, %v9883_v56 }
 0xe5e   : > { %v10042_v17 = vsel %vm8423_vm15, %v10034_v38, %v9915_v3 }
 0xe5f   : > { %10380 = vrot.lane.b32.xlu0 %v17633_v58, %s18391_s23 }
 0xe80   : > { %v9823_v44 = vpop.permute.xlu1 %9822 }
 0xe81   : > { %v9761_v52 = vpop.permute.xlu0 %9760  ;;  %v10019_v32 = vsel %vm9439_vm11, %v10011_v54, %v9823_v44 }
 0xe82   : > { %v10004_v46 = vsel %vm9998_vm6, %v17716_v48, %v9761_v52 }
 0xe84   : > { %v9947_v19 = vpop.permute.xlu1 %9946 }
 0xe85   : > { %v9885_v59 = vpop.permute.xlu0 %9884  ;;  %v10051_v33 = vsel %vm10048_vm7, %v10042_v17, %v9947_v19 }
 0xe86   : > { %v10035_v60 = vsel %vm10031_vm12, %v10026_v14, %v9885_v59  ;;  %v11332_v14 = vld [vmem:[%s18295_s12] ss:$0 sm:$0xff] }
 0xe88   : > { %v9855_v40 = vpop.permute.xlu1 %9854 }
 0xe89   : > { %v9793_v58 = vpop.permute.xlu0 %9792  ;;  %v10027_v5 = vsel %vm6320_vm8, %v10019_v32, %v9855_v40 }
 0xe8a   : > { %v10012_v43 = vsel %vm4217_vm1, %v10004_v46, %v9793_v58 }
 0xe8c   : > { %v9979_v22 = vpop.permute.xlu1 %9978 }
 0xe8d   : > { %v9917_v28 = vpop.permute.xlu0 %9916  ;;  %v10060_v27 = vsel %vm10057_vm14, %v10051_v33, %v9979_v22 }
 0xe8e   : > { %11900 = vmatprep.mubr.msk.f32.mxu1 %vm10085_vm9, %v10060_v27  ;;  %v10043_v11 = vsel %vm8423_vm15, %v10035_v60, %v9917_v28 }
 0xe90   : > { %v9857_v51 = vpop.permute.xlu1 %9856 }
 0xe91   : > { %v9825_v30 = vpop.permute.xlu0 %9824 }
 0xe92   : > { %v10020_v39 = vsel %vm9439_vm11, %v10012_v43, %v9825_v30 }
 0xe93   : > { %v10028_v57 = vsel %vm6320_vm8, %v10020_v39, %v9857_v51 }
 0xe94   : > { %v9981_v8 = vpop.permute.xlu1 %9980 }
 0xe95   : > { %v9949_v47 = vpop.permute.xlu0 %9948 }
 0xe96   : > { %v10052_v50 = vsel %vm10048_vm7, %v10043_v11, %v9949_v47 }
 0xe97   : > { %v10061_v9 = vsel %vm10057_vm14, %v10052_v50, %v9981_v8 }
 0xe98   : > { %11901 = vmatmul.mubr.msk.f32.gmra.mrb[66].mxu1 %vm10085_vm9, %v10061_v9  ;;  %v9795_v37 = vpop.permute.xlu1 %9794 }
 0xe99   : > { %v9763_v35 = vpop.permute.xlu0 %9762 }
 0xe9a   : > { %v10005_v20 = vsel %vm9998_vm6, %v17732_v6, %v9763_v35 }
 0xe9b   : > { %v10013_v4 = vsel %vm4217_vm1, %v10005_v20, %v9795_v37  ;;  %v10667_v20 = vld [vmem:[%s18296_s13 + $0x28] sm:$0xff] }
 0xe9c   : > { %v9919_v2 = vpop.permute.xlu1 %9918 }
 0xe9d   : > { %v9887_v13 = vpop.permute.xlu0 %9886 }
 0xe9e   : > { %v10036_v10 = vsel %vm10031_vm12, %v10027_v5, %v9887_v13 }
 0xe9f   : > { %v10044_v53 = vsel %vm8423_vm15, %v10036_v10, %v9919_v2 }
 0xea0   : > { %v9827_v23 = vpop.permute.xlu1 %9826 }
 0xea1   : > { %v9765_v63 = vpop.permute.xlu0 %9764 }
 0xea2   : > { %v10006_v48 = vsel %vm9998_vm6, %v17750_v16, %v9765_v63  ;;  %v10021_v16 = vsel %vm9439_vm11, %v10013_v4, %v9827_v23  ;;  %v10669_v4 = vld [vmem:[%s18296_s13 + $0x38] sm:$0xff]  ;;  %vm18402_vm6 = vmmov %vm18401_vm13 }
 0xea4   : > { %v9951_v55 = vpop.permute.xlu1 %9950 }
 0xea5   : > { %v9889_v26 = vpop.permute.xlu0 %9888  ;;  %v10053_v21 = vsel %vm10048_vm7, %v10044_v53, %v9951_v55 }
 0xea6   : > { %v10037_v24 = vsel %vm10031_vm12, %v10028_v57, %v9889_v26 }
 0xea8   : > { %v9859_v7 = vpop.permute.xlu1 %9858 }
 0xea9   : > { %v9797_v1 = vpop.permute.xlu0 %9796  ;;  %v10029_v33 = vsel %vm6320_vm8, %v10021_v16, %v9859_v7 }
 0xeaa   : > { %v10014_v59 = vsel %vm4217_vm1, %v10006_v48, %v9797_v1  ;;  %vm10259_vm1 = vcmask 113744   ;;  %v10665_v48 = vld [vmem:[%s18296_s13 + $0x18] sm:$0xff] }
 0xeac   : > { %v9983_v25 = vpop.permute.xlu1 %9982 }
 0xead   : > { %v9921_v15 = vpop.permute.xlu0 %9920  ;;  %v10062_v45 = vsel %vm10057_vm14, %v10053_v21, %v9983_v25 }
 0xeae   : > { %11903 = vmatprep.mubr.msk.f32.mxu1 %vm10085_vm9, %v10062_v45  ;;  %v10045_v56 = vsel %vm8423_vm15, %v10037_v24, %v9921_v15 }
 0xeb0   : > { %v9891_v12 = vpop.permute.xlu1 %9890 }
 0xeb1   : > { %v9829_v41 = vpop.permute.xlu0 %9828  ;;  %v10038_v22 = vsel %vm10031_vm12, %v10029_v33, %v9891_v12  ;;  %v10670_v33 = vld [vmem:[%s18296_s13 + $0x40] sm:$0xff] }
 0xeb2   : > { %v10022_v42 = vsel %vm9439_vm11, %v10014_v59, %v9829_v41  ;;  %vm10653_vm11 = vcmask 916480  }
 0xeb4   : > { %v9893_v18 = vpop.permute.xlu1 %9892 }
 0xeb5   : > { %v9953_v29 = vpop.permute.xlu0 %9952 }
 0xeb6   : > { %v10054_v44 = vsel %vm10048_vm7, %v10045_v56, %v9953_v29  ;;  %v10662_v56 = vld [vmem:[%s18296_s13] sm:$0xff] }
 0xeb8   : > { %v9925_v3 = vpop.permute.xlu1 %9924 }
 0xeb9   : > { %v9861_v31 = vpop.permute.xlu0 %9860 }
 0xeba   : > { %v10030_v62 = vsel %vm6320_vm8, %v10022_v42, %v9861_v31  ;;  %v10666_v42 = vld [vmem:[%s18296_s13 + $0x20] sm:$0xff]  ;;  %vm12122_vm8 = vmpackc.low %vm9512_vm10, %vm12311_vm3  ;;  %vm18399_vm3 = vcmask 457728   ;;  %vm10644_vm10 = vcmask 801792  }
 0xebb   : > { %v10039_v38 = vsel %vm10031_vm12, %v10030_v62, %v9893_v18  ;;  %vm18403_vm12 = vmmov %vm18399_vm3 }
 0xebc   : > { %v9957_v58 = vpop.permute.xlu1 %9956  ;;  %v10047_v28 = vsel %vm8423_vm15, %v10039_v38, %v9925_v3  ;;  %v10663_v3 = vld [vmem:[%s18296_s13 + $0x8] sm:$0xff] }
 0xebd   : > { %v9985_v19 = vpop.permute.xlu0 %9984  ;;  %v10056_v51 = vsel %vm10048_vm7, %v10047_v28, %v9957_v58  ;;  %v10668_v58 = vld [vmem:[%s18296_s13 + $0x30] sm:$0xff] }
 0xebe   : > { %v10063_v52 = vsel %vm10057_vm14, %v10054_v44, %v9985_v19  ;;  %v12093_v44 = vpack.c.bf16 %v10663_v3, %v10662_v56  ;;  %v10664_v19 = vld [vmem:[%s18296_s13 + $0x10] sm:$0xff]  ;;  %v12105_v38 = vpack.c.bf16 %v10669_v4, %v10668_v58 }
 0xebf   : > { %11904 = vmatmul.mubr.msk.f32.gmra.mrb[68].mxu1 %vm10085_vm9, %v10063_v52  ;;  %v12097_v52 = vpack.c.bf16 %v10665_v48, %v10664_v19 }
 0xec0   : > { %v9989_v27 = vpop.permute.xlu1 %9988  ;;  %12094 = vmatprep.subr.bf16.mxu0 %v12093_v44 }
 0xec1   : > { %v9923_v40 = vpop.permute.xlu0 %9922  ;;  %v10065_v61 = vsel %vm10057_vm14, %v10056_v51, %v9989_v27  ;;  %12096 = vmatpush3.bf16.msra.mxu0 %v12093_v44  ;;  %v10674_v51 = vld [vmem:[%s18296_s13 + $0x60] sm:$0xff] }
 0xec2   : > { %v10046_v6 = vsel %vm8423_vm15, %v10038_v22, %v9923_v40  ;;  %12098 = vmatprep.subr.bf16.mxu0 %v12097_v52  ;;  %v12101_v40 = vpack.c.bf16 %v10667_v20, %v10666_v42  ;;  %v10671_v22 = vld [vmem:[%s18296_s13 + $0x48] sm:$0xff]  ;;  %vm18400_vm15 = vmmov %vm18399_vm3 }
 0xec3   : > { %v12109_v28 = vpack.c.bf16 %v10671_v22, %v10670_v33  ;;  %v10339_v22 = vld [vmem:[#allocation4 + $0x92] sm:$0xff] }
 0xec4   : > { %v17885_v34 = vpop.permute.xlu1 %10522 }
 0xec5   : > { %v9955_v17 = vpop.permute.xlu0 %9954  ;;  %12100 = vmatpush3.bf16.msra.mxu0 %v12097_v52 }
 0xec6   : > { %v10055_v36 = vsel %vm10048_vm7, %v10046_v6, %v9955_v17  ;;  %12102 = vmatprep.subr.bf16.mxu0 %v12101_v40  ;;  %v10672_v6 = vld [vmem:[%s18296_s13 + $0x50] sm:$0xff] }
 0xec8   : > { %v17889_v26 = vpop.permute.xlu1 %10554 }
 0xec9   : > { %v9987_v49 = vpop.permute.xlu0 %9986  ;;  %12104 = vmatpush3.bf16.msra.mxu0 %v12101_v40 }
 0xeca   : > { %v10064_v30 = vsel %vm10057_vm14, %v10055_v36, %v9987_v49  ;;  %12106 = vmatprep.subr.bf16.mxu0 %v12105_v38  ;;  %v10673_v36 = vld [vmem:[%s18296_s13 + $0x58] sm:$0xff]  ;;  %vm18404_vm14 = vmmov %vm18402_vm6 }
 0xecb   : > { %11906 = vmatprep.mubr.msk.f32.mxu1 %vm10085_vm9, %v10064_v30  ;;  %v12113_v49 = vpack.c.bf16 %v10673_v36, %v10672_v6  ;;  %v10675_v30 = vld [vmem:[%s18296_s13 + $0x68] sm:$0xff] }
 0xecc   : > { %11907 = vmatmul.mubr.msk.f32.gmra.mrb[70].mxu1 %vm10085_vm9, %v10065_v61  ;;  %v12117_v61 = vpack.c.bf16 %v10675_v30, %v10674_v51  ;;  %vm18405_vm9 = vmmov %vm18399_vm3 }
 0xecd   : > { %v17887_v55 = vpop.permute.xlu0 %10348  ;;  %12108 = vmatpush3.bf16.msra.mxu0 %v12105_v38 }
 0xece   : > { %12110 = vmatprep.subr.bf16.mxu0 %v12109_v28 }
 0xed1   : > { %v17891_v54 = vpop.permute.xlu0 %10380  ;;  %12112 = vmatpush3.bf16.msra.mxu0 %v12109_v28 }
 0xed2   : > { %12114 = vmatprep.subr.bf16.mxu0 %v12113_v49 }
 0xed5   : > { %12116 = vmatpush3.bf16.msra.mxu0 %v12113_v49 }
 0xed6   : > { %12118 = vmatprep.subr.bf16.mxu0 %v12117_v61 }
 0xed9   : > { %12120 = vmatpush3.bf16.msra.mxu0 %v12117_v61 }
 0xf1a   : > { %v11899_v60 = vpop.f32.mrb[64].mxu1 }
 0xf1b   : > { %v10186_v11 = vadd.f32 %v11899_v60, %v11332_v14  ;;  %v10180_v8 = vpop.f32.mrb[65].mxu1  ;;  %v10676_v60 = vld [vmem:[%s18296_s13 + $0x70] sm:$0xff] }
 0xf1c   : > { %v10181_v47 = vadd.f32 %v11332_v14, %v10180_v8 }
 0xf1d   : > { %v10220_v50 = vmax.f32 %v10186_v11, 0.0  ;;  %v10677_v11 = vld [vmem:[%s18296_s13 + $0x78] sm:$0x3f] }
 0xf1e   : > { %v10219_v9 = vmax.f32 %v10181_v47, 0.0  ;;  %v12121_v8 = vpack.c.bf16 %v10677_v11, %v10676_v60 }
 0xf1f   : > { %10237 = vrot.lane.b32.xlu1 %v10220_v50, %s12331_s22 }
 0xf20   : > { %10235 = vrot.lane.b32.xlu0 %v10219_v9, %s12331_s22  ;;  %12123 = vmatprep.subr.msk.bf16.mxu0 %vm12122_vm8, %v12121_v8 }
 0xf21   : > { %12126 = vmatpush3.bf16.msk.msra.mxu0 %vm12122_vm8, %v12121_v8  ;;  %vm18407_vm8 = vmmov %vm18399_vm3 }
 0xf6b   : > { %v11902_v37 = vpop.f32.mrb[66].mxu1 }
 0xf6c   : > { %v10196_v35 = vadd.f32 %v11902_v37, %v11332_v14  ;;  %v10190_v2 = vpop.f32.mrb[67].mxu1 }
 0xf6d   : > { %v10191_v13 = vadd.f32 %v11332_v14, %v10190_v2 }
 0xf6e   : > { %v10222_v23 = vmax.f32 %v10196_v35, 0.0 }
 0xf6f   : > { %v10221_v63 = vmax.f32 %v10191_v13, 0.0 }
 0xf70   : > { %10241 = vrot.lane.b32.xlu1 %v10222_v23, %s12331_s22 }
 0xf71   : > { %10239 = vrot.lane.b32.xlu0 %v10221_v63, %s12331_s22 }
 0xf91   : > { %v10238_v32 = vpop.permute.xlu1 %10237 }
 0xf92   : > { %v11905_v5 = vpop.f32.mrb[68].mxu1  ;;  %v10236_v1 = vpop.permute.xlu0 %10235  ;;  %10261 = vst.msk [vmem:[#allocation4 + $0x21] sm:$0xff] %vm10259_vm1, %v10238_v32 }
 0xf93   : > { %v10206_v10 = vadd.f32 %v11905_v5, %v11332_v14  ;;  %v10200_v7 = vpop.f32.mrb[69].mxu1  ;;  %10260 = vst.msk [vmem:[#allocation4 + $0x11] sm:$0xff] %vm10259_vm1, %v10236_v1 }
 0xf94   : > { %v10201_v53 = vadd.f32 %v11332_v14, %v10200_v7 }
 0xf95   : > { %v10224_v21 = vmax.f32 %v10206_v10, 0.0 }
 0xf96   : > { %v10223_v25 = vmax.f32 %v10201_v53, 0.0 }
 0xf97   : > { %10245 = vrot.lane.b32.xlu1 %v10224_v21, %s12331_s22 }
 0xf98   : > { %10243 = vrot.lane.b32.xlu0 %v10223_v25, %s12331_s22 }
 0xf99   : > { %v17899_v43 = vld [vmem:[#allocation4 + $0x20] sm:$0xff] }
 0xf9a   : > { %v10301_v18 = vld [vmem:[#allocation4 + $0x21] sm:$0xff]  ;;  %v17907_v31 = vld [vmem:[#allocation4 + $0x10] sm:$0xff] }
 0xf9b   : > { %v10309_v39 = vld [vmem:[#allocation4 + $0x22] sm:$0xff]  ;;  %v10300_v57 = vld [vmem:[#allocation4 + $0x11] sm:$0xff] }
 0xf9c   : > { %v10285_v24 = vld [vmem:[#allocation4 + $0x12] sm:$0xff] }
 0xf9f   : > { %v11908_v15 = vpop.f32.mrb[70].mxu1 }
 0xfa0   : > { %v10216_v45 = vadd.f32 %v11908_v15, %v11332_v14  ;;  %v10210_v12 = vpop.f32.mrb[71].mxu1 }
 0xfa1   : > { %v10211_v41 = vadd.f32 %v11332_v14, %v10210_v12 }
 0xfa2   : > { %v10226_v46 = vmax.f32 %v10216_v45, 0.0 }
 0xfa3   : > { %v10225_v29 = vmax.f32 %v10211_v41, 0.0 }
 0xfa4   : > { %10249 = vrot.lane.b32.xlu1 %v10226_v46, %s12331_s22 }
 0xfa5   : > { %10247 = vrot.lane.b32.xlu0 %v10225_v29, %s12331_s22  ;;  %s12337_s22 = smov 112  }
 0xfa8   : > { %10414 = vrot.lane.b32.xlu1 %v17899_v43, %s12330_s28 }
 0xfa9   : > { %10446 = vrot.lane.b32.xlu0 %v10301_v18, %s18398_s3 }
 0xfac   : > { %10352 = vrot.lane.b32.xlu1 %v10301_v18, %s12335_s21 }
 0xfad   : > { %10478 = vrot.lane.b32.xlu0 %v10309_v39, %s12333_s19 }
 0xfb0   : > { %10384 = vrot.lane.b32.xlu1 %v10309_v39, %s18391_s23 }
 0xfb1   : > { %10412 = vrot.lane.b32.xlu0 %v17907_v31, %s12330_s28 }
 0xfb4   : > { %10508 = vrot.lane.b32.xlu1 %v17899_v43, %s18397_s29 }
 0xfb5   : > { %10444 = vrot.lane.b32.xlu0 %v10300_v57, %s18398_s3 }
 0xfb8   : > { %10540 = vrot.lane.b32.xlu1 %v10301_v18, %s12336_s27 }
 0xfbc   : > { %10572 = vrot.lane.b32.xlu1 %v10309_v39, %s12337_s22  ;;  %v10268_v39 = vld [vmem:[#allocation4] sm:$0xff] }
 0xfc0   : > { %10350 = vrot.lane.b32.xlu1 %v10300_v57, %s12335_s21 }
 0xfc4   : > { %10382 = vrot.lane.b32.xlu1 %v10285_v24, %s18391_s23 }
 0xfc8   : > { %10476 = vrot.lane.b32.xlu1 %v10285_v24, %s12333_s19  ;;  %v10596_v24 = vsel %vm712_vm5, %v10268_v39, %v17887_v55 }
 0xfe2   : > { %v10242_v59 = vpop.permute.xlu1 %10241 }
 0xfe3   : > { %10263 = vst.msk [vmem:[#allocation4 + $0x41] sm:$0xff] %vm10259_vm1, %v10242_v59  ;;  %v10240_v62 = vpop.permute.xlu0 %10239  ;;  %v10604_v59 = vsel %vm4283_vm4, %v10596_v24, %v17891_v54 }
 0xfe4   : > { %10262 = vst.msk [vmem:[#allocation4 + $0x31] sm:$0xff] %vm10259_vm1, %v10240_v62 }
 0xfea   : > { %v17945_v16 = vld [vmem:[#allocation4 + $0x40] sm:$0xff] }
 0xfeb   : > { %v10303_v17 = vld [vmem:[#allocation4 + $0x41] sm:$0xff]  ;;  %10418 = vrot.lane.b32.xlu0 %v17945_v16, %s12330_s28  ;;  %v10279_v14 = vld [vmem:[#allocation4 + $0x31] sm:$0xff] }
 0xfec   : > { %10450 = vrot.lane.b32.xlu1 %v10303_v17, %s18398_s3  ;;  %v10288_v27 = vld [vmem:[#allocation4 + $0x42] sm:$0xff]  ;;  %v10287_v47 = vld [vmem:[#allocation4 + $0x32] sm:$0xff] }
 0xfed   : > { %v17985_v50 = vld [vmem:[#allocation4 + $0x30] sm:$0xff] }
 0xfef   : > { %10356 = vrot.lane.b32.xlu0 %v10303_v17, %s12335_s21 }
 0xff0   : > { %10388 = vrot.lane.b32.xlu1 %v10288_v27, %s18391_s23 }
 0xff3   : > { %10482 = vrot.lane.b32.xlu0 %v10288_v27, %s12333_s19 }
 0xff4   : > { %10512 = vrot.lane.b32.xlu1 %v17945_v16, %s18397_s29 }
 0xff7   : > { %10354 = vrot.lane.b32.xlu0 %v10279_v14, %s12335_s21 }
 0xff8   : > { %10544 = vrot.lane.b32.xlu1 %v10303_v17, %s12336_s27 }
 0xffb   : > { %10386 = vrot.lane.b32.xlu0 %v10287_v47, %s18391_s23 }
 0xffc   : > { %10576 = vrot.lane.b32.xlu1 %v10288_v27, %s12337_s22 }
 0xfff   : > { %10510 = vrot.lane.b32.xlu0 %v17985_v50, %s18397_s29 }
0x1000   : > { %10416 = vrot.lane.b32.xlu1 %v17985_v50, %s12330_s28 }
0x1003   : > { %10542 = vrot.lane.b32.xlu0 %v10279_v14, %s12336_s27 }
0x1004   : > { %10448 = vrot.lane.b32.xlu1 %v10279_v14, %s18398_s3 }
0x1007   : > { %10480 = vrot.lane.b32.xlu0 %v10287_v47, %s12333_s19 }
0x1008   : > { %10574 = vrot.lane.b32.xlu1 %v10287_v47, %s12337_s22 }
0x1009   : > { %v10246_v9 = vpop.permute.xlu1 %10245 }
0x100a   : > { %10265 = vst.msk [vmem:[#allocation4 + $0x61] sm:$0xff] %vm10259_vm1, %v10246_v9  ;;  %v10244_v37 = vpop.permute.xlu0 %10243 }
0x100b   : > { %10264 = vst.msk [vmem:[#allocation4 + $0x51] sm:$0xff] %vm10259_vm1, %v10244_v37 }
0x1011   : > { %v10305_v35 = vld [vmem:[#allocation4 + $0x61] sm:$0xff] }
0x1012   : > { %v17997_v2 = vld [vmem:[#allocation4 + $0x60] sm:$0xff]  ;;  %10454 = vrot.lane.b32.xlu1 %v10305_v35, %s18398_s3  ;;  %v10281_v5 = vld [vmem:[#allocation4 + $0x51] sm:$0xff] }
0x1013   : > { %10422 = vrot.lane.b32.xlu0 %v17997_v2, %s12330_s28  ;;  %v10290_v13 = vld [vmem:[#allocation4 + $0x62] sm:$0xff]  ;;  %v10289_v7 = vld [vmem:[#allocation4 + $0x52] sm:$0xff] }
0x1014   : > { %v18018_v15 = vld [vmem:[#allocation4 + $0x50] sm:$0xff] }
0x1016   : > { %v10250_v23 = vpop.permute.xlu1 %10249  ;;  %10392 = vrot.lane.b32.xlu1 %v10290_v13, %s18391_s23 }
0x1017   : > { %10360 = vrot.lane.b32.xlu0 %v10305_v35, %s12335_s21  ;;  %10267 = vst.msk [vmem:[#allocation4 + $0x81] sm:$0xff] %vm10259_vm1, %v10250_v23  ;;  %v10248_v63 = vpop.permute.xlu0 %10247 }
0x1018   : > { %10266 = vst.msk [vmem:[#allocation4 + $0x71] sm:$0xff] %vm10259_vm1, %v10248_v63  ;;  %vm18406_vm1 = vmmov %vm18402_vm6 }
0x101a   : > { %v10415_v32 = vpop.permute.xlu1 %10414  ;;  %10516 = vrot.lane.b32.xlu1 %v17997_v2, %s18397_s29 }
0x101b   : > { %10486 = vrot.lane.b32.xlu0 %v10290_v13, %s12333_s19  ;;  %v10447_v25 = vpop.permute.xlu0 %10446 }
0x101e   : > { %v10353_v10 = vpop.permute.xlu1 %10352  ;;  %10548 = vrot.lane.b32.xlu1 %v10305_v35, %s12336_s27  ;;  %v10299_v18 = vld [vmem:[#allocation4 + $0x80] sm:$0xff] }
0x101f   : > { %10358 = vrot.lane.b32.xlu0 %v10281_v5, %s12335_s21  ;;  %v10598_v1 = vsel %vm712_vm5, %v17899_v43, %v10353_v10  ;;  %v10479_v41 = vpop.permute.xlu0 %10478  ;;  %v10315_v43 = vld [vmem:[#allocation4 + $0x82] sm:$0xff]  ;;  %v18032_v3 = vld [vmem:[#allocation4 + $0x70] sm:$0xff] }
0x1020   : > { %v10307_v56 = vld [vmem:[#allocation4 + $0x81] sm:$0xff]  ;;  %v10306_v20 = vld [vmem:[#allocation4 + $0x71] sm:$0xff] }
0x1021   : > { %v10314_v38 = vld [vmem:[#allocation4 + $0x72] sm:$0xff] }
0x1022   : > { %v10385_v53 = vpop.permute.xlu1 %10384  ;;  %10580 = vrot.lane.b32.xlu1 %v10290_v13, %s12337_s22 }
0x1023   : > { %10390 = vrot.lane.b32.xlu0 %v10289_v7, %s18391_s23  ;;  %v18016_v21 = vsel %vm4283_vm4, %v10598_v1, %v10385_v53  ;;  %v10413_v29 = vpop.permute.xlu0 %10412 }
0x1024   : > { %v10612_v42 = vsel %vm9456_vm0, %v10604_v59, %v10413_v29 }
0x1026   : > { %v10509_v45 = vpop.permute.xlu1 %10508  ;;  %10420 = vrot.lane.b32.xlu1 %v18018_v15, %s12330_s28 }
0x1027   : > { %10514 = vrot.lane.b32.xlu0 %v18018_v15, %s18397_s29  ;;  %v10445_v48 = vpop.permute.xlu0 %10444 }
0x102a   : > { %v10541_v12 = vpop.permute.xlu1 %10540  ;;  %10452 = vrot.lane.b32.xlu1 %v10281_v5, %s18398_s3 }
0x102b   : > { %10546 = vrot.lane.b32.xlu0 %v10281_v5, %s12336_s27 }
0x102e   : > { %v10573_v46 = vpop.permute.xlu1 %10572  ;;  %10578 = vrot.lane.b32.xlu1 %v10289_v7, %s12337_s22 }
0x102f   : > { %10484 = vrot.lane.b32.xlu0 %v10289_v7, %s12333_s19 }
0x1032   : > { %v10351_v57 = vpop.permute.xlu1 %10350  ;;  %10490 = vrot.lane.b32.xlu1 %v10315_v43, %s12333_s19 }
0x1033   : > { %10426 = vrot.lane.b32.xlu0 %v10299_v18, %s12330_s28  ;;  %v10597_v44 = vsel %vm712_vm5, %v17907_v31, %v10351_v57  ;;  %v10620_v31 = vsel %vm18400_vm15, %v10612_v42, %v10445_v48  ;;  %vm18409_vm15 = vmmov %vm18407_vm8 }
0x1036   : > { %v10383_v19 = vpop.permute.xlu1 %10382  ;;  %10424 = vrot.lane.b32.xlu1 %v18032_v3, %s12330_s28 }
0x1037   : > { %10458 = vrot.lane.b32.xlu0 %v10307_v56, %s18398_s3  ;;  %v10605_v52 = vsel %vm4283_vm4, %v10597_v44, %v10383_v19 }
0x1038   : > { %v10613_v55 = vsel %vm9456_vm0, %v10605_v52, %v10415_v32 }
0x1039   : > { %v10621_v62 = vsel %vm18399_vm3, %v10613_v55, %v10447_v25  ;;  %vm18408_vm3 = vmmov %vm18406_vm1 }
0x103a   : > { %v10477_v40 = vpop.permute.xlu1 %10476  ;;  %10456 = vrot.lane.b32.xlu1 %v10306_v20, %s18398_s3  ;;  %v10629_v58 = vsel %vm10048_vm7, %v10621_v62, %v10479_v41 }
0x103b   : > { %10520 = vrot.lane.b32.xlu0 %v10299_v18, %s18397_s29  ;;  %v10628_v4 = vsel %vm10048_vm7, %v10620_v31, %v10477_v40 }
0x103c   : > { %v10636_v54 = vsel %vm18401_vm13, %v10628_v4, %v10509_v45  ;;  %vm18410_vm13 = vmmov %vm18407_vm8 }
0x103d   : > { %v10645_v17 = vsel %vm10644_vm10, %v10636_v54, %v10541_v12 }
0x103e   : > { %10488 = vrot.lane.b32.xlu1 %v10314_v38, %s12333_s19  ;;  %v10654_v33 = vsel %vm10653_vm11, %v10645_v17, %v10573_v46 }
0x103f   : > { %10552 = vrot.lane.b32.xlu0 %v10307_v56, %s12336_s27  ;;  %11941 = vmatprep.mubr.msk.f32.mxu0 %vm10685_vm2, %v10654_v33 }
0x1042   : > { %10586 = vrot.lane.b32.xlu1 %v10339_v22, %s12337_s22 }
0x1043   : > { %10362 = vrot.lane.b32.xlu0 %v10306_v20, %s12335_s21 }
0x1047   : > { %10394 = vrot.lane.b32.xlu0 %v10314_v38, %s18391_s23 }
0x104b   : > { %10518 = vrot.lane.b32.xlu0 %v18032_v3, %s18397_s29 }
0x104f   : > { %10550 = vrot.lane.b32.xlu0 %v10306_v20, %s12336_s27 }
0x1053   : > { %10582 = vrot.lane.b32.xlu0 %v10314_v38, %s12337_s22 }
0x1057   : > { %10584 = vrot.lane.b32.xlu0 %v10315_v43, %s12337_s22  ;;  %s12340_s22 = smov 35  }
0x105d   : > { %v10419_v27 = vpop.permute.xlu0 %10418 }
0x105e   : > { %v10451_v28 = vpop.permute.xlu1 %10450 }
0x1061   : > { %v10357_v36 = vpop.permute.xlu0 %10356 }
0x1062   : > { %v10389_v6 = vpop.permute.xlu1 %10388  ;;  %v10600_v48 = vsel %vm712_vm5, %v17945_v16, %v10357_v36 }
0x1063   : > { %v10608_v42 = vsel %vm4283_vm4, %v10600_v48, %v10389_v6 }
0x1065   : > { %v10483_v51 = vpop.permute.xlu0 %10482 }
0x1066   : > { %v10513_v49 = vpop.permute.xlu1 %10512 }
0x1069   : > { %v10355_v61 = vpop.permute.xlu0 %10354 }
0x106a   : > { %v10545_v30 = vpop.permute.xlu1 %10544  ;;  %v10599_v18 = vsel %vm712_vm5, %v17985_v50, %v10355_v61 }
0x106d   : > { %v10387_v60 = vpop.permute.xlu0 %10386 }
0x106e   : > { %v10577_v14 = vpop.permute.xlu1 %10576  ;;  %v10607_v24 = vsel %vm4283_vm4, %v10599_v18, %v10387_v60 }
0x106f   : > { %v10615_v56 = vsel %vm9456_vm0, %v10607_v24, %v10419_v27 }
0x1070   : > { %v10623_v52 = vsel %vm18405_vm9, %v10615_v56, %v10451_v28 }
0x1071   : > { %v10511_v8 = vpop.permute.xlu0 %10510  ;;  %v10631_v20 = vsel %vm10048_vm7, %v10623_v52, %v10483_v51 }
0x1072   : > { %v10417_v11 = vpop.permute.xlu1 %10416  ;;  %v10637_v35 = vsel %vm18402_vm6, %v10629_v58, %v10511_v8  ;;  %vm18411_vm6 = vmmov %vm18407_vm8 }
0x1073   : > { %v10614_v37 = vsel %vm9456_vm0, %v18016_v21, %v10417_v11 }
0x1075   : > { %v10543_v9 = vpop.permute.xlu0 %10542 }
0x1076   : > { %v10449_v47 = vpop.permute.xlu1 %10448  ;;  %v10646_v23 = vsel %vm10644_vm10, %v10637_v35, %v10543_v9 }
0x1077   : > { %v10622_v13 = vsel %vm18403_vm12, %v10614_v37, %v10449_v47  ;;  %vm18413_vm12 = vmmov %vm18406_vm1 }
0x1079   : > { %v10481_v32 = vpop.permute.xlu0 %10480 }
0x107a   : > { %v10575_v63 = vpop.permute.xlu1 %10574  ;;  %v10630_v10 = vsel %vm10048_vm7, %v10622_v13, %v10481_v32 }
0x107b   : > { %v10655_v5 = vsel %vm10653_vm11, %v10646_v23, %v10575_v63  ;;  %v10638_v7 = vsel %vm18404_vm14, %v10630_v10, %v10513_v49 }
0x107c   : > { %11942 = vmatmul.mubr.msk.f32.vlgmr.msra.gmra.mrb[72].mxu0 %vm10685_vm2, %v10655_v5  ;;  %v10647_v1 = vsel %vm10644_vm10, %v10638_v7, %v10545_v30 }
0x107d   : > { %v10656_v53 = vsel %vm10653_vm11, %v10647_v1, %v10577_v14 }
0x107e   : > { %11944 = vmatprep.mubr.msk.f32.mxu0 %vm10685_vm2, %v10656_v53 }
0x1084   : > { %v10455_v21 = vpop.permute.xlu1 %10454 }
0x1085   : > { %v10423_v25 = vpop.permute.xlu0 %10422 }
0x1088   : > { %v10393_v45 = vpop.permute.xlu1 %10392 }
0x1089   : > { %v10361_v12 = vpop.permute.xlu0 %10360 }
0x108a   : > { %v10602_v9 = vsel %vm712_vm5, %v17997_v2, %v10361_v12 }
0x108c   : > { %v10517_v41 = vpop.permute.xlu1 %10516 }
0x108d   : > { %v10487_v46 = vpop.permute.xlu0 %10486 }
0x1090   : > { %v10549_v29 = vpop.permute.xlu1 %10548 }
0x1091   : > { %v10359_v43 = vpop.permute.xlu0 %10358 }
0x1092   : > { %v10601_v30 = vsel %vm712_vm5, %v18018_v15, %v10359_v43  ;;  %v10610_v15 = vsel %vm4283_vm4, %v10602_v9, %v10393_v45 }
0x1094   : > { %v10581_v39 = vpop.permute.xlu1 %10580 }
0x1095   : > { %v10391_v57 = vpop.permute.xlu0 %10390 }
0x1096   : > { %v10609_v60 = vsel %vm4283_vm4, %v10601_v30, %v10391_v57 }
0x1097   : > { %v10617_v37 = vsel %vm9456_vm0, %v10609_v60, %v10423_v25 }
0x1098   : > { %v10421_v44 = vpop.permute.xlu1 %10420 }
0x1099   : > { %v10515_v19 = vpop.permute.xlu0 %10514  ;;  %v10616_v50 = vsel %vm9456_vm0, %v10608_v42, %v10421_v44 }
0x109a   : > { %v10639_v62 = vsel %vm18406_vm1, %v10631_v20, %v10515_v19 }
0x109c   : > { %v10453_v59 = vpop.permute.xlu1 %10452 }
0x109d   : > { %v10547_v55 = vpop.permute.xlu0 %10546  ;;  %v10624_v31 = vsel %vm18407_vm8, %v10616_v50, %v10453_v59 }
0x109e   : > { %v10648_v40 = vsel %vm10644_vm10, %v10639_v62, %v10547_v55 }
0x10a0   : > { %v10579_v58 = vpop.permute.xlu1 %10578 }
0x10a1   : > { %v10485_v4 = vpop.permute.xlu0 %10484  ;;  %v10657_v16 = vsel %vm10653_vm11, %v10648_v40, %v10579_v58 }
0x10a2   : > { %v10632_v54 = vsel %vm10048_vm7, %v10624_v31, %v10485_v4  ;;  %11945 = vmatmul.mubr.msk.f32.gmra.mrb[74].mxu0 %vm10685_vm2, %v10657_v16 }
0x10a3   : > { %v10640_v38 = vsel %vm18408_vm3, %v10632_v54, %v10517_v41 }
0x10a4   : > { %v10649_v17 = vsel %vm10644_vm10, %v10640_v38, %v10549_v29  ;;  %v10491_v6 = vpop.permute.xlu1 %10490 }
0x10a5   : > { %v10427_v33 = vpop.permute.xlu0 %10426  ;;  %v10658_v22 = vsel %vm10653_vm11, %v10649_v17, %v10581_v39  ;;  %v18131_v39 = vld [vmem:[%s18297_s14] ss:$0 sm:$0xff] }
0x10a6   : > { %11947 = vmatprep.mubr.msk.f32.mxu0 %vm10685_vm2, %v10658_v22  ;;  %v10944_v17 = vld [vmem:[%s18298_s15] sm:$0xff]  ;;  %v10946_v22 = vld [vmem:[%s18298_s15 + $0x10] sm:$0xff] }
0x10a8   : > { %v10425_v49 = vpop.permute.xlu1 %10424 }
0x10a9   : > { %v10459_v28 = vpop.permute.xlu0 %10458  ;;  %v10618_v63 = vsel %vm9456_vm0, %v10610_v15, %v10425_v49 }
0x10ac   : > { %v10457_v11 = vpop.permute.xlu1 %10456 }
0x10ad   : > { %v10521_v27 = vpop.permute.xlu0 %10520  ;;  %v10626_v5 = vsel %vm18411_vm6, %v10618_v63, %v10457_v11 }
0x10b0   : > { %v10489_v23 = vpop.permute.xlu1 %10488 }
0x10b1   : > { %v10553_v36 = vpop.permute.xlu0 %10552  ;;  %v10634_v7 = vsel %vm10048_vm7, %v10626_v5, %v10489_v23  ;;  %v10948_v5 = vld [vmem:[%s18298_s15 + $0x20] sm:$0xff] }
0x10b4   : > { %v10587_v41 = vpop.permute.xlu1 %10586 }
0x10b5   : > { %v10363_v51 = vpop.permute.xlu0 %10362 }
0x10b6   : > { %v10603_v61 = vsel %vm712_vm5, %v18032_v3, %v10363_v51  ;;  %v10625_v3 = vsel %vm18410_vm13, %v10617_v37, %v10455_v21  ;;  %vm18412_vm5 = vmmov %vm18406_vm1 }
0x10b7   : > { %v10633_v2 = vsel %vm10048_vm7, %v10625_v3, %v10487_v46 }
0x10b9   : > { %v10395_v14 = vpop.permute.xlu0 %10394 }
0x10ba   : > { %v10611_v8 = vsel %vm4283_vm4, %v10603_v61, %v10395_v14  ;;  %vm18414_vm4 = vmmov %vm18406_vm1 }
0x10bb   : > { %v10619_v47 = vsel %vm9456_vm0, %v10611_v8, %v10427_v33  ;;  %v10642_v21 = vsel %vm18414_vm4, %v10634_v7, %v10521_v27  ;;  %vm18415_vm0 = vcmask 56320   ;;  %v10945_v33 = vld [vmem:[%s18298_s15 + $0x8] sm:$0xff]  ;;  %vm10868_vm4 = vcmask 107577  }
0x10bc   : > { %v10627_v13 = vsel %vm18409_vm15, %v10619_v47, %v10459_v28  ;;  %v10651_v46 = vsel %vm10644_vm10, %v10642_v21, %v10553_v36  ;;  %vm18418_vm14 = vmmov %vm18415_vm0  ;;  %v12339_v28 = vmov 0.0|0.0   ;;  %v12128_v27 = vpack.c.bf16 %v10945_v33, %v10944_v17  ;;  %v11033_v33 = vld [vmem:[%s18300_s17] sm:$0xff] }
0x10bd   : > { %v10519_v35 = vpop.permute.xlu0 %10518  ;;  %v10635_v10 = vsel %vm10048_vm7, %v10627_v13, %v10491_v6  ;;  %vm18416_vm7 = vmmov %vm18415_vm0  ;;  %12127 = vmatprep.subr.bf16.mxu1 %v12339_v28  ;;  %v10947_v6 = vld [vmem:[%s18298_s15 + $0x18] sm:$0xff] }
0x10be   : > { %v10641_v1 = vsel %vm18412_vm5, %v10633_v2, %v10519_v35  ;;  %v10643_v53 = vsel %vm18413_vm12, %v10635_v10, %v17885_v34  ;;  %vm18419_vm9 = vmmov %vm18415_vm0  ;;  %12129 = vmatpush3.bf16.msra.mxu1 %v12128_v27  ;;  %v12131_v36 = vpack.c.bf16 %v10947_v6, %v10946_v22  ;;  %v10949_v10 = vld [vmem:[%s18298_s15 + $0x28] sm:$0xff]  ;;  %vm12343_vm12 = vmmov 0  }
0x10bf   : > { %v10652_v29 = vsel %vm10644_vm10, %v10643_v53, %v17889_v26  ;;  %vm18420_vm1 = vmmov %vm18415_vm0  ;;  %12130 = vmatprep.subr.bf16.mxu1 %v12339_v28  ;;  %v12134_v7 = vpack.c.bf16 %v10949_v10, %v10948_v5  ;;  %v10950_v53 = vld [vmem:[%s18298_s15 + $0x30] sm:$0xff]  ;;  %11981 = vmatprep.mubr.msk.f32.mxu1 %vm12343_vm12, %v12303_v0  ;;  %v11034_v22 = vld [vmem:[%s18300_s17 + $0x8] sm:$0xff] }
0x10c0   : > { %v10661_v34 = vsel %vm10653_vm11, %v10652_v29, %v10587_v41  ;;  %vm18421_vm8 = vmmov %vm18415_vm0  ;;  %v10953_v41 = vld [vmem:[%s18298_s15 + $0x48] sm:$0xff]  ;;  %v12149_v27 = vpack.c.bf16 %v11034_v22, %v11033_v33 }
0x10c1   : > { %v10551_v32 = vpop.permute.xlu0 %10550  ;;  %vm18422_vm3 = vmmov %vm18415_vm0 }
0x10c2   : > { %v10650_v25 = vsel %vm10644_vm10, %v10641_v1, %v10551_v32  ;;  %vm18417_vm10 = vmmov %vm18415_vm0  ;;  %12132 = vmatpush3.bf16.msra.mxu1 %v12131_v36  ;;  %v11035_v36 = vld [vmem:[%s18300_s17 + $0x10] sm:$0xff] }
0x10c3   : > { %12133 = vmatprep.subr.bf16.mxu1 %v12339_v28  ;;  %vm18423_vm15 = vmmov %vm18415_vm0 }
0x10c4   : > { %vm18424_vm13 = vmmov %vm18415_vm0 }
0x10c5   : > { %v10583_v45 = vpop.permute.xlu0 %10582  ;;  %vm18425_vm6 = vmmov %vm18415_vm0 }
0x10c6   : > { %v10659_v12 = vsel %vm10653_vm11, %v10650_v25, %v10583_v45  ;;  %12135 = vmatpush3.bf16.msra.mxu1 %v12134_v7  ;;  %v10951_v25 = vld [vmem:[%s18298_s15 + $0x38] sm:$0xff]  ;;  %vm18426_vm5 = vmmov %vm18415_vm0 }
0x10c7   : > { %11948 = vmatmul.mubr.msk.f32.gmra.mrb[76].mxu0 %vm10685_vm2, %v10659_v12  ;;  %12136 = vmatprep.subr.bf16.mxu1 %v12339_v28  ;;  %v12137_v21 = vpack.c.bf16 %v10951_v25, %v10950_v53  ;;  %v10952_v12 = vld [vmem:[%s18298_s15 + $0x40] sm:$0xff] }
0x10c9   : > { %v10585_v43 = vpop.permute.xlu0 %10584 }
0x10ca   : > { %v10660_v18 = vsel %vm10653_vm11, %v10651_v46, %v10585_v43  ;;  %12138 = vmatpush3.bf16.msra.mxu1 %v12137_v21  ;;  %v12140_v43 = vpack.c.bf16 %v10953_v41, %v10952_v12 }
0x10cb   : > { %11950 = vmatprep.mubr.msk.f32.mxu0 %vm10685_vm2, %v10660_v18  ;;  %12139 = vmatprep.subr.bf16.mxu1 %v12339_v28 }
0x10cc   : > { %11951 = vmatmul.mubr.msk.f32.gmra.mrb[78].mxu0 %vm10685_vm2, %v10661_v34  ;;  %vm10862_vm2 = vcmask 49152   ;;  %v10954_v34 = vld [vmem:[%s18298_s15 + $0x50] sm:$0xff] }
0x10ce   : > { %12141 = vmatpush3.bf16.msra.mxu1 %v12140_v43 }
0x10cf   : > { %12142 = vmatprep.subr.bf16.mxu1 %v12339_v28 }
0x114f   : > { %v11943_v57 = vpop.f32.mrb[72].mxu0 }
0x1150   : > { %v10785_v24 = vadd.f32 %v11943_v57, %v18131_v39  ;;  %v10779_v26 = vpop.f32.mrb[73].mxu0 }
0x1151   : > { %v10780_v56 = vadd.f32 %v18131_v39, %v10779_v26  ;;  %v10957_v26 = vld [vmem:[%s18298_s15 + $0x68] sm:$0xff] }
0x1152   : > { %v10819_v44 = vmax.f32 %v10785_v24, 0.0  ;;  %v10956_v24 = vld [vmem:[%s18298_s15 + $0x60] sm:$0xff] }
0x1153   : > { %v10818_v19 = vmax.f32 %v10780_v56, 0.0 }
0x1154   : > { %10827 = vst.msk [vmem:[#allocation5 + $0x10] sm:$0xff] %vm18415_vm0, %v10819_v44  ;;  %vm10873_vm0 = vcmask 166002  }
0x1155   : > { %10826 = vst.msk [vmem:[#allocation5] sm:$0xff] %vm18416_vm7, %v10818_v19  ;;  %v12146_v19 = vpack.c.bf16 %v10957_v26, %v10956_v24  ;;  %vm10878_vm7 = vcmask 224427  }
0x115b   : > { %v10838_v48 = vld [vmem:[#allocation5 + $0x10] sm:$0xff] }
0x115c   : > { %v10834_v52 = vld [vmem:[#allocation5] sm:$0xff] }
0x115d   : > { %v10842_v59 = vmax.f32 %v10834_v52, %v10838_v48 }
0x115f   : > { %10846 = vst.msk [vmem:[#allocation6] sm:$0xff] %vm18417_vm10, %v10842_v59  ;;  %vm10884_vm10 = vcmask 278752  }
0x1166   : > { %v10850_v55 = vld [vmem:[#allocation6] ss:$2 sm:$0xf]  ;;  %v10854_v42 = vld [vmem:[#allocation6 + $0x1] ss:$2 sm:$0xf] }
0x1167   : > { %v10858_v20 = vmax.f32 %v10850_v55, %v10854_v42 }
0x1169   : > { %10870 = vrot.lane.b32.xlu1 %v10858_v20, %s12335_s21  ;;  %10865 = vrot.lane.b32.xlu0 %v10858_v20, %s18384_s25  ;;  %10863 = vst.msk [vmem:[#allocation7] sm:$0x1] %vm10862_vm2, %v10858_v20  ;;  %vm10889_vm2 = vcmask 337177   ;;  %s18427_s21 = sld [smem:[#allocation23_spill]] }
0x116d   : > { %10875 = vrot.lane.b32.xlu0 %v10858_v20, %s12338_s24 }
0x1175   : > { %v11946_v50 = vpop.f32.mrb[74].mxu0 }
0x1176   : > { %v10795_v62 = vadd.f32 %v11946_v50, %v18131_v39  ;;  %v10789_v31 = vpop.f32.mrb[75].mxu0 }
0x1177   : > { %v10790_v40 = vadd.f32 %v18131_v39, %v10789_v31 }
0x1178   : > { %v10821_v58 = vmax.f32 %v10795_v62, 0.0 }
0x1179   : > { %v10820_v4 = vmax.f32 %v10790_v40, 0.0 }
0x117a   : > { %10829 = vst.msk [vmem:[#allocation5 + $0x30] sm:$0xff] %vm18418_vm14, %v10821_v58  ;;  %vm10894_vm14 = vcmask 395602  }
0x117b   : > { %10828 = vst.msk [vmem:[#allocation5 + $0x20] sm:$0xff] %vm18419_vm9, %v10820_v4  ;;  %vm10899_vm9 = vcmask 454027  }
0x1181   : > { %v10839_v16 = vld [vmem:[#allocation5 + $0x30] sm:$0xff] }
0x1182   : > { %v10835_v54 = vld [vmem:[#allocation5 + $0x20] sm:$0xff] }
0x1183   : > { %v10843_v38 = vmax.f32 %v10835_v54, %v10839_v16 }
0x1185   : > { %10847 = vst.msk [vmem:[#allocation6 + $0x10] sm:$0xff] %vm18420_vm1, %v10843_v38  ;;  %vm10905_vm1 = vcmask 508352  }
0x118c   : > { %v10851_v49 = vld [vmem:[#allocation6 + $0x10] ss:$2 sm:$0xf]  ;;  %v10855_v51 = vld [vmem:[#allocation6 + $0x11] ss:$2 sm:$0xf] }
0x118d   : > { %v10859_v30 = vmax.f32 %v10851_v49, %v10855_v51  ;;  %v11036_v49 = vld [vmem:[%s18300_s17 + $0x18] sm:$0xff] }
0x118e   : > { %v12152_v51 = vpack.c.bf16 %v11036_v49, %v11035_v36 }
0x118f   : > { %10886 = vrot.lane.b32.xlu0 %v10859_v30, %s12340_s22  ;;  %10881 = vrot.lane.b32.xlu1 %v10859_v30, %s18391_s23  ;;  %s18431_s22 = sld [smem:[#allocation25_spill]]  ;;  %s11114_s23 = scalar_lea.sflag [#allocation9], %s593_s18 }
0x1193   : > { %10896 = vrot.lane.b32.xlu0 %v10859_v30, %s12341_s20  ;;  %10891 = vrot.lane.b32.xlu1 %v10859_v30, %s12330_s28  ;;  %s12342_s20 = smov 63   ;;  %v10958_v30 = vld [vmem:[%s18427_s21] sm:$0x1] }
0x119a   : > { %v11949_v61 = vpop.f32.mrb[76].mxu0 }
0x119b   : > { %v10805_v14 = vadd.f32 %v11949_v61, %v18131_v39  ;;  %v10799_v60 = vpop.f32.mrb[77].mxu0 }
0x119c   : > { %v10800_v11 = vadd.f32 %v18131_v39, %v10799_v60 }
0x119d   : > { %v10823_v8 = vmax.f32 %v10805_v14, 0.0 }
0x119e   : > { %v10822_v47 = vmax.f32 %v10800_v11, 0.0 }
0x119f   : > { %10831 = vst.msk [vmem:[#allocation5 + $0x50] sm:$0xff] %vm18421_vm8, %v10823_v8  ;;  %v11952_v9 = vpop.f32.mrb[78].mxu0  ;;  %vm10910_vm8 = vcmask 566777  }
0x11a0   : > { %10830 = vst.msk [vmem:[#allocation5 + $0x40] sm:$0xff] %vm18422_vm3, %v10822_v47  ;;  %v10815_v37 = vadd.f32 %v11952_v9, %v18131_v39  ;;  %v10809_v35 = vpop.f32.mrb[79].mxu0  ;;  %vm10915_vm3 = vcmask 625202  }
0x11a1   : > { %v10810_v13 = vadd.f32 %v18131_v39, %v10809_v35  ;;  %v10955_v39 = vld [vmem:[%s18298_s15 + $0x58] sm:$0xff] }
0x11a2   : > { %v10825_v15 = vmax.f32 %v10815_v37, 0.0  ;;  %v12143_v57 = vpack.c.bf16 %v10955_v39, %v10954_v34 }
0x11a3   : > { %v10824_v23 = vmax.f32 %v10810_v13, 0.0 }
0x11a4   : > { %10833 = vst.msk [vmem:[#allocation5 + $0x70] sm:$0xff] %vm18423_vm15, %v10825_v15  ;;  %12144 = vmatpush3.bf16.msra.mxu1 %v12143_v57  ;;  %vm10920_vm15 = vcmask 683627  }
0x11a5   : > { %10832 = vst.msk [vmem:[#allocation5 + $0x60] sm:$0xff] %vm18424_vm13, %v10824_v23  ;;  %12145 = vmatprep.subr.bf16.mxu1 %v12339_v28  ;;  %vm10926_vm13 = vcmask 737952  }
0x11a6   : > { %v10840_v3 = vld [vmem:[#allocation5 + $0x50] sm:$0xff] }
0x11a7   : > { %v10836_v63 = vld [vmem:[#allocation5 + $0x40] sm:$0xff] }
0x11a8   : > { %v10844_v32 = vmax.f32 %v10836_v63, %v10840_v3  ;;  %12147 = vmatpush3.bf16.msra.mxu1 %v12146_v19 }
0x11a9   : > { %12148 = vmatprep.subr.bf16.mxu1 %v12339_v28 }
0x11aa   : > { %10848 = vst.msk [vmem:[#allocation6 + $0x20] sm:$0xff] %vm18425_vm6, %v10844_v32  ;;  %vm10931_vm6 = vcmask 796377  }
0x11ab   : > { %v10841_v2 = vld [vmem:[#allocation5 + $0x70] sm:$0xff] }
0x11ac   : > { %v10837_v1 = vld [vmem:[#allocation5 + $0x60] sm:$0xff] }
0x11ad   : > { %v10845_v45 = vmax.f32 %v10837_v1, %v10841_v2 }
0x11af   : > { %10849 = vst.msk [vmem:[#allocation6 + $0x30] sm:$0xff] %vm18426_vm5, %v10845_v45  ;;  %vm10936_vm5 = vcmask 854802  }
0x11b1   : > { %v10852_v29 = vld [vmem:[#allocation6 + $0x20] ss:$2 sm:$0xf]  ;;  %v10856_v46 = vld [vmem:[#allocation6 + $0x21] ss:$2 sm:$0xf] }
0x11b2   : > { %v10860_v18 = vmax.f32 %v10852_v29, %v10856_v46 }
0x11b4   : > { %10907 = vrot.lane.b32.xlu0 %v10860_v18, %s12342_s20  ;;  %10902 = vrot.lane.b32.xlu1 %v10860_v18, %s18398_s3  ;;  %s12344_s3 = smov 77  }
0x11b6   : > { %v10853_v56 = vld [vmem:[#allocation6 + $0x30] ss:$2 sm:$0xf]  ;;  %v10857_v44 = vld [vmem:[#allocation6 + $0x31] ss:$2 sm:$0xf] }
0x11b7   : > { %v10861_v48 = vmax.f32 %v10853_v56, %v10857_v44 }
0x11b8   : > { %10917 = vrot.lane.b32.xlu0 %v10860_v18, %s12344_s3  ;;  %10912 = vrot.lane.b32.xlu1 %v10860_v18, %s12333_s19  ;;  %s594_s19 = scalar_lea.vmem [#allocation8], %s593_s18 }
0x11bc   : > { %10928 = vrot.lane.b32.xlu0 %v10861_v48, %s12345_s26  ;;  %10923 = vrot.lane.b32.xlu1 %v10861_v48, %s18397_s29  ;;  %s18430_s26 = sld [smem:[#allocation24_spill]]  ;;  %s11126_s29 = sshll.u32 %s594_s19, 4  ;;  %s18243_s29 = int_to_ptr.vmem [resolvable:$true] %s11126_s29 }
0x11bd   : > { %s12239_s28 = scalar_lea.vmem %s18243_s29, 16 }
0x11be   : > { %p12240_p11 = scmp.ne.s32.totalorder %s18243_s29, %s12239_s28 }
0x11c0   : > { %10938 = vrot.lane.b32.xlu0 %v10861_v48, %s12346_s16  ;;  %10933 = vrot.lane.b32.xlu1 %v10861_v48, %s12336_s27  ;;  %s11354_s16 = sshll.u32 %s12469_s1, 4  ;;  %p12241_p12 = pnand %p12240_p11, %p12486_p5 }
0x11c1   : > { %s18241_s20 = scalar_lea.hbm %s18431_s22, %s11354_s16  ;;  %s12347_s1 = smov [#allocation8]  }
0x11c2   : > { %p12242_p13 = pneg %p12241_p12  ;;  %s12243_s24 = sshll.u32 %s12347_s1, 4  ;;  %s12244_s24 = int_to_ptr.vmem [resolvable:$false] %s12243_s24 }
0x11c3   : > { %s12245_s25 = scalar_lea.vmem %s12244_s24, 32  ;;  %p12246_p0 = scmp.lt.s32.totalorder %s18243_s29, %s12244_s24 }
0x11c4   : > { %p12247_p1 = scmp.lt.s32.totalorder %s12245_s25, %s12239_s28 }
0x11c6   : > { %p12248_p2 = por %p12247_p1, %p12246_p0 }
0x11c8   : > { %p12249_p3 = pnand %p12248_p2, %p12242_p13 }
0x11db   : > { %v10871_v52 = vpop.permute.xlu1 %10870  ;;  %v10866_v59 = vpop.permute.xlu0 %10865 }
0x11dc   : > { %10869 = vst.msk [vmem:[#allocation7 - $0x1] sm:$0x2] %vm10868_vm4, %v10866_v59  ;;  %vm10941_vm4 = vcmask 913227  }
0x11dd   : > { %10874 = vst.msk [vmem:[#allocation7 - $0x2] sm:$0x4] %vm10873_vm0, %v10871_v52 }
0x11df   : > { %v10876_v55 = vpop.permute.xlu0 %10875 }
0x11e0   : > { %10879 = vst.msk [vmem:[#allocation7 - $0x3] sm:$0x8] %vm10878_vm7, %v10876_v55 }
0x1201   : > { %v10882_v42 = vpop.permute.xlu1 %10881  ;;  %v10887_v20 = vpop.permute.xlu0 %10886 }
0x1202   : > { %10885 = vst.msk [vmem:[#allocation7] sm:$0x1] %vm10884_vm10, %v10882_v42 }
0x1203   : > { %10890 = vst.msk [vmem:[#allocation7 - $0x1] sm:$0x2] %vm10889_vm2, %v10887_v20 }
0x1205   : > { %v10892_v50 = vpop.permute.xlu1 %10891  ;;  %v10897_v62 = vpop.permute.xlu0 %10896 }
0x1206   : > { %10895 = vst.msk [vmem:[#allocation7 - $0x2] sm:$0x4] %vm10894_vm14, %v10892_v50 }
0x1207   : > { %10900 = vst.msk [vmem:[#allocation7 - $0x3] sm:$0x8] %vm10899_vm9, %v10897_v62 }
0x1226   : > { %v10903_v31 = vpop.permute.xlu1 %10902  ;;  %v10908_v40 = vpop.permute.xlu0 %10907 }
0x1227   : > { %10906 = vst.msk [vmem:[#allocation7] sm:$0x1] %vm10905_vm1, %v10903_v31 }
0x1228   : > { %10911 = vst.msk [vmem:[#allocation7 - $0x1] sm:$0x2] %vm10910_vm8, %v10908_v40 }
0x122a   : > { %v10913_v58 = vpop.permute.xlu1 %10912  ;;  %v10918_v4 = vpop.permute.xlu0 %10917 }
0x122b   : > { %10916 = vst.msk [vmem:[#allocation7 - $0x2] sm:$0x4] %vm10915_vm3, %v10913_v58 }
0x122c   : > { %10921 = vst.msk [vmem:[#allocation7 - $0x3] sm:$0x8] %vm10920_vm15, %v10918_v4 }
0x122e   : > { %v10924_v16 = vpop.permute.xlu1 %10923  ;;  %v10929_v54 = vpop.permute.xlu0 %10928 }
0x122f   : > { %10927 = vst.msk [vmem:[#allocation7] sm:$0x1] %vm10926_vm13, %v10924_v16 }
0x1230   : > { %10932 = vst.msk [vmem:[#allocation7 - $0x1] sm:$0x2] %vm10931_vm6, %v10929_v54 }
0x1232   : > { %v10934_v38 = vpop.permute.xlu1 %10933  ;;  %v10939_v17 = vpop.permute.xlu0 %10938 }
0x1233   : > { %10937 = vst.msk [vmem:[#allocation7 - $0x2] sm:$0x4] %vm10936_vm5, %v10934_v38 }
0x1234   : > { %10942 = vst.msk [vmem:[#allocation7 - $0x3] sm:$0x8] %vm10941_vm4, %v10939_v17 }
0x123b   : > { %v10943_v6 = vld [vmem:[#allocation7] sm:$0x1] }
0x123c   : > { %11982 = vmatmul.mubr.msk.f32.vlgmr.msra.gmra.mrb[72].mxu1 %vm10653_vm11, %v10943_v6  ;;  %vm18428_vm11 = vcmask 261120  }
0x123d   : > { %12150 = vmatpush3.bf16.msra.mxu1 %v12149_v27  ;;  %11992 = vmatprep.mubr.msk.f32.mxu1 %vm12343_vm12, %v12303_v0  ;;  %vm11111_vm12 = vcmask 122880  }
0x123e   : > { %12151 = vmatprep.subr.bf16.mxu1 %v12339_v28  ;;  %v11037_v28 = vld [vmem:[%s18430_s26] sm:$0x1] }
0x1241   : > { %12153 = vmatpush3.bf16.msra.mxu1 %v12152_v51 }
0x130f   : > { %v11028_v61 = vpop.f32.mrb[72].mxu1 }
0x1310   : > { %v11029_v14 = vadd.f32 %v11028_v61, %v10958_v30  ;;  %v11983_v60 = vpop.f32.mrb[73].mxu1 }
0x1312   : > { %v11032_v0 = vmax.f32 %v11029_v14, 0.0 }
0x1314   : > { %11993 = vmatmul.mubr.msk.f32.vlgmr.msra.gmra.mrb[74].mxu1 %vm18428_vm11, %v11032_v0 }
0x13e7   : > { %v11107_v11 = vpop.f32.mrb[74].mxu1 }
0x13e8   : > { %v11108_v8 = vadd.f32 %v11107_v11, %v11037_v28  ;;  %v11994_v47 = vpop.f32.mrb[75].mxu1 }
0x13ea   : > { %11112 = vst.msk [vmem:[%s594_s19] sm:$0x1] %vm11111_vm12, %v11108_v8 }
0x13eb   : > { %12252 = shalt.err (!%p12249_p3)
}
0x13ec   : > { %s12253_s21 = scalar_lea.hbm %s18241_s20, 16  ;;  %s12257_s3 = scalar_lea.hbm %s18431_s22, 32 }
0x13ed   : > { %p12254_p4 = scmp.ne.s32.totalorder %s18241_s20, %s12253_s21  ;;  %p12258_p9 = scmp.lt.u32.totalorder %s18241_s20, %s18431_s22 }
0x13ee   : > { %p12259_p10 = scmp.lt.u32.totalorder %s12257_s3, %s12253_s21  ;;  %p12261_p12 = scmp.lt.u32.totalorder %s12253_s21, %s18241_s20 }
0x13ef   : > { %p12255_p7 = pnand %p12254_p4, %p12486_p5 }
0x13f0   : > { %p12260_p11 = por %p12259_p10, %p12258_p9 }
0x13f1   : > { %p12256_p8 = pneg %p12255_p7 }
0x13f2   : > { %p12262_p13 = por %p12261_p12, %p12260_p11 }
0x13f4   : > { %p12263_p0 = pnand %p12262_p13, %p12256_p8 }
0x13f6   : > { %12266 = shalt.err (!%p12263_p0)
}
0x13f7   : > { %12154 = dma.vmem_to_hbm [thread:$0]  (%p12486_p5), %s18243_s29, 16, %s18241_s20, %s11114_s23  }
0x13f8 PF: > { %s18432_s19 = sld [smem:[#allocation13_spill]]  ;;  %s18433_s27 = sld [smem:[#allocation11_spill]] }
0x13fe   : > { %p12160_p1 = scmp.ge.s32.totalorder %s18432_s19, 2  ;;  %s11138_s28 = sand.u32 1, %s18433_s27  }
0x13ff   : > { %s11139_s1 = scalar_lea.sflag [#allocation9], %s11138_s28 }
0x1400   : > { %p12157_p2 = pnand %p12160_p1, %p12490_p6 }
0x1402   : > { %12284 = dma.done.wait (!%p12157_p2), %s11139_s1, 16  }
0x1403   : > { %12286 = vsyncadd (!%p12157_p2), %s11139_s1, 4294967280  ;;  %s18435_s21 = sld [smem:[#allocation14_spill]]  ;;  %s18436_s24 = sld [smem:[#allocation12_spill]] }
0x1404   : > { %s18437_s20 = sld [smem:[#allocation15_spill]]  ;;  %s18438_s0 = smov %s12293_s30 }
0x1409   : > { %p29_p3 = scmp.ge.s32.totalorder %s18435_s21, 4   ;;  %s18439_s30 = smov %s18436_s24 }
0x140b   :  { %31 = sbr.rel (!%p29_p3) target bundleno = 12 (0xc), region = 153 }
0x1412   :  { %11143 = vsyncpa [#allocation9], 1 }
0x1413   :  { %11145 = vsyncpa [#allocation9 + $0x1], 1 }

</bundles_post_ra>
